<compile_context>
chip_gen: v5e
topology: v5e:2x2
jax: 0.10.0
libtpu: 0.0.40
codegen_flags: <defaults>
</compile_context>

<pallas_src>
import math
from functools import partial

import numpy as np

import jax
import jax.numpy as jnp
from jax.experimental import pallas as pl
from jax.experimental.pallas import tpu as pltpu

# ----------------------------- model hyper-params -----------------------------
HIDDEN = 128
NUM_HEADS = 4
HEAD_DIM = HIDDEN // NUM_HEADS
FFN = 256
VOCAB = 512
NUM_LAYERS = 2
OBJ_FEAT = 256          # stand-in for the 2048-dim precomputed FastRCNN features
IMG_FINAL = 128         # config.NETWORK.IMAGE_FINAL_DIM
MAX_POS = 256

CLS_ID, PAD_ID, SEP_ID, MASK_ID, STOP_ID = 101, 0, 102, 103, 105

LN_EPS = 1e-12


def _vmem_spec(shape):
    """Full-array VMEM block for a grid=(1,) pallas_call."""
    n = len(shape)
    return pl.BlockSpec(shape, lambda i, _n=n: (0,) * _n)


def _ln_f32(x, g, b, eps=LN_EPS):
    """LayerNorm over the last axis, f32 math (used inside kernels)."""
    mu = jnp.mean(x, axis=-1, keepdims=True)
    var = jnp.mean(jnp.square(x - mu), axis=-1, keepdims=True)
    return (x - mu) * jax.lax.rsqrt(var + eps) * g + b


# ----------------------------- visual prep kernel (runs once) -----------------
def _visual_prep_kernel(bf_ref, imgw_ref, imgb_ref, vtw_ref, vtb_ref,
                        vow_ref, vob_ref, tvis_ref, ovis_ref):
    """FastRCNN(precomputed) Linear+ReLU, then the two visual->hidden 1x1 projections."""
    x = bf_ref[...].astype(jnp.float32)
    rep = jnp.dot(x, imgw_ref[...], preferred_element_type=jnp.float32) + imgb_ref[...]
    rep = jnp.maximum(rep, 0.0)
    tvis = jnp.dot(rep, vtw_ref[...], preferred_element_type=jnp.float32) + vtb_ref[...]
    ovis = jnp.dot(rep, vow_ref[...], preferred_element_type=jnp.float32) + vob_ref[...]
    tvis_ref[...] = tvis.astype(tvis_ref.dtype)
    ovis_ref[...] = ovis.astype(ovis_ref.dtype)


def visual_prep(box_features_2d, p):
    """box_features_2d: [B*O, OBJ_FEAT] -> (tvis [B*O, H], ovis [B*O, H])."""
    M, F = box_features_2d.shape
    Mp = max(8, ((M + 7) // 8) * 8)
    x = box_features_2d
    if Mp != M:
        x = jnp.pad(x, ((0, Mp - M), (0, 0)))

    inputs = (x, p['img_w'], p['img_b'], p['vis_text_w'], p['vis_text_b'],
              p['vis_obj_w'], p['vis_obj_b'])
    tvis, ovis = pl.pallas_call(
        _visual_prep_kernel,
        out_shape=(jax.ShapeDtypeStruct((Mp, HIDDEN), jnp.float32),
                   jax.ShapeDtypeStruct((Mp, HIDDEN), jnp.float32)),
        grid_spec=pltpu.PrefetchScalarGridSpec(
            num_scalar_prefetch=0, grid=(1,),
            in_specs=[_vmem_spec(a.shape) for a in inputs],
            out_specs=[_vmem_spec((Mp, HIDDEN)), _vmem_spec((Mp, HIDDEN))]),
        compiler_params=pltpu.CompilerParams(dimension_semantics=("arbitrary",)),
    )(*inputs)
    return tvis[:M], ovis[:M]


# ----------------------------- fused per-step VL-BERT kernel ------------------
def _fused_step_kernel(h0_ref, bias_ref, sel_ref,
                       wqkv_ref, bqkv_ref, wo_ref, bo_ref,
                       ln1g_ref, ln1b_ref, wff1_ref, bff1_ref,
                       wff2_ref, bff2_ref, ln2g_ref, ln2b_ref,
                       embg_ref, embb_ref,
                       trw_ref, trb_ref, mlng_ref, mlnb_ref,
                       decw_ref, decb_ref,
                       out_ref, *, B, S, L):
    """Embedding LN -> L transformer layers -> [MASK]-row gather -> MLM head.

    h0:   [B*S, H]  pre-LN input embeddings (text ++ objects, batch-major rows)
    bias: [B, 1, S] additive key mask per batch element
    sel:  [B, B*S]  one-hot row selector for the per-batch [MASK] position
    out:  [B, V]    MLM logits at the [MASK] row only
    """
    f32, bf16 = jnp.float32, jnp.bfloat16
    H, NH, Dh = HIDDEN, NUM_HEADS, HEAD_DIM
    scale = 1.0 / math.sqrt(Dh)

    x = h0_ref[...].astype(f32)                                   # [BS, H]
    h = _ln_f32(x, embg_ref[...], embb_ref[...])
    bias_all = bias_ref[...].astype(f32)                          # [B, 1, S]

    for l in range(L):
        # one lane-dense fused QKV matmul: [BS,128] @ [128,384]
        qkv = (jnp.dot(h.astype(bf16), wqkv_ref[l],
                       preferred_element_type=f32) + bqkv_ref[l])  # [BS, 3H]

        ctx_rows = []
        for b in range(B):
            kbias = bias_all[b]                                    # [1, S]
            r0 = b * S
            heads = []
            for hh in range(NH):
                q = qkv[r0:r0 + S, hh * Dh:(hh + 1) * Dh] * scale
                k = qkv[r0:r0 + S, H + hh * Dh:H + (hh + 1) * Dh]
                v = qkv[r0:r0 + S, 2 * H + hh * Dh:2 * H + (hh + 1) * Dh]
                s = jax.lax.dot_general(q, k, (((1,), (1,)), ((), ())),
                                        preferred_element_type=f32) + kbias
                m = jnp.max(s, axis=-1, keepdims=True)
                p = jnp.exp(s - m)
                denom = jnp.sum(p, axis=-1, keepdims=True)
                # exact normalization (argmax tie-stability during generation)
                ctx = jnp.dot(p, v, preferred_element_type=f32) / denom
                heads.append(ctx)                                  # [S, Dh]
            ctx_rows.append(jnp.concatenate(heads, axis=-1))       # [S, H] lane-dense
        ctx_all = jnp.concatenate(ctx_rows, axis=0)                # [BS, H]

        # single fused output projection over all heads
        attn = (jnp.dot(ctx_all.astype(bf16), wo_ref[l],
                        preferred_element_type=f32) + bo_ref[l])
        h1 = _ln_f32(h + attn, ln1g_ref[l], ln1b_ref[l])

        # TODO(synk): reference BERT uses exact erf GELU; tanh approximation here.
        ff = jax.nn.gelu(jnp.dot(h1.astype(bf16), wff1_ref[l],
                                 preferred_element_type=f32) + bff1_ref[l])
        ff = jnp.dot(ff.astype(bf16), wff2_ref[l],
                     preferred_element_type=f32) + bff2_ref[l]
        h = _ln_f32(h1 + ff, ln2g_ref[l], ln2b_ref[l])

    # gather the [MASK] row per batch element with a tiny one-hot matmul
    xm = jnp.dot(sel_ref[...], h, preferred_element_type=f32)      # [B, H]

    # fused MLM head on the gathered rows only
    t = jnp.dot(xm.astype(bf16), trw_ref[...],
                preferred_element_type=f32) + trb_ref[...]
    t = jax.nn.gelu(t)
    t = _ln_f32(t, mlng_ref[...], mlnb_ref[...])
    logits = jnp.dot(t.astype(bf16), decw_ref[...],
                     preferred_element_type=f32) + decb_ref[...]   # [B, V]
    out_ref[...] = logits.astype(out_ref.dtype)


def fused_vlbert_step(h0, bias, sel, p):
    """One generation-step forward. h0: [B*S, H], bias: [B,1,S], sel: [B, B*S]."""
    B = bias.shape[0]
    S = bias.shape[2]
    V = p['mlm_dec_b'].shape[1]
    L = p['wqkv'].shape[0]

    inputs = (h0, bias, sel,
              p['wqkv'], p['bqkv'], p['wo'], p['bo'],
              p['ln1_g'], p['ln1_b'], p['wff1'], p['bff1'],
              p['wff2'], p['bff2'], p['ln2_g'], p['ln2_b'],
              p['emb_ln_g'], p['emb_ln_b'],
              p['mlm_tr_w'], p['mlm_tr_b'], p['mlm_ln_g'], p['mlm_ln_b'],
              p['mlm_dec_w'], p['mlm_dec_b'])

    return pl.pallas_call(
        partial(_fused_step_kernel, B=B, S=S, L=L),
        out_shape=jax.ShapeDtypeStruct((B, V), jnp.float32),
        grid_spec=pltpu.PrefetchScalarGridSpec(
            num_scalar_prefetch=0, grid=(1,),
            in_specs=[_vmem_spec(a.shape) for a in inputs],
            out_specs=_vmem_spec((B, V))),
        compiler_params=pltpu.CompilerParams(
            dimension_semantics=("arbitrary",),
            vmem_limit_bytes=64 << 20),
        # TODO(synk): at real BERT scale (V~30k) keep the vocab decoder V-tiled
        # (bf16 + pl.Buffered) instead of fully VMEM-resident (v7x: 64 MiB VMEM).
    )(*inputs)


# ----------------------------- param packing (done ONCE, outside the loop) -----
def pack_params(p):
    """Stack per-layer weights on a leading L axis, cast MXU weights to bf16,
    reshape biases / LN params to broadcast-ready 2-D/3-D.  Loop-invariant."""
    L = len(p['layers'])
    bf16 = jnp.bfloat16

    def stk(k, dtype=None):
        a = jnp.stack([ly[k] for ly in p['layers']])
        return a.astype(dtype) if dtype is not None else a

    packed = {
        'word_emb': p['word_emb'],
        'pos_emb': p['pos_emb'],
        'tok_type_emb': p['tok_type_emb'],
        'obj_ling_emb': p['obj_ling_emb'],
        'obj_mask_visual_emb': p['obj_mask_visual_emb'],
        'img_w': p['img_w'], 'img_b': p['img_b'].reshape(1, -1),
        'vis_text_w': p['vis_text_w'], 'vis_text_b': p['vis_text_b'].reshape(1, -1),
        'vis_obj_w': p['vis_obj_w'], 'vis_obj_b': p['vis_obj_b'].reshape(1, -1),
        'emb_ln_g': p['emb_ln_g'].reshape(1, -1), 'emb_ln_b': p['emb_ln_b'].reshape(1, -1),
        'wqkv': stk('wqkv', bf16),                         # [L, H, 3H]
        'bqkv': stk('bqkv').reshape(L, 1, -1),             # [L, 1, 3H]
        'wo': stk('wo', bf16),                             # [L, H, H]
        'bo': stk('bo').reshape(L, 1, -1),
        'ln1_g': stk('ln1_g').reshape(L, 1, -1), 'ln1_b': stk('ln1_b').reshape(L, 1, -1),
        'wff1': stk('wff1', bf16), 'bff1': stk('bff1').reshape(L, 1, -1),
        'wff2': stk('wff2', bf16), 'bff2': stk('bff2').reshape(L, 1, -1),
        'ln2_g': stk('ln2_g').reshape(L, 1, -1), 'ln2_b': stk('ln2_b').reshape(L, 1, -1),
        'mlm_tr_w': p['mlm_tr_w'].astype(bf16), 'mlm_tr_b': p['mlm_tr_b'].reshape(1, -1),
        'mlm_ln_g': p['mlm_ln_g'].reshape(1, -1), 'mlm_ln_b': p['mlm_ln_b'].reshape(1, -1),
        'mlm_dec_w': p['mlm_dec_w'].astype(bf16), 'mlm_dec_b': p['mlm_dec_b'].reshape(1, -1),
    }
    return packed


# ----------------------------- jitted device forward ---------------------------
@partial(jax.jit, static_argnums=(0, 1))
def _device_forward(num_steps, t0, p, boxes, text, mlm_labels, mvrc_ops, im_info):
    """Whole generation loop on device, static shapes, compiled once."""
    B, O = boxes.shape[0], boxes.shape[1]
    T_total = text.shape[1]
    S = T_total + O
    V = p['mlm_dec_b'].shape[1]

    box_mask = boxes[:, :, 0] > -1.5
    mask_obj = box_mask.astype(jnp.float32)

    # IMAGE_FEAT_PRECOMPUTED path: features live in boxes[:, :, 4:]
    # TODO(synk): full FastRCNN conv backbone / ROIAlign path not implemented.
    box_features = boxes[:, :, 4:]
    box_features = jnp.where((mvrc_ops == 1)[..., None],
                             p['obj_mask_visual_emb'][0], box_features)

    # loop-invariant visual projections (one pallas_call, run once)
    tvis_all, ovis = visual_prep(box_features.reshape(B * O, -1), p)
    ovis = ovis.reshape(B, O, HIDDEN)
    # text_tags are all zero -> every text token gets object 0's visual embedding
    tvis_row = tvis_all.reshape(B, O, HIDDEN)[:, 0, :]                 # [B, H]

    # loop-invariant embedding bases
    text_emb_base = (tvis_row[:, None, :]
                     + p['pos_emb'][:T_total][None]
                     + p['tok_type_emb'][0][None, None, :])            # [B, T, H]
    obj_emb_base = (p['obj_ling_emb'][0][None, None, :]
                    + ovis
                    + p['tok_type_emb'][1][None, None, :])             # [B, O, H]

    def step(i, carry):
        text_ids, labels, stop, gen_tokens, _ = carry

        # embeddings (cheap gathers/adds left to XLA)
        word = p['word_emb'][text_ids]                                 # [B, T, H]
        text_emb = word + text_emb_base
        pos_o = jax.lax.dynamic_slice_in_dim(p['pos_emb'], t0 + i, O, axis=0)[None]
        obj_emb = obj_emb_base + pos_o
        h0 = jnp.concatenate([text_emb, obj_emb], axis=1).reshape(B * S, HIDDEN)

        text_mask = (text_ids > 0).astype(jnp.float32)
        mask = jnp.concatenate([text_mask, mask_obj], axis=1)          # [B, S]
        bias = ((1.0 - mask) * -1e9)[:, None, :]                       # [B, 1, S]

        mask_pos = jnp.argmax((labels == MASK_ID).astype(jnp.int32), axis=1)  # [B]
        sel = jax.nn.one_hot(jnp.arange(B) * S + mask_pos, B * S,
                             dtype=jnp.float32)                         # [B, B*S]

        # ONE fused pallas_call: embedding LN -> layers -> [MASK]-row MLM logits
        mask_logits = fused_vlbert_step(h0, bias, sel, p)              # [B, V]
        answers = jnp.argmax(mask_logits, axis=-1).astype(text_ids.dtype)

        r = jnp.arange(B)
        # new labels: all -1 except the new [MASK] position (always in-bounds:
        # buffer was pre-padded with num_steps + 4 slack)
        new_labels = jnp.full_like(labels, -1).at[r, mask_pos + 1].set(MASK_ID)

        # write answer, then [MASK], [PAD], [SEP] into the static buffer
        new_text = text_ids.at[r, mask_pos].set(answers)
        new_text = new_text.at[r, mask_pos + 1].set(MASK_ID)
        new_text = new_text.at[r, mask_pos + 2].set(PAD_ID)
        new_text = new_text.at[r, mask_pos + 3].set(SEP_ID)

        active = jnp.logical_not(stop)
        is_stop = answers == STOP_ID
        gen_tokens = gen_tokens.at[:, i].set(
            jnp.where(active & jnp.logical_not(is_stop),
                      answers.astype(jnp.int32), -1))
        stop = jnp.logical_or(stop, is_stop)
        return (new_text, new_labels, stop, gen_tokens, mask_logits)

    init = (text, mlm_labels,
            jnp.zeros((B,), jnp.bool_),
            jnp.full((B, num_steps), -1, jnp.int32),
            jnp.zeros((B, V), jnp.float32))
    _, _, _, gen_tokens, last_logits = jax.lax.fori_loop(0, num_steps, step, init)

    zero = jnp.zeros((), im_info.dtype)
    return gen_tokens, last_logits, zero, zero, zero


# ----------------------------- top-level forward -------------------------------
def bertgen_generate_mmt_forward(params, image, boxes, im_info, text,
                                 relationship_label, mlm_labels, mvrc_ops,
                                 mvrc_labels, max_gen_steps=2):
    del image, relationship_label, mvrc_labels  # unused (precomputed feats, losses off)
    B, O = boxes.shape[0], boxes.shape[1]
    T0 = text.shape[1]
    num_steps = max_gen_steps + 1

    # pack / relayout / bf16-cast weights ONCE (outside the generation loop & jit)
    packed = pack_params(params)

    # Statically pad the text buffers once so every generation step runs with
    # identical shapes (single compile, no host syncs in the loop).  Enough slack
    # for the mask_pos+3 writes; rounded so S = T_total + O is a multiple of 8.
    T_total = T0 + num_steps + 4
    T_total += (-(T_total + O)) % 8

    text_pad = jnp.zeros((B, T_total), text.dtype).at[:, :T0].set(text)
    labels_pad = jnp.full((B, T_total), -1, mlm_labels.dtype).at[:, :T0].set(mlm_labels)

    gen_tokens, last_logits, rel_loss, mlm_loss, mvrc_loss = _device_forward(
        num_steps, T0, packed, boxes, text_pad, labels_pad, mvrc_ops, im_info)

    # single host transfer at the end to build the python token lists
    gen_host = np.asarray(jax.device_get(gen_tokens))
    generated = [[int(t) for t in row if t >= 0] for row in gen_host]

    # TODO(synk): BertTokenizer ids->string detokenization has no TPU equivalent;
    # we return generated token ids instead of decoded sentences.
    outputs = {
        'relationship_logits': None, 'relationship_label': None,
        'mlm_logits': None, 'mlm_label': None,
        'mvrc_logits': None, 'mvrc_label': None,
        'relationship_loss': rel_loss,
        'mlm_loss': mlm_loss,
        'mvrc_loss': mvrc_loss,
        'generated_token_ids': generated,
        'last_mlm_mask_logits': last_logits,
    }
    loss = rel_loss + mlm_loss + mvrc_loss
    return outputs, loss


# ----------------------------- parameter init ----------------------------------
def init_params(key, std=0.02):
    ks = iter(jax.random.split(key, 32))

    def nrm(shape):
        return jax.random.normal(next(ks), shape, jnp.float32) * std

    p = {
        'word_emb': nrm((VOCAB, HIDDEN)),
        'pos_emb': nrm((MAX_POS, HIDDEN)),
        'tok_type_emb': nrm((2, HIDDEN)),
        'emb_ln_g': jnp.ones((HIDDEN,), jnp.float32),
        'emb_ln_b': jnp.zeros((HIDDEN,), jnp.float32),
        'vis_text_w': nrm((IMG_FINAL, HIDDEN)),
        'vis_text_b': jnp.zeros((HIDDEN,), jnp.float32),
        'vis_obj_w': nrm((IMG_FINAL, HIDDEN)),
        'vis_obj_b': jnp.zeros((HIDDEN,), jnp.float32),
        'img_w': nrm((OBJ_FEAT, IMG_FINAL)),
        'img_b': jnp.zeros((IMG_FINAL,), jnp.float32),
        'obj_ling_emb': nrm((1, HIDDEN)),                              # object_linguistic_embeddings
        'obj_mask_visual_emb': jnp.zeros((1, OBJ_FEAT), jnp.float32),  # filled with 0.0
        'aux_text_visual_emb': nrm((1, HIDDEN)),                       # unused in this forward
        'mlm_tr_w': nrm((HIDDEN, HIDDEN)),
        'mlm_tr_b': jnp.zeros((HIDDEN,), jnp.float32),
        'mlm_ln_g': jnp.ones((HIDDEN,), jnp.float32),
        'mlm_ln_b': jnp.zeros((HIDDEN,), jnp.float32),
        'mlm_dec_w': nrm((HIDDEN, VOCAB)),
        'mlm_dec_b': jnp.zeros((VOCAB,), jnp.float32),
        'layers': [],
    }
    for _ in range(NUM_LAYERS):
        p['layers'].append({
            'wqkv': nrm((HIDDEN, 3 * HIDDEN)), 'bqkv': jnp.zeros((3 * HIDDEN,), jnp.float32),
            'wo': nrm((HIDDEN, HIDDEN)), 'bo': jnp.zeros((HIDDEN,), jnp.float32),
            'ln1_g': jnp.ones((HIDDEN,), jnp.float32), 'ln1_b': jnp.zeros((HIDDEN,), jnp.float32),
            'wff1': nrm((HIDDEN, FFN)), 'bff1': jnp.zeros((FFN,), jnp.float32),
            'wff2': nrm((FFN, HIDDEN)), 'bff2': jnp.zeros((HIDDEN,), jnp.float32),
            'ln2_g': jnp.ones((HIDDEN,), jnp.float32), 'ln2_b': jnp.zeros((HIDDEN,), jnp.float32),
        })
    return p


# ----------------------------- main ---------------------------------------------
if __name__ == "__main__":
    key = jax.random.PRNGKey(0)
    pkey, dkey = jax.random.split(key)
    params = init_params(pkey)

    B, O, T0 = 2, 4, 8
    k1, k2, k3 = jax.random.split(dkey, 3)
    image = jax.random.normal(k1, (B, 3, 16, 16), jnp.float32)        # NCHW, unused (precomputed feats)
    box_coords = jnp.abs(jax.random.normal(k2, (B, O, 4), jnp.float32)) + 0.5  # > -1.5 => all valid
    box_feats = jax.random.normal(k3, (B, O, OBJ_FEAT), jnp.float32)
    boxes = jnp.concatenate([box_coords, box_feats], axis=-1)         # [B, O, 4 + OBJ_FEAT]
    im_info = jnp.array([[16.0, 16.0, 1.0]] * B, jnp.float32)

    text = jnp.array([[CLS_ID, 7, 9, MASK_ID, SEP_ID, 0, 0, 0],
                      [CLS_ID, 11, 13, MASK_ID, SEP_ID, 0, 0, 0]], jnp.int32)
    relationship_label = jnp.zeros((B,), jnp.int32)
    mlm_labels = jnp.full((B, T0), -1, jnp.int32).at[:, 3].set(MASK_ID)
    mvrc_ops = jnp.zeros((B, O), jnp.int32).at[0, 1].set(1)
    mvrc_labels = jnp.zeros((B, O, VOCAB), jnp.float32)

    outputs, loss = bertgen_generate_mmt_forward(
        params, image, boxes, im_info, text, relationship_label,
        mlm_labels, mvrc_ops, mvrc_labels, max_gen_steps=2)

    jax.block_until_ready(outputs['last_mlm_mask_logits'])
    jax.block_until_ready(loss)
    print("KERNEL_OK")
</pallas_src>

<mosaic_0001>
module attributes {stable_mosaic.version = 11 : i64} {
  func.func @_visual_prep_kernel(%arg0: i32, %arg1: memref<8x256xf32, #tpu.memory_space<vmem>>, %arg2: memref<256x128xf32, #tpu.memory_space<vmem>>, %arg3: memref<1x128xf32, #tpu.memory_space<vmem>>, %arg4: memref<128x128xf32, #tpu.memory_space<vmem>>, %arg5: memref<1x128xf32, #tpu.memory_space<vmem>>, %arg6: memref<128x128xf32, #tpu.memory_space<vmem>>, %arg7: memref<1x128xf32, #tpu.memory_space<vmem>>, %arg8: memref<8x128xf32, #tpu.memory_space<vmem>>, %arg9: memref<8x128xf32, #tpu.memory_space<vmem>>) attributes {dimension_semantics = [#tpu.dimension_semantics<arbitrary>], iteration_bounds = array<i64: 1>, scalar_prefetch = 0 : i64, scratch_operands = 0 : i64, tpu.core_type = #tpu.core_type<tc>, window_params = [{pipeline_mode = #tpu.pipeline_mode<synchronous>, transform_indices = @transform_0, window_bounds = array<i64: 8, 256>}, {pipeline_mode = #tpu.pipeline_mode<synchronous>, transform_indices = @transform_1, window_bounds = array<i64: 256, 128>}, {pipeline_mode = #tpu.pipeline_mode<synchronous>, transform_indices = @transform_2, window_bounds = array<i64: 1, 128>}, {pipeline_mode = #tpu.pipeline_mode<synchronous>, transform_indices = @transform_3, window_bounds = array<i64: 128, 128>}, {pipeline_mode = #tpu.pipeline_mode<synchronous>, transform_indices = @transform_4, window_bounds = array<i64: 1, 128>}, {pipeline_mode = #tpu.pipeline_mode<synchronous>, transform_indices = @transform_5, window_bounds = array<i64: 128, 128>}, {pipeline_mode = #tpu.pipeline_mode<synchronous>, transform_indices = @transform_6, window_bounds = array<i64: 1, 128>}, {pipeline_mode = #tpu.pipeline_mode<synchronous>, transform_indices = @transform_7, window_bounds = array<i64: 8, 128>}, {pipeline_mode = #tpu.pipeline_mode<synchronous>, transform_indices = @transform_8, window_bounds = array<i64: 8, 128>}]} {
    %c0 = arith.constant 0 : index
    %c0_0 = arith.constant 0 : index
    %0 = vector.load %arg1[%c0, %c0_0] : memref<8x256xf32, #tpu.memory_space<vmem>>, vector<8x256xf32>
    %c0_1 = arith.constant 0 : index
    %c0_2 = arith.constant 0 : index
    %1 = vector.load %arg2[%c0_1, %c0_2] : memref<256x128xf32, #tpu.memory_space<vmem>>, vector<256x128xf32>
    %cst = arith.constant dense<0.000000e+00> : vector<8x128xf32>
    %2 = tpu.matmul %0, %1, %cst {dimension_numbers = #tpu.dot_dimension_numbers<[1], [0], [0], [1], [0, 0, 1, 1], [], []>} : vector<8x256xf32>, vector<256x128xf32>, vector<8x128xf32> -> vector<8x128xf32>
    %c0_3 = arith.constant 0 : index
    %c0_4 = arith.constant 0 : index
    %3 = vector.load %arg3[%c0_3, %c0_4] : memref<1x128xf32, #tpu.memory_space<vmem>>, vector<1x128xf32>
    %4 = vector.broadcast %3 : vector<1x128xf32> to vector<8x128xf32>
    %5 = arith.addf %2, %4 : vector<8x128xf32>
    %cst_5 = arith.constant 0.000000e+00 : f32
    %6 = vector.broadcast %cst_5 : f32 to vector<8x128xf32>
    %7 = arith.maximumf %5, %6 : vector<8x128xf32>
    %c0_6 = arith.constant 0 : index
    %c0_7 = arith.constant 0 : index
    %8 = vector.load %arg4[%c0_6, %c0_7] : memref<128x128xf32, #tpu.memory_space<vmem>>, vector<128x128xf32>
    %cst_8 = arith.constant dense<0.000000e+00> : vector<8x128xf32>
    %9 = tpu.matmul %7, %8, %cst_8 {dimension_numbers = #tpu.dot_dimension_numbers<[1], [0], [0], [1], [0, 0, 1, 1], [], []>} : vector<8x128xf32>, vector<128x128xf32>, vector<8x128xf32> -> vector<8x128xf32>
    %c0_9 = arith.constant 0 : index
    %c0_10 = arith.constant 0 : index
    %10 = vector.load %arg5[%c0_9, %c0_10] : memref<1x128xf32, #tpu.memory_space<vmem>>, vector<1x128xf32>
    %11 = vector.broadcast %10 : vector<1x128xf32> to vector<8x128xf32>
    %12 = arith.addf %9, %11 : vector<8x128xf32>
    %c0_11 = arith.constant 0 : index
    %c0_12 = arith.constant 0 : index
    %13 = vector.load %arg6[%c0_11, %c0_12] : memref<128x128xf32, #tpu.memory_space<vmem>>, vector<128x128xf32>
    %cst_13 = arith.constant dense<0.000000e+00> : vector<8x128xf32>
    %14 = tpu.matmul %7, %13, %cst_13 {dimension_numbers = #tpu.dot_dimension_numbers<[1], [0], [0], [1], [0, 0, 1, 1], [], []>} : vector<8x128xf32>, vector<128x128xf32>, vector<8x128xf32> -> vector<8x128xf32>
    %c0_14 = arith.constant 0 : index
    %c0_15 = arith.constant 0 : index
    %15 = vector.load %arg7[%c0_14, %c0_15] : memref<1x128xf32, #tpu.memory_space<vmem>>, vector<1x128xf32>
    %16 = vector.broadcast %15 : vector<1x128xf32> to vector<8x128xf32>
    %17 = arith.addf %14, %16 : vector<8x128xf32>
    %c0_16 = arith.constant 0 : index
    %c0_17 = arith.constant 0 : index
    %18 = vector.load %arg8[%c0_16, %c0_17] : memref<8x128xf32, #tpu.memory_space<vmem>>, vector<8x128xf32>
    tpu.vector_store %arg8[%c0_16, %c0_17], %12 {strides = array<i32>} : memref<8x128xf32, #tpu.memory_space<vmem>>, vector<8x128xf32>,
    %c0_18 = arith.constant 0 : index
    %c0_19 = arith.constant 0 : index
    %19 = vector.load %arg9[%c0_18, %c0_19] : memref<8x128xf32, #tpu.memory_space<vmem>>, vector<8x128xf32>
    tpu.vector_store %arg9[%c0_18, %c0_19], %17 {strides = array<i32>} : memref<8x128xf32, #tpu.memory_space<vmem>>, vector<8x128xf32>,
    return
  }
  func.func @transform_0(%arg0: i32) -> (i32, i32) {
    %c0_i32 = arith.constant 0 : i32
    %c0_i32_0 = arith.constant 0 : i32
    %c0_i32_1 = arith.constant 0 : i32
    return %c0_i32, %c0_i32_0 : i32, i32
  }
  func.func @transform_1(%arg0: i32) -> (i32, i32) {
    %c0_i32 = arith.constant 0 : i32
    %c0_i32_0 = arith.constant 0 : i32
    %c0_i32_1 = arith.constant 0 : i32
    return %c0_i32, %c0_i32_0 : i32, i32
  }
  func.func @transform_2(%arg0: i32) -> (i32, i32) {
    %c0_i32 = arith.constant 0 : i32
    %c0_i32_0 = arith.constant 0 : i32
    %c0_i32_1 = arith.constant 0 : i32
    return %c0_i32, %c0_i32_0 : i32, i32
  }
  func.func @transform_3(%arg0: i32) -> (i32, i32) {
    %c0_i32 = arith.constant 0 : i32
    %c0_i32_0 = arith.constant 0 : i32
    %c0_i32_1 = arith.constant 0 : i32
    return %c0_i32, %c0_i32_0 : i32, i32
  }
  func.func @transform_4(%arg0: i32) -> (i32, i32) {
    %c0_i32 = arith.constant 0 : i32
    %c0_i32_0 = arith.constant 0 : i32
    %c0_i32_1 = arith.constant 0 : i32
    return %c0_i32, %c0_i32_0 : i32, i32
  }
  func.func @transform_5(%arg0: i32) -> (i32, i32) {
    %c0_i32 = arith.constant 0 : i32
    %c0_i32_0 = arith.constant 0 : i32
    %c0_i32_1 = arith.constant 0 : i32
    return %c0_i32, %c0_i32_0 : i32, i32
  }
  func.func @transform_6(%arg0: i32) -> (i32, i32) {
    %c0_i32 = arith.constant 0 : i32
    %c0_i32_0 = arith.constant 0 : i32
    %c0_i32_1 = arith.constant 0 : i32
    return %c0_i32, %c0_i32_0 : i32, i32
  }
  func.func @transform_7(%arg0: i32) -> (i32, i32) {
    %c0_i32 = arith.constant 0 : i32
    %c0_i32_0 = arith.constant 0 : i32
    %c0_i32_1 = arith.constant 0 : i32
    return %c0_i32, %c0_i32_0 : i32, i32
  }
  func.func @transform_8(%arg0: i32) -> (i32, i32) {
    %c0_i32 = arith.constant 0 : i32
    %c0_i32_0 = arith.constant 0 : i32
    %c0_i32_1 = arith.constant 0 : i32
    return %c0_i32, %c0_i32_0 : i32, i32
  }
}

module attributes {stable_mosaic.version = 11 : i64} {
  func.func @_fused_step_kernel(%arg0: i32, %arg1: memref<48x128xf32, #tpu.memory_space<vmem>>, %arg2: memref<2x1x24xf32, #tpu.memory_space<vmem>>, %arg3: memref<2x48xf32, #tpu.memory_space<vmem>>, %arg4: memref<2x128x384xbf16, #tpu.memory_space<vmem>>, %arg5: memref<2x1x384xf32, #tpu.memory_space<vmem>>, %arg6: memref<2x128x128xbf16, #tpu.memory_space<vmem>>, %arg7: memref<2x1x128xf32, #tpu.memory_space<vmem>>, %arg8: memref<2x1x128xf32, #tpu.memory_space<vmem>>, %arg9: memref<2x1x128xf32, #tpu.memory_space<vmem>>, %arg10: memref<2x128x256xbf16, #tpu.memory_space<vmem>>, %arg11: memref<2x1x256xf32, #tpu.memory_space<vmem>>, %arg12: memref<2x256x128xbf16, #tpu.memory_space<vmem>>, %arg13: memref<2x1x128xf32, #tpu.memory_space<vmem>>, %arg14: memref<2x1x128xf32, #tpu.memory_space<vmem>>, %arg15: memref<2x1x128xf32, #tpu.memory_space<vmem>>, %arg16: memref<1x128xf32, #tpu.memory_space<vmem>>, %arg17: memref<1x128xf32, #tpu.memory_space<vmem>>, %arg18: memref<128x128xbf16, #tpu.memory_space<vmem>>, %arg19: memref<1x128xf32, #tpu.memory_space<vmem>>, %arg20: memref<1x128xf32, #tpu.memory_space<vmem>>, %arg21: memref<1x128xf32, #tpu.memory_space<vmem>>, %arg22: memref<128x512xbf16, #tpu.memory_space<vmem>>, %arg23: memref<1x512xf32, #tpu.memory_space<vmem>>, %arg24: memref<2x512xf32, #tpu.memory_space<vmem>>) attributes {dimension_semantics = [#tpu.dimension_semantics<arbitrary>], iteration_bounds = array<i64: 1>, scalar_prefetch = 0 : i64, scratch_operands = 0 : i64, tpu.core_type = #tpu.core_type<tc>, window_params = [{pipeline_mode = #tpu.pipeline_mode<synchronous>, transform_indices = @transform_0, window_bounds = array<i64: 48, 128>}, {pipeline_mode = #tpu.pipeline_mode<synchronous>, transform_indices = @transform_1, window_bounds = array<i64: 2, 1, 24>}, {pipeline_mode = #tpu.pipeline_mode<synchronous>, transform_indices = @transform_2, window_bounds = array<i64: 2, 48>}, {pipeline_mode = #tpu.pipeline_mode<synchronous>, transform_indices = @transform_3, window_bounds = array<i64: 2, 128, 384>}, {pipeline_mode = #tpu.pipeline_mode<synchronous>, transform_indices = @transform_4, window_bounds = array<i64: 2, 1, 384>}, {pipeline_mode = #tpu.pipeline_mode<synchronous>, transform_indices = @transform_5, window_bounds = array<i64: 2, 128, 128>}, {pipeline_mode = #tpu.pipeline_mode<synchronous>, transform_indices = @transform_6, window_bounds = array<i64: 2, 1, 128>}, {pipeline_mode = #tpu.pipeline_mode<synchronous>, transform_indices = @transform_7, window_bounds = array<i64: 2, 1, 128>}, {pipeline_mode = #tpu.pipeline_mode<synchronous>, transform_indices = @transform_8, window_bounds = array<i64: 2, 1, 128>}, {pipeline_mode = #tpu.pipeline_mode<synchronous>, transform_indices = @transform_9, window_bounds = array<i64: 2, 128, 256>}, {pipeline_mode = #tpu.pipeline_mode<synchronous>, transform_indices = @transform_10, window_bounds = array<i64: 2, 1, 256>}, {pipeline_mode = #tpu.pipeline_mode<synchronous>, transform_indices = @transform_11, window_bounds = array<i64: 2, 256, 128>}, {pipeline_mode = #tpu.pipeline_mode<synchronous>, transform_indices = @transform_12, window_bounds = array<i64: 2, 1, 128>}, {pipeline_mode = #tpu.pipeline_mode<synchronous>, transform_indices = @transform_13, window_bounds = array<i64: 2, 1, 128>}, {pipeline_mode = #tpu.pipeline_mode<synchronous>, transform_indices = @transform_14, window_bounds = array<i64: 2, 1, 128>}, {pipeline_mode = #tpu.pipeline_mode<synchronous>, transform_indices = @transform_15, window_bounds = array<i64: 1, 128>}, {pipeline_mode = #tpu.pipeline_mode<synchronous>, transform_indices = @transform_16, window_bounds = array<i64: 1, 128>}, {pipeline_mode = #tpu.pipeline_mode<synchronous>, transform_indices = @transform_17, window_bounds = array<i64: 128, 128>}, {pipeline_mode = #tpu.pipeline_mode<synchronous>, transform_indices = @transform_18, window_bounds = array<i64: 1, 128>}, {pipeline_mode = #tpu.pipeline_mode<synchronous>, transform_indices = @transform_19, window_bounds = array<i64: 1, 128>}, {pipeline_mode = #tpu.pipeline_mode<synchronous>, transform_indices = @transform_20, window_bounds = array<i64: 1, 128>}, {pipeline_mode = #tpu.pipeline_mode<synchronous>, transform_indices = @transform_21, window_bounds = array<i64: 128, 512>}, {pipeline_mode = #tpu.pipeline_mode<synchronous>, transform_indices = @transform_22, window_bounds = array<i64: 1, 512>}, {pipeline_mode = #tpu.pipeline_mode<synchronous>, transform_indices = @transform_23, window_bounds = array<i64: 2, 512>}]} {
    %c0 = arith.constant 0 : index
    %c0_0 = arith.constant 0 : index
    %0 = vector.load %arg1[%c0, %c0_0] : memref<48x128xf32, #tpu.memory_space<vmem>>, vector<48x128xf32>
    %c0_1 = arith.constant 0 : index
    %c0_2 = arith.constant 0 : index
    %1 = vector.load %arg16[%c0_1, %c0_2] : memref<1x128xf32, #tpu.memory_space<vmem>>, vector<1x128xf32>
    %c0_3 = arith.constant 0 : index
    %c0_4 = arith.constant 0 : index
    %2 = vector.load %arg17[%c0_3, %c0_4] : memref<1x128xf32, #tpu.memory_space<vmem>>, vector<1x128xf32>
    %cst = arith.constant dense<0.000000e+00> : vector<48xf32>
    %3 = vector.multi_reduction <add>, %0, %cst [1] : vector<48x128xf32> to vector<48xf32>
    %4 = vector.shape_cast %3 : vector<48xf32> to vector<48x1xf32>
    %cst_5 = arith.constant 1.280000e+02 : f32
    %5 = vector.broadcast %cst_5 : f32 to vector<48x1xf32>
    %6 = arith.divf %4, %5 : vector<48x1xf32>
    %7 = vector.broadcast %6 : vector<48x1xf32> to vector<48x128xf32>
    %8 = arith.subf %0, %7 : vector<48x128xf32>
    %9 = arith.mulf %8, %8 : vector<48x128xf32>
    %cst_6 = arith.constant dense<0.000000e+00> : vector<48xf32>
    %10 = vector.multi_reduction <add>, %9, %cst_6 [1] : vector<48x128xf32> to vector<48xf32>
    %11 = vector.shape_cast %10 : vector<48xf32> to vector<48x1xf32>
    %cst_7 = arith.constant 1.280000e+02 : f32
    %12 = vector.broadcast %cst_7 : f32 to vector<48x1xf32>
    %13 = arith.divf %11, %12 : vector<48x1xf32>
    %14 = vector.broadcast %6 : vector<48x1xf32> to vector<48x128xf32>
    %15 = arith.subf %0, %14 : vector<48x128xf32>
    %cst_8 = arith.constant 9.99999996E-13 : f32
    %16 = vector.broadcast %cst_8 : f32 to vector<48x1xf32>
    %17 = arith.addf %13, %16 : vector<48x1xf32>
    %18 = math.rsqrt %17 : vector<48x1xf32>
    %19 = vector.broadcast %18 : vector<48x1xf32> to vector<48x128xf32>
    %20 = arith.mulf %15, %19 : vector<48x128xf32>
    %21 = vector.broadcast %1 : vector<1x128xf32> to vector<48x128xf32>
    %22 = arith.mulf %20, %21 : vector<48x128xf32>
    %23 = vector.broadcast %2 : vector<1x128xf32> to vector<48x128xf32>
    %24 = arith.addf %22, %23 : vector<48x128xf32>
    %c0_9 = arith.constant 0 : index
    %c0_10 = arith.constant 0 : index
    %c0_11 = arith.constant 0 : index
    %25 = vector.load %arg2[%c0_9, %c0_10, %c0_11] : memref<2x1x24xf32, #tpu.memory_space<vmem>>, vector<2x1x24xf32>
    %26 = arith.truncf %24 : vector<48x128xf32> to vector<48x128xbf16>
    %c0_12 = arith.constant 0 : index
    %c0_13 = arith.constant 0 : index
    %c0_14 = arith.constant 0 : index
    %27 = vector.load %arg4[%c0_12, %c0_13, %c0_14] : memref<2x128x384xbf16, #tpu.memory_space<vmem>>, vector<1x128x384xbf16>
    %28 = vector.shape_cast %27 : vector<1x128x384xbf16> to vector<128x384xbf16>
    %cst_15 = arith.constant dense<0.000000e+00> : vector<48x384xf32>
    %29 = tpu.matmul %26, %28, %cst_15 {dimension_numbers = #tpu.dot_dimension_numbers<[1], [0], [0], [1], [0, 0, 1, 1], [], []>} : vector<48x128xbf16>, vector<128x384xbf16>, vector<48x384xf32> -> vector<48x384xf32>
    %c0_16 = arith.constant 0 : index
    %c0_17 = arith.constant 0 : index
    %c0_18 = arith.constant 0 : index
    %30 = vector.load %arg5[%c0_16, %c0_17, %c0_18] : memref<2x1x384xf32, #tpu.memory_space<vmem>>, vector<1x1x384xf32>
    %31 = vector.shape_cast %30 : vector<1x1x384xf32> to vector<1x384xf32>
    %32 = vector.broadcast %31 : vector<1x384xf32> to vector<48x384xf32>
    %33 = arith.addf %29, %32 : vector<48x384xf32>
    %34 = vector.extract_strided_slice %25 {offsets = [0, 0, 0], sizes = [1, 1, 24], strides = [1, 1, 1]} : vector<2x1x24xf32> to vector<1x1x24xf32>
    %35 = vector.shape_cast %34 : vector<1x1x24xf32> to vector<1x24xf32>
    %36 = vector.extract_strided_slice %33 {offsets = [0, 0], sizes = [24, 32], strides = [1, 1]} : vector<48x384xf32> to vector<24x32xf32>
    %cst_19 = arith.constant 0.176776692 : f32
    %37 = vector.broadcast %cst_19 : f32 to vector<24x32xf32>
    %38 = arith.mulf %36, %37 : vector<24x32xf32>
    %39 = vector.extract_strided_slice %33 {offsets = [0, 128], sizes = [24, 32], strides = [1, 1]} : vector<48x384xf32> to vector<24x32xf32>
    %40 = vector.extract_strided_slice %33 {offsets = [0, 256], sizes = [24, 32], strides = [1, 1]} : vector<48x384xf32> to vector<24x32xf32>
    %cst_20 = arith.constant dense<0.000000e+00> : vector<24x24xf32>
    %41 = tpu.matmul %38, %39, %cst_20 {dimension_numbers = #tpu.dot_dimension_numbers<[1], [1], [0], [0], [0, 0, 1, 0], [], []>} : vector<24x32xf32>, vector<24x32xf32>, vector<24x24xf32> -> vector<24x24xf32>
    %42 = vector.broadcast %35 : vector<1x24xf32> to vector<24x24xf32>
    %43 = arith.addf %41, %42 : vector<24x24xf32>
    %cst_21 = arith.constant dense<0xFF800000> : vector<24xf32>
    %44 = vector.multi_reduction <maximumf>, %43, %cst_21 [1] : vector<24x24xf32> to vector<24xf32>
    %45 = vector.shape_cast %44 : vector<24xf32> to vector<24x1xf32>
    %46 = vector.broadcast %45 : vector<24x1xf32> to vector<24x24xf32>
    %47 = arith.subf %43, %46 : vector<24x24xf32>
    %48 = math.exp %47 : vector<24x24xf32>
    %cst_22 = arith.constant dense<0.000000e+00> : vector<24xf32>
    %49 = vector.multi_reduction <add>, %48, %cst_22 [1] : vector<24x24xf32> to vector<24xf32>
    %50 = vector.shape_cast %49 : vector<24xf32> to vector<24x1xf32>
    %cst_23 = arith.constant dense<0.000000e+00> : vector<24x32xf32>
    %51 = tpu.matmul %48, %40, %cst_23 {dimension_numbers = #tpu.dot_dimension_numbers<[1], [0], [0], [1], [0, 0, 1, 1], [], []>} : vector<24x24xf32>, vector<24x32xf32>, vector<24x32xf32> -> vector<24x32xf32>
    %52 = vector.broadcast %50 : vector<24x1xf32> to vector<24x32xf32>
    %53 = arith.divf %51, %52 : vector<24x32xf32>
    %54 = vector.extract_strided_slice %33 {offsets = [0, 32], sizes = [24, 32], strides = [1, 1]} : vector<48x384xf32> to vector<24x32xf32>
    %cst_24 = arith.constant 0.176776692 : f32
    %55 = vector.broadcast %cst_24 : f32 to vector<24x32xf32>
    %56 = arith.mulf %54, %55 : vector<24x32xf32>
    %57 = vector.extract_strided_slice %33 {offsets = [0, 160], sizes = [24, 32], strides = [1, 1]} : vector<48x384xf32> to vector<24x32xf32>
    %58 = vector.extract_strided_slice %33 {offsets = [0, 288], sizes = [24, 32], strides = [1, 1]} : vector<48x384xf32> to vector<24x32xf32>
    %cst_25 = arith.constant dense<0.000000e+00> : vector<24x24xf32>
    %59 = tpu.matmul %56, %57, %cst_25 {dimension_numbers = #tpu.dot_dimension_numbers<[1], [1], [0], [0], [0, 0, 1, 0], [], []>} : vector<24x32xf32>, vector<24x32xf32>, vector<24x24xf32> -> vector<24x24xf32>
    %60 = vector.broadcast %35 : vector<1x24xf32> to vector<24x24xf32>
    %61 = arith.addf %59, %60 : vector<24x24xf32>
    %cst_26 = arith.constant dense<0xFF800000> : vector<24xf32>
    %62 = vector.multi_reduction <maximumf>, %61, %cst_26 [1] : vector<24x24xf32> to vector<24xf32>
    %63 = vector.shape_cast %62 : vector<24xf32> to vector<24x1xf32>
    %64 = vector.broadcast %63 : vector<24x1xf32> to vector<24x24xf32>
    %65 = arith.subf %61, %64 : vector<24x24xf32>
    %66 = math.exp %65 : vector<24x24xf32>
    %cst_27 = arith.constant dense<0.000000e+00> : vector<24xf32>
    %67 = vector.multi_reduction <add>, %66, %cst_27 [1] : vector<24x24xf32> to vector<24xf32>
    %68 = vector.shape_cast %67 : vector<24xf32> to vector<24x1xf32>
    %cst_28 = arith.constant dense<0.000000e+00> : vector<24x32xf32>
    %69 = tpu.matmul %66, %58, %cst_28 {dimension_numbers = #tpu.dot_dimension_numbers<[1], [0], [0], [1], [0, 0, 1, 1], [], []>} : vector<24x24xf32>, vector<24x32xf32>, vector<24x32xf32> -> vector<24x32xf32>
    %70 = vector.broadcast %68 : vector<24x1xf32> to vector<24x32xf32>
    %71 = arith.divf %69, %70 : vector<24x32xf32>
    %72 = vector.extract_strided_slice %33 {offsets = [0, 64], sizes = [24, 32], strides = [1, 1]} : vector<48x384xf32> to vector<24x32xf32>
    %cst_29 = arith.constant 0.176776692 : f32
    %73 = vector.broadcast %cst_29 : f32 to vector<24x32xf32>
    %74 = arith.mulf %72, %73 : vector<24x32xf32>
    %75 = vector.extract_strided_slice %33 {offsets = [0, 192], sizes = [24, 32], strides = [1, 1]} : vector<48x384xf32> to vector<24x32xf32>
    %76 = vector.extract_strided_slice %33 {offsets = [0, 320], sizes = [24, 32], strides = [1, 1]} : vector<48x384xf32> to vector<24x32xf32>
    %cst_30 = arith.constant dense<0.000000e+00> : vector<24x24xf32>
    %77 = tpu.matmul %74, %75, %cst_30 {dimension_numbers = #tpu.dot_dimension_numbers<[1], [1], [0], [0], [0, 0, 1, 0], [], []>} : vector<24x32xf32>, vector<24x32xf32>, vector<24x24xf32> -> vector<24x24xf32>
    %78 = vector.broadcast %35 : vector<1x24xf32> to vector<24x24xf32>
    %79 = arith.addf %77, %78 : vector<24x24xf32>
    %cst_31 = arith.constant dense<0xFF800000> : vector<24xf32>
    %80 = vector.multi_reduction <maximumf>, %79, %cst_31 [1] : vector<24x24xf32> to vector<24xf32>
    %81 = vector.shape_cast %80 : vector<24xf32> to vector<24x1xf32>
    %82 = vector.broadcast %81 : vector<24x1xf32> to vector<24x24xf32>
    %83 = arith.subf %79, %82 : vector<24x24xf32>
    %84 = math.exp %83 : vector<24x24xf32>
    %cst_32 = arith.constant dense<0.000000e+00> : vector<24xf32>
    %85 = vector.multi_reduction <add>, %84, %cst_32 [1] : vector<24x24xf32> to vector<24xf32>
    %86 = vector.shape_cast %85 : vector<24xf32> to vector<24x1xf32>
    %cst_33 = arith.constant dense<0.000000e+00> : vector<24x32xf32>
    %87 = tpu.matmul %84, %76, %cst_33 {dimension_numbers = #tpu.dot_dimension_numbers<[1], [0], [0], [1], [0, 0, 1, 1], [], []>} : vector<24x24xf32>, vector<24x32xf32>, vector<24x32xf32> -> vector<24x32xf32>
    %88 = vector.broadcast %86 : vector<24x1xf32> to vector<24x32xf32>
    %89 = arith.divf %87, %88 : vector<24x32xf32>
    %90 = vector.extract_strided_slice %33 {offsets = [0, 96], sizes = [24, 32], strides = [1, 1]} : vector<48x384xf32> to vector<24x32xf32>
    %cst_34 = arith.constant 0.176776692 : f32
    %91 = vector.broadcast %cst_34 : f32 to vector<24x32xf32>
    %92 = arith.mulf %90, %91 : vector<24x32xf32>
    %93 = vector.extract_strided_slice %33 {offsets = [0, 224], sizes = [24, 32], strides = [1, 1]} : vector<48x384xf32> to vector<24x32xf32>
    %94 = vector.extract_strided_slice %33 {offsets = [0, 352], sizes = [24, 32], strides = [1, 1]} : vector<48x384xf32> to vector<24x32xf32>
    %cst_35 = arith.constant dense<0.000000e+00> : vector<24x24xf32>
    %95 = tpu.matmul %92, %93, %cst_35 {dimension_numbers = #tpu.dot_dimension_numbers<[1], [1], [0], [0], [0, 0, 1, 0], [], []>} : vector<24x32xf32>, vector<24x32xf32>, vector<24x24xf32> -> vector<24x24xf32>
    %96 = vector.broadcast %35 : vector<1x24xf32> to vector<24x24xf32>
    %97 = arith.addf %95, %96 : vector<24x24xf32>
    %cst_36 = arith.constant dense<0xFF800000> : vector<24xf32>
    %98 = vector.multi_reduction <maximumf>, %97, %cst_36 [1] : vector<24x24xf32> to vector<24xf32>
    %99 = vector.shape_cast %98 : vector<24xf32> to vector<24x1xf32>
    %100 = vector.broadcast %99 : vector<24x1xf32> to vector<24x24xf32>
    %101 = arith.subf %97, %100 : vector<24x24xf32>
    %102 = math.exp %101 : vector<24x24xf32>
    %cst_37 = arith.constant dense<0.000000e+00> : vector<24xf32>
    %103 = vector.multi_reduction <add>, %102, %cst_37 [1] : vector<24x24xf32> to vector<24xf32>
    %104 = vector.shape_cast %103 : vector<24xf32> to vector<24x1xf32>
    %cst_38 = arith.constant dense<0.000000e+00> : vector<24x32xf32>
    %105 = tpu.matmul %102, %94, %cst_38 {dimension_numbers = #tpu.dot_dimension_numbers<[1], [0], [0], [1], [0, 0, 1, 1], [], []>} : vector<24x24xf32>, vector<24x32xf32>, vector<24x32xf32> -> vector<24x32xf32>
    %106 = vector.broadcast %104 : vector<24x1xf32> to vector<24x32xf32>
    %107 = arith.divf %105, %106 : vector<24x32xf32>
    %108 = tpu.concatenate %53, %71, %89, %107 in 1 : vector<24x32xf32>, vector<24x32xf32>, vector<24x32xf32>, vector<24x32xf32> -> vector<24x128xf32>
    %109 = vector.extract_strided_slice %25 {offsets = [1, 0, 0], sizes = [1, 1, 24], strides = [1, 1, 1]} : vector<2x1x24xf32> to vector<1x1x24xf32>
    %110 = vector.shape_cast %109 : vector<1x1x24xf32> to vector<1x24xf32>
    %111 = vector.extract_strided_slice %33 {offsets = [24, 0], sizes = [24, 32], strides = [1, 1]} : vector<48x384xf32> to vector<24x32xf32>
    %cst_39 = arith.constant 0.176776692 : f32
    %112 = vector.broadcast %cst_39 : f32 to vector<24x32xf32>
    %113 = arith.mulf %111, %112 : vector<24x32xf32>
    %114 = vector.extract_strided_slice %33 {offsets = [24, 128], sizes = [24, 32], strides = [1, 1]} : vector<48x384xf32> to vector<24x32xf32>
    %115 = vector.extract_strided_slice %33 {offsets = [24, 256], sizes = [24, 32], strides = [1, 1]} : vector<48x384xf32> to vector<24x32xf32>
    %cst_40 = arith.constant dense<0.000000e+00> : vector<24x24xf32>
    %116 = tpu.matmul %113, %114, %cst_40 {dimension_numbers = #tpu.dot_dimension_numbers<[1], [1], [0], [0], [0, 0, 1, 0], [], []>} : vector<24x32xf32>, vector<24x32xf32>, vector<24x24xf32> -> vector<24x24xf32>
    %117 = vector.broadcast %110 : vector<1x24xf32> to vector<24x24xf32>
    %118 = arith.addf %116, %117 : vector<24x24xf32>
    %cst_41 = arith.constant dense<0xFF800000> : vector<24xf32>
    %119 = vector.multi_reduction <maximumf>, %118, %cst_41 [1] : vector<24x24xf32> to vector<24xf32>
    %120 = vector.shape_cast %119 : vector<24xf32> to vector<24x1xf32>
    %121 = vector.broadcast %120 : vector<24x1xf32> to vector<24x24xf32>
    %122 = arith.subf %118, %121 : vector<24x24xf32>
    %123 = math.exp %122 : vector<24x24xf32>
    %cst_42 = arith.constant dense<0.000000e+00> : vector<24xf32>
    %124 = vector.multi_reduction <add>, %123, %cst_42 [1] : vector<24x24xf32> to vector<24xf32>
    %125 = vector.shape_cast %124 : vector<24xf32> to vector<24x1xf32>
    %cst_43 = arith.constant dense<0.000000e+00> : vector<24x32xf32>
    %126 = tpu.matmul %123, %115, %cst_43 {dimension_numbers = #tpu.dot_dimension_numbers<[1], [0], [0], [1], [0, 0, 1, 1], [], []>} : vector<24x24xf32>, vector<24x32xf32>, vector<24x32xf32> -> vector<24x32xf32>
    %127 = vector.broadcast %125 : vector<24x1xf32> to vector<24x32xf32>
    %128 = arith.divf %126, %127 : vector<24x32xf32>
    %129 = vector.extract_strided_slice %33 {offsets = [24, 32], sizes = [24, 32], strides = [1, 1]} : vector<48x384xf32> to vector<24x32xf32>
    %cst_44 = arith.constant 0.176776692 : f32
    %130 = vector.broadcast %cst_44 : f32 to vector<24x32xf32>
    %131 = arith.mulf %129, %130 : vector<24x32xf32>
    %132 = vector.extract_strided_slice %33 {offsets = [24, 160], sizes = [24, 32], strides = [1, 1]} : vector<48x384xf32> to vector<24x32xf32>
    %133 = vector.extract_strided_slice %33 {offsets = [24, 288], sizes = [24, 32], strides = [1, 1]} : vector<48x384xf32> to vector<24x32xf32>
    %cst_45 = arith.constant dense<0.000000e+00> : vector<24x24xf32>
    %134 = tpu.matmul %131, %132, %cst_45 {dimension_numbers = #tpu.dot_dimension_numbers<[1], [1], [0], [0], [0, 0, 1, 0], [], []>} : vector<24x32xf32>, vector<24x32xf32>, vector<24x24xf32> -> vector<24x24xf32>
    %135 = vector.broadcast %110 : vector<1x24xf32> to vector<24x24xf32>
    %136 = arith.addf %134, %135 : vector<24x24xf32>
    %cst_46 = arith.constant dense<0xFF800000> : vector<24xf32>
    %137 = vector.multi_reduction <maximumf>, %136, %cst_46 [1] : vector<24x24xf32> to vector<24xf32>
    %138 = vector.shape_cast %137 : vector<24xf32> to vector<24x1xf32>
    %139 = vector.broadcast %138 : vector<24x1xf32> to vector<24x24xf32>
    %140 = arith.subf %136, %139 : vector<24x24xf32>
    %141 = math.exp %140 : vector<24x24xf32>
    %cst_47 = arith.constant dense<0.000000e+00> : vector<24xf32>
    %142 = vector.multi_reduction <add>, %141, %cst_47 [1] : vector<24x24xf32> to vector<24xf32>
    %143 = vector.shape_cast %142 : vector<24xf32> to vector<24x1xf32>
    %cst_48 = arith.constant dense<0.000000e+00> : vector<24x32xf32>
    %144 = tpu.matmul %141, %133, %cst_48 {dimension_numbers = #tpu.dot_dimension_numbers<[1], [0], [0], [1], [0, 0, 1, 1], [], []>} : vector<24x24xf32>, vector<24x32xf32>, vector<24x32xf32> -> vector<24x32xf32>
    %145 = vector.broadcast %143 : vector<24x1xf32> to vector<24x32xf32>
    %146 = arith.divf %144, %145 : vector<24x32xf32>
    %147 = vector.extract_strided_slice %33 {offsets = [24, 64], sizes = [24, 32], strides = [1, 1]} : vector<48x384xf32> to vector<24x32xf32>
    %cst_49 = arith.constant 0.176776692 : f32
    %148 = vector.broadcast %cst_49 : f32 to vector<24x32xf32>
    %149 = arith.mulf %147, %148 : vector<24x32xf32>
    %150 = vector.extract_strided_slice %33 {offsets = [24, 192], sizes = [24, 32], strides = [1, 1]} : vector<48x384xf32> to vector<24x32xf32>
    %151 = vector.extract_strided_slice %33 {offsets = [24, 320], sizes = [24, 32], strides = [1, 1]} : vector<48x384xf32> to vector<24x32xf32>
    %cst_50 = arith.constant dense<0.000000e+00> : vector<24x24xf32>
    %152 = tpu.matmul %149, %150, %cst_50 {dimension_numbers = #tpu.dot_dimension_numbers<[1], [1], [0], [0], [0, 0, 1, 0], [], []>} : vector<24x32xf32>, vector<24x32xf32>, vector<24x24xf32> -> vector<24x24xf32>
    %153 = vector.broadcast %110 : vector<1x24xf32> to vector<24x24xf32>
    %154 = arith.addf %152, %153 : vector<24x24xf32>
    %cst_51 = arith.constant dense<0xFF800000> : vector<24xf32>
    %155 = vector.multi_reduction <maximumf>, %154, %cst_51 [1] : vector<24x24xf32> to vector<24xf32>
    %156 = vector.shape_cast %155 : vector<24xf32> to vector<24x1xf32>
    %157 = vector.broadcast %156 : vector<24x1xf32> to vector<24x24xf32>
    %158 = arith.subf %154, %157 : vector<24x24xf32>
    %159 = math.exp %158 : vector<24x24xf32>
    %cst_52 = arith.constant dense<0.000000e+00> : vector<24xf32>
    %160 = vector.multi_reduction <add>, %159, %cst_52 [1] : vector<24x24xf32> to vector<24xf32>
    %161 = vector.shape_cast %160 : vector<24xf32> to vector<24x1xf32>
    %cst_53 = arith.constant dense<0.000000e+00> : vector<24x32xf32>
    %162 = tpu.matmul %159, %151, %cst_53 {dimension_numbers = #tpu.dot_dimension_numbers<[1], [0], [0], [1], [0, 0, 1, 1], [], []>} : vector<24x24xf32>, vector<24x32xf32>, vector<24x32xf32> -> vector<24x32xf32>
    %163 = vector.broadcast %161 : vector<24x1xf32> to vector<24x32xf32>
    %164 = arith.divf %162, %163 : vector<24x32xf32>
    %165 = vector.extract_strided_slice %33 {offsets = [24, 96], sizes = [24, 32], strides = [1, 1]} : vector<48x384xf32> to vector<24x32xf32>
    %cst_54 = arith.constant 0.176776692 : f32
    %166 = vector.broadcast %cst_54 : f32 to vector<24x32xf32>
    %167 = arith.mulf %165, %166 : vector<24x32xf32>
    %168 = vector.extract_strided_slice %33 {offsets = [24, 224], sizes = [24, 32], strides = [1, 1]} : vector<48x384xf32> to vector<24x32xf32>
    %169 = vector.extract_strided_slice %33 {offsets = [24, 352], sizes = [24, 32], strides = [1, 1]} : vector<48x384xf32> to vector<24x32xf32>
    %cst_55 = arith.constant dense<0.000000e+00> : vector<24x24xf32>
    %170 = tpu.matmul %167, %168, %cst_55 {dimension_numbers = #tpu.dot_dimension_numbers<[1], [1], [0], [0], [0, 0, 1, 0], [], []>} : vector<24x32xf32>, vector<24x32xf32>, vector<24x24xf32> -> vector<24x24xf32>
    %171 = vector.broadcast %110 : vector<1x24xf32> to vector<24x24xf32>
    %172 = arith.addf %170, %171 : vector<24x24xf32>
    %cst_56 = arith.constant dense<0xFF800000> : vector<24xf32>
    %173 = vector.multi_reduction <maximumf>, %172, %cst_56 [1] : vector<24x24xf32> to vector<24xf32>
    %174 = vector.shape_cast %173 : vector<24xf32> to vector<24x1xf32>
    %175 = vector.broadcast %174 : vector<24x1xf32> to vector<24x24xf32>
    %176 = arith.subf %172, %175 : vector<24x24xf32>
    %177 = math.exp %176 : vector<24x24xf32>
    %cst_57 = arith.constant dense<0.000000e+00> : vector<24xf32>
    %178 = vector.multi_reduction <add>, %177, %cst_57 [1] : vector<24x24xf32> to vector<24xf32>
    %179 = vector.shape_cast %178 : vector<24xf32> to vector<24x1xf32>
    %cst_58 = arith.constant dense<0.000000e+00> : vector<24x32xf32>
    %180 = tpu.matmul %177, %169, %cst_58 {dimension_numbers = #tpu.dot_dimension_numbers<[1], [0], [0], [1], [0, 0, 1, 1], [], []>} : vector<24x24xf32>, vector<24x32xf32>, vector<24x32xf32> -> vector<24x32xf32>
    %181 = vector.broadcast %179 : vector<24x1xf32> to vector<24x32xf32>
    %182 = arith.divf %180, %181 : vector<24x32xf32>
    %183 = tpu.concatenate %128, %146, %164, %182 in 1 : vector<24x32xf32>, vector<24x32xf32>, vector<24x32xf32>, vector<24x32xf32> -> vector<24x128xf32>
    %184 = tpu.concatenate %108, %183 in 0 : vector<24x128xf32>, vector<24x128xf32> -> vector<48x128xf32>
    %185 = arith.truncf %184 : vector<48x128xf32> to vector<48x128xbf16>
    %c0_59 = arith.constant 0 : index
    %c0_60 = arith.constant 0 : index
    %c0_61 = arith.constant 0 : index
    %186 = vector.load %arg6[%c0_59, %c0_60, %c0_61] : memref<2x128x128xbf16, #tpu.memory_space<vmem>>, vector<1x128x128xbf16>
    %187 = vector.shape_cast %186 : vector<1x128x128xbf16> to vector<128x128xbf16>
    %cst_62 = arith.constant dense<0.000000e+00> : vector<48x128xf32>
    %188 = tpu.matmul %185, %187, %cst_62 {dimension_numbers = #tpu.dot_dimension_numbers<[1], [0], [0], [1], [0, 0, 1, 1], [], []>} : vector<48x128xbf16>, vector<128x128xbf16>, vector<48x128xf32> -> vector<48x128xf32>
    %c0_63 = arith.constant 0 : index
    %c0_64 = arith.constant 0 : index
    %c0_65 = arith.constant 0 : index
    %189 = vector.load %arg7[%c0_63, %c0_64, %c0_65] : memref<2x1x128xf32, #tpu.memory_space<vmem>>, vector<1x1x128xf32>
    %190 = vector.shape_cast %189 : vector<1x1x128xf32> to vector<1x128xf32>
    %191 = vector.broadcast %190 : vector<1x128xf32> to vector<48x128xf32>
    %192 = arith.addf %188, %191 : vector<48x128xf32>
    %193 = arith.addf %24, %192 : vector<48x128xf32>
    %c0_66 = arith.constant 0 : index
    %c0_67 = arith.constant 0 : index
    %c0_68 = arith.constant 0 : index
    %194 = vector.load %arg8[%c0_66, %c0_67, %c0_68] : memref<2x1x128xf32, #tpu.memory_space<vmem>>, vector<1x1x128xf32>
    %195 = vector.shape_cast %194 : vector<1x1x128xf32> to vector<1x128xf32>
    %c0_69 = arith.constant 0 : index
    %c0_70 = arith.constant 0 : index
    %c0_71 = arith.constant 0 : index
    %196 = vector.load %arg9[%c0_69, %c0_70, %c0_71] : memref<2x1x128xf32, #tpu.memory_space<vmem>>, vector<1x1x128xf32>
    %197 = vector.shape_cast %196 : vector<1x1x128xf32> to vector<1x128xf32>
    %cst_72 = arith.constant dense<0.000000e+00> : vector<48xf32>
    %198 = vector.multi_reduction <add>, %193, %cst_72 [1] : vector<48x128xf32> to vector<48xf32>
    %199 = vector.shape_cast %198 : vector<48xf32> to vector<48x1xf32>
    %cst_73 = arith.constant 1.280000e+02 : f32
    %200 = vector.broadcast %cst_73 : f32 to vector<48x1xf32>
    %201 = arith.divf %199, %200 : vector<48x1xf32>
    %202 = vector.broadcast %201 : vector<48x1xf32> to vector<48x128xf32>
    %203 = arith.subf %193, %202 : vector<48x128xf32>
    %204 = arith.mulf %203, %203 : vector<48x128xf32>
    %cst_74 = arith.constant dense<0.000000e+00> : vector<48xf32>
    %205 = vector.multi_reduction <add>, %204, %cst_74 [1] : vector<48x128xf32> to vector<48xf32>
    %206 = vector.shape_cast %205 : vector<48xf32> to vector<48x1xf32>
    %cst_75 = arith.constant 1.280000e+02 : f32
    %207 = vector.broadcast %cst_75 : f32 to vector<48x1xf32>
    %208 = arith.divf %206, %207 : vector<48x1xf32>
    %209 = vector.broadcast %201 : vector<48x1xf32> to vector<48x128xf32>
    %210 = arith.subf %193, %209 : vector<48x128xf32>
    %cst_76 = arith.constant 9.99999996E-13 : f32
    %211 = vector.broadcast %cst_76 : f32 to vector<48x1xf32>
    %212 = arith.addf %208, %211 : vector<48x1xf32>
    %213 = math.rsqrt %212 : vector<48x1xf32>
    %214 = vector.broadcast %213 : vector<48x1xf32> to vector<48x128xf32>
    %215 = arith.mulf %210, %214 : vector<48x128xf32>
    %216 = vector.broadcast %195 : vector<1x128xf32> to vector<48x128xf32>
    %217 = arith.mulf %215, %216 : vector<48x128xf32>
    %218 = vector.broadcast %197 : vector<1x128xf32> to vector<48x128xf32>
    %219 = arith.addf %217, %218 : vector<48x128xf32>
    %220 = arith.truncf %219 : vector<48x128xf32> to vector<48x128xbf16>
    %c0_77 = arith.constant 0 : index
    %c0_78 = arith.constant 0 : index
    %c0_79 = arith.constant 0 : index
    %221 = vector.load %arg10[%c0_77, %c0_78, %c0_79] : memref<2x128x256xbf16, #tpu.memory_space<vmem>>, vector<1x128x256xbf16>
    %222 = vector.shape_cast %221 : vector<1x128x256xbf16> to vector<128x256xbf16>
    %cst_80 = arith.constant dense<0.000000e+00> : vector<48x256xf32>
    %223 = tpu.matmul %220, %222, %cst_80 {dimension_numbers = #tpu.dot_dimension_numbers<[1], [0], [0], [1], [0, 0, 1, 1], [], []>} : vector<48x128xbf16>, vector<128x256xbf16>, vector<48x256xf32> -> vector<48x256xf32>
    %c0_81 = arith.constant 0 : index
    %c0_82 = arith.constant 0 : index
    %c0_83 = arith.constant 0 : index
    %224 = vector.load %arg11[%c0_81, %c0_82, %c0_83] : memref<2x1x256xf32, #tpu.memory_space<vmem>>, vector<1x1x256xf32>
    %225 = vector.shape_cast %224 : vector<1x1x256xf32> to vector<1x256xf32>
    %226 = vector.broadcast %225 : vector<1x256xf32> to vector<48x256xf32>
    %227 = arith.addf %223, %226 : vector<48x256xf32>
    %228 = arith.mulf %227, %227 : vector<48x256xf32>
    %229 = arith.mulf %227, %228 : vector<48x256xf32>
    %cst_84 = arith.constant 4.471500e-02 : f32
    %230 = vector.broadcast %cst_84 : f32 to vector<48x256xf32>
    %231 = arith.mulf %230, %229 : vector<48x256xf32>
    %232 = arith.addf %227, %231 : vector<48x256xf32>
    %cst_85 = arith.constant 0.797884583 : f32
    %233 = vector.broadcast %cst_85 : f32 to vector<48x256xf32>
    %234 = arith.mulf %233, %232 : vector<48x256xf32>
    %235 = math.tanh %234 : vector<48x256xf32>
    %cst_86 = arith.constant 1.000000e+00 : f32
    %236 = vector.broadcast %cst_86 : f32 to vector<48x256xf32>
    %237 = arith.addf %236, %235 : vector<48x256xf32>
    %cst_87 = arith.constant 5.000000e-01 : f32
    %238 = vector.broadcast %cst_87 : f32 to vector<48x256xf32>
    %239 = arith.mulf %238, %237 : vector<48x256xf32>
    %240 = arith.mulf %227, %239 : vector<48x256xf32>
    %241 = arith.truncf %240 : vector<48x256xf32> to vector<48x256xbf16>
    %c0_88 = arith.constant 0 : index
    %c0_89 = arith.constant 0 : index
    %c0_90 = arith.constant 0 : index
    %242 = vector.load %arg12[%c0_88, %c0_89, %c0_90] : memref<2x256x128xbf16, #tpu.memory_space<vmem>>, vector<1x256x128xbf16>
    %243 = vector.shape_cast %242 : vector<1x256x128xbf16> to vector<256x128xbf16>
    %cst_91 = arith.constant dense<0.000000e+00> : vector<48x128xf32>
    %244 = tpu.matmul %241, %243, %cst_91 {dimension_numbers = #tpu.dot_dimension_numbers<[1], [0], [0], [1], [0, 0, 1, 1], [], []>} : vector<48x256xbf16>, vector<256x128xbf16>, vector<48x128xf32> -> vector<48x128xf32>
    %c0_92 = arith.constant 0 : index
    %c0_93 = arith.constant 0 : index
    %c0_94 = arith.constant 0 : index
    %245 = vector.load %arg13[%c0_92, %c0_93, %c0_94] : memref<2x1x128xf32, #tpu.memory_space<vmem>>, vector<1x1x128xf32>
    %246 = vector.shape_cast %245 : vector<1x1x128xf32> to vector<1x128xf32>
    %247 = vector.broadcast %246 : vector<1x128xf32> to vector<48x128xf32>
    %248 = arith.addf %244, %247 : vector<48x128xf32>
    %249 = arith.addf %219, %248 : vector<48x128xf32>
    %c0_95 = arith.constant 0 : index
    %c0_96 = arith.constant 0 : index
    %c0_97 = arith.constant 0 : index
    %250 = vector.load %arg14[%c0_95, %c0_96, %c0_97] : memref<2x1x128xf32, #tpu.memory_space<vmem>>, vector<1x1x128xf32>
    %251 = vector.shape_cast %250 : vector<1x1x128xf32> to vector<1x128xf32>
    %c0_98 = arith.constant 0 : index
    %c0_99 = arith.constant 0 : index
    %c0_100 = arith.constant 0 : index
    %252 = vector.load %arg15[%c0_98, %c0_99, %c0_100] : memref<2x1x128xf32, #tpu.memory_space<vmem>>, vector<1x1x128xf32>
    %253 = vector.shape_cast %252 : vector<1x1x128xf32> to vector<1x128xf32>
    %cst_101 = arith.constant dense<0.000000e+00> : vector<48xf32>
    %254 = vector.multi_reduction <add>, %249, %cst_101 [1] : vector<48x128xf32> to vector<48xf32>
    %255 = vector.shape_cast %254 : vector<48xf32> to vector<48x1xf32>
    %cst_102 = arith.constant 1.280000e+02 : f32
    %256 = vector.broadcast %cst_102 : f32 to vector<48x1xf32>
    %257 = arith.divf %255, %256 : vector<48x1xf32>
    %258 = vector.broadcast %257 : vector<48x1xf32> to vector<48x128xf32>
    %259 = arith.subf %249, %258 : vector<48x128xf32>
    %260 = arith.mulf %259, %259 : vector<48x128xf32>
    %cst_103 = arith.constant dense<0.000000e+00> : vector<48xf32>
    %261 = vector.multi_reduction <add>, %260, %cst_103 [1] : vector<48x128xf32> to vector<48xf32>
    %262 = vector.shape_cast %261 : vector<48xf32> to vector<48x1xf32>
    %cst_104 = arith.constant 1.280000e+02 : f32
    %263 = vector.broadcast %cst_104 : f32 to vector<48x1xf32>
    %264 = arith.divf %262, %263 : vector<48x1xf32>
    %265 = vector.broadcast %257 : vector<48x1xf32> to vector<48x128xf32>
    %266 = arith.subf %249, %265 : vector<48x128xf32>
    %cst_105 = arith.constant 9.99999996E-13 : f32
    %267 = vector.broadcast %cst_105 : f32 to vector<48x1xf32>
    %268 = arith.addf %264, %267 : vector<48x1xf32>
    %269 = math.rsqrt %268 : vector<48x1xf32>
    %270 = vector.broadcast %269 : vector<48x1xf32> to vector<48x128xf32>
    %271 = arith.mulf %266, %270 : vector<48x128xf32>
    %272 = vector.broadcast %251 : vector<1x128xf32> to vector<48x128xf32>
    %273 = arith.mulf %271, %272 : vector<48x128xf32>
    %274 = vector.broadcast %253 : vector<1x128xf32> to vector<48x128xf32>
    %275 = arith.addf %273, %274 : vector<48x128xf32>
    %276 = arith.truncf %275 : vector<48x128xf32> to vector<48x128xbf16>
    %c1 = arith.constant 1 : index
    %c0_106 = arith.constant 0 : index
    %c0_107 = arith.constant 0 : index
    %277 = vector.load %arg4[%c1, %c0_106, %c0_107] : memref<2x128x384xbf16, #tpu.memory_space<vmem>>, vector<1x128x384xbf16>
    %278 = vector.shape_cast %277 : vector<1x128x384xbf16> to vector<128x384xbf16>
    %cst_108 = arith.constant dense<0.000000e+00> : vector<48x384xf32>
    %279 = tpu.matmul %276, %278, %cst_108 {dimension_numbers = #tpu.dot_dimension_numbers<[1], [0], [0], [1], [0, 0, 1, 1], [], []>} : vector<48x128xbf16>, vector<128x384xbf16>, vector<48x384xf32> -> vector<48x384xf32>
    %c1_109 = arith.constant 1 : index
    %c0_110 = arith.constant 0 : index
    %c0_111 = arith.constant 0 : index
    %280 = vector.load %arg5[%c1_109, %c0_110, %c0_111] : memref<2x1x384xf32, #tpu.memory_space<vmem>>, vector<1x1x384xf32>
    %281 = vector.shape_cast %280 : vector<1x1x384xf32> to vector<1x384xf32>
    %282 = vector.broadcast %281 : vector<1x384xf32> to vector<48x384xf32>
    %283 = arith.addf %279, %282 : vector<48x384xf32>
    %284 = vector.extract_strided_slice %25 {offsets = [0, 0, 0], sizes = [1, 1, 24], strides = [1, 1, 1]} : vector<2x1x24xf32> to vector<1x1x24xf32>
    %285 = vector.shape_cast %284 : vector<1x1x24xf32> to vector<1x24xf32>
    %286 = vector.extract_strided_slice %283 {offsets = [0, 0], sizes = [24, 32], strides = [1, 1]} : vector<48x384xf32> to vector<24x32xf32>
    %cst_112 = arith.constant 0.176776692 : f32
    %287 = vector.broadcast %cst_112 : f32 to vector<24x32xf32>
    %288 = arith.mulf %286, %287 : vector<24x32xf32>
    %289 = vector.extract_strided_slice %283 {offsets = [0, 128], sizes = [24, 32], strides = [1, 1]} : vector<48x384xf32> to vector<24x32xf32>
    %290 = vector.extract_strided_slice %283 {offsets = [0, 256], sizes = [24, 32], strides = [1, 1]} : vector<48x384xf32> to vector<24x32xf32>
    %cst_113 = arith.constant dense<0.000000e+00> : vector<24x24xf32>
    %291 = tpu.matmul %288, %289, %cst_113 {dimension_numbers = #tpu.dot_dimension_numbers<[1], [1], [0], [0], [0, 0, 1, 0], [], []>} : vector<24x32xf32>, vector<24x32xf32>, vector<24x24xf32> -> vector<24x24xf32>
    %292 = vector.broadcast %285 : vector<1x24xf32> to vector<24x24xf32>
    %293 = arith.addf %291, %292 : vector<24x24xf32>
    %cst_114 = arith.constant dense<0xFF800000> : vector<24xf32>
    %294 = vector.multi_reduction <maximumf>, %293, %cst_114 [1] : vector<24x24xf32> to vector<24xf32>
    %295 = vector.shape_cast %294 : vector<24xf32> to vector<24x1xf32>
    %296 = vector.broadcast %295 : vector<24x1xf32> to vector<24x24xf32>
    %297 = arith.subf %293, %296 : vector<24x24xf32>
    %298 = math.exp %297 : vector<24x24xf32>
    %cst_115 = arith.constant dense<0.000000e+00> : vector<24xf32>
    %299 = vector.multi_reduction <add>, %298, %cst_115 [1] : vector<24x24xf32> to vector<24xf32>
    %300 = vector.shape_cast %299 : vector<24xf32> to vector<24x1xf32>
    %cst_116 = arith.constant dense<0.000000e+00> : vector<24x32xf32>
    %301 = tpu.matmul %298, %290, %cst_116 {dimension_numbers = #tpu.dot_dimension_numbers<[1], [0], [0], [1], [0, 0, 1, 1], [], []>} : vector<24x24xf32>, vector<24x32xf32>, vector<24x32xf32> -> vector<24x32xf32>
    %302 = vector.broadcast %300 : vector<24x1xf32> to vector<24x32xf32>
    %303 = arith.divf %301, %302 : vector<24x32xf32>
    %304 = vector.extract_strided_slice %283 {offsets = [0, 32], sizes = [24, 32], strides = [1, 1]} : vector<48x384xf32> to vector<24x32xf32>
    %cst_117 = arith.constant 0.176776692 : f32
    %305 = vector.broadcast %cst_117 : f32 to vector<24x32xf32>
    %306 = arith.mulf %304, %305 : vector<24x32xf32>
    %307 = vector.extract_strided_slice %283 {offsets = [0, 160], sizes = [24, 32], strides = [1, 1]} : vector<48x384xf32> to vector<24x32xf32>
    %308 = vector.extract_strided_slice %283 {offsets = [0, 288], sizes = [24, 32], strides = [1, 1]} : vector<48x384xf32> to vector<24x32xf32>
    %cst_118 = arith.constant dense<0.000000e+00> : vector<24x24xf32>
    %309 = tpu.matmul %306, %307, %cst_118 {dimension_numbers = #tpu.dot_dimension_numbers<[1], [1], [0], [0], [0, 0, 1, 0], [], []>} : vector<24x32xf32>, vector<24x32xf32>, vector<24x24xf32> -> vector<24x24xf32>
    %310 = vector.broadcast %285 : vector<1x24xf32> to vector<24x24xf32>
    %311 = arith.addf %309, %310 : vector<24x24xf32>
    %cst_119 = arith.constant dense<0xFF800000> : vector<24xf32>
    %312 = vector.multi_reduction <maximumf>, %311, %cst_119 [1] : vector<24x24xf32> to vector<24xf32>
    %313 = vector.shape_cast %312 : vector<24xf32> to vector<24x1xf32>
    %314 = vector.broadcast %313 : vector<24x1xf32> to vector<24x24xf32>
    %315 = arith.subf %311, %314 : vector<24x24xf32>
    %316 = math.exp %315 : vector<24x24xf32>
    %cst_120 = arith.constant dense<0.000000e+00> : vector<24xf32>
    %317 = vector.multi_reduction <add>, %316, %cst_120 [1] : vector<24x24xf32> to vector<24xf32>
    %318 = vector.shape_cast %317 : vector<24xf32> to vector<24x1xf32>
    %cst_121 = arith.constant dense<0.000000e+00> : vector<24x32xf32>
    %319 = tpu.matmul %316, %308, %cst_121 {dimension_numbers = #tpu.dot_dimension_numbers<[1], [0], [0], [1], [0, 0, 1, 1], [], []>} : vector<24x24xf32>, vector<24x32xf32>, vector<24x32xf32> -> vector<24x32xf32>
    %320 = vector.broadcast %318 : vector<24x1xf32> to vector<24x32xf32>
    %321 = arith.divf %319, %320 : vector<24x32xf32>
    %322 = vector.extract_strided_slice %283 {offsets = [0, 64], sizes = [24, 32], strides = [1, 1]} : vector<48x384xf32> to vector<24x32xf32>
    %cst_122 = arith.constant 0.176776692 : f32
    %323 = vector.broadcast %cst_122 : f32 to vector<24x32xf32>
    %324 = arith.mulf %322, %323 : vector<24x32xf32>
    %325 = vector.extract_strided_slice %283 {offsets = [0, 192], sizes = [24, 32], strides = [1, 1]} : vector<48x384xf32> to vector<24x32xf32>
    %326 = vector.extract_strided_slice %283 {offsets = [0, 320], sizes = [24, 32], strides = [1, 1]} : vector<48x384xf32> to vector<24x32xf32>
    %cst_123 = arith.constant dense<0.000000e+00> : vector<24x24xf32>
    %327 = tpu.matmul %324, %325, %cst_123 {dimension_numbers = #tpu.dot_dimension_numbers<[1], [1], [0], [0], [0, 0, 1, 0], [], []>} : vector<24x32xf32>, vector<24x32xf32>, vector<24x24xf32> -> vector<24x24xf32>
    %328 = vector.broadcast %285 : vector<1x24xf32> to vector<24x24xf32>
    %329 = arith.addf %327, %328 : vector<24x24xf32>
    %cst_124 = arith.constant dense<0xFF800000> : vector<24xf32>
    %330 = vector.multi_reduction <maximumf>, %329, %cst_124 [1] : vector<24x24xf32> to vector<24xf32>
    %331 = vector.shape_cast %330 : vector<24xf32> to vector<24x1xf32>
    %332 = vector.broadcast %331 : vector<24x1xf32> to vector<24x24xf32>
    %333 = arith.subf %329, %332 : vector<24x24xf32>
    %334 = math.exp %333 : vector<24x24xf32>
    %cst_125 = arith.constant dense<0.000000e+00> : vector<24xf32>
    %335 = vector.multi_reduction <add>, %334, %cst_125 [1] : vector<24x24xf32> to vector<24xf32>
    %336 = vector.shape_cast %335 : vector<24xf32> to vector<24x1xf32>
    %cst_126 = arith.constant dense<0.000000e+00> : vector<24x32xf32>
    %337 = tpu.matmul %334, %326, %cst_126 {dimension_numbers = #tpu.dot_dimension_numbers<[1], [0], [0], [1], [0, 0, 1, 1], [], []>} : vector<24x24xf32>, vector<24x32xf32>, vector<24x32xf32> -> vector<24x32xf32>
    %338 = vector.broadcast %336 : vector<24x1xf32> to vector<24x32xf32>
    %339 = arith.divf %337, %338 : vector<24x32xf32>
    %340 = vector.extract_strided_slice %283 {offsets = [0, 96], sizes = [24, 32], strides = [1, 1]} : vector<48x384xf32> to vector<24x32xf32>
    %cst_127 = arith.constant 0.176776692 : f32
    %341 = vector.broadcast %cst_127 : f32 to vector<24x32xf32>
    %342 = arith.mulf %340, %341 : vector<24x32xf32>
    %343 = vector.extract_strided_slice %283 {offsets = [0, 224], sizes = [24, 32], strides = [1, 1]} : vector<48x384xf32> to vector<24x32xf32>
    %344 = vector.extract_strided_slice %283 {offsets = [0, 352], sizes = [24, 32], strides = [1, 1]} : vector<48x384xf32> to vector<24x32xf32>
    %cst_128 = arith.constant dense<0.000000e+00> : vector<24x24xf32>
    %345 = tpu.matmul %342, %343, %cst_128 {dimension_numbers = #tpu.dot_dimension_numbers<[1], [1], [0], [0], [0, 0, 1, 0], [], []>} : vector<24x32xf32>, vector<24x32xf32>, vector<24x24xf32> -> vector<24x24xf32>
    %346 = vector.broadcast %285 : vector<1x24xf32> to vector<24x24xf32>
    %347 = arith.addf %345, %346 : vector<24x24xf32>
    %cst_129 = arith.constant dense<0xFF800000> : vector<24xf32>
    %348 = vector.multi_reduction <maximumf>, %347, %cst_129 [1] : vector<24x24xf32> to vector<24xf32>
    %349 = vector.shape_cast %348 : vector<24xf32> to vector<24x1xf32>
    %350 = vector.broadcast %349 : vector<24x1xf32> to vector<24x24xf32>
    %351 = arith.subf %347, %350 : vector<24x24xf32>
    %352 = math.exp %351 : vector<24x24xf32>
    %cst_130 = arith.constant dense<0.000000e+00> : vector<24xf32>
    %353 = vector.multi_reduction <add>, %352, %cst_130 [1] : vector<24x24xf32> to vector<24xf32>
    %354 = vector.shape_cast %353 : vector<24xf32> to vector<24x1xf32>
    %cst_131 = arith.constant dense<0.000000e+00> : vector<24x32xf32>
    %355 = tpu.matmul %352, %344, %cst_131 {dimension_numbers = #tpu.dot_dimension_numbers<[1], [0], [0], [1], [0, 0, 1, 1], [], []>} : vector<24x24xf32>, vector<24x32xf32>, vector<24x32xf32> -> vector<24x32xf32>
    %356 = vector.broadcast %354 : vector<24x1xf32> to vector<24x32xf32>
    %357 = arith.divf %355, %356 : vector<24x32xf32>
    %358 = tpu.concatenate %303, %321, %339, %357 in 1 : vector<24x32xf32>, vector<24x32xf32>, vector<24x32xf32>, vector<24x32xf32> -> vector<24x128xf32>
    %359 = vector.extract_strided_slice %25 {offsets = [1, 0, 0], sizes = [1, 1, 24], strides = [1, 1, 1]} : vector<2x1x24xf32> to vector<1x1x24xf32>
    %360 = vector.shape_cast %359 : vector<1x1x24xf32> to vector<1x24xf32>
    %361 = vector.extract_strided_slice %283 {offsets = [24, 0], sizes = [24, 32], strides = [1, 1]} : vector<48x384xf32> to vector<24x32xf32>
    %cst_132 = arith.constant 0.176776692 : f32
    %362 = vector.broadcast %cst_132 : f32 to vector<24x32xf32>
    %363 = arith.mulf %361, %362 : vector<24x32xf32>
    %364 = vector.extract_strided_slice %283 {offsets = [24, 128], sizes = [24, 32], strides = [1, 1]} : vector<48x384xf32> to vector<24x32xf32>
    %365 = vector.extract_strided_slice %283 {offsets = [24, 256], sizes = [24, 32], strides = [1, 1]} : vector<48x384xf32> to vector<24x32xf32>
    %cst_133 = arith.constant dense<0.000000e+00> : vector<24x24xf32>
    %366 = tpu.matmul %363, %364, %cst_133 {dimension_numbers = #tpu.dot_dimension_numbers<[1], [1], [0], [0], [0, 0, 1, 0], [], []>} : vector<24x32xf32>, vector<24x32xf32>, vector<24x24xf32> -> vector<24x24xf32>
    %367 = vector.broadcast %360 : vector<1x24xf32> to vector<24x24xf32>
    %368 = arith.addf %366, %367 : vector<24x24xf32>
    %cst_134 = arith.constant dense<0xFF800000> : vector<24xf32>
    %369 = vector.multi_reduction <maximumf>, %368, %cst_134 [1] : vector<24x24xf32> to vector<24xf32>
    %370 = vector.shape_cast %369 : vector<24xf32> to vector<24x1xf32>
    %371 = vector.broadcast %370 : vector<24x1xf32> to vector<24x24xf32>
    %372 = arith.subf %368, %371 : vector<24x24xf32>
    %373 = math.exp %372 : vector<24x24xf32>
    %cst_135 = arith.constant dense<0.000000e+00> : vector<24xf32>
    %374 = vector.multi_reduction <add>, %373, %cst_135 [1] : vector<24x24xf32> to vector<24xf32>
    %375 = vector.shape_cast %374 : vector<24xf32> to vector<24x1xf32>
    %cst_136 = arith.constant dense<0.000000e+00> : vector<24x32xf32>
    %376 = tpu.matmul %373, %365, %cst_136 {dimension_numbers = #tpu.dot_dimension_numbers<[1], [0], [0], [1], [0, 0, 1, 1], [], []>} : vector<24x24xf32>, vector<24x32xf32>, vector<24x32xf32> -> vector<24x32xf32>
    %377 = vector.broadcast %375 : vector<24x1xf32> to vector<24x32xf32>
    %378 = arith.divf %376, %377 : vector<24x32xf32>
    %379 = vector.extract_strided_slice %283 {offsets = [24, 32], sizes = [24, 32], strides = [1, 1]} : vector<48x384xf32> to vector<24x32xf32>
    %cst_137 = arith.constant 0.176776692 : f32
    %380 = vector.broadcast %cst_137 : f32 to vector<24x32xf32>
    %381 = arith.mulf %379, %380 : vector<24x32xf32>
    %382 = vector.extract_strided_slice %283 {offsets = [24, 160], sizes = [24, 32], strides = [1, 1]} : vector<48x384xf32> to vector<24x32xf32>
    %383 = vector.extract_strided_slice %283 {offsets = [24, 288], sizes = [24, 32], strides = [1, 1]} : vector<48x384xf32> to vector<24x32xf32>
    %cst_138 = arith.constant dense<0.000000e+00> : vector<24x24xf32>
    %384 = tpu.matmul %381, %382, %cst_138 {dimension_numbers = #tpu.dot_dimension_numbers<[1], [1], [0], [0], [0, 0, 1, 0], [], []>} : vector<24x32xf32>, vector<24x32xf32>, vector<24x24xf32> -> vector<24x24xf32>
    %385 = vector.broadcast %360 : vector<1x24xf32> to vector<24x24xf32>
    %386 = arith.addf %384, %385 : vector<24x24xf32>
    %cst_139 = arith.constant dense<0xFF800000> : vector<24xf32>
    %387 = vector.multi_reduction <maximumf>, %386, %cst_139 [1] : vector<24x24xf32> to vector<24xf32>
    %388 = vector.shape_cast %387 : vector<24xf32> to vector<24x1xf32>
    %389 = vector.broadcast %388 : vector<24x1xf32> to vector<24x24xf32>
    %390 = arith.subf %386, %389 : vector<24x24xf32>
    %391 = math.exp %390 : vector<24x24xf32>
    %cst_140 = arith.constant dense<0.000000e+00> : vector<24xf32>
    %392 = vector.multi_reduction <add>, %391, %cst_140 [1] : vector<24x24xf32> to vector<24xf32>
    %393 = vector.shape_cast %392 : vector<24xf32> to vector<24x1xf32>
    %cst_141 = arith.constant dense<0.000000e+00> : vector<24x32xf32>
    %394 = tpu.matmul %391, %383, %cst_141 {dimension_numbers = #tpu.dot_dimension_numbers<[1], [0], [0], [1], [0, 0, 1, 1], [], []>} : vector<24x24xf32>, vector<24x32xf32>, vector<24x32xf32> -> vector<24x32xf32>
    %395 = vector.broadcast %393 : vector<24x1xf32> to vector<24x32xf32>
    %396 = arith.divf %394, %395 : vector<24x32xf32>
    %397 = vector.extract_strided_slice %283 {offsets = [24, 64], sizes = [24, 32], strides = [1, 1]} : vector<48x384xf32> to vector<24x32xf32>
    %cst_142 = arith.constant 0.176776692 : f32
    %398 = vector.broadcast %cst_142 : f32 to vector<24x32xf32>
    %399 = arith.mulf %397, %398 : vector<24x32xf32>
    %400 = vector.extract_strided_slice %283 {offsets = [24, 192], sizes = [24, 32], strides = [1, 1]} : vector<48x384xf32> to vector<24x32xf32>
    %401 = vector.extract_strided_slice %283 {offsets = [24, 320], sizes = [24, 32], strides = [1, 1]} : vector<48x384xf32> to vector<24x32xf32>
    %cst_143 = arith.constant dense<0.000000e+00> : vector<24x24xf32>
    %402 = tpu.matmul %399, %400, %cst_143 {dimension_numbers = #tpu.dot_dimension_numbers<[1], [1], [0], [0], [0, 0, 1, 0], [], []>} : vector<24x32xf32>, vector<24x32xf32>, vector<24x24xf32> -> vector<24x24xf32>
    %403 = vector.broadcast %360 : vector<1x24xf32> to vector<24x24xf32>
    %404 = arith.addf %402, %403 : vector<24x24xf32>
    %cst_144 = arith.constant dense<0xFF800000> : vector<24xf32>
    %405 = vector.multi_reduction <maximumf>, %404, %cst_144 [1] : vector<24x24xf32> to vector<24xf32>
    %406 = vector.shape_cast %405 : vector<24xf32> to vector<24x1xf32>
    %407 = vector.broadcast %406 : vector<24x1xf32> to vector<24x24xf32>
    %408 = arith.subf %404, %407 : vector<24x24xf32>
    %409 = math.exp %408 : vector<24x24xf32>
    %cst_145 = arith.constant dense<0.000000e+00> : vector<24xf32>
    %410 = vector.multi_reduction <add>, %409, %cst_145 [1] : vector<24x24xf32> to vector<24xf32>
    %411 = vector.shape_cast %410 : vector<24xf32> to vector<24x1xf32>
    %cst_146 = arith.constant dense<0.000000e+00> : vector<24x32xf32>
    %412 = tpu.matmul %409, %401, %cst_146 {dimension_numbers = #tpu.dot_dimension_numbers<[1], [0], [0], [1], [0, 0, 1, 1], [], []>} : vector<24x24xf32>, vector<24x32xf32>, vector<24x32xf32> -> vector<24x32xf32>
    %413 = vector.broadcast %411 : vector<24x1xf32> to vector<24x32xf32>
    %414 = arith.divf %412, %413 : vector<24x32xf32>
    %415 = vector.extract_strided_slice %283 {offsets = [24, 96], sizes = [24, 32], strides = [1, 1]} : vector<48x384xf32> to vector<24x32xf32>
    %cst_147 = arith.constant 0.176776692 : f32
    %416 = vector.broadcast %cst_147 : f32 to vector<24x32xf32>
    %417 = arith.mulf %415, %416 : vector<24x32xf32>
    %418 = vector.extract_strided_slice %283 {offsets = [24, 224], sizes = [24, 32], strides = [1, 1]} : vector<48x384xf32> to vector<24x32xf32>
    %419 = vector.extract_strided_slice %283 {offsets = [24, 352], sizes = [24, 32], strides = [1, 1]} : vector<48x384xf32> to vector<24x32xf32>
    %cst_148 = arith.constant dense<0.000000e+00> : vector<24x24xf32>
    %420 = tpu.matmul %417, %418, %cst_148 {dimension_numbers = #tpu.dot_dimension_numbers<[1], [1], [0], [0], [0, 0, 1, 0], [], []>} : vector<24x32xf32>, vector<24x32xf32>, vector<24x24xf32> -> vector<24x24xf32>
    %421 = vector.broadcast %360 : vector<1x24xf32> to vector<24x24xf32>
    %422 = arith.addf %420, %421 : vector<24x24xf32>
    %cst_149 = arith.constant dense<0xFF800000> : vector<24xf32>
    %423 = vector.multi_reduction <maximumf>, %422, %cst_149 [1] : vector<24x24xf32> to vector<24xf32>
    %424 = vector.shape_cast %423 : vector<24xf32> to vector<24x1xf32>
    %425 = vector.broadcast %424 : vector<24x1xf32> to vector<24x24xf32>
    %426 = arith.subf %422, %425 : vector<24x24xf32>
    %427 = math.exp %426 : vector<24x24xf32>
    %cst_150 = arith.constant dense<0.000000e+00> : vector<24xf32>
    %428 = vector.multi_reduction <add>, %427, %cst_150 [1] : vector<24x24xf32> to vector<24xf32>
    %429 = vector.shape_cast %428 : vector<24xf32> to vector<24x1xf32>
    %cst_151 = arith.constant dense<0.000000e+00> : vector<24x32xf32>
    %430 = tpu.matmul %427, %419, %cst_151 {dimension_numbers = #tpu.dot_dimension_numbers<[1], [0], [0], [1], [0, 0, 1, 1], [], []>} : vector<24x24xf32>, vector<24x32xf32>, vector<24x32xf32> -> vector<24x32xf32>
    %431 = vector.broadcast %429 : vector<24x1xf32> to vector<24x32xf32>
    %432 = arith.divf %430, %431 : vector<24x32xf32>
    %433 = tpu.concatenate %378, %396, %414, %432 in 1 : vector<24x32xf32>, vector<24x32xf32>, vector<24x32xf32>, vector<24x32xf32> -> vector<24x128xf32>
    %434 = tpu.concatenate %358, %433 in 0 : vector<24x128xf32>, vector<24x128xf32> -> vector<48x128xf32>
    %435 = arith.truncf %434 : vector<48x128xf32> to vector<48x128xbf16>
    %c1_152 = arith.constant 1 : index
    %c0_153 = arith.constant 0 : index
    %c0_154 = arith.constant 0 : index
    %436 = vector.load %arg6[%c1_152, %c0_153, %c0_154] : memref<2x128x128xbf16, #tpu.memory_space<vmem>>, vector<1x128x128xbf16>
    %437 = vector.shape_cast %436 : vector<1x128x128xbf16> to vector<128x128xbf16>
    %cst_155 = arith.constant dense<0.000000e+00> : vector<48x128xf32>
    %438 = tpu.matmul %435, %437, %cst_155 {dimension_numbers = #tpu.dot_dimension_numbers<[1], [0], [0], [1], [0, 0, 1, 1], [], []>} : vector<48x128xbf16>, vector<128x128xbf16>, vector<48x128xf32> -> vector<48x128xf32>
    %c1_156 = arith.constant 1 : index
    %c0_157 = arith.constant 0 : index
    %c0_158 = arith.constant 0 : index
    %439 = vector.load %arg7[%c1_156, %c0_157, %c0_158] : memref<2x1x128xf32, #tpu.memory_space<vmem>>, vector<1x1x128xf32>
    %440 = vector.shape_cast %439 : vector<1x1x128xf32> to vector<1x128xf32>
    %441 = vector.broadcast %440 : vector<1x128xf32> to vector<48x128xf32>
    %442 = arith.addf %438, %441 : vector<48x128xf32>
    %443 = arith.addf %275, %442 : vector<48x128xf32>
    %c1_159 = arith.constant 1 : index
    %c0_160 = arith.constant 0 : index
    %c0_161 = arith.constant 0 : index
    %444 = vector.load %arg8[%c1_159, %c0_160, %c0_161] : memref<2x1x128xf32, #tpu.memory_space<vmem>>, vector<1x1x128xf32>
    %445 = vector.shape_cast %444 : vector<1x1x128xf32> to vector<1x128xf32>
    %c1_162 = arith.constant 1 : index
    %c0_163 = arith.constant 0 : index
    %c0_164 = arith.constant 0 : index
    %446 = vector.load %arg9[%c1_162, %c0_163, %c0_164] : memref<2x1x128xf32, #tpu.memory_space<vmem>>, vector<1x1x128xf32>
    %447 = vector.shape_cast %446 : vector<1x1x128xf32> to vector<1x128xf32>
    %cst_165 = arith.constant dense<0.000000e+00> : vector<48xf32>
    %448 = vector.multi_reduction <add>, %443, %cst_165 [1] : vector<48x128xf32> to vector<48xf32>
    %449 = vector.shape_cast %448 : vector<48xf32> to vector<48x1xf32>
    %cst_166 = arith.constant 1.280000e+02 : f32
    %450 = vector.broadcast %cst_166 : f32 to vector<48x1xf32>
    %451 = arith.divf %449, %450 : vector<48x1xf32>
    %452 = vector.broadcast %451 : vector<48x1xf32> to vector<48x128xf32>
    %453 = arith.subf %443, %452 : vector<48x128xf32>
    %454 = arith.mulf %453, %453 : vector<48x128xf32>
    %cst_167 = arith.constant dense<0.000000e+00> : vector<48xf32>
    %455 = vector.multi_reduction <add>, %454, %cst_167 [1] : vector<48x128xf32> to vector<48xf32>
    %456 = vector.shape_cast %455 : vector<48xf32> to vector<48x1xf32>
    %cst_168 = arith.constant 1.280000e+02 : f32
    %457 = vector.broadcast %cst_168 : f32 to vector<48x1xf32>
    %458 = arith.divf %456, %457 : vector<48x1xf32>
    %459 = vector.broadcast %451 : vector<48x1xf32> to vector<48x128xf32>
    %460 = arith.subf %443, %459 : vector<48x128xf32>
    %cst_169 = arith.constant 9.99999996E-13 : f32
    %461 = vector.broadcast %cst_169 : f32 to vector<48x1xf32>
    %462 = arith.addf %458, %461 : vector<48x1xf32>
    %463 = math.rsqrt %462 : vector<48x1xf32>
    %464 = vector.broadcast %463 : vector<48x1xf32> to vector<48x128xf32>
    %465 = arith.mulf %460, %464 : vector<48x128xf32>
    %466 = vector.broadcast %445 : vector<1x128xf32> to vector<48x128xf32>
    %467 = arith.mulf %465, %466 : vector<48x128xf32>
    %468 = vector.broadcast %447 : vector<1x128xf32> to vector<48x128xf32>
    %469 = arith.addf %467, %468 : vector<48x128xf32>
    %470 = arith.truncf %469 : vector<48x128xf32> to vector<48x128xbf16>
    %c1_170 = arith.constant 1 : index
    %c0_171 = arith.constant 0 : index
    %c0_172 = arith.constant 0 : index
    %471 = vector.load %arg10[%c1_170, %c0_171, %c0_172] : memref<2x128x256xbf16, #tpu.memory_space<vmem>>, vector<1x128x256xbf16>
    %472 = vector.shape_cast %471 : vector<1x128x256xbf16> to vector<128x256xbf16>
    %cst_173 = arith.constant dense<0.000000e+00> : vector<48x256xf32>
    %473 = tpu.matmul %470, %472, %cst_173 {dimension_numbers = #tpu.dot_dimension_numbers<[1], [0], [0], [1], [0, 0, 1, 1], [], []>} : vector<48x128xbf16>, vector<128x256xbf16>, vector<48x256xf32> -> vector<48x256xf32>
    %c1_174 = arith.constant 1 : index
    %c0_175 = arith.constant 0 : index
    %c0_176 = arith.constant 0 : index
    %474 = vector.load %arg11[%c1_174, %c0_175, %c0_176] : memref<2x1x256xf32, #tpu.memory_space<vmem>>, vector<1x1x256xf32>
    %475 = vector.shape_cast %474 : vector<1x1x256xf32> to vector<1x256xf32>
    %476 = vector.broadcast %475 : vector<1x256xf32> to vector<48x256xf32>
    %477 = arith.addf %473, %476 : vector<48x256xf32>
    %478 = arith.mulf %477, %477 : vector<48x256xf32>
    %479 = arith.mulf %477, %478 : vector<48x256xf32>
    %cst_177 = arith.constant 4.471500e-02 : f32
    %480 = vector.broadcast %cst_177 : f32 to vector<48x256xf32>
    %481 = arith.mulf %480, %479 : vector<48x256xf32>
    %482 = arith.addf %477, %481 : vector<48x256xf32>
    %cst_178 = arith.constant 0.797884583 : f32
    %483 = vector.broadcast %cst_178 : f32 to vector<48x256xf32>
    %484 = arith.mulf %483, %482 : vector<48x256xf32>
    %485 = math.tanh %484 : vector<48x256xf32>
    %cst_179 = arith.constant 1.000000e+00 : f32
    %486 = vector.broadcast %cst_179 : f32 to vector<48x256xf32>
    %487 = arith.addf %486, %485 : vector<48x256xf32>
    %cst_180 = arith.constant 5.000000e-01 : f32
    %488 = vector.broadcast %cst_180 : f32 to vector<48x256xf32>
    %489 = arith.mulf %488, %487 : vector<48x256xf32>
    %490 = arith.mulf %477, %489 : vector<48x256xf32>
    %491 = arith.truncf %490 : vector<48x256xf32> to vector<48x256xbf16>
    %c1_181 = arith.constant 1 : index
    %c0_182 = arith.constant 0 : index
    %c0_183 = arith.constant 0 : index
    %492 = vector.load %arg12[%c1_181, %c0_182, %c0_183] : memref<2x256x128xbf16, #tpu.memory_space<vmem>>, vector<1x256x128xbf16>
    %493 = vector.shape_cast %492 : vector<1x256x128xbf16> to vector<256x128xbf16>
    %cst_184 = arith.constant dense<0.000000e+00> : vector<48x128xf32>
    %494 = tpu.matmul %491, %493, %cst_184 {dimension_numbers = #tpu.dot_dimension_numbers<[1], [0], [0], [1], [0, 0, 1, 1], [], []>} : vector<48x256xbf16>, vector<256x128xbf16>, vector<48x128xf32> -> vector<48x128xf32>
    %c1_185 = arith.constant 1 : index
    %c0_186 = arith.constant 0 : index
    %c0_187 = arith.constant 0 : index
    %495 = vector.load %arg13[%c1_185, %c0_186, %c0_187] : memref<2x1x128xf32, #tpu.memory_space<vmem>>, vector<1x1x128xf32>
    %496 = vector.shape_cast %495 : vector<1x1x128xf32> to vector<1x128xf32>
    %497 = vector.broadcast %496 : vector<1x128xf32> to vector<48x128xf32>
    %498 = arith.addf %494, %497 : vector<48x128xf32>
    %499 = arith.addf %469, %498 : vector<48x128xf32>
    %c1_188 = arith.constant 1 : index
    %c0_189 = arith.constant 0 : index
    %c0_190 = arith.constant 0 : index
    %500 = vector.load %arg14[%c1_188, %c0_189, %c0_190] : memref<2x1x128xf32, #tpu.memory_space<vmem>>, vector<1x1x128xf32>
    %501 = vector.shape_cast %500 : vector<1x1x128xf32> to vector<1x128xf32>
    %c1_191 = arith.constant 1 : index
    %c0_192 = arith.constant 0 : index
    %c0_193 = arith.constant 0 : index
    %502 = vector.load %arg15[%c1_191, %c0_192, %c0_193] : memref<2x1x128xf32, #tpu.memory_space<vmem>>, vector<1x1x128xf32>
    %503 = vector.shape_cast %502 : vector<1x1x128xf32> to vector<1x128xf32>
    %cst_194 = arith.constant dense<0.000000e+00> : vector<48xf32>
    %504 = vector.multi_reduction <add>, %499, %cst_194 [1] : vector<48x128xf32> to vector<48xf32>
    %505 = vector.shape_cast %504 : vector<48xf32> to vector<48x1xf32>
    %cst_195 = arith.constant 1.280000e+02 : f32
    %506 = vector.broadcast %cst_195 : f32 to vector<48x1xf32>
    %507 = arith.divf %505, %506 : vector<48x1xf32>
    %508 = vector.broadcast %507 : vector<48x1xf32> to vector<48x128xf32>
    %509 = arith.subf %499, %508 : vector<48x128xf32>
    %510 = arith.mulf %509, %509 : vector<48x128xf32>
    %cst_196 = arith.constant dense<0.000000e+00> : vector<48xf32>
    %511 = vector.multi_reduction <add>, %510, %cst_196 [1] : vector<48x128xf32> to vector<48xf32>
    %512 = vector.shape_cast %511 : vector<48xf32> to vector<48x1xf32>
    %cst_197 = arith.constant 1.280000e+02 : f32
    %513 = vector.broadcast %cst_197 : f32 to vector<48x1xf32>
    %514 = arith.divf %512, %513 : vector<48x1xf32>
    %515 = vector.broadcast %507 : vector<48x1xf32> to vector<48x128xf32>
    %516 = arith.subf %499, %515 : vector<48x128xf32>
    %cst_198 = arith.constant 9.99999996E-13 : f32
    %517 = vector.broadcast %cst_198 : f32 to vector<48x1xf32>
    %518 = arith.addf %514, %517 : vector<48x1xf32>
    %519 = math.rsqrt %518 : vector<48x1xf32>
    %520 = vector.broadcast %519 : vector<48x1xf32> to vector<48x128xf32>
    %521 = arith.mulf %516, %520 : vector<48x128xf32>
    %522 = vector.broadcast %501 : vector<1x128xf32> to vector<48x128xf32>
    %523 = arith.mulf %521, %522 : vector<48x128xf32>
    %524 = vector.broadcast %503 : vector<1x128xf32> to vector<48x128xf32>
    %525 = arith.addf %523, %524 : vector<48x128xf32>
    %c0_199 = arith.constant 0 : index
    %c0_200 = arith.constant 0 : index
    %526 = vector.load %arg3[%c0_199, %c0_200] : memref<2x48xf32, #tpu.memory_space<vmem>>, vector<2x48xf32>
    %cst_201 = arith.constant dense<0.000000e+00> : vector<2x128xf32>
    %527 = tpu.matmul %526, %525, %cst_201 {dimension_numbers = #tpu.dot_dimension_numbers<[1], [0], [0], [1], [0, 0, 1, 1], [], []>} : vector<2x48xf32>, vector<48x128xf32>, vector<2x128xf32> -> vector<2x128xf32>
    %528 = arith.truncf %527 : vector<2x128xf32> to vector<2x128xbf16>
    %c0_202 = arith.constant 0 : index
    %c0_203 = arith.constant 0 : index
    %529 = vector.load %arg18[%c0_202, %c0_203] : memref<128x128xbf16, #tpu.memory_space<vmem>>, vector<128x128xbf16>
    %cst_204 = arith.constant dense<0.000000e+00> : vector<2x128xf32>
    %530 = tpu.matmul %528, %529, %cst_204 {dimension_numbers = #tpu.dot_dimension_numbers<[1], [0], [0], [1], [0, 0, 1, 1], [], []>} : vector<2x128xbf16>, vector<128x128xbf16>, vector<2x128xf32> -> vector<2x128xf32>
    %c0_205 = arith.constant 0 : index
    %c0_206 = arith.constant 0 : index
    %531 = vector.load %arg19[%c0_205, %c0_206] : memref<1x128xf32, #tpu.memory_space<vmem>>, vector<1x128xf32>
    %532 = vector.broadcast %531 : vector<1x128xf32> to vector<2x128xf32>
    %533 = arith.addf %530, %532 : vector<2x128xf32>
    %534 = arith.mulf %533, %533 : vector<2x128xf32>
    %535 = arith.mulf %533, %534 : vector<2x128xf32>
    %cst_207 = arith.constant 4.471500e-02 : f32
    %536 = vector.broadcast %cst_207 : f32 to vector<2x128xf32>
    %537 = arith.mulf %536, %535 : vector<2x128xf32>
    %538 = arith.addf %533, %537 : vector<2x128xf32>
    %cst_208 = arith.constant 0.797884583 : f32
    %539 = vector.broadcast %cst_208 : f32 to vector<2x128xf32>
    %540 = arith.mulf %539, %538 : vector<2x128xf32>
    %541 = math.tanh %540 : vector<2x128xf32>
    %cst_209 = arith.constant 1.000000e+00 : f32
    %542 = vector.broadcast %cst_209 : f32 to vector<2x128xf32>
    %543 = arith.addf %542, %541 : vector<2x128xf32>
    %cst_210 = arith.constant 5.000000e-01 : f32
    %544 = vector.broadcast %cst_210 : f32 to vector<2x128xf32>
    %545 = arith.mulf %544, %543 : vector<2x128xf32>
    %546 = arith.mulf %533, %545 : vector<2x128xf32>
    %c0_211 = arith.constant 0 : index
    %c0_212 = arith.constant 0 : index
    %547 = vector.load %arg20[%c0_211, %c0_212] : memref<1x128xf32, #tpu.memory_space<vmem>>, vector<1x128xf32>
    %c0_213 = arith.constant 0 : index
    %c0_214 = arith.constant 0 : index
    %548 = vector.load %arg21[%c0_213, %c0_214] : memref<1x128xf32, #tpu.memory_space<vmem>>, vector<1x128xf32>
    %cst_215 = arith.constant dense<0.000000e+00> : vector<2xf32>
    %549 = vector.multi_reduction <add>, %546, %cst_215 [1] : vector<2x128xf32> to vector<2xf32>
    %550 = vector.shape_cast %549 : vector<2xf32> to vector<2x1xf32>
    %cst_216 = arith.constant 1.280000e+02 : f32
    %551 = vector.broadcast %cst_216 : f32 to vector<2x1xf32>
    %552 = arith.divf %550, %551 : vector<2x1xf32>
    %553 = vector.broadcast %552 : vector<2x1xf32> to vector<2x128xf32>
    %554 = arith.subf %546, %553 : vector<2x128xf32>
    %555 = arith.mulf %554, %554 : vector<2x128xf32>
    %cst_217 = arith.constant dense<0.000000e+00> : vector<2xf32>
    %556 = vector.multi_reduction <add>, %555, %cst_217 [1] : vector<2x128xf32> to vector<2xf32>
    %557 = vector.shape_cast %556 : vector<2xf32> to vector<2x1xf32>
    %cst_218 = arith.constant 1.280000e+02 : f32
    %558 = vector.broadcast %cst_218 : f32 to vector<2x1xf32>
    %559 = arith.divf %557, %558 : vector<2x1xf32>
    %560 = vector.broadcast %552 : vector<2x1xf32> to vector<2x128xf32>
    %561 = arith.subf %546, %560 : vector<2x128xf32>
    %cst_219 = arith.constant 9.99999996E-13 : f32
    %562 = vector.broadcast %cst_219 : f32 to vector<2x1xf32>
    %563 = arith.addf %559, %562 : vector<2x1xf32>
    %564 = math.rsqrt %563 : vector<2x1xf32>
    %565 = vector.broadcast %564 : vector<2x1xf32> to vector<2x128xf32>
    %566 = arith.mulf %561, %565 : vector<2x128xf32>
    %567 = vector.broadcast %547 : vector<1x128xf32> to vector<2x128xf32>
    %568 = arith.mulf %566, %567 : vector<2x128xf32>
    %569 = vector.broadcast %548 : vector<1x128xf32> to vector<2x128xf32>
    %570 = arith.addf %568, %569 : vector<2x128xf32>
    %571 = arith.truncf %570 : vector<2x128xf32> to vector<2x128xbf16>
    %c0_220 = arith.constant 0 : index
    %c0_221 = arith.constant 0 : index
    %572 = vector.load %arg22[%c0_220, %c0_221] : memref<128x512xbf16, #tpu.memory_space<vmem>>, vector<128x512xbf16>
    %cst_222 = arith.constant dense<0.000000e+00> : vector<2x512xf32>
    %573 = tpu.matmul %571, %572, %cst_222 {dimension_numbers = #tpu.dot_dimension_numbers<[1], [0], [0], [1], [0, 0, 1, 1], [], []>} : vector<2x128xbf16>, vector<128x512xbf16>, vector<2x512xf32> -> vector<2x512xf32>
    %c0_223 = arith.constant 0 : index
    %c0_224 = arith.constant 0 : index
    %574 = vector.load %arg23[%c0_223, %c0_224] : memref<1x512xf32, #tpu.memory_space<vmem>>, vector<1x512xf32>
    %575 = vector.broadcast %574 : vector<1x512xf32> to vector<2x512xf32>
    %576 = arith.addf %573, %575 : vector<2x512xf32>
    %c0_225 = arith.constant 0 : index
    %c0_226 = arith.constant 0 : index
    %577 = vector.load %arg24[%c0_225, %c0_226] : memref<2x512xf32, #tpu.memory_space<vmem>>, vector<2x512xf32>
    tpu.vector_store %arg24[%c0_225, %c0_226], %576 {strides = array<i32>} : memref<2x512xf32, #tpu.memory_space<vmem>>, vector<2x512xf32>,
    return
  }
  func.func @transform_0(%arg0: i32) -> (i32, i32) {
    %c0_i32 = arith.constant 0 : i32
    %c0_i32_0 = arith.constant 0 : i32
    %c0_i32_1 = arith.constant 0 : i32
    return %c0_i32, %c0_i32_0 : i32, i32
  }
  func.func @transform_1(%arg0: i32) -> (i32, i32, i32) {
    %c0_i32 = arith.constant 0 : i32
    %c0_i32_0 = arith.constant 0 : i32
    %c0_i32_1 = arith.constant 0 : i32
    %c0_i32_2 = arith.constant 0 : i32
    return %c0_i32, %c0_i32_0, %c0_i32_1 : i32, i32, i32
  }
  func.func @transform_2(%arg0: i32) -> (i32, i32) {
    %c0_i32 = arith.constant 0 : i32
    %c0_i32_0 = arith.constant 0 : i32
    %c0_i32_1 = arith.constant 0 : i32
    return %c0_i32, %c0_i32_0 : i32, i32
  }
  func.func @transform_3(%arg0: i32) -> (i32, i32, i32) {
    %c0_i32 = arith.constant 0 : i32
    %c0_i32_0 = arith.constant 0 : i32
    %c0_i32_1 = arith.constant 0 : i32
    %c0_i32_2 = arith.constant 0 : i32
    return %c0_i32, %c0_i32_0, %c0_i32_1 : i32, i32, i32
  }
  func.func @transform_4(%arg0: i32) -> (i32, i32, i32) {
    %c0_i32 = arith.constant 0 : i32
    %c0_i32_0 = arith.constant 0 : i32
    %c0_i32_1 = arith.constant 0 : i32
    %c0_i32_2 = arith.constant 0 : i32
    return %c0_i32, %c0_i32_0, %c0_i32_1 : i32, i32, i32
  }
  func.func @transform_5(%arg0: i32) -> (i32, i32, i32) {
    %c0_i32 = arith.constant 0 : i32
    %c0_i32_0 = arith.constant 0 : i32
    %c0_i32_1 = arith.constant 0 : i32
    %c0_i32_2 = arith.constant 0 : i32
    return %c0_i32, %c0_i32_0, %c0_i32_1 : i32, i32, i32
  }
  func.func @transform_6(%arg0: i32) -> (i32, i32, i32) {
    %c0_i32 = arith.constant 0 : i32
    %c0_i32_0 = arith.constant 0 : i32
    %c0_i32_1 = arith.constant 0 : i32
    %c0_i32_2 = arith.constant 0 : i32
    return %c0_i32, %c0_i32_0, %c0_i32_1 : i32, i32, i32
  }
  func.func @transform_7(%arg0: i32) -> (i32, i32, i32) {
    %c0_i32 = arith.constant 0 : i32
    %c0_i32_0 = arith.constant 0 : i32
    %c0_i32_1 = arith.constant 0 : i32
    %c0_i32_2 = arith.constant 0 : i32
    return %c0_i32, %c0_i32_0, %c0_i32_1 : i32, i32, i32
  }
  func.func @transform_8(%arg0: i32) -> (i32, i32, i32) {
    %c0_i32 = arith.constant 0 : i32
    %c0_i32_0 = arith.constant 0 : i32
    %c0_i32_1 = arith.constant 0 : i32
    %c0_i32_2 = arith.constant 0 : i32
    return %c0_i32, %c0_i32_0, %c0_i32_1 : i32, i32, i32
  }
  func.func @transform_9(%arg0: i32) -> (i32, i32, i32) {
    %c0_i32 = arith.constant 0 : i32
    %c0_i32_0 = arith.constant 0 : i32
    %c0_i32_1 = arith.constant 0 : i32
    %c0_i32_2 = arith.constant 0 : i32
    return %c0_i32, %c0_i32_0, %c0_i32_1 : i32, i32, i32
  }
  func.func @transform_10(%arg0: i32) -> (i32, i32, i32) {
    %c0_i32 = arith.constant 0 : i32
    %c0_i32_0 = arith.constant 0 : i32
    %c0_i32_1 = arith.constant 0 : i32
    %c0_i32_2 = arith.constant 0 : i32
    return %c0_i32, %c0_i32_0, %c0_i32_1 : i32, i32, i32
  }
  func.func @transform_11(%arg0: i32) -> (i32, i32, i32) {
    %c0_i32 = arith.constant 0 : i32
    %c0_i32_0 = arith.constant 0 : i32
    %c0_i32_1 = arith.constant 0 : i32
    %c0_i32_2 = arith.constant 0 : i32
    return %c0_i32, %c0_i32_0, %c0_i32_1 : i32, i32, i32
  }
  func.func @transform_12(%arg0: i32) -> (i32, i32, i32) {
    %c0_i32 = arith.constant 0 : i32
    %c0_i32_0 = arith.constant 0 : i32
    %c0_i32_1 = arith.constant 0 : i32
    %c0_i32_2 = arith.constant 0 : i32
    return %c0_i32, %c0_i32_0, %c0_i32_1 : i32, i32, i32
  }
  func.func @transform_13(%arg0: i32) -> (i32, i32, i32) {
    %c0_i32 = arith.constant 0 : i32
    %c0_i32_0 = arith.constant 0 : i32
    %c0_i32_1 = arith.constant 0 : i32
    %c0_i32_2 = arith.constant 0 : i32
    return %c0_i32, %c0_i32_0, %c0_i32_1 : i32, i32, i32
  }
  func.func @transform_14(%arg0: i32) -> (i32, i32, i32) {
    %c0_i32 = arith.constant 0 : i32
    %c0_i32_0 = arith.constant 0 : i32
    %c0_i32_1 = arith.constant 0 : i32
    %c0_i32_2 = arith.constant 0 : i32
    return %c0_i32, %c0_i32_0, %c0_i32_1 : i32, i32, i32
  }
  func.func @transform_15(%arg0: i32) -> (i32, i32) {
    %c0_i32 = arith.constant 0 : i32
    %c0_i32_0 = arith.constant 0 : i32
    %c0_i32_1 = arith.constant 0 : i32
    return %c0_i32, %c0_i32_0 : i32, i32
  }
  func.func @transform_16(%arg0: i32) -> (i32, i32) {
    %c0_i32 = arith.constant 0 : i32
    %c0_i32_0 = arith.constant 0 : i32
    %c0_i32_1 = arith.constant 0 : i32
    return %c0_i32, %c0_i32_0 : i32, i32
  }
  func.func @transform_17(%arg0: i32) -> (i32, i32) {
    %c0_i32 = arith.constant 0 : i32
    %c0_i32_0 = arith.constant 0 : i32
    %c0_i32_1 = arith.constant 0 : i32
    return %c0_i32, %c0_i32_0 : i32, i32
  }
  func.func @transform_18(%arg0: i32) -> (i32, i32) {
    %c0_i32 = arith.constant 0 : i32
    %c0_i32_0 = arith.constant 0 : i32
    %c0_i32_1 = arith.constant 0 : i32
    return %c0_i32, %c0_i32_0 : i32, i32
  }
  func.func @transform_19(%arg0: i32) -> (i32, i32) {
    %c0_i32 = arith.constant 0 : i32
    %c0_i32_0 = arith.constant 0 : i32
    %c0_i32_1 = arith.constant 0 : i32
    return %c0_i32, %c0_i32_0 : i32, i32
  }
  func.func @transform_20(%arg0: i32) -> (i32, i32) {
    %c0_i32 = arith.constant 0 : i32
    %c0_i32_0 = arith.constant 0 : i32
    %c0_i32_1 = arith.constant 0 : i32
    return %c0_i32, %c0_i32_0 : i32, i32
  }
  func.func @transform_21(%arg0: i32) -> (i32, i32) {
    %c0_i32 = arith.constant 0 : i32
    %c0_i32_0 = arith.constant 0 : i32
    %c0_i32_1 = arith.constant 0 : i32
    return %c0_i32, %c0_i32_0 : i32, i32
  }
  func.func @transform_22(%arg0: i32) -> (i32, i32) {
    %c0_i32 = arith.constant 0 : i32
    %c0_i32_0 = arith.constant 0 : i32
    %c0_i32_1 = arith.constant 0 : i32
    return %c0_i32, %c0_i32_0 : i32, i32
  }
  func.func @transform_23(%arg0: i32) -> (i32, i32) {
    %c0_i32 = arith.constant 0 : i32
    %c0_i32_0 = arith.constant 0 : i32
    %c0_i32_1 = arith.constant 0 : i32
    return %c0_i32, %c0_i32_0 : i32, i32
  }
}

</mosaic_0001>

<bundles_post_ra>
// kernel: custom-call.18
= control target key start
LH: loop header
LB: loop body
LE: loop exit
PB: predicated region body
PF: predicated region fallthrough
CT: control target
= control target key end

     0   :  { %s6_s0 = inlined_call_operand.hbm [shape: f32[2,512], index: 0, kind: output, shape index: {}]  }

// kernel: custom-call.10
= control target key start
LH: loop header
LB: loop body
LE: loop exit
PB: predicated region body
PF: predicated region fallthrough
CT: control target
= control target key end

     0   :  { %s6_s0 = inlined_call_operand.vmem [shape: pred[2], index: 0, kind: output, shape index: {}]  }

// kernel: _device_forward.1
= control target key start
LH: loop header
LB: loop body
LE: loop exit
PB: predicated region body
PF: predicated region fallthrough
CT: control target
= control target key end

     0   :  { %14 = vsyncpa [#allocation3], 0  ;;  %s410_s0 = inlined_call_operand.vmem [shape: f32[8,256], index: 0, kind: input, shape index: {}]   ;;  %s411_s1 = inlined_call_operand.hbm [shape: f32[256,128], index: 1, kind: input, shape index: {}]   ;;  %s412_s2 = inlined_call_operand.vmem [shape: f32[1,128], index: 2, kind: input, shape index: {}]   ;;  %s413_s3 = inlined_call_operand.hbm [shape: f32[128,128], index: 3, kind: input, shape index: {}]   ;;  %s414_s4 = inlined_call_operand.vmem [shape: f32[1,128], index: 4, kind: input, shape index: {}]   ;;  %s415_s5 = inlined_call_operand.hbm [shape: f32[128,128], index: 5, kind: input, shape index: {}]   ;;  %s416_s6 = inlined_call_operand.vmem [shape: f32[1,128], index: 6, kind: input, shape index: {}]   ;;  %s417_s7 = inlined_call_operand.vmem [shape: f32[8,128], index: 7, kind: output, shape index: {0}]   ;;  %s418_s8 = inlined_call_operand.vmem [shape: f32[8,128], index: 8, kind: output, shape index: {1}]  }
   0x1   :  { %15 = vsyncpa [#allocation5], 0  ;;  %s37_s29 = sshll.u32 %s413_s3, 4  ;;  %s330_s30 = smov [#allocation4]   ;;  %s38_s29 = int_to_ptr.hbm [resolvable:$true] %s37_s29 }
   0x2   :  { %s39_s9 = sshll.u32 %s330_s30, 4  ;;  %s22_s12 = sshll.u32 %s411_s1, 4  ;;  %s40_s9 = int_to_ptr.vmem [resolvable:$true] %s39_s9  ;;  %s23_s12 = int_to_ptr.hbm [resolvable:$true] %s22_s12 }
   0x3   :  { %s331_s13 = smov 128   ;;  %s332_s14 = smov 8  }
   0x4   :  { %45 = dma.hbm_to_vmem [thread:$0]  %s38_s29, 2048, %s40_s9, [#allocation5], %s331_s13, %s331_s13, %s332_s14  }
   0x5   :  { %s333_s15 = smov [#allocation2]   ;;  %s52_s19 = sshll.u32 %s415_s5, 4  ;;  %s53_s19 = int_to_ptr.hbm [resolvable:$true] %s52_s19 }
   0x6   :  { %s24_s16 = sshll.u32 %s333_s15, 4  ;;  %s334_s3 = smov [#allocation6]   ;;  %s25_s16 = int_to_ptr.vmem [resolvable:$true] %s24_s16 }
   0x7   :  { %30 = dma.hbm_to_vmem [thread:$0]  %s23_s12, 4096, %s25_s16, [#allocation3], %s331_s13, %s331_s13, %s332_s14  }
   0x8   :  { %s54_s20 = sshll.u32 %s334_s3, 4  ;;  %s55_s20 = int_to_ptr.vmem [resolvable:$true] %s54_s20 }
   0x9   :  { %60 = dma.hbm_to_vmem [thread:$0]  %s53_s19, 2048, %s55_s20, [#allocation5], %s331_s13, %s331_s13, %s332_s14  }
   0xa   :  { %326 = dma.done.wait [#allocation3], 4096  }
   0xb   :  { %327 = vsyncadd [#allocation3], 4294963200 }
   0xc   :  { %328 = dma.done.wait [#allocation5], 4096  }
   0xd   :  { %329 = vsyncadd [#allocation5], 4294963200  ;;  %v92_v0 = vld [vmem:[#allocation2 + $0x78] sm:$0xff]  ;;  %v91_v1 = vld [vmem:[#allocation2 + $0x70] sm:$0xff] }
   0xe   :  { %v108_v2 = vld [vmem:[#allocation2 + $0xf8] sm:$0xff]  ;;  %113 = vmatpush.msra.mxu0 %v92_v0  ;;  %v107_v3 = vld [vmem:[#allocation2 + $0xf0] sm:$0xff]  ;;  %v90_v4 = vld [vmem:[#allocation2 + $0x68] sm:$0xff] }
   0xf   :  { %133 = vmatpush.msra.mxu1 %v108_v2  ;;  %v106_v5 = vld [vmem:[#allocation2 + $0xe8] sm:$0xff]  ;;  %v89_v6 = vld [vmem:[#allocation2 + $0x60] sm:$0xff]  ;;  %v88_v8 = vld [vmem:[#allocation2 + $0x58] sm:$0xff] }
  0x10   :  { %114 = vmatpush.msra.mxu0 %v91_v1  ;;  %v105_v7 = vld [vmem:[#allocation2 + $0xe0] sm:$0xff]  ;;  %v104_v9 = vld [vmem:[#allocation2 + $0xd8] sm:$0xff]  ;;  %v87_v10 = vld [vmem:[#allocation2 + $0x50] sm:$0xff] }
  0x11   :  { %134 = vmatpush.msra.mxu1 %v107_v3  ;;  %v103_v11 = vld [vmem:[#allocation2 + $0xd0] sm:$0xff]  ;;  %v86_v12 = vld [vmem:[#allocation2 + $0x48] sm:$0xff]  ;;  %v85_v14 = vld [vmem:[#allocation2 + $0x40] sm:$0xff] }
  0x12   :  { %115 = vmatpush.msra.mxu0 %v90_v4  ;;  %v102_v13 = vld [vmem:[#allocation2 + $0xc8] sm:$0xff]  ;;  %v169_v15 = vld [vmem:[#allocation4 + $0x78] sm:$0xff]  ;;  %v101_v17 = vld [vmem:[#allocation2 + $0xc0] sm:$0xff] }
  0x13   :  { %135 = vmatpush.msra.mxu1 %v106_v5  ;;  %v209_v16 = vld [vmem:[#allocation6 + $0x78] sm:$0xff]  ;;  %174 = vmatpush.msra.mxu2 %v169_v15  ;;  %v168_v18 = vld [vmem:[#allocation4 + $0x70] sm:$0xff]  ;;  %v167_v20 = vld [vmem:[#allocation4 + $0x68] sm:$0xff] }
  0x14   :  { %116 = vmatpush.msra.mxu0 %v89_v6  ;;  %214 = vmatpush.msra.mxu3 %v209_v16  ;;  %v208_v19 = vld [vmem:[#allocation6 + $0x70] sm:$0xff]  ;;  %v207_v21 = vld [vmem:[#allocation6 + $0x68] sm:$0xff]  ;;  %v84_v22 = vld [vmem:[#allocation2 + $0x38] sm:$0xff] }
  0x15   :  { %136 = vmatpush.msra.mxu1 %v105_v7  ;;  %v100_v23 = vld [vmem:[#allocation2 + $0xb8] sm:$0xff]  ;;  %175 = vmatpush.msra.mxu2 %v168_v18  ;;  %v166_v24 = vld [vmem:[#allocation4 + $0x60] sm:$0xff]  ;;  %v83_v26 = vld [vmem:[#allocation2 + $0x30] sm:$0xff] }
  0x16   :  { %117 = vmatpush.msra.mxu0 %v88_v8  ;;  %215 = vmatpush.msra.mxu3 %v208_v19  ;;  %v206_v25 = vld [vmem:[#allocation6 + $0x60] sm:$0xff]  ;;  %v99_v27 = vld [vmem:[#allocation2 + $0xb0] sm:$0xff]  ;;  %v165_v28 = vld [vmem:[#allocation4 + $0x58] sm:$0xff] }
  0x17   :  { %137 = vmatpush.msra.mxu1 %v104_v9  ;;  %176 = vmatpush.msra.mxu2 %v167_v20  ;;  %v205_v29 = vld [vmem:[#allocation6 + $0x58] sm:$0xff]  ;;  %v82_v30 = vld [vmem:[#allocation2 + $0x28] sm:$0xff]  ;;  %v81_v31 = vld [vmem:[#allocation2 + $0x20] sm:$0xff] }
  0x18   :  { %118 = vmatpush.msra.mxu0 %v87_v10  ;;  %216 = vmatpush.msra.mxu3 %v207_v21  ;;  %v98_v32 = vld [vmem:[#allocation2 + $0xa8] sm:$0xff]  ;;  %v164_v33 = vld [vmem:[#allocation4 + $0x50] sm:$0xff]  ;;  %v97_v35 = vld [vmem:[#allocation2 + $0xa0] sm:$0xff] }
  0x19   :  { %138 = vmatpush.msra.mxu1 %v103_v11  ;;  %177 = vmatpush.msra.mxu2 %v166_v24  ;;  %v204_v34 = vld [vmem:[#allocation6 + $0x50] sm:$0xff]  ;;  %v163_v36 = vld [vmem:[#allocation4 + $0x48] sm:$0xff]  ;;  %v80_v38 = vld [vmem:[#allocation2 + $0x18] sm:$0xff] }
  0x1a   :  { %119 = vmatpush.msra.mxu0 %v86_v12  ;;  %217 = vmatpush.msra.mxu3 %v206_v25  ;;  %v203_v37 = vld [vmem:[#allocation6 + $0x48] sm:$0xff]  ;;  %v96_v39 = vld [vmem:[#allocation2 + $0x98] sm:$0xff]  ;;  %v162_v40 = vld [vmem:[#allocation4 + $0x40] sm:$0xff] }
  0x1b   :  { %139 = vmatpush.msra.mxu1 %v102_v13  ;;  %178 = vmatpush.msra.mxu2 %v165_v28  ;;  %v202_v41 = vld [vmem:[#allocation6 + $0x40] sm:$0xff]  ;;  %v79_v42 = vld [vmem:[#allocation2 + $0x10] sm:$0xff]  ;;  %v161_v44 = vld [vmem:[#allocation4 + $0x38] sm:$0xff] }
  0x1c   :  { %120 = vmatpush.msra.mxu0 %v85_v14  ;;  %218 = vmatpush.msra.mxu3 %v205_v29  ;;  %v95_v43 = vld [vmem:[#allocation2 + $0x90] sm:$0xff]  ;;  %v201_v45 = vld [vmem:[#allocation6 + $0x38] sm:$0xff]  ;;  %v78_v46 = vld [vmem:[#allocation2 + $0x8] sm:$0xff] }
  0x1d   :  { %140 = vmatpush.msra.mxu1 %v101_v17  ;;  %179 = vmatpush.msra.mxu2 %v164_v33  ;;  %v94_v47 = vld [vmem:[#allocation2 + $0x88] sm:$0xff]  ;;  %v160_v48 = vld [vmem:[#allocation4 + $0x30] sm:$0xff]  ;;  %v77_v50 = vld [vmem:[#allocation2] sm:$0xff] }
  0x1e   :  { %121 = vmatpush.msra.mxu0 %v84_v22  ;;  %219 = vmatpush.msra.mxu3 %v204_v34  ;;  %v200_v49 = vld [vmem:[#allocation6 + $0x30] sm:$0xff]  ;;  %v93_v51 = vld [vmem:[#allocation2 + $0x80] sm:$0xff]  ;;  %v76_v53 = vld [vmem:[%s410_s0 + $0x8] sm:$0xff] }
  0x1f   :  { %141 = vmatpush.msra.mxu1 %v100_v23  ;;  %180 = vmatpush.msra.mxu2 %v163_v36  ;;  %v75_v52 = vld [vmem:[%s410_s0] sm:$0xff]  ;;  %v159_v54 = vld [vmem:[#allocation4 + $0x28] sm:$0xff]  ;;  %v157_v58 = vld [vmem:[#allocation4 + $0x18] sm:$0xff] }
  0x20   :  { %122 = vmatpush.msra.mxu0 %v83_v26  ;;  %220 = vmatpush.msra.mxu3 %v203_v37  ;;  %v199_v55 = vld [vmem:[#allocation6 + $0x28] sm:$0xff]  ;;  %v158_v56 = vld [vmem:[#allocation4 + $0x20] sm:$0xff]  ;;  %v197_v59 = vld [vmem:[#allocation6 + $0x18] sm:$0xff] }
  0x21   :  { %142 = vmatpush.msra.mxu1 %v99_v27  ;;  %181 = vmatpush.msra.mxu2 %v162_v40  ;;  %v198_v57 = vld [vmem:[#allocation6 + $0x20] sm:$0xff]  ;;  %v156_v60 = vld [vmem:[#allocation4 + $0x10] sm:$0xff]  ;;  %v155_v62 = vld [vmem:[#allocation4 + $0x8] sm:$0xff] }
  0x22   :  { %123 = vmatpush.msra.mxu0 %v82_v30  ;;  %221 = vmatpush.msra.mxu3 %v202_v41  ;;  %v196_v61 = vld [vmem:[#allocation6 + $0x10] sm:$0xff]  ;;  %v195_v63 = vld [vmem:[#allocation6 + $0x8] sm:$0xff]  ;;  %v154_v0 = vld [vmem:[#allocation4] sm:$0xff] }
  0x23   :  { %143 = vmatpush.msra.mxu1 %v98_v32  ;;  %182 = vmatpush.msra.mxu2 %v161_v44  ;;  %v194_v1 = vld [vmem:[#allocation6] sm:$0xff] }
  0x24   :  { %124 = vmatpush.msra.mxu0 %v81_v31  ;;  %222 = vmatpush.msra.mxu3 %v201_v45  ;;  %v251_v2 = vld [vmem:[%s412_s2] ss:$0 sm:$0xff] }
  0x25   :  { %144 = vmatpush.msra.mxu1 %v97_v35  ;;  %183 = vmatpush.msra.mxu2 %v160_v48  ;;  %v252_v8 = vld [vmem:[%s414_s4] ss:$0 sm:$0xff] }
  0x26   :  { %125 = vmatpush.msra.mxu0 %v80_v38  ;;  %223 = vmatpush.msra.mxu3 %v200_v49  ;;  %v253_v9 = vld [vmem:[%s416_s6] ss:$0 sm:$0xff] }
  0x27   :  { %145 = vmatpush.msra.mxu1 %v96_v39  ;;  %184 = vmatpush.msra.mxu2 %v159_v54 }
  0x28   :  { %126 = vmatpush.msra.mxu0 %v79_v42  ;;  %224 = vmatpush.msra.mxu3 %v199_v55 }
  0x29   :  { %146 = vmatpush.msra.mxu1 %v95_v43  ;;  %185 = vmatpush.msra.mxu2 %v158_v56 }
  0x2a   :  { %127 = vmatpush.msra.mxu0 %v78_v46  ;;  %225 = vmatpush.msra.mxu3 %v198_v57 }
  0x2b   :  { %147 = vmatpush.msra.mxu1 %v94_v47  ;;  %186 = vmatpush.msra.mxu2 %v157_v58 }
  0x2c   :  { %128 = vmatpush.msra.mxu0 %v77_v50  ;;  %226 = vmatpush.msra.mxu3 %v197_v59 }
  0x2d   :  { %148 = vmatpush.msra.mxu1 %v93_v51  ;;  %129 = vmatmul.f32.vlgmr.msra.gmra.mxu0 %v75_v52 }
  0x2e   :  { %149 = vmatmul.f32.vlgmr.msra.gmra.mxu1 %v76_v53  ;;  %187 = vmatpush.msra.mxu2 %v156_v60 }
  0x2f   :  { %227 = vmatpush.msra.mxu3 %v196_v61 }
  0x30   :  { %188 = vmatpush.msra.mxu2 %v155_v62 }
  0x31   :  { %228 = vmatpush.msra.mxu3 %v195_v63 }
  0x32   :  { %189 = vmatpush.msra.mxu2 %v154_v0 }
  0x33   :  { %229 = vmatpush.msra.mxu3 %v194_v1 }
  0xaa   :  { %v130_v3 = vpop.f32.mrf.mxu0 }
  0xab   :  { %v150_v4 = vpop.f32.mrf.mxu1  ;;  %v131_v5 = vadd.f32 %v251_v2, %v130_v3 }
  0xad   :  { %v151_v6 = vadd.f32 %v150_v4, %v131_v5 }
  0xaf   :  { %v153_v7 = vmax.f32 %v151_v6, 0.0 }
  0xb1   :  { %190 = vmatmul.f32.vlgmr.msra.gmra.mxu2 %v153_v7  ;;  %230 = vmatmul.f32.vlgmr.msra.gmra.mxu3 %v153_v7 }
 0x134   :  { %v191_v10 = vpop.f32.mrf.mxu2  ;;  %v231_v11 = vpop.f32.mrf.mxu3 }
 0x135   :  { %v192_v12 = vadd.f32 %v252_v8, %v191_v10  ;;  %v232_v13 = vadd.f32 %v253_v9, %v231_v11 }
 0x137   :  { %234 = vst [vmem:[%s417_s7] sm:$0xff] %v192_v12 }
 0x138   :  { %235 = vst [vmem:[%s418_s8] sm:$0xff] %v232_v13 }
 0x139   :  { %244 = vsyncpa [#allocation3], 1 }
 0x13a   :  { %245 = vsyncpa [#allocation5], 1 }

// kernel: closed_call.32
= control target key start
LH: loop header
LB: loop body
LE: loop exit
PB: predicated region body
PF: predicated region fallthrough
CT: control target
= control target key end

     0   :  { %s10010_s0 = inlined_call_operand.vmem [shape: f32[48,128], index: 0, kind: input, shape index: {}]   ;;  %s10011_s1 = inlined_call_operand.vmem [shape: f32[2,1,24], index: 1, kind: input, shape index: {}]   ;;  %s10012_s2 = inlined_call_operand.vmem [shape: f32[2,48], index: 2, kind: input, shape index: {}]   ;;  %s10013_s3 = inlined_call_operand.vmem [shape: bf16[2,128,384], index: 3, kind: input, shape index: {}]   ;;  %s10014_s4 = inlined_call_operand.vmem [shape: f32[2,1,384], index: 4, kind: input, shape index: {}]   ;;  %s10015_s5 = inlined_call_operand.vmem [shape: bf16[2,128,128], index: 5, kind: input, shape index: {}]   ;;  %s10016_s6 = inlined_call_operand.vmem [shape: f32[2,1,128], index: 6, kind: input, shape index: {}]   ;;  %s10017_s7 = inlined_call_operand.vmem [shape: f32[2,1,128], index: 7, kind: input, shape index: {}]   ;;  %s10018_s8 = inlined_call_operand.vmem [shape: f32[2,1,128], index: 8, kind: input, shape index: {}]   ;;  %s10019_s9 = inlined_call_operand.vmem [shape: bf16[2,128,256], index: 9, kind: input, shape index: {}]   ;;  %s10020_s10 = inlined_call_operand.vmem [shape: f32[2,1,256], index: 10, kind: input, shape index: {}]   ;;  %s10021_s11 = inlined_call_operand.hbm [shape: bf16[2,256,128], index: 11, kind: input, shape index: {}]   ;;  %s10022_s12 = inlined_call_operand.vmem [shape: f32[2,1,128], index: 12, kind: input, shape index: {}]   ;;  %s10023_s13 = inlined_call_operand.vmem [shape: f32[2,1,128], index: 13, kind: input, shape index: {}]   ;;  %s10024_s14 = inlined_call_operand.vmem [shape: f32[2,1,128], index: 14, kind: input, shape index: {}]   ;;  %s10025_s15 = inlined_call_operand.vmem [shape: f32[1,128], index: 15, kind: input, shape index: {}]   ;;  %s10026_s16 = inlined_call_operand.vmem [shape: f32[1,128], index: 16, kind: input, shape index: {}]   ;;  %s10027_s17 = inlined_call_operand.vmem [shape: bf16[128,128], index: 17, kind: input, shape index: {}]   ;;  %s10028_s18 = inlined_call_operand.vmem [shape: f32[1,128], index: 18, kind: input, shape index: {}]   ;;  %s10029_s19 = inlined_call_operand.vmem [shape: f32[1,128], index: 19, kind: input, shape index: {}]   ;;  %s10030_s20 = inlined_call_operand.vmem [shape: f32[1,128], index: 20, kind: input, shape index: {}]   ;;  %s10031_s21 = inlined_call_operand.hbm [shape: bf16[128,512], index: 21, kind: input, shape index: {}]   ;;  %s10032_s22 = inlined_call_operand.vmem [shape: f32[1,512], index: 22, kind: input, shape index: {}]   ;;  %s10033_s23 = inlined_call_operand.vmem [shape: f32[2,512], index: 23, kind: output, shape index: {}]  }
   0x1   :  { %10045 = sst [smem:[#allocation8_spill]] %s10010_s0 }
   0x2   :  { %10046 = sst [smem:[#allocation9_spill]] %s10011_s1 }
   0x3   :  { %10047 = sst [smem:[#allocation10_spill]] %s10012_s2 }
   0x4   :  { %10048 = sst [smem:[#allocation11_spill]] %s10013_s3 }
   0x5   :  { %10049 = sst [smem:[#allocation12_spill]] %s10014_s4 }
   0x6   :  { %10050 = sst [smem:[#allocation13_spill]] %s10015_s5 }
   0x7   :  { %10051 = sst [smem:[#allocation14_spill]] %s10016_s6 }
   0x8   :  { %10052 = sst [smem:[#allocation15_spill]] %s10017_s7 }
   0x9   :  { %28 = vsyncpa [#allocation3], 0  ;;  %s56_s24 = sshll.u32 %s10021_s11, 4  ;;  %s57_s24 = int_to_ptr.hbm [resolvable:$true] %s56_s24 }
   0xa   :  { %29 = vsyncpa [#allocation5], 0  ;;  %s7269_s25 = smov [#allocation2]   ;;  %s87_s2 = sshll.u32 %s10031_s21, 4  ;;  %s88_s2 = int_to_ptr.hbm [resolvable:$true] %s87_s2 }
   0xb   :  { %s58_s5 = sshll.u32 %s7269_s25, 4  ;;  %s10043_s6 = smov 64   ;;  %s59_s5 = int_to_ptr.vmem [resolvable:$true] %s58_s5 }
   0xc   :  { %s7271_s27 = smov 4   ;;  %s7272_s7 = smov [#allocation4]  }
   0xd   :  { %64 = dma.hbm_to_vmem [thread:$0]  %s57_s24, 4096, %s59_s5, [#allocation3], %s10043_s6, %s10043_s6, %s7271_s27  }
   0xe   :  { %s89_s28 = sshll.u32 %s7272_s7, 4  ;;  %s7273_s29 = smov 256   ;;  %s90_s28 = int_to_ptr.vmem [resolvable:$true] %s89_s28 }
   0xf   :  { %s7274_s11 = smov 16  }
  0x10   :  { %95 = dma.hbm_to_vmem [thread:$0]  %s88_s2, 4096, %s90_s28, [#allocation5], %s7273_s29, %s7273_s29, %s7274_s11  }
  0x11   :  { %7265 = dma.done.wait [#allocation3], 4096  }
  0x12   :  { %7266 = vsyncadd [#allocation3], 4294963200 }
  0x13   :  { %7267 = dma.done.wait [#allocation5], 4096  }
  0x14   :  { %7268 = vsyncadd [#allocation5], 4294963200  ;;  %s10053_s4 = sld [smem:[#allocation8_spill]]  ;;  %v7275_v4 = vmov 128.0   ;;  %s7276_s3 = smov 96   ;;  %vm510_vm13 = vcmask 261120  }
  0x15   :  { %6909 = vrcp.f32 %v7275_v4  ;;  %s10054_s27 = sld [smem:[#allocation11_spill]]  ;;  %s10041_s0 = smov 32   ;;  %vm555_vm14 = vcmask 195584  }
  0x16   :  { %s10055_s11 = sld [smem:[#allocation12_spill]]  ;;  %s10075_s26 = smov 32  }
  0x17   :  { %s10056_s24 = sld [smem:[#allocation9_spill]] }
  0x18   :  { %s10065_s2 = sld [smem:[#allocation13_spill]] }
  0x19   :  { %s10100_s28 = sld [smem:[#allocation10_spill]] }
  0x1a   :  { %v108_v0 = vld [vmem:[%s10053_s4 + $0x10] sm:$0xff]  ;;  %v106_v1 = vld [vmem:[%s10053_s4] sm:$0xff]  ;;  %v109_v2 = vld [vmem:[%s10053_s4 + $0x18] sm:$0xff] }
  0x1b   :  { %118 = vadd.xlane.f32.xlu1 %v108_v0  ;;  %114 = vadd.xlane.f32.xlu0 %v106_v1  ;;  %v107_v3 = vld [vmem:[%s10053_s4 + $0x8] sm:$0xff]  ;;  %v6910_v5 = vpop.eup %6909  ;;  %v6572_v28 = vld [vmem:[%s10054_s27 + $0xb0] sm:$0xf0]  ;;  %v5749_v31 = vld [vmem:[%s10054_s27 + $0xb4] sm:$0xf0] }
  0x1c   :  { %v127_v6 = vmul.f32 128.0, %v6910_v5  ;;  %vm131_vm0 = vweird.f32 %v6910_v5  ;;  %v5747_v27 = vld [vmem:[%s10054_s27 + $0xa8] sm:$0xf]  ;;  %v6571_v29 = vld [vmem:[%s10054_s27 + $0xac] sm:$0xf] }
  0x1d   :  { %v5748_v30 = vor.u32 %v6572_v28, %v5747_v27  ;;  %v5755_v32 = vld [vmem:[%s10054_s27 + $0xb0] sm:$0xf]  ;;  %v6573_v33 = vld [vmem:[%s10054_s27 + $0xb8] sm:$0xf0]  ;;  %v5752_v34 = vor.u32 %v6571_v29, %v5749_v31  ;;  %v6568_v38 = vld [vmem:[%s10054_s27 + $0x94] sm:$0xf] }
  0x1e   :  { %v128_v7 = vsub.f32 1.0, %v127_v6  ;;  %v5756_v35 = vor.u32 %v6573_v33, %v5755_v32  ;;  %v5735_v36 = vld [vmem:[%s10054_s27 + $0x90] sm:$0xf]  ;;  %v6569_v37 = vld [vmem:[%s10054_s27 + $0x98] sm:$0xf0] }
  0x1f   :  { %432 = vmatpush.bf16.msra.mxu0 %v5748_v30  ;;  %456 = vmatpush.bf16.msra.mxu1 %v5752_v34  ;;  %v5736_v39 = vor.u32 %v6569_v37, %v5735_v36  ;;  %v5737_v40 = vld [vmem:[%s10054_s27 + $0x9c] sm:$0xf0]  ;;  %v5743_v41 = vld [vmem:[%s10054_s27 + $0x98] sm:$0xf]  ;;  %v6570_v42 = vld [vmem:[%s10054_s27 + $0xa0] sm:$0xf0] }
  0x20   :  { %v129_v8 = vmul.f32 %v6910_v5, %v128_v7  ;;  %480 = vmatpush.bf16.msra.mxu2 %v5756_v35  ;;  %v5740_v43 = vor.u32 %v6568_v38, %v5737_v40  ;;  %v5744_v44 = vor.u32 %v6570_v42, %v5743_v41  ;;  %v5723_v45 = vld [vmem:[%s10054_s27 + $0x78] sm:$0xf]  ;;  %v6566_v46 = vld [vmem:[%s10054_s27 + $0x80] sm:$0xf0]  ;;  %v6565_v47 = vld [vmem:[%s10054_s27 + $0x7c] sm:$0xf] }
  0x21   :  { %v5724_v48 = vor.u32 %v6566_v46, %v5723_v45  ;;  %v5725_v49 = vld [vmem:[%s10054_s27 + $0x84] sm:$0xf0]  ;;  %v5731_v50 = vld [vmem:[%s10054_s27 + $0x80] sm:$0xf]  ;;  %v6567_v51 = vld [vmem:[%s10054_s27 + $0x88] sm:$0xf0] }
  0x22   :  { %v130_v9 = vadd.f32 %v6910_v5, %v129_v8  ;;  %v5728_v52 = vor.u32 %v6565_v47, %v5725_v49  ;;  %v5732_v53 = vor.u32 %v6567_v51, %v5731_v50  ;;  %v5711_v54 = vld [vmem:[%s10054_s27 + $0x60] sm:$0xf]  ;;  %v6563_v55 = vld [vmem:[%s10054_s27 + $0x68] sm:$0xf0]  ;;  %v6562_v56 = vld [vmem:[%s10054_s27 + $0x64] sm:$0xf] }
  0x23   :  { %120 = vadd.xlane.f32.xlu1 %v109_v2  ;;  %116 = vadd.xlane.f32.xlu0 %v107_v3  ;;  %v5712_v57 = vor.u32 %v6563_v55, %v5711_v54  ;;  %v5713_v58 = vld [vmem:[%s10054_s27 + $0x6c] sm:$0xf0]  ;;  %v5719_v59 = vld [vmem:[%s10054_s27 + $0x68] sm:$0xf]  ;;  %v6564_v60 = vld [vmem:[%s10054_s27 + $0x70] sm:$0xf0] }
  0x24   :  { %v7418_v10 = vsel %vm131_vm0, %v6910_v5, %v130_v9  ;;  %433 = vmatpush.bf16.msra.mxu0 %v5736_v39  ;;  %457 = vmatpush.bf16.msra.mxu1 %v5740_v43  ;;  %v5716_v61 = vor.u32 %v6562_v56, %v5713_v58  ;;  %v5720_v62 = vor.u32 %v6564_v60, %v5719_v59  ;;  %v5699_v63 = vld [vmem:[%s10054_s27 + $0x48] sm:$0xf]  ;;  %v5707_v4 = vld [vmem:[%s10054_s27 + $0x50] sm:$0xf]  ;;  %v6561_v5 = vld [vmem:[%s10054_s27 + $0x58] sm:$0xf0] }
  0x25   :  { %481 = vmatpush.bf16.msra.mxu2 %v5744_v44  ;;  %v5708_v7 = vor.u32 %v6561_v5, %v5707_v4  ;;  %v5687_v8 = vld [vmem:[%s10054_s27 + $0x30] sm:$0xf]  ;;  %v6557_v9 = vld [vmem:[%s10054_s27 + $0x38] sm:$0xf0]  ;;  %v5683_v27 = vld [vmem:[%s10054_s27 + $0x20] sm:$0xf] }
  0x26   :  { %v6555_v28 = vld [vmem:[%s10054_s27 + $0x28] sm:$0xf0]  ;;  %v5663_v32 = vld [vmem:[%s10054_s27] sm:$0xf]  ;;  %v6550_v34 = vld [vmem:[%s10054_s27 + $0x4] sm:$0xf] }
  0x27   :  { %v5684_v31 = vor.u32 %v6555_v28, %v5683_v27  ;;  %v6551_v33 = vld [vmem:[%s10054_s27 + $0x8] sm:$0xf0]  ;;  %v5665_v38 = vld [vmem:[%s10054_s27 + $0xc] sm:$0xf0]  ;;  %v5671_v39 = vld [vmem:[%s10054_s27 + $0x8] sm:$0xf] }
  0x28   :  { %434 = vmatpush.bf16.msra.mxu0 %v5724_v48  ;;  %458 = vmatpush.bf16.msra.mxu1 %v5728_v52  ;;  %v5664_v37 = vor.u32 %v6551_v33, %v5663_v32  ;;  %v6552_v40 = vld [vmem:[%s10054_s27 + $0x10] sm:$0xf0]  ;;  %v5668_v41 = vor.u32 %v6550_v34, %v5665_v38  ;;  %v7591_v5 = vld [vmem:[%s10053_s4 + $0x28] sm:$0xff] }
  0x29   :  { %482 = vmatpush.bf16.msra.mxu2 %v5732_v53  ;;  %v5672_v42 = vor.u32 %v6552_v40, %v5671_v39 }
  0x2c   :  { %435 = vmatpush.bf16.msra.mxu0 %v5712_v57  ;;  %459 = vmatpush.bf16.msra.mxu1 %v5716_v61 }
  0x2d   :  { %483 = vmatpush.bf16.msra.mxu2 %v5720_v62 }
  0x31   :  { %484 = vmatpush.bf16.msra.mxu2 %v5708_v7 }
  0x8e   :  { %v119_v11 = vpop.xlane.xlu1 %118  ;;  %v115_v12 = vpop.xlane.xlu0 %114 }
  0x8f   :  { %v135_v13 = vmul.f32 %v7418_v10, %v119_v11  ;;  %v133_v14 = vmul.f32 %v7418_v10, %v115_v12  ;;  %v6556_v11 = vld [vmem:[%s10054_s27 + $0x34] sm:$0xf]  ;;  %v5688_v12 = vor.u32 %v6557_v9, %v5687_v8 }
  0x91   :  { %v7422_v15 = vsub.f32 %v108_v0, %v135_v13  ;;  %v7424_v16 = vsub.f32 %v106_v1, %v133_v14  ;;  %v6560_v0 = vld [vmem:[%s10054_s27 + $0x50] sm:$0xf0]  ;;  %v6559_v1 = vld [vmem:[%s10054_s27 + $0x4c] sm:$0xf]  ;;  %v5689_v13 = vld [vmem:[%s10054_s27 + $0x3c] sm:$0xf0] }
  0x92   :  { %v5695_v14 = vld [vmem:[%s10054_s27 + $0x38] sm:$0xf] }
  0x93   :  { %v147_v17 = vmul.f32 %v7422_v15, %v7422_v15  ;;  %v145_v18 = vmul.f32 %v7424_v16, %v7424_v16 }
  0x95   :  { %155 = vadd.xlane.f32.xlu0 %v147_v17  ;;  %151 = vadd.xlane.f32.xlu2 %v145_v18  ;;  %v6558_v17 = vld [vmem:[%s10054_s27 + $0x40] sm:$0xf0]  ;;  %v5692_v18 = vor.u32 %v6556_v11, %v5689_v13  ;;  %v7604_v11 = vld [vmem:[%s10025_s15] ss:$0 sm:$0xff]  ;;  %s10072_s15 = sld [smem:[#allocation14_spill]] }
  0x96   :  { %v121_v19 = vpop.xlane.xlu1 %120  ;;  %v117_v20 = vpop.xlane.xlu0 %116 }
  0x97   :  { %v136_v21 = vmul.f32 %v7418_v10, %v121_v19  ;;  %v134_v22 = vmul.f32 %v7418_v10, %v117_v20  ;;  %v5696_v19 = vor.u32 %v6558_v17, %v5695_v14  ;;  %v5675_v20 = vld [vmem:[%s10054_s27 + $0x18] sm:$0xf] }
  0x99   :  { %v7432_v23 = vsub.f32 %v109_v2, %v136_v21  ;;  %v7434_v24 = vsub.f32 %v107_v3, %v134_v22  ;;  %v5700_v2 = vor.u32 %v6560_v0, %v5699_v63  ;;  %v5701_v3 = vld [vmem:[%s10054_s27 + $0x54] sm:$0xf0]  ;;  %485 = vmatpush.bf16.msra.mxu2 %v5696_v19  ;;  %v6554_v21 = vld [vmem:[%s10054_s27 + $0x20] sm:$0xf0]  ;;  %v6553_v22 = vld [vmem:[%s10054_s27 + $0x1c] sm:$0xf] }
  0x9a   :  { %v5704_v6 = vor.u32 %v6559_v1, %v5701_v3 }
  0x9b   :  { %v148_v25 = vmul.f32 %v7432_v23, %v7432_v23  ;;  %v146_v26 = vmul.f32 %v7434_v24, %v7434_v24  ;;  %436 = vmatpush.bf16.msra.mxu0 %v5700_v2 }
  0x9c   :  { %460 = vmatpush.bf16.msra.mxu1 %v5704_v6  ;;  %v7596_v6 = vld [vmem:[%s10053_s4 + $0x20] sm:$0xff] }
  0x9d   :  { %157 = vadd.xlane.f32.xlu1 %v148_v25  ;;  %153 = vadd.xlane.f32.xlu2 %v146_v26  ;;  %v5676_v25 = vor.u32 %v6554_v21, %v5675_v20  ;;  %v5677_v26 = vld [vmem:[%s10054_s27 + $0x24] sm:$0xf0]  ;;  %v7611_v20 = vld [vmem:[%s10026_s16] ss:$0 sm:$0xff]  ;;  %s10073_s16 = sld [smem:[#allocation15_spill]] }
  0x9e   :  { %v5680_v30 = vor.u32 %v6553_v22, %v5677_v26  ;;  %486 = vmatpush.bf16.msra.mxu2 %v5684_v31  ;;  %122 = vadd.xlane.f32.xlu0 %v7596_v6 }
  0x9f   :  { %437 = vmatpush.bf16.msra.mxu0 %v5688_v12 }
  0xa0   :  { %461 = vmatpush.bf16.msra.mxu1 %v5692_v18 }
  0xa2   :  { %487 = vmatpush.bf16.msra.mxu2 %v5672_v42 }
  0xa3   :  { %438 = vmatpush.bf16.msra.mxu0 %v5676_v25 }
  0xa4   :  { %462 = vmatpush.bf16.msra.mxu1 %v5680_v30 }
  0xa5   :  { %124 = vadd.xlane.f32.xlu1 %v7591_v5 }
  0xa7   :  { %439 = vmatpush.bf16.msra.mxu0 %v5664_v37 }
  0xa8   :  { %463 = vmatpush.bf16.msra.mxu1 %v5668_v41 }
 0x108   :  { %v152_v29 = vpop.xlane.xlu2 %151  ;;  %v156_v36 = vpop.xlane.xlu0 %155 }
 0x109   :  { %v163_v35 = vmul.f32 %v152_v29, %v7418_v10  ;;  %v165_v44 = vmul.f32 %v156_v36, %v7418_v10 }
 0x10b   :  { %v169_v43 = vadd.f32 1e-12, %v163_v35  ;;  %v171_v45 = vadd.f32 1e-12, %v165_v44 }
 0x10d   :  { %6911 = vrsqrt.f32 %v169_v43  ;;  %vm181_vm2 = vweird.f32 %v169_v43  ;;  %vm201_vm9 = vweird.f32 %v171_v45 }
 0x10e   :  { %6913 = vrsqrt.f32 %v171_v45 }
 0x110   :  { %v158_v46 = vpop.xlane.xlu1 %157  ;;  %v154_v47 = vpop.xlane.xlu2 %153 }
 0x111   :  { %v166_v48 = vmul.f32 %v158_v46, %v7418_v10  ;;  %v164_v49 = vmul.f32 %v154_v47, %v7418_v10 }
 0x113   :  { %v6912_v50 = vpop.eup %6911  ;;  %v172_v51 = vadd.f32 1e-12, %v166_v48  ;;  %v170_v52 = vadd.f32 1e-12, %v164_v49 }
 0x114   :  { %v176_v53 = vmul.f32 %v6912_v50, %v169_v43  ;;  %v6914_v56 = vpop.eup %6913  ;;  %vm182_vm1 = vweird.f32 %v6912_v50 }
 0x115   :  { %6915 = vrsqrt.f32 %v172_v51  ;;  %v196_v62 = vmul.f32 %v6914_v56, %v171_v45  ;;  %vm183_vm3 = vmor %vm181_vm2, %vm182_vm1  ;;  %vm191_vm5 = vweird.f32 %v170_v52  ;;  %vm211_vm7 = vweird.f32 %v172_v51 }
 0x116   :  { %v177_v54 = vmul.f32 %v6912_v50, %v176_v53  ;;  %6917 = vrsqrt.f32 %v170_v52  ;;  %vm202_vm10 = vweird.f32 %v6914_v56 }
 0x117   :  { %v197_v3 = vmul.f32 %v6914_v56, %v196_v62  ;;  %vm203_vm12 = vmor %vm201_vm9, %vm202_vm10 }
 0x118   :  { %v178_v55 = vmul.f32 0.5, %v177_v54 }
 0x119   :  { %v198_v12 = vmul.f32 0.5, %v197_v3 }
 0x11a   :  { %v179_v57 = vsub.f32 1.5, %v178_v55 }
 0x11b   :  { %v6916_v58 = vpop.eup %6915 }
 0x11c   :  { %v6918_v59 = vpop.eup %6917  ;;  %v206_v60 = vmul.f32 %v6916_v58, %v172_v51  ;;  %v180_v61 = vmul.f32 %v6912_v50, %v179_v57  ;;  %vm212_vm8 = vweird.f32 %v6916_v58 }
 0x11d   :  { %v186_v63 = vmul.f32 %v6918_v59, %v170_v52  ;;  %vm192_vm4 = vweird.f32 %v6918_v59  ;;  %vm213_vm11 = vmor %vm211_vm7, %vm212_vm8 }
 0x11e   :  { %v207_v0 = vmul.f32 %v6916_v58, %v206_v60  ;;  %v184_v2 = vsel %vm183_vm3, %v6912_v50, %v180_v61  ;;  %vm193_vm6 = vmor %vm191_vm5, %vm192_vm4  ;;  %v125_v61 = vpop.xlane.xlu1 %124 }
 0x11f   :  { %v187_v1 = vmul.f32 %v6918_v59, %v186_v63  ;;  %v235_v9 = vmul.f32 %v184_v2, %v7424_v16  ;;  %v199_v16 = vsub.f32 1.5, %v198_v12  ;;  %v138_v62 = vmul.f32 %v7418_v10, %v125_v61 }
 0x120   :  { %v208_v7 = vmul.f32 0.5, %v207_v0 }
 0x121   :  { %v188_v4 = vmul.f32 0.5, %v187_v1  ;;  %v244_v19 = vmul.f32 %v7604_v11, %v235_v9  ;;  %v200_v26 = vmul.f32 %v6914_v56, %v199_v16  ;;  %v7691_v63 = vsub.f32 %v7591_v5, %v138_v62  ;;  %v123_v1 = vpop.xlane.xlu0 %122  ;;  %v7705_v5 = vld [vmem:[%s10056_s24] ss:$0 sm:$0xff] }
 0x122   :  { %v209_v14 = vsub.f32 1.5, %v208_v7 }
 0x123   :  { %v189_v8 = vsub.f32 1.5, %v188_v4  ;;  %v7615_v25 = vadd.f32 %v7611_v20, %v244_v19  ;;  %v204_v29 = vsel %vm203_vm12, %v6914_v56, %v200_v26  ;;  %v150_v0 = vmul.f32 %v7691_v63, %v7691_v63 }
 0x124   :  { %v210_v22 = vmul.f32 %v6916_v58, %v209_v14  ;;  %v237_v31 = vmul.f32 %v204_v29, %v7422_v15  ;;  %v296_v15 = vld [vmem:[%s10055_s11] sm:$0x7]  ;;  %v137_v26 = vmul.f32 %v7418_v10, %v123_v1 }
 0x125   :  { %v190_v13 = vmul.f32 %v6918_v59, %v189_v8  ;;  %v7652_v47 = vperm.slane %v296_v15, 0  ;;  %v7659_v49 = vperm.slane %v296_v15, 2 }
 0x126   :  { %v214_v28 = vsel %vm213_vm11, %v6916_v58, %v210_v22  ;;  %v246_v33 = vmul.f32 %v7604_v11, %v237_v31 }
 0x127   :  { %v194_v17 = vsel %vm193_vm6, %v6918_v59, %v190_v13  ;;  %v238_v30 = vmul.f32 %v214_v28, %v7432_v23  ;;  %v7637_v23 = vperm.slane %v296_v15, 1 }
 0x128   :  { %v236_v18 = vmul.f32 %v194_v17, %v7434_v24  ;;  %v7630_v35 = vadd.f32 %v7611_v20, %v246_v33 }
 0x129   :  { %v247_v32 = vmul.f32 %v7604_v11, %v238_v30 }
 0x12a   :  { %v245_v21 = vmul.f32 %v7604_v11, %v236_v18 }
 0x12b   :  { %v7627_v34 = vadd.f32 %v7611_v20, %v247_v32 }
 0x12c   :  { %v7618_v24 = vadd.f32 %v7611_v20, %v245_v21 }
 0x12d   :  { %v262_v36 = vpack.c.bf16 %v7627_v34, %v7630_v35 }
 0x12e   :  { %v261_v27 = vpack.c.bf16 %v7618_v24, %v7615_v25 }
 0x130   :  { %440 = vmatmul.bf16.vlgmr.msra.gmra.mxu0 %v261_v27  ;;  %464 = vmatmul.bf16.vlgmr.msra.gmra.mxu1 %v261_v27 }
 0x131   :  { %488 = vmatmul.bf16.vlgmr.msra.gmra.mxu2 %v261_v27  ;;  %v7729_v27 = vsub.f32 %v7596_v6, %v137_v26 }
 0x133   :  { %v149_v28 = vmul.f32 %v7729_v27, %v7729_v27 }
 0x140   :  { %445 = vmatmul.bf16.gmra.mxu0 %v262_v36  ;;  %469 = vmatmul.bf16.gmra.mxu1 %v262_v36 }
 0x141   :  { %493 = vmatmul.bf16.gmra.mxu2 %v262_v36 }
 0x1ad   :  { %v465_v37 = vpop.f32.mrf.mxu1  ;;  %v441_v40 = vpop.f32.mrf.mxu0 }
 0x1ae   :  { %v7640_v38 = vadd.f32 %v465_v37, %v7637_v23  ;;  %v442_v51 = vadd.f32 %v441_v40, %v7652_v47 }
 0x1b0   :  { %669 = vrot.lane.b32.xlu0 %v7640_v38, %s7276_s3  ;;  %v7674_v56 = vmul.f32 0.17677669, %v442_v51 }
 0x1b4   :  { %v489_v39 = vpop.f32.mrf.mxu2 }
 0x1b5   :  { %v467_v41 = vpop.f32.mrf.mxu1  ;;  %v443_v46 = vpop.f32.mrf.mxu0  ;;  %v7679_v57 = vadd.f32 %v489_v39, %v7659_v49 }
 0x1b6   :  { %v7645_v42 = vadd.f32 %v467_v41, %v7637_v23  ;;  %v444_v48 = vadd.f32 %v443_v46, %v7652_v47 }
 0x1b8   :  { %671 = vrot.lane.b32.xlu2 %v7645_v42, %s7276_s3  ;;  %v7666_v54 = vmul.f32 0.17677669, %v444_v48 }
 0x1bc   :  { %v491_v43 = vpop.f32.mrf.mxu2 }
 0x1bd   :  { %v470_v44 = vpop.f32.mrf.mxu1  ;;  %v492_v52 = vadd.f32 %v491_v43, %v7659_v49  ;;  %v446_v58 = vpop.f32.mrf.mxu0 }
 0x1be   :  { %v7650_v45 = vadd.f32 %v470_v44, %v7637_v23  ;;  %v447_v59 = vadd.f32 %v446_v58, %v7652_v47 }
 0x1c0   :  { %673 = vrot.lane.b32.xlu1 %v7650_v45, %s7276_s3  ;;  %5757 = vmatpush.xpose.msk.msra.mxu3 %vm510_vm13, %v7650_v45  ;;  %v7685_v60 = vmul.f32 0.17677669, %v447_v59 }
 0x1c4   :  { %v494_v50 = vpop.f32.mrf.mxu2  ;;  %5758 = vmatpush.xpose.msk.msra.mxu3 %vm510_vm13, %v7645_v42 }
 0x1c5   :  { %v495_v53 = vadd.f32 %v494_v50, %v7659_v49 }
 0x1c7   :  { %v7668_v55 = vpack.i.bf16 %v492_v52, %v495_v53 }
 0x1c8   :  { %665 = vrot.lane.b32.xlu1 %v7666_v54, %s7276_s3  ;;  %5759 = vmatpush.xpose.msk.msra.mxu3 %vm510_vm13, %v7640_v38 }
 0x1cb   :  { %5760 = vmatmul.msk.f32.vlgmr.msra.gmra.mxu3 %vm510_vm13, %v7674_v56 }
 0x1cc   :  { %605 = vmatpush.msrb.mxu3 %v495_v53 }
 0x1ce   :  { %606 = vmatpush.msrb.mxu3 %v492_v52 }
 0x1d0   :  { %607 = vmatpush.msrb.mxu3 %v7679_v57 }
 0x1d3   :  { %5761 = vmatmul.msk.f32.gmra.mxu3 %vm510_vm13, %v7666_v54 }
 0x1db   :  { %5762 = vmatmul.msk.f32.gmra.mxu3 %vm510_vm13, %v7685_v60 }
 0x1f2   :  { %161 = vadd.xlane.f32.xlu1 %v150_v0 }
 0x20b   :  { %842 = vrot.lane.b32.xlu1 %v7650_v45, %s10043_s6 }
 0x212   :  { %v672_v3 = vpop.permute.xlu2 %671 }
 0x213   :  { %998 = vrot.lane.b32.xlu1 %v7674_v56, %s10041_s0 }
 0x222   :  { %v670_v4 = vpop.permute.xlu0 %669 }
 0x232   :  { %v674_v2 = vpop.permute.xlu1 %673 }
 0x233   :  { %5766 = vmatpush.xpose.msk.msra.mxu3 %vm510_vm13, %v674_v2 }
 0x237   :  { %5767 = vmatpush.xpose.msk.msra.mxu3 %vm510_vm13, %v672_v3 }
 0x23a   :  { %v666_v16 = vpop.permute.xlu1 %665 }
 0x23b   :  { %5768 = vmatpush.xpose.msk.msra.mxu3 %vm510_vm13, %v670_v4 }
 0x24e   :  { %v546_v7 = vpop.f32.mrf.mxu3 }
 0x24f   :  { %v547_v8 = vadd.f32 %v7705_v5, %v546_v7 }
 0x251   :  { %v556_v9 = vsel %vm555_vm14, %v547_v8, -inf }
 0x252   :  { %557 = vmax.xlane.f32.xlu2 %v556_v9 }
 0x256   :  { %v549_v12 = vpop.f32.mrf.mxu3 }
 0x257   :  { %v550_v13 = vadd.f32 %v7705_v5, %v549_v12 }
 0x259   :  { %v559_v14 = vsel %vm555_vm14, %v550_v13, -inf }
 0x25a   :  { %560 = vmax.xlane.f32.xlu2 %v559_v14 }
 0x25e   :  { %v552_v17 = vpop.f32.mrf.mxu3 }
 0x25f   :  { %v553_v18 = vadd.f32 %v7705_v5, %v552_v17 }
 0x261   :  { %v562_v19 = vsel %vm555_vm14, %v553_v18, -inf }
 0x262   :  { %563 = vmax.xlane.f32.xlu0 %v562_v19 }
 0x265   :  { %v162_v21 = vpop.xlane.xlu1 %161 }
 0x266   :  { %v168_v48 = vmul.f32 %v162_v21, %v7418_v10 }
 0x268   :  { %v174_v50 = vadd.f32 1e-12, %v168_v48 }
 0x26a   :  { %vm231_vm15 = vweird.f32 %v174_v50 }
 0x272   :  { %663 = vrot.lane.b32.xlu2 %v7674_v56, %s7276_s3 }
 0x276   :  { %667 = vrot.lane.b32.xlu0 %v7685_v60, %s7276_s3 }
 0x27d   :  { %v7717_v22 = vpop.permute.xlu1 %842 }
 0x27e   :  { %6718 = vmatpush.xpose.msk.msrb.mxu1 %vm510_vm13, %v7717_v22  ;;  %743 = vrot.lane.b32.xlu0 %v7679_v57, %s7276_s3 }
 0x286   :  { %840 = vrot.lane.b32.xlu0 %v7645_v42, %s10043_s6 }
 0x28e   :  { %838 = vrot.lane.b32.xlu0 %v7640_v38, %s10043_s6 }
 0x29b   :  { %159 = vadd.xlane.f32.xlu2 %v149_v28 }
 0x2b3   :  { %6731 = vrot.lane.b32.xlu2 %v7668_v55, %s7276_s3 }
 0x2bb   :  { %1008 = vrot.lane.b32.xlu2 %v7650_v45, %s10041_s0 }
 0x2c3   :  { %1006 = vrot.lane.b32.xlu2 %v7645_v42, %s10041_s0 }
 0x2c5   :  { %v558_v29 = vpop.xlane.xlu2 %557 }
 0x2c6   :  { %v565_v30 = vsub.f32 %v547_v8, %v558_v29 }
 0x2c8   :  { %v568_v31 = vmul.f32 1.442695, %v565_v30 }
 0x2ca   :  { %6919 = vpow2.f32 %v568_v31 }
 0x2cb   :  { %1004 = vrot.lane.b32.xlu2 %v7640_v38, %s10041_s0  ;;  %v472_v38 = vpop.f32.mrf.mxu1 }
 0x2cc   :  { %v7756_v42 = vadd.f32 %v472_v38, %v7637_v23 }
 0x2cd   :  { %v561_v6 = vpop.xlane.xlu2 %560 }
 0x2ce   :  { %v566_v32 = vsub.f32 %v550_v13, %v561_v6  ;;  %v999_v6 = vpop.permute.xlu1 %998 }
 0x2d0   :  { %v7741_v33 = vpop.eup %6919  ;;  %v570_v36 = vmul.f32 1.442695, %v566_v32 }
 0x2d1   :  { %5763 = vmatmul.msk.f32.vlgmr.msrb.gmra.mxu3 %vm555_vm14, %v7741_v33 }
 0x2d2   :  { %6921 = vpow2.f32 %v570_v36 }
 0x2d3   :  { %834 = vrot.lane.b32.xlu2 %v7666_v54, %s10043_s6 }
 0x2d5   :  { %v564_v15 = vpop.xlane.xlu0 %563  ;;  %v664_v43 = vpop.permute.xlu2 %663 }
 0x2d6   :  { %v567_v37 = vsub.f32 %v553_v18, %v564_v15 }
 0x2d8   :  { %v7747_v39 = vpop.eup %6921  ;;  %v572_v40 = vmul.f32 1.442695, %v567_v37 }
 0x2d9   :  { %5764 = vmatmul.msk.f32.gmra.mxu3 %vm555_vm14, %v7747_v39 }
 0x2da   :  { %6923 = vpow2.f32 %v572_v40 }
 0x2db   :  { %836 = vrot.lane.b32.xlu2 %v7685_v60, %s10043_s6  ;;  %6925 = vrsqrt.f32 %v174_v50 }
 0x2e0   :  { %v7753_v41 = vpop.eup %6923 }
 0x2e1   :  { %5765 = vmatmul.msk.f32.gmra.mxu3 %vm555_vm14, %v7753_v41  ;;  %v6926_v52 = vpop.eup %6925 }
 0x2e2   :  { %v226_v53 = vmul.f32 %v6926_v52, %v174_v50  ;;  %vm232_vm0 = vweird.f32 %v6926_v52 }
 0x2e3   :  { %1374 = vrot.lane.b32.xlu2 %v7756_v42, %s7276_s3  ;;  %vm233_vm1 = vmor %vm231_vm15, %vm232_vm0 }
 0x2e4   :  { %v227_v58 = vmul.f32 %v6926_v52, %v226_v53 }
 0x2e6   :  { %v228_v0 = vmul.f32 0.5, %v227_v58 }
 0x2e8   :  { %v668_v44 = vpop.permute.xlu0 %667  ;;  %v229_v1 = vsub.f32 1.5, %v228_v0 }
 0x2e9   :  { %5769 = vmatmul.msk.f32.vlgmr.msra.gmra.mxu3 %vm510_vm13, %v664_v43  ;;  %v448_v43 = vpop.f32.mrf.mxu0 }
 0x2ea   :  { %v230_v8 = vmul.f32 %v6926_v52, %v229_v1 }
 0x2ec   :  { %v234_v13 = vsel %vm233_vm1, %v6926_v52, %v230_v8 }
 0x2ed   :  { %v240_v19 = vmul.f32 %v234_v13, %v7691_v63 }
 0x2ef   :  { %v249_v28 = vmul.f32 %v7604_v11, %v240_v19 }
 0x2f0   :  { %v744_v45 = vpop.permute.xlu0 %743 }
 0x2f1   :  { %5770 = vmatmul.msk.f32.gmra.mxu3 %vm510_vm13, %v666_v16  ;;  %v7783_v63 = vadd.f32 %v7611_v20, %v249_v28 }
 0x2f8   :  { %v841_v46 = vpop.permute.xlu0 %840 }
 0x2f9   :  { %5771 = vmatmul.msk.f32.gmra.mxu3 %vm510_vm13, %v668_v44  ;;  %6719 = vmatpush.xpose.msk.msrb.mxu1 %vm510_vm13, %v841_v46  ;;  %v449_v44 = vadd.f32 %v448_v43, %v7652_v47 }
 0x300   :  { %v839_v51 = vpop.permute.xlu0 %838 }
 0x301   :  { %6720 = vmatpush.xpose.msk.msrb.mxu1 %vm510_vm13, %v839_v51 }
 0x30e   :  { %v160_v59 = vpop.xlane.xlu2 %159 }
 0x30f   :  { %v167_v61 = vmul.f32 %v160_v59, %v7418_v10 }
 0x311   :  { %v173_v62 = vadd.f32 1e-12, %v167_v61 }
 0x313   :  { %6927 = vrsqrt.f32 %v173_v62  ;;  %vm221_vm3 = vweird.f32 %v173_v62 }
 0x316   :  { %v6732_v2 = vpop.permute.xlu2 %6731 }
 0x317   :  { %v6733_v3 = vunpack.i.l.bf16 %v6732_v2  ;;  %v6734_v7 = vunpack.i.h.bf16 %v6732_v2 }
 0x319   :  { %v6928_v4 = vpop.eup %6927  ;;  %774 = vmatpush.msrb.mxu0 %v6733_v3 }
 0x31a   :  { %v216_v9 = vmul.f32 %v6928_v4, %v173_v62  ;;  %vm222_vm2 = vweird.f32 %v6928_v4 }
 0x31b   :  { %775 = vmatpush.msrb.mxu0 %v6734_v7  ;;  %vm223_vm4 = vmor %vm221_vm3, %vm222_vm2 }
 0x31c   :  { %v217_v12 = vmul.f32 %v6928_v4, %v216_v9 }
 0x31d   :  { %776 = vmatpush.msrb.mxu0 %v744_v45  ;;  %v7806_v45 = vmul.f32 0.17677669, %v449_v44 }
 0x31e   :  { %v218_v14 = vmul.f32 0.5, %v217_v12  ;;  %v1009_v17 = vpop.permute.xlu2 %1008 }
 0x31f   :  { %5775 = vmatpush.xpose.msk.msra.mxu0 %vm510_vm13, %v7717_v22  ;;  %5784 = vmatpush.xpose.msk.msrb.mxu3 %vm510_vm13, %v1009_v17 }
 0x320   :  { %v219_v18 = vsub.f32 1.5, %v218_v14 }
 0x322   :  { %v220_v16 = vmul.f32 %v6928_v4, %v219_v18 }
 0x323   :  { %5776 = vmatpush.xpose.msk.msra.mxu0 %vm510_vm13, %v841_v46 }
 0x324   :  { %v224_v21 = vsel %vm223_vm4, %v6928_v4, %v220_v16 }
 0x325   :  { %v239_v26 = vmul.f32 %v224_v21, %v7729_v27 }
 0x326   :  { %v1007_v29 = vpop.permute.xlu2 %1006 }
 0x327   :  { %5777 = vmatpush.xpose.msk.msra.mxu0 %vm510_vm13, %v839_v51  ;;  %5785 = vmatpush.xpose.msk.msrb.mxu3 %vm510_vm13, %v1007_v29  ;;  %v248_v22 = vmul.f32 %v7604_v11, %v239_v26 }
 0x329   :  { %v7780_v30 = vadd.f32 %v7611_v20, %v248_v22 }
 0x32b   :  { %v263_v31 = vpack.c.bf16 %v7783_v63, %v7780_v30 }
 0x32d   :  { %450 = vmatmul.bf16.gmra.mxu0 %v263_v31  ;;  %474 = vmatmul.bf16.gmra.mxu1 %v263_v31 }
 0x32e   :  { %498 = vmatmul.bf16.gmra.mxu2 %v263_v31  ;;  %v1005_v27 = vpop.permute.xlu2 %1004 }
 0x32f   :  { %5786 = vmatpush.xpose.msk.msrb.mxu3 %vm510_vm13, %v1005_v27 }
 0x332   :  { %5787 = vmatmul.msk.f32.vlgmr.msrb.gmra.mxu3 %vm510_vm13, %v999_v6 }
 0x336   :  { %v835_v32 = vpop.permute.xlu2 %834 }
 0x33d   :  { %5779 = vmatmul.msk.f32.vlgmr.msrb.gmra.mxu1 %vm510_vm13, %v835_v32 }
 0x33e   :  { %v837_v11 = vpop.permute.xlu2 %836 }
 0x345   :  { %5780 = vmatmul.msk.f32.gmra.mxu1 %vm510_vm13, %v837_v11 }
 0x346   :  { %v1375_v14 = vpop.permute.xlu2 %1374 }
 0x354   :  { %v7791_v20 = vpop.f32.mrf.mxu3 }
 0x35c   :  { %v7793_v36 = vpop.f32.mrf.mxu3 }
 0x364   :  { %v7795_v15 = vpop.f32.mrf.mxu3 }
 0x36c   :  { %v704_v37 = vpop.f32.mrf.mxu3 }
 0x36d   :  { %v705_v40 = vadd.f32 %v7705_v5, %v704_v37 }
 0x36f   :  { %v713_v38 = vsel %vm555_vm14, %v705_v40, -inf }
 0x370   :  { %714 = vmax.xlane.f32.xlu0 %v713_v38 }
 0x374   :  { %v707_v58 = vpop.f32.mrf.mxu3 }
 0x37c   :  { %v710_v1 = vpop.f32.mrf.mxu3 }
 0x37d   :  { %v7847_v2 = vadd.f32 %v7705_v5, %v710_v1 }
 0x384   :  { %832 = vrot.lane.b32.xlu0 %v7674_v56, %s10043_s6 }
 0x38c   :  { %1000 = vrot.lane.b32.xlu0 %v7666_v54, %s10041_s0 }
 0x394   :  { %1002 = vrot.lane.b32.xlu0 %v7685_v60, %s10041_s0 }
 0x39c   :  { %1368 = vrot.lane.b32.xlu0 %v7806_v45, %s7276_s3 }
 0x3aa   :  { %v475_v46 = vpop.f32.mrf.mxu1  ;;  %v451_v56 = vpop.f32.mrf.mxu0 }
 0x3ab   :  { %v476_v54 = vadd.f32 %v475_v46, %v7637_v23  ;;  %v452_v60 = vadd.f32 %v451_v56, %v7652_v47 }
 0x3b2   :  { %v477_v48 = vpop.f32.mrf.mxu1  ;;  %v453_v51 = vpop.f32.mrf.mxu0 }
 0x3b3   :  { %v478_v50 = vadd.f32 %v477_v48, %v7637_v23  ;;  %v1212_v23 = vmul.f32 0.17677669, %v452_v60  ;;  %v454_v52 = vadd.f32 %v453_v51, %v7652_v47  ;;  %v7842_v47 = vadd.f32 %v7705_v5, %v707_v58 }
 0x3b5   :  { %1547 = vrot.lane.b32.xlu2 %v478_v50, %s10043_s6  ;;  %1378 = vrot.lane.b32.xlu1 %v478_v50, %s7276_s3  ;;  %v1213_v53 = vmul.f32 0.17677669, %v454_v52  ;;  %v716_v0 = vsel %vm555_vm14, %v7842_v47, -inf  ;;  %v1039_v7 = vpop.f32.mrf.mxu3 }
 0x3b6   :  { %1713 = vrot.lane.b32.xlu0 %v478_v50, %s10041_s0  ;;  %5793 = vmatpush.xpose.msk.msra.mxu1 %vm510_vm13, %v478_v50  ;;  %v7859_v9 = vadd.f32 %v7705_v5, %v1039_v7 }
 0x3b8   :  { %v1048_v12 = vsel %vm555_vm14, %v7859_v9, -inf }
 0x3ba   :  { %5794 = vmatpush.xpose.msk.msra.mxu1 %vm510_vm13, %v476_v54  ;;  %v876_v29 = vpop.f32.mrf.mxu1 }
 0x3bb   :  { %v7904_v60 = vadd.f32 %v7705_v5, %v876_v29 }
 0x3bd   :  { %1545 = vrot.lane.b32.xlu2 %v476_v54, %s10043_s6  ;;  %1376 = vrot.lane.b32.xlu1 %v476_v54, %s7276_s3 }
 0x3be   :  { %1711 = vrot.lane.b32.xlu0 %v476_v54, %s10041_s0  ;;  %5795 = vmatpush.xpose.msk.msra.mxu1 %vm510_vm13, %v7756_v42 }
 0x3c1   :  { %5796 = vmatmul.msk.f32.vlgmr.msra.gmra.mxu1 %vm510_vm13, %v7806_v45 }
 0x3c2   :  { %v879_v27 = vpop.f32.mrf.mxu1 }
 0x3c5   :  { %1709 = vrot.lane.b32.xlu2 %v7756_v42, %s10041_s0 }
 0x3c6   :  { %1537 = vrot.lane.b32.xlu0 %v7806_v45, %s10043_s6 }
 0x3c9   :  { %5797 = vmatmul.msk.f32.gmra.mxu1 %vm510_vm13, %v1212_v23 }
 0x3cd   :  { %1539 = vrot.lane.b32.xlu2 %v1212_v23, %s10043_s6 }
 0x3ce   :  { %1705 = vrot.lane.b32.xlu0 %v1212_v23, %s10041_s0 }
 0x3d1   :  { %5798 = vmatmul.msk.f32.gmra.mxu1 %vm510_vm13, %v1213_v53 }
 0x3d5   :  { %1707 = vrot.lane.b32.xlu2 %v1213_v53, %s10041_s0 }
 0x3d6   :  { %909 = vrot.lane.b32.xlu0 %v7679_v57, %s10043_s6 }
 0x3dd   :  { %6741 = vrot.lane.b32.xlu2 %v7668_v55, %s10041_s0 }
 0x3de   :  { %1075 = vrot.lane.b32.xlu0 %v7679_v57, %s10041_s0  ;;  %v719_v57 = vsel %vm555_vm14, %v7847_v2, -inf }
 0x3e3   :  { %v715_v59 = vpop.xlane.xlu0 %714 }
 0x3e4   :  { %v722_v61 = vsub.f32 %v705_v40, %v715_v59  ;;  %v7888_v40 = vld [vmem:[%s10056_s24 + $0x1] ss:$0 sm:$0xff] }
 0x3e6   :  { %v725_v62 = vmul.f32 1.442695, %v722_v61 }
 0x3e7   :  { %717 = vmax.xlane.f32.xlu1 %v716_v0 }
 0x3e8   :  { %6929 = vpow2.f32 %v725_v62 }
 0x3ee   :  { %v7849_v3 = vpop.eup %6929 }
 0x3ef   :  { %720 = vmax.xlane.f32.xlu1 %v719_v57  ;;  %5772 = vmatmul.msk.f32.vlgmr.msrb.gmra.mxu0 %vm555_vm14, %v7849_v3 }
 0x3f6   :  { %v7855_v4 = vpop.permute.xlu0 %832 }
 0x3fe   :  { %v1001_v8 = vpop.permute.xlu0 %1000 }
 0x3ff   :  { %5788 = vmatmul.msk.f32.gmra.mxu3 %vm510_vm13, %v1001_v8 }
 0x406   :  { %1049 = vmax.xlane.f32.xlu2 %v1048_v12  ;;  %v1003_v13 = vpop.permute.xlu0 %1002 }
 0x407   :  { %5789 = vmatmul.msk.f32.gmra.mxu3 %vm510_vm13, %v1003_v13 }
 0x408   :  { %1370 = vrot.lane.b32.xlu1 %v1212_v23, %s7276_s3  ;;  %v885_v23 = vsel %vm555_vm14, %v7904_v60, -inf }
 0x40e   :  { %v1369_v16 = vpop.permute.xlu0 %1368 }
 0x40f   :  { %v1548_v17 = vpop.permute.xlu2 %1547 }
 0x410   :  { %1372 = vrot.lane.b32.xlu1 %v1213_v53, %s7276_s3  ;;  %5811 = vmatpush.xpose.msk.msrb.mxu1 %vm510_vm13, %v1548_v17 }
 0x417   :  { %v1546_v18 = vpop.permute.xlu2 %1545 }
 0x418   :  { %1543 = vrot.lane.b32.xlu1 %v7756_v42, %s10043_s6  ;;  %5812 = vmatpush.xpose.msk.msrb.mxu1 %vm510_vm13, %v1546_v18 }
 0x41f   :  { %v1710_v19 = vpop.permute.xlu2 %1709 }
 0x420   :  { %1703 = vrot.lane.b32.xlu1 %v7806_v45, %s10041_s0 }
 0x427   :  { %v1379_v21 = vpop.permute.xlu1 %1378  ;;  %v7872_v26 = vpop.permute.xlu2 %1539 }
 0x428   :  { %v1714_v28 = vpop.permute.xlu0 %1713  ;;  %5802 = vmatpush.xpose.msk.msra.mxu3 %vm510_vm13, %v1379_v21  ;;  %1541 = vrot.lane.b32.xlu1 %v1213_v53, %s10043_s6  ;;  %v7910_v53 = vadd.f32 %v7705_v5, %v879_v27 }
 0x42a   :  { %v888_v59 = vsel %vm555_vm14, %v7910_v53, -inf }
 0x42f   :  { %v1377_v22 = vpop.permute.xlu1 %1376  ;;  %v7876_v31 = vpop.permute.xlu2 %1707 }
 0x430   :  { %v1712_v42 = vpop.permute.xlu0 %1711  ;;  %5803 = vmatpush.xpose.msk.msra.mxu3 %vm510_vm13, %v1377_v22  ;;  %6736 = vrot.lane.b32.xlu1 %v7668_v55, %s10043_s6 }
 0x434   :  { %5804 = vmatpush.xpose.msk.msra.mxu3 %vm510_vm13, %v1375_v14 }
 0x437   :  { %v6742_v6 = vpop.permute.xlu2 %6741  ;;  %5805 = vmatmul.msk.f32.vlgmr.msra.gmra.mxu3 %vm510_vm13, %v1369_v16 }
 0x438   :  { %5820 = vmatpush.xpose.msk.msrb.mxu3 %vm510_vm13, %v1714_v28  ;;  %v6743_v32 = vunpack.i.l.bf16 %v6742_v6  ;;  %v1538_v11 = vpop.permute.xlu0 %1537  ;;  %v6744_v37 = vunpack.i.h.bf16 %v6742_v6 }
 0x43a   :  { %1106 = vmatpush.msrb.mxu0 %v6743_v32 }
 0x43c   :  { %5821 = vmatpush.xpose.msk.msrb.mxu3 %vm510_vm13, %v1712_v42  ;;  %1107 = vmatpush.msrb.mxu0 %v6744_v37 }
 0x43e   :  { %v1252_v55 = vpop.f32.mrf.mxu1 }
 0x43f   :  { %v7892_v38 = vadd.f32 %v7888_v40, %v1252_v55 }
 0x440   :  { %5822 = vmatpush.xpose.msk.msrb.mxu3 %vm510_vm13, %v1710_v19  ;;  %v1706_v43 = vpop.permute.xlu0 %1705 }
 0x441   :  { %v1261_v44 = vsel %vm555_vm14, %v7892_v38, -inf }
 0x442   :  { %1262 = vmax.xlane.f32.xlu0 %v1261_v44 }
 0x446   :  { %v1255_v45 = vpop.f32.mrf.mxu1 }
 0x447   :  { %v7918_v1 = vadd.f32 %v7888_v40, %v1255_v45 }
 0x448   :  { %v7896_v46 = vpop.permute.xlu0 %909 }
 0x449   :  { %v1264_v7 = vsel %vm555_vm14, %v7918_v1, -inf }
 0x44e   :  { %v1258_v48 = vpop.f32.mrf.mxu1 }
 0x44f   :  { %v7899_v50 = vadd.f32 %v7888_v40, %v1258_v48 }
 0x450   :  { %v1076_v54 = vpop.permute.xlu0 %1075 }
 0x451   :  { %1108 = vmatpush.msrb.mxu0 %v1076_v54  ;;  %v1267_v56 = vsel %vm555_vm14, %v7899_v50, -inf }
 0x452   :  { %1268 = vmax.xlane.f32.xlu0 %v1267_v56 }
 0x45a   :  { %v718_v51 = vpop.xlane.xlu1 %717  ;;  %886 = vmax.xlane.f32.xlu1 %v885_v23 }
 0x45b   :  { %v723_v52 = vsub.f32 %v7842_v47, %v718_v51  ;;  %v496_v47 = vpop.f32.mrf.mxu2 }
 0x45d   :  { %v727_v58 = vmul.f32 1.442695, %v723_v52 }
 0x45f   :  { %6931 = vpow2.f32 %v727_v58 }
 0x462   :  { %v721_v61 = vpop.xlane.xlu1 %720  ;;  %889 = vmax.xlane.f32.xlu1 %v888_v59 }
 0x463   :  { %v724_v62 = vsub.f32 %v7847_v2, %v721_v61  ;;  %v499_v2 = vpop.f32.mrf.mxu2 }
 0x464   :  { %v500_v16 = vadd.f32 %v499_v2, %v7659_v49 }
 0x465   :  { %v7915_v0 = vpop.eup %6931  ;;  %v729_v57 = vmul.f32 1.442695, %v724_v62 }
 0x466   :  { %5773 = vmatmul.msk.f32.gmra.mxu0 %vm555_vm14, %v7915_v0 }
 0x467   :  { %6933 = vpow2.f32 %v729_v57 }
 0x46a   :  { %1265 = vmax.xlane.f32.xlu1 %v1264_v7 }
 0x46b   :  { %v501_v13 = vpop.f32.mrf.mxu2 }
 0x46c   :  { %v502_v19 = vadd.f32 %v501_v13, %v7659_v49  ;;  %v7971_v56 = vpop.f32.mrf.mxu0 }
 0x46d   :  { %v7924_v8 = vpop.eup %6933 }
 0x46e   :  { %5774 = vmatmul.msk.f32.gmra.mxu0 %vm555_vm14, %v7924_v8  ;;  %v7934_v21 = vpack.i.bf16 %v500_v16, %v502_v19 }
 0x476   :  { %5778 = vmatmul.msk.f32.vlgmr.msra.gmra.mxu0 %vm510_vm13, %v7855_v4 }
 0x479   :  { %v1050_v12 = vpop.xlane.xlu2 %1049 }
 0x47a   :  { %v1057_v14 = vsub.f32 %v7859_v9, %v1050_v12  ;;  %v1371_v17 = vpop.permute.xlu1 %1370 }
 0x47b   :  { %5806 = vmatmul.msk.f32.gmra.mxu3 %vm510_vm13, %v1371_v17 }
 0x47c   :  { %v1060_v18 = vmul.f32 1.442695, %v1057_v14 }
 0x47e   :  { %6935 = vpow2.f32 %v1060_v18 }
 0x482   :  { %v1373_v28 = vpop.permute.xlu1 %1372  ;;  %v1042_v27 = vpop.f32.mrf.mxu3 }
 0x483   :  { %6746 = vrot.lane.b32.xlu1 %v7934_v21, %s7276_s3  ;;  %5807 = vmatmul.msk.f32.gmra.mxu3 %vm510_vm13, %v1373_v28 }
 0x484   :  { %v7939_v4 = vpop.eup %6935 }
 0x485   :  { %5790 = vmatmul.msk.f32.vlgmr.msrb.gmra.mxu0 %vm555_vm14, %v7939_v4 }
 0x48a   :  { %v1544_v9 = vpop.permute.xlu1 %1543  ;;  %v1045_v55 = vpop.f32.mrf.mxu3 }
 0x48b   :  { %5813 = vmatpush.xpose.msk.msrb.mxu1 %vm510_vm13, %v1544_v9 }
 0x48e   :  { %5814 = vmatmul.msk.f32.vlgmr.msrb.gmra.mxu1 %vm510_vm13, %v1538_v11  ;;  %v1043_v11 = vadd.f32 %v7705_v5, %v1042_v27 }
 0x490   :  { %v1051_v37 = vsel %vm555_vm14, %v1043_v11, -inf }
 0x492   :  { %v1704_v29 = vpop.permute.xlu1 %1703 }
 0x493   :  { %5823 = vmatmul.msk.f32.vlgmr.msrb.gmra.mxu3 %vm510_vm13, %v1704_v29 }
 0x496   :  { %5815 = vmatmul.msk.f32.gmra.mxu1 %vm510_vm13, %v7872_v26  ;;  %v7955_v26 = vadd.f32 %v496_v47, %v7659_v49 }
 0x49a   :  { %v1542_v22 = vpop.permute.xlu1 %1541 }
 0x49b   :  { %5824 = vmatmul.msk.f32.gmra.mxu3 %vm510_vm13, %v1706_v43 }
 0x49e   :  { %5816 = vmatmul.msk.f32.gmra.mxu1 %vm510_vm13, %v1542_v22 }
 0x4a2   :  { %v6737_v42 = vpop.permute.xlu1 %6736 }
 0x4a3   :  { %5825 = vmatmul.msk.f32.gmra.mxu3 %vm510_vm13, %v7876_v31  ;;  %v6738_v6 = vunpack.i.l.bf16 %v6737_v42  ;;  %v6739_v32 = vunpack.i.h.bf16 %v6737_v42  ;;  %v1046_v31 = vadd.f32 %v7705_v5, %v1045_v55 }
 0x4a5   :  { %940 = vmatpush.msrb.mxu2 %v6738_v6  ;;  %v1054_v43 = vsel %vm555_vm14, %v1046_v31, -inf }
 0x4a7   :  { %941 = vmatpush.msrb.mxu2 %v6739_v32 }
 0x4a9   :  { %942 = vmatpush.msrb.mxu2 %v7896_v46 }
 0x4ab   :  { %1310 = vmatpush.msra.mxu2 %v502_v19 }
 0x4ad   :  { %1311 = vmatpush.msra.mxu2 %v500_v16  ;;  %1052 = vmax.xlane.f32.xlu1 %v1051_v37 }
 0x4af   :  { %1312 = vmatpush.msra.mxu2 %v7955_v26 }
 0x4b5   :  { %1055 = vmax.xlane.f32.xlu1 %v1054_v43 }
 0x4ba   :  { %v1409_v44 = vpop.f32.mrf.mxu3 }
 0x4bb   :  { %v1410_v45 = vadd.f32 %v7888_v40, %v1409_v44 }
 0x4bd   :  { %v1418_v46 = vsel %vm555_vm14, %v1410_v45, -inf }
 0x4be   :  { %1419 = vmax.xlane.f32.xlu2 %v1418_v46 }
 0x4cd   :  { %v7965_v49 = vpop.xlane.xlu1 %886 }
 0x4d5   :  { %v7967_v48 = vpop.xlane.xlu1 %889 }
 0x4d6   :  { %1448 = vrot.lane.b32.xlu2 %v7955_v26, %s7276_s3 }
 0x4dd   :  { %v7969_v54 = vpop.xlane.xlu1 %1265 }
 0x4e3   :  { %v7973_v51 = vpop.f32.mrf.mxu0 }
 0x4eb   :  { %v7978_v62 = vpop.f32.mrf.mxu0 }
 0x4f3   :  { %v873_v12 = vpop.f32.mrf.mxu0 }
 0x4f4   :  { %v7988_v14 = vadd.f32 %v7705_v5, %v873_v12 }
 0x4f5   :  { %v6747_v23 = vpop.permute.xlu1 %6746 }
 0x4f6   :  { %v6748_v52 = vunpack.i.l.bf16 %v6747_v23  ;;  %v6749_v58 = vunpack.i.h.bf16 %v6747_v23  ;;  %v882_v17 = vsel %vm555_vm14, %v7988_v14, -inf }
 0x4f8   :  { %1479 = vmatpush.msra.mxu0 %v6748_v52 }
 0x4fa   :  { %1480 = vmatpush.msra.mxu0 %v6749_v58 }
 0x4fe   :  { %v1412_v59 = vpop.f32.mrf.mxu3 }
 0x4ff   :  { %v7976_v61 = vadd.f32 %v7888_v40, %v1412_v59  ;;  %v731_v59 = vsel %vm555_vm14, %v7849_v3, 0.0 }
 0x501   :  { %v1421_v57 = vsel %vm555_vm14, %v7976_v61, -inf }
 0x502   :  { %1422 = vmax.xlane.f32.xlu1 %v1421_v57 }
 0x506   :  { %v1415_v47 = vpop.f32.mrf.mxu3 }
 0x507   :  { %v7983_v7 = vadd.f32 %v7888_v40, %v1415_v47 }
 0x509   :  { %v1424_v2 = vsel %vm555_vm14, %v7983_v7, -inf }
 0x50a   :  { %1425 = vmax.xlane.f32.xlu0 %v1424_v2  ;;  %v893_v2 = vsub.f32 %v7910_v53, %v7967_v48 }
 0x50b   :  { %v1578_v13 = vpop.f32.mrf.mxu1 }
 0x50c   :  { %v7995_v19 = vadd.f32 %v7888_v40, %v1578_v13  ;;  %v734_v13 = vsel %vm555_vm14, %v7915_v0, 0.0 }
 0x50e   :  { %v1587_v5 = vsel %vm555_vm14, %v7995_v19, -inf }
 0x512   :  { %883 = vmax.xlane.f32.xlu0 %v882_v17 }
 0x513   :  { %v7992_v18 = vpop.f32.mrf.mxu1 }
 0x516   :  { %v1744_v16 = vpop.f32.mrf.mxu3 }
 0x517   :  { %v7998_v28 = vadd.f32 %v7888_v40, %v1744_v16 }
 0x519   :  { %v1753_v9 = vsel %vm555_vm14, %v7998_v28, -inf }
 0x51a   :  { %1754 = vmax.xlane.f32.xlu2 %v1753_v9  ;;  %1588 = vmax.xlane.f32.xlu0 %v1587_v5  ;;  %v892_v5 = vsub.f32 %v7904_v60, %v7965_v49 }
 0x51b   :  { %1614 = vrot.lane.b32.xlu1 %v7955_v26, %s10043_s6  ;;  %v1584_v29 = vpop.f32.mrf.mxu1 }
 0x51c   :  { %v8007_v22 = vadd.f32 %v7888_v40, %v1584_v29  ;;  %v896_v29 = vmul.f32 1.442695, %v892_v5 }
 0x51e   :  { %v1747_v42 = vpop.f32.mrf.mxu3  ;;  %v1593_v32 = vsel %vm555_vm14, %v8007_v22, -inf }
 0x51f   :  { %v8032_v17 = vadd.f32 %v7888_v40, %v1747_v42  ;;  %v8049_v42 = vadd.f32 %v7888_v40, %v7992_v18  ;;  %v737_v18 = vsel %vm555_vm14, %v7924_v8, 0.0 }
 0x520   :  { %v1053_v27 = vpop.xlane.xlu1 %1052 }
 0x521   :  { %v1058_v6 = vsub.f32 %v1043_v11, %v1053_v27  ;;  %v1756_v53 = vsel %vm555_vm14, %v8032_v17, -inf  ;;  %v577_v27 = vsel %vm555_vm14, %v7747_v39, 0.0 }
 0x522   :  { %1594 = vmax.xlane.f32.xlu2 %v1593_v32  ;;  %v1263_v32 = vpop.xlane.xlu0 %1262 }
 0x523   :  { %v1062_v37 = vmul.f32 1.442695, %v1058_v6 }
 0x525   :  { %6937 = vpow2.f32 %v1062_v37 }
 0x526   :  { %v1750_v55 = vpop.f32.mrf.mxu3 }
 0x527   :  { %v8012_v43 = vadd.f32 %v7888_v40, %v1750_v55 }
 0x528   :  { %v1056_v44 = vpop.xlane.xlu1 %1055 }
 0x529   :  { %v1059_v46 = vsub.f32 %v1046_v31, %v1056_v44  ;;  %v1759_v23 = vsel %vm555_vm14, %v8012_v43, -inf }
 0x52a   :  { %1760 = vmax.xlane.f32.xlu2 %v1759_v23  ;;  %v8056_v60 = vpop.xlane.xlu0 %1268 }
 0x52b   :  { %v6938_v52 = vpop.eup %6937  ;;  %v1064_v58 = vmul.f32 1.442695, %v1059_v46 }
 0x52c   :  { %5791 = vmatmul.msk.f32.gmra.mxu0 %vm555_vm14, %v6938_v52 }
 0x52d   :  { %6939 = vpow2.f32 %v1064_v58 }
 0x52e   :  { %6751 = vrot.lane.b32.xlu0 %v7934_v21, %s10043_s6 }
 0x531   :  { %v1420_v11 = vpop.xlane.xlu2 %1419 }
 0x532   :  { %v1427_v57 = vsub.f32 %v1410_v45, %v1420_v11  ;;  %732 = vadd.xlane.f32.xlu2 %v731_v59  ;;  %v898_v45 = vmul.f32 1.442695, %v893_v2 }
 0x533   :  { %v6940_v47 = vpop.eup %6939 }
 0x534   :  { %v1430_v31 = vmul.f32 1.442695, %v1427_v57  ;;  %5792 = vmatmul.msk.f32.gmra.mxu0 %vm555_vm14, %v6940_v47  ;;  %v1072_v9 = vsel %vm555_vm14, %v6940_v47, 0.0 }
 0x536   :  { %6941 = vpow2.f32 %v1430_v31  ;;  %6756 = vrot.lane.b32.xlu0 %v7934_v21, %s10041_s0  ;;  %v1069_v21 = vsel %vm555_vm14, %v6938_v52, 0.0 }
 0x537   :  { %6943 = vpow2.f32 %v898_v45 }
 0x538   :  { %6945 = vpow2.f32 %v896_v29  ;;  %v1271_v29 = vsub.f32 %v7918_v1, %v7969_v54  ;;  %v580_v1 = vsel %vm555_vm14, %v7753_v41, 0.0 }
 0x539   :  { %v1449_v12 = vpop.permute.xlu2 %1448 }
 0x53a   :  { %735 = vadd.xlane.f32.xlu2 %v734_v13  ;;  %1481 = vmatpush.msra.mxu0 %v1449_v12 }
 0x53c   :  { %v6942_v3 = vpop.eup %6941 }
 0x53d   :  { %5808 = vmatmul.msk.f32.vlgmr.msra.gmra.mxu0 %vm555_vm14, %v6942_v3  ;;  %v8037_v0 = vpop.eup %6943  ;;  %v1436_v16 = vsel %vm555_vm14, %v6942_v3, 0.0 }
 0x53e   :  { %1780 = vrot.lane.b32.xlu0 %v7955_v26, %s10041_s0  ;;  %v906_v48 = vsel %vm555_vm14, %v8037_v0, 0.0  ;;  %v1066_v26 = vsel %vm555_vm14, %v7939_v4, 0.0  ;;  %v1590_v4 = vsel %vm555_vm14, %v8049_v42, -inf  ;;  %v6946_v6 = vpop.eup %6945 }
 0x53f   :  { %v903_v37 = vsel %vm555_vm14, %v6946_v6, 0.0 }
 0x542   :  { %1070 = vadd.xlane.f32.xlu2 %v1069_v21 }
 0x545   :  { %1757 = vmax.xlane.f32.xlu1 %v1756_v53  ;;  %v1270_v53 = vsub.f32 %v7892_v38, %v1263_v32  ;;  %v1275_v32 = vmul.f32 1.442695, %v1271_v29 }
 0x54a   :  { %907 = vadd.xlane.f32.xlu2 %v906_v48  ;;  %v1273_v48 = vmul.f32 1.442695, %v1270_v53 }
 0x54d   :  { %1067 = vadd.xlane.f32.xlu1 %v1066_v26 }
 0x555   :  { %1437 = vadd.xlane.f32.xlu1 %v1436_v16 }
 0x55d   :  { %1073 = vadd.xlane.f32.xlu1 %v1072_v9 }
 0x565   :  { %578 = vadd.xlane.f32.xlu1 %v577_v27  ;;  %v574_v27 = vsel %vm555_vm14, %v7741_v33, 0.0  ;;  %v1272_v33 = vsub.f32 %v7899_v50, %v8056_v60 }
 0x568   :  { %1591 = vmax.xlane.f32.xlu0 %v1590_v4 }
 0x570   :  { %904 = vadd.xlane.f32.xlu0 %v903_v37 }
 0x575   :  { %v1423_v49 = vpop.xlane.xlu1 %1422 }
 0x576   :  { %v1428_v40 = vsub.f32 %v7976_v61, %v1423_v49 }
 0x578   :  { %v1432_v39 = vmul.f32 1.442695, %v1428_v40  ;;  %738 = vadd.xlane.f32.xlu0 %v737_v18 }
 0x57a   :  { %6947 = vpow2.f32 %v1432_v39 }
 0x57d   :  { %v1426_v55 = vpop.xlane.xlu0 %1425 }
 0x57e   :  { %v1429_v44 = vsub.f32 %v7983_v7, %v1426_v55 }
 0x580   :  { %v6948_v46 = vpop.eup %6947  ;;  %v1434_v23 = vmul.f32 1.442695, %v1429_v44 }
 0x581   :  { %5809 = vmatmul.msk.f32.gmra.mxu0 %vm555_vm14, %v6948_v46  ;;  %v1439_v52 = vsel %vm555_vm14, %v6948_v46, 0.0  ;;  %v1277_v46 = vmul.f32 1.442695, %v1272_v33 }
 0x582   :  { %6949 = vpow2.f32 %v1434_v23  ;;  %1440 = vadd.xlane.f32.xlu1 %v1439_v52 }
 0x585   :  { %v884_v58 = vpop.xlane.xlu0 %883 }
 0x586   :  { %v891_v61 = vsub.f32 %v7988_v14, %v884_v58 }
 0x588   :  { %v8065_v11 = vpop.eup %6949  ;;  %v894_v8 = vmul.f32 1.442695, %v891_v61 }
 0x589   :  { %5810 = vmatmul.msk.f32.gmra.mxu0 %vm555_vm14, %v8065_v11  ;;  %v1442_v50 = vsel %vm555_vm14, %v8065_v11, 0.0 }
 0x58a   :  { %6951 = vpow2.f32 %v894_v8 }
 0x58d   :  { %v1755_v59 = vpop.xlane.xlu2 %1754  ;;  %v1589_v57 = vpop.xlane.xlu0 %1588 }
 0x58e   :  { %v1762_v7 = vsub.f32 %v7998_v28, %v1755_v59  ;;  %v1596_v47 = vsub.f32 %v7995_v19, %v1589_v57 }
 0x590   :  { %v6952_v31 = vpop.eup %6951  ;;  %v1765_v2 = vmul.f32 1.442695, %v1762_v7  ;;  %v1599_v12 = vmul.f32 1.442695, %v1596_v47 }
 0x591   :  { %5781 = vmatmul.msk.f32.vlgmr.msrb.gmra.mxu2 %vm555_vm14, %v6952_v31  ;;  %v900_v5 = vsel %vm555_vm14, %v6952_v31, 0.0 }
 0x592   :  { %6953 = vpow2.f32 %v1765_v2 }
 0x593   :  { %6955 = vpow2.f32 %v1599_v12 }
 0x595   :  { %v1595_v14 = vpop.xlane.xlu2 %1594 }
 0x596   :  { %v1598_v13 = vsub.f32 %v8007_v22, %v1595_v14 }
 0x598   :  { %v6954_v3 = vpop.eup %6953  ;;  %v1603_v45 = vmul.f32 1.442695, %v1598_v13 }
 0x599   :  { %v8073_v21 = vpop.eup %6955  ;;  %5782 = vmatmul.msk.f32.gmra.mxu2 %vm555_vm14, %v6946_v6  ;;  %v1771_v19 = vsel %vm555_vm14, %v6954_v3, 0.0 }
 0x59a   :  { %6957 = vpow2.f32 %v1603_v45  ;;  %1772 = vadd.xlane.f32.xlu2 %v1771_v19  ;;  %v1605_v28 = vsel %vm555_vm14, %v8073_v21, 0.0 }
 0x59b   :  { %1606 = vadd.xlane.f32.xlu0 %v1605_v28  ;;  %6959 = vpow2.f32 %v1273_v48 }
 0x59d   :  { %v8080_v26 = vpop.xlane.xlu2 %1760 }
 0x59e   :  { %v1764_v19 = vsub.f32 %v8012_v43, %v8080_v26 }
 0x5a0   :  { %v8082_v22 = vpop.eup %6957  ;;  %v6752_v16 = vpop.permute.xlu0 %6751 }
 0x5a1   :  { %v6753_v9 = vunpack.i.l.bf16 %v6752_v16  ;;  %5783 = vmatmul.msk.f32.gmra.mxu2 %vm555_vm14, %v8037_v0  ;;  %v1611_v38 = vsel %vm555_vm14, %v8082_v22, 0.0  ;;  %v6754_v4 = vunpack.i.h.bf16 %v6752_v16  ;;  %v1615_v0 = vpop.permute.xlu1 %1614  ;;  %v6960_v37 = vpop.eup %6959 }
 0x5a2   :  { %1612 = vadd.xlane.f32.xlu1 %v1611_v38  ;;  %901 = vadd.xlane.f32.xlu2 %v900_v5  ;;  %v1279_v54 = vsel %vm555_vm14, %v6960_v37, 0.0  ;;  %v1769_v5 = vmul.f32 1.442695, %v1764_v19 }
 0x5a3   :  { %575 = vadd.xlane.f32.xlu0 %v574_v27  ;;  %1645 = vmatpush.msrb.mxu2 %v6753_v9 }
 0x5a5   :  { %v733_v6 = vpop.xlane.xlu2 %732  ;;  %1646 = vmatpush.msrb.mxu2 %v6754_v4 }
 0x5a6   :  { %6961 = vrcp.f32 %v733_v6  ;;  %v798_v59 = vand.u32 2147483648, %v733_v6  ;;  %vm792_vm6 = vweird.f32 %v733_v6  ;;  %v796_v2 = vand.u32 2147483647, %v733_v6 }
 0x5a7   :  { %1647 = vmatpush.msrb.mxu2 %v1615_v0  ;;  %6963 = vpow2.f32 %v1275_v32 }
 0x5a8   :  { %v6757_v49 = vpop.permute.xlu0 %6756  ;;  %v799_v45 = vor.u32 1.1754944e-38, %v798_v59  ;;  %vm797_vm10 = vcmp.eq.f32.partialorder %v796_v2, 8.507059e+37 }
 0x5a9   :  { %v6758_v40 = vunpack.i.l.bf16 %v6757_v49  ;;  %5799 = vmatmul.msk.f32.vlgmr.msra.gmra.mxu2 %vm555_vm14, %v6960_v37  ;;  %v6759_v18 = vunpack.i.h.bf16 %v6757_v49 }
 0x5aa   :  { %581 = vadd.xlane.f32.xlu2 %v580_v1 }
 0x5ab   :  { %1280 = vadd.xlane.f32.xlu0 %v1279_v54  ;;  %1811 = vmatpush.msrb.mxu0 %v6758_v40  ;;  %v1110_v54 = vpop.f32.mrf.mxu0 }
 0x5ac   :  { %v6962_v39 = vpop.eup %6961 }
 0x5ad   :  { %v788_v55 = vmul.f32 %v6962_v39, %v733_v6  ;;  %v736_v44 = vpop.xlane.xlu2 %735  ;;  %1812 = vmatpush.msrb.mxu0 %v6759_v18  ;;  %v8099_v52 = vpop.eup %6963  ;;  %vm793_vm5 = vweird.f32 %v6962_v39 }
 0x5ae   :  { %6965 = vrcp.f32 %v736_v44  ;;  %v813_v47 = vand.u32 2147483648, %v736_v44  ;;  %vm794_vm7 = vmor %vm792_vm6, %vm793_vm5  ;;  %v811_v14 = vand.u32 2147483647, %v736_v44  ;;  %vm807_vm9 = vweird.f32 %v736_v44 }
 0x5af   :  { %v789_v23 = vsub.f32 1.0, %v788_v55  ;;  %6967 = vpow2.f32 %v1277_v46 }
 0x5b0   :  { %v1781_v41 = vpop.permute.xlu0 %1780  ;;  %v814_v28 = vor.u32 1.1754944e-38, %v813_v47  ;;  %vm812_vm12 = vcmp.eq.f32.partialorder %v811_v14, 8.507059e+37 }
 0x5b1   :  { %5800 = vmatmul.msk.f32.gmra.mxu2 %vm555_vm14, %v8099_v52  ;;  %1813 = vmatpush.msrb.mxu0 %v1781_v41  ;;  %v790_v60 = vmul.f32 %v6962_v39, %v789_v23 }
 0x5b2   :  { %1443 = vadd.xlane.f32.xlu2 %v1442_v50  ;;  %5826 = vmatmul.msk.f32.vlgmr.msrb.gmra.mxu0 %vm555_vm14, %v6954_v3 }
 0x5b3   :  { %v791_v8 = vadd.f32 %v6962_v39, %v790_v60 }
 0x5b4   :  { %v6966_v58 = vpop.eup %6965 }
 0x5b5   :  { %v803_v61 = vmul.f32 %v6966_v58, %v736_v44  ;;  %v8106_v57 = vpop.eup %6967  ;;  %vm808_vm8 = vweird.f32 %v6966_v58  ;;  %v795_v13 = vsel %vm794_vm7, %v6962_v39, %v791_v8  ;;  %v1071_v6 = vpop.xlane.xlu2 %1070 }
 0x5b6   :  { %vm809_vm11 = vmor %vm807_vm9, %vm808_vm8  ;;  %v800_v48 = vsel %vm797_vm10, %v799_v45, %v795_v13  ;;  %vm1139_vm3 = vweird.f32 %v1071_v6  ;;  %v1143_v14 = vand.u32 2147483647, %v1071_v6 }
 0x5b7   :  { %v804_v7 = vsub.f32 1.0, %v803_v61  ;;  %v801_v38 = vmul.f32 %v800_v48, %v7971_v56 }
 0x5b8   :  { %v1758_v31 = vpop.xlane.xlu1 %1757  ;;  %vm1144_vm6 = vcmp.eq.f32.partialorder %v1143_v14, 8.507059e+37 }
 0x5b9   :  { %v805_v12 = vmul.f32 %v6966_v58, %v804_v7  ;;  %v1763_v11 = vsub.f32 %v8032_v17, %v1758_v31  ;;  %5801 = vmatmul.msk.f32.gmra.mxu2 %vm555_vm14, %v8106_v57 }
 0x5bb   :  { %v1767_v3 = vmul.f32 1.442695, %v1763_v11  ;;  %v806_v53 = vadd.f32 %v6966_v58, %v805_v12 }
 0x5bd   :  { %6969 = vpow2.f32 %v1767_v3  ;;  %v810_v17 = vsel %vm809_vm11, %v6966_v58, %v806_v53  ;;  %v1113_v58 = vpop.f32.mrf.mxu0 }
 0x5be   :  { %v815_v16 = vsel %vm812_vm12, %v814_v28, %v810_v17  ;;  %6971 = vpow2.f32 %v1769_v5 }
 0x5bf   :  { %v816_v9 = vmul.f32 %v815_v16, %v7973_v51 }
 0x5c0   :  { %v1068_v4 = vpop.xlane.xlu1 %1067 }
 0x5c1   :  { %5817 = vmatmul.msk.f32.vlgmr.msrb.gmra.mxu2 %vm555_vm14, %v8073_v21  ;;  %v6760_v29 = vpack.i.bf16 %v816_v9, %v801_v38  ;;  %6973 = vrcp.f32 %v1068_v4  ;;  %v1130_v59 = vand.u32 2147483648, %v1068_v4  ;;  %vm1124_vm1 = vweird.f32 %v1068_v4 }
 0x5c2   :  { %v1128_v31 = vand.u32 2147483647, %v1068_v4 }
 0x5c3   :  { %v6970_v27 = vpop.eup %6969  ;;  %6761 = vrot.lane.b32.xlu1 %v6760_v29, %s10041_s0  ;;  %v1131_v13 = vor.u32 1.1754944e-38, %v1130_v59 }
 0x5c4   :  { %5827 = vmatmul.msk.f32.gmra.mxu0 %vm555_vm14, %v6970_v27  ;;  %v1774_v43 = vsel %vm555_vm14, %v6970_v27, 0.0  ;;  %v6972_v26 = vpop.eup %6971  ;;  %vm1129_vm5 = vcmp.eq.f32.partialorder %v1128_v31, 8.507059e+37 }
 0x5c5   :  { %1775 = vadd.xlane.f32.xlu2 %v1774_v43  ;;  %v1777_v46 = vsel %vm555_vm14, %v6972_v26, 0.0  ;;  %v8133_v48 = vpop.f32.mrf.mxu0 }
 0x5c7   :  { %v6974_v0 = vpop.eup %6973 }
 0x5c8   :  { %v8124_v49 = vpop.xlane.xlu1 %1437  ;;  %v1120_v33 = vmul.f32 %v6974_v0, %v1068_v4  ;;  %vm1125_vm15 = vweird.f32 %v6974_v0 }
 0x5c9   :  { %vm1126_vm2 = vmor %vm1124_vm1, %vm1125_vm15  ;;  %v1503_v29 = vand.u32 2147483648, %v8124_v49  ;;  %vm1497_vm11 = vweird.f32 %v8124_v49 }
 0x5ca   :  { %v1121_v39 = vsub.f32 1.0, %v1120_v33 }
 0x5cc   :  { %5828 = vmatmul.msk.f32.gmra.mxu0 %vm555_vm14, %v6972_v26  ;;  %v1122_v23 = vmul.f32 %v6974_v0, %v1121_v39  ;;  %v1501_v26 = vand.u32 2147483647, %v8124_v49 }
 0x5cd   :  { %v1483_v33 = vpop.f32.mrf.mxu0 }
 0x5ce   :  { %v1123_v8 = vadd.f32 %v6974_v0, %v1122_v23 }
 0x5d0   :  { %v1127_v11 = vsel %vm1126_vm2, %v6974_v0, %v1123_v8  ;;  %v1504_v0 = vor.u32 1.1754944e-38, %v1503_v29 }
 0x5d1   :  { %v1132_v53 = vsel %vm1129_vm5, %v1131_v13, %v1127_v11 }
 0x5d2   :  { %v1133_v9 = vmul.f32 %v1132_v53, %v1110_v54 }
 0x5db   :  { %v1592_v51 = vpop.xlane.xlu0 %1591 }
 0x5dc   :  { %v1597_v56 = vsub.f32 %v8049_v42, %v1592_v51  ;;  %v8138_v51 = vpop.xlane.xlu1 %1073 }
 0x5de   :  { %v1601_v32 = vmul.f32 1.442695, %v1597_v56 }
 0x5e0   :  { %6975 = vpow2.f32 %v1601_v32 }
 0x5e1   :  { %6977 = vrcp.f32 %v1071_v6 }
 0x5e2   :  { %6979 = vrcp.f32 %v8124_v49 }
 0x5e3   :  { %v8122_v21 = vpop.xlane.xlu0 %904 }
 0x5e4   :  { %v8144_v54 = vpop.xlane.xlu1 %578  ;;  %vm973_vm2 = vweird.f32 %v8122_v21 }
 0x5e6   :  { %v6976_v37 = vpop.eup %6975 }
 0x5e7   :  { %v6978_v40 = vpop.eup %6977  ;;  %5818 = vmatmul.msk.f32.gmra.mxu2 %vm555_vm14, %v6976_v37  ;;  %v1608_v1 = vsel %vm555_vm14, %v6976_v37, 0.0  ;;  %v8141_v37 = vpop.xlane.xlu2 %907 }
 0x5e8   :  { %1609 = vadd.xlane.f32.xlu0 %v1608_v1  ;;  %v1135_v42 = vmul.f32 %v6978_v40, %v1071_v6  ;;  %v6980_v44 = vpop.eup %6979  ;;  %vm1140_vm0 = vweird.f32 %v6978_v40 }
 0x5e9   :  { %v1493_v60 = vmul.f32 %v6980_v44, %v8124_v49  ;;  %vm1141_vm4 = vmor %vm1139_vm3, %vm1140_vm0  ;;  %vm1498_vm8 = vweird.f32 %v6980_v44  ;;  %vm1502_vm0 = vcmp.eq.f32.partialorder %v1501_v26, 8.507059e+37 }
 0x5ea   :  { %v1136_v55 = vsub.f32 1.0, %v1135_v42  ;;  %vm1499_vm12 = vmor %vm1497_vm11, %vm1498_vm8 }
 0x5eb   :  { %v739_v18 = vpop.xlane.xlu0 %738  ;;  %v1494_v47 = vsub.f32 1.0, %v1493_v60 }
 0x5ec   :  { %6981 = vrcp.f32 %v739_v18  ;;  %v1137_v50 = vmul.f32 %v6978_v40, %v1136_v55  ;;  %v828_v17 = vand.u32 2147483648, %v739_v18  ;;  %vm822_vm9 = vweird.f32 %v739_v18 }
 0x5ed   :  { %v1495_v3 = vmul.f32 %v6980_v44, %v1494_v47  ;;  %v826_v38 = vand.u32 2147483647, %v739_v18  ;;  %6983 = vrcp.f32 %v8122_v21 }
 0x5ee   :  { %v1138_v2 = vadd.f32 %v6978_v40, %v1137_v50  ;;  %v829_v4 = vor.u32 1.1754944e-38, %v828_v17  ;;  %6985 = vrcp.f32 %v8138_v51 }
 0x5ef   :  { %5819 = vmatmul.msk.f32.gmra.mxu2 %vm555_vm14, %v8082_v22  ;;  %v1145_v22 = vand.u32 2147483648, %v1071_v6  ;;  %v1496_v5 = vadd.f32 %v6980_v44, %v1495_v3  ;;  %vm827_vm15 = vcmp.eq.f32.partialorder %v826_v38, 8.507059e+37  ;;  %v1158_v38 = vand.u32 2147483647, %v8138_v51 }
 0x5f0   :  { %1778 = vadd.xlane.f32.xlu0 %v1777_v46  ;;  %v1142_v45 = vsel %vm1141_vm4, %v6978_v40, %v1138_v2  ;;  %vm1154_vm4 = vweird.f32 %v8138_v51 }
 0x5f1   :  { %v1146_v19 = vor.u32 1.1754944e-38, %v1145_v22  ;;  %v1500_v6 = vsel %vm1499_vm12, %v6980_v44, %v1496_v5  ;;  %v1160_v5 = vand.u32 2147483648, %v8138_v51 }
 0x5f2   :  { %v6982_v41 = vpop.eup %6981  ;;  %v1505_v40 = vsel %vm1502_vm0, %v1504_v0, %v1500_v6 }
 0x5f3   :  { %v818_v61 = vmul.f32 %v6982_v41, %v739_v18  ;;  %vm823_vm7 = vweird.f32 %v6982_v41  ;;  %v1147_v16 = vsel %vm1144_vm6, %v1146_v19, %v1142_v45  ;;  %v1506_v42 = vmul.f32 %v1505_v40, %v1483_v33  ;;  %v6984_v39 = vpop.eup %6983 }
 0x5f4   :  { %vm824_vm10 = vmor %vm822_vm9, %vm823_vm7  ;;  %v1148_v27 = vmul.f32 %v1147_v16, %v1113_v58  ;;  %v8155_v23 = vpop.eup %6985  ;;  %vm974_vm1 = vweird.f32 %v6984_v39  ;;  %v979_v45 = vand.u32 2147483648, %v8122_v21  ;;  %v977_v19 = vand.u32 2147483647, %v8122_v21 }
 0x5f5   :  { %v819_v7 = vsub.f32 1.0, %v818_v61  ;;  %v8151_v55 = vpop.xlane.xlu1 %1440  ;;  %v1150_v60 = vmul.f32 %v8155_v23, %v8138_v51  ;;  %vm8178_vm5 = vmor %vm973_vm2, %vm974_vm1  ;;  %vm1155_vm8 = vweird.f32 %v8155_v23  ;;  %vm1159_vm2 = vcmp.eq.f32.partialorder %v1158_v38, 8.507059e+37 }
 0x5f6   :  { %v6770_v56 = vpack.i.bf16 %v1148_v27, %v1133_v9  ;;  %vm978_vm9 = vcmp.eq.f32.partialorder %v977_v19, 8.507059e+37  ;;  %vm8205_vm12 = vmor %vm1154_vm4, %vm1155_vm8 }
 0x5f7   :  { %v820_v12 = vmul.f32 %v6982_v41, %v819_v7  ;;  %v1151_v47 = vsub.f32 1.0, %v1150_v60 }
 0x5f9   :  { %v821_v28 = vadd.f32 %v6982_v41, %v820_v12  ;;  %v1152_v3 = vmul.f32 %v8155_v23, %v1151_v47 }
 0x5fb   :  { %v825_v43 = vsel %vm824_vm10, %v6982_v41, %v821_v28  ;;  %v1153_v0 = vadd.f32 %v8155_v23, %v1152_v3 }
 0x5fc   :  { %v830_v32 = vsel %vm827_vm15, %v829_v4, %v825_v43 }
 0x5fd   :  { %v831_v1 = vmul.f32 %v830_v32, %v7978_v62  ;;  %v969_v62 = vmul.f32 %v6984_v39, %v8122_v21 }
 0x5fe   :  { %v8166_v31 = vpop.f32.mrf.mxu0 }
 0x5ff   :  { %v6775_v49 = vpack.i.bf16 %v1506_v42, %v831_v1  ;;  %v970_v41 = vsub.f32 1.0, %v969_v62 }
 0x601   :  { %v971_v59 = vmul.f32 %v6984_v39, %v970_v41 }
 0x603   :  { %v972_v13 = vadd.f32 %v6984_v39, %v971_v59  ;;  %v1157_v59 = vsel %vm8205_vm12, %v8155_v23, %v1153_v0 }
 0x604   :  { %6771 = vrot.lane.b32.xlu0 %v6770_v56, %s7276_s3  ;;  %v980_v56 = vor.u32 1.1754944e-38, %v979_v45 }
 0x605   :  { %v976_v27 = vsel %vm8178_vm5, %v6984_v39, %v972_v13  ;;  %v1518_v13 = vand.u32 2147483648, %v8151_v55 }
 0x606   :  { %v1489_v33 = vpop.f32.mrf.mxu0  ;;  %v981_v42 = vsel %vm978_vm9, %v980_v56, %v976_v27 }
 0x60c   :  { %6776 = vrot.lane.b32.xlu0 %v6775_v49, %s10041_s0 }
 0x60d   :  { %v8148_v18 = vpop.xlane.xlu2 %1772 }
 0x60e   :  { %6987 = vrcp.f32 %v8148_v18  ;;  %v8184_v29 = vpop.xlane.xlu0 %1606  ;;  %v1835_v60 = vand.u32 2147483648, %v8148_v18  ;;  %vm1829_vm15 = vweird.f32 %v8148_v18 }
 0x60f   :  { %6989 = vrcp.f32 %v8151_v55 }
 0x614   :  { %v944_v44 = vpop.f32.mrf.mxu2  ;;  %v8158_v50 = vpop.eup %6987 }
 0x615   :  { %v902_v46 = vpop.xlane.xlu2 %901  ;;  %v8162_v58 = vpop.eup %6989  ;;  %v1825_v61 = vmul.f32 %v8158_v50, %v8148_v18  ;;  %vm1830_vm11 = vweird.f32 %v8158_v50 }
 0x616   :  { %6991 = vrcp.f32 %v902_v46  ;;  %v1508_v12 = vmul.f32 %v8162_v58, %v8151_v55  ;;  %v964_v53 = vand.u32 2147483648, %v902_v46  ;;  %v962_v17 = vand.u32 2147483647, %v902_v46  ;;  %vm8215_vm0 = vmor %vm1829_vm15, %vm1830_vm11 }
 0x617   :  { %6993 = vrcp.f32 %v8141_v37  ;;  %v1826_v11 = vsub.f32 1.0, %v1825_v61  ;;  %vm958_vm6 = vweird.f32 %v902_v46  ;;  %vm1513_vm1 = vweird.f32 %v8162_v58 }
 0x618   :  { %v1509_v16 = vsub.f32 1.0, %v1508_v12  ;;  %v965_v32 = vor.u32 1.1754944e-38, %v964_v53  ;;  %vm963_vm10 = vcmp.eq.f32.partialorder %v962_v17, 8.507059e+37  ;;  %vm988_vm15 = vweird.f32 %v8141_v37 }
 0x619   :  { %v1827_v26 = vmul.f32 %v8158_v50, %v1826_v11 }
 0x61a   :  { %v1510_v1 = vmul.f32 %v8162_v58, %v1509_v16 }
 0x61c   :  { %v947_v8 = vpop.f32.mrf.mxu2  ;;  %v6992_v7 = vpop.eup %6991  ;;  %v1511_v47 = vadd.f32 %v8162_v58, %v1510_v1 }
 0x61d   :  { %v8168_v2 = vpop.xlane.xlu2 %581  ;;  %v954_v22 = vmul.f32 %v6992_v7, %v902_v46  ;;  %vm959_vm3 = vweird.f32 %v6992_v7  ;;  %v8191_v4 = vpop.eup %6993  ;;  %v982_v39 = vmul.f32 %v981_v42, %v947_v8  ;;  %v1828_v46 = vadd.f32 %v8158_v50, %v1827_v26 }
 0x61e   :  { %vm960_vm7 = vmor %vm958_vm6, %vm959_vm3  ;;  %v1161_v8 = vor.u32 1.1754944e-38, %v1160_v5  ;;  %vm1512_vm3 = vweird.f32 %v8151_v55  ;;  %v984_v3 = vmul.f32 %v8191_v4, %v8141_v37  ;;  %vm989_vm11 = vweird.f32 %v8191_v4 }
 0x61f   :  { %v955_v14 = vsub.f32 1.0, %v954_v22  ;;  %v1832_v23 = vsel %vm8215_vm0, %v8158_v50, %v1828_v46  ;;  %vm8234_vm5 = vmor %vm1512_vm3, %vm1513_vm1  ;;  %v1516_v50 = vand.u32 2147483647, %v8151_v55  ;;  %v1519_v55 = vor.u32 1.1754944e-38, %v1518_v13 }
 0x620   :  { %v1162_v11 = vsel %vm1159_vm2, %v1161_v8, %v1157_v59  ;;  %v1515_v17 = vsel %vm8234_vm5, %v8162_v58, %v1511_v47  ;;  %vm990_vm0 = vmor %vm988_vm15, %vm989_vm11  ;;  %v992_v59 = vand.u32 2147483647, %v8141_v37  ;;  %vm1663_vm1 = vweird.f32 %v8184_v29 }
 0x621   :  { %v956_v28 = vmul.f32 %v6992_v7, %v955_v14  ;;  %v1836_v14 = vor.u32 1.1754944e-38, %v1835_v60  ;;  %v1163_v9 = vmul.f32 %v1162_v11, %v8133_v48  ;;  %v1282_v48 = vsel %vm555_vm14, %v8099_v52, 0.0 }
 0x622   :  { %vm993_vm3 = vcmp.eq.f32.partialorder %v992_v59, 8.507059e+37  ;;  %v1285_v59 = vsel %vm555_vm14, %v8106_v57, 0.0 }
 0x623   :  { %v957_v43 = vadd.f32 %v6992_v7, %v956_v28 }
 0x624   :  { %v8188_v21 = vpop.f32.mrf.mxu2 }
 0x625   :  { %v8193_v6 = vpop.xlane.xlu2 %1443  ;;  %v961_v40 = vsel %vm960_vm7, %v6992_v7, %v957_v43  ;;  %vm1517_vm7 = vcmp.eq.f32.partialorder %v1516_v50, 8.507059e+37 }
 0x626   :  { %6995 = vrcp.f32 %v8193_v6  ;;  %v966_v49 = vsel %vm963_vm10, %v965_v32, %v961_v40  ;;  %v1533_v16 = vand.u32 2147483648, %v8193_v6  ;;  %v1531_v43 = vand.u32 2147483647, %v8193_v6 }
 0x627   :  { %6997 = vrcp.f32 %v8184_v29  ;;  %v967_v62 = vmul.f32 %v966_v49, %v944_v44  ;;  %v1833_v44 = vand.u32 2147483647, %v8148_v18  ;;  %vm1527_vm8 = vweird.f32 %v8193_v6 }
 0x628   :  { %v1520_v32 = vsel %vm1517_vm7, %v1519_v55, %v1515_v17  ;;  %v1534_v0 = vor.u32 1.1754944e-38, %v1533_v16  ;;  %v985_v40 = vsub.f32 1.0, %v984_v3  ;;  %vm1532_vm10 = vcmp.eq.f32.partialorder %v1531_v43, 8.507059e+37  ;;  %v8272_v3 = vpop.xlane.xlu0 %575  ;;  %v6577_v17 = vld [vmem:[%s10065_s2 + $0x18] sm:$0xff] }
 0x629   :  { %v6765_v61 = vpack.i.bf16 %v982_v39, %v967_v62  ;;  %vm1834_vm4 = vcmp.eq.f32.partialorder %v1833_v44, 8.507059e+37  ;;  %v1521_v39 = vmul.f32 %v1520_v32, %v8166_v31  ;;  %v994_v31 = vand.u32 2147483648, %v8141_v37  ;;  %v6575_v32 = vld [vmem:[%s10065_s2 + $0x8] sm:$0xff] }
 0x62a   :  { %v1837_v28 = vsel %vm1834_vm4, %v1836_v14, %v1832_v23  ;;  %v986_v62 = vmul.f32 %v8191_v4, %v985_v40  ;;  %v1667_v44 = vand.u32 2147483647, %v8184_v29 }
 0x62b   :  { %6766 = vrot.lane.b32.xlu2 %v6765_v61, %s10043_s6 }
 0x62c   :  { %v6996_v51 = vpop.eup %6995  ;;  %v8222_v22 = vpop.f32.mrf.mxu2  ;;  %v987_v52 = vadd.f32 %v8191_v4, %v986_v62  ;;  %vm1668_vm4 = vcmp.eq.f32.partialorder %v1667_v44, 8.507059e+37 }
 0x62d   :  { %v8227_v18 = vpop.eup %6997  ;;  %v1523_v12 = vmul.f32 %v6996_v51, %v8193_v6  ;;  %vm1528_vm6 = vweird.f32 %v6996_v51 }
 0x62e   :  { %v1659_v5 = vmul.f32 %v8227_v18, %v8184_v29  ;;  %vm1529_vm9 = vmor %vm1527_vm8, %vm1528_vm6  ;;  %vm1664_vm12 = vweird.f32 %v8227_v18  ;;  %v991_v8 = vsel %vm990_vm0, %v8191_v4, %v987_v52  ;;  %v6580_v4 = vld [vmem:[%s10065_s2 + $0x30] sm:$0xff] }
 0x62f   :  { %v1524_v53 = vsub.f32 1.0, %v1523_v12  ;;  %v1815_v19 = vpop.f32.mrf.mxu0  ;;  %vm1665_vm2 = vmor %vm1663_vm1, %vm1664_vm12 }
 0x630   :  { %v1838_v38 = vmul.f32 %v1837_v28, %v1815_v19  ;;  %v1660_v1 = vsub.f32 1.0, %v1659_v5  ;;  %v8283_v45 = vpop.xlane.xlu0 %1280 }
 0x631   :  { %v1525_v27 = vmul.f32 %v6996_v51, %v1524_v53  ;;  %v6578_v53 = vld [vmem:[%s10065_s2 + $0x20] sm:$0xff] }
 0x632   :  { %v6780_v26 = vpack.i.bf16 %v1838_v38, %v1163_v9  ;;  %v1661_v41 = vmul.f32 %v8227_v18, %v1660_v1  ;;  %v6576_v38 = vld [vmem:[%s10065_s2 + $0x10] sm:$0xff] }
 0x633   :  { %v1526_v56 = vadd.f32 %v6996_v51, %v1525_v27 }
 0x634   :  { %v8248_v58 = vpop.f32.mrf.mxu2  ;;  %6781 = vrot.lane.b32.xlu1 %v6780_v26, %s7276_s3  ;;  %v1662_v61 = vadd.f32 %v8227_v18, %v1661_v41 }
 0x635   :  { %v1530_v42 = vsel %vm1529_vm9, %v6996_v51, %v1526_v56  ;;  %v995_v51 = vor.u32 1.1754944e-38, %v994_v31 }
 0x636   :  { %1283 = vadd.xlane.f32.xlu0 %v1282_v48  ;;  %v1535_v49 = vsel %vm1532_vm10, %v1534_v0, %v1530_v42  ;;  %v1666_v7 = vsel %vm1665_vm2, %v8227_v18, %v1662_v61  ;;  %v8281_v18 = vpop.xlane.xlu1 %1612 }
 0x637   :  { %v1536_v6 = vmul.f32 %v1535_v49, %v1489_v33  ;;  %v1669_v33 = vand.u32 2147483648, %v8184_v29  ;;  %v996_v23 = vsel %vm993_vm3, %v995_v51, %v991_v8  ;;  %v6581_v29 = vld [vmem:[%s10065_s2 + $0x38] sm:$0xff]  ;;  %6999 = vrcp.f32 %v8281_v18  ;;  %v6574_v49 = vld [vmem:[%s10065_s2] sm:$0xff] }
 0x638   :  { %v997_v14 = vmul.f32 %v996_v23, %v8188_v21  ;;  %1985 = vmatpush.bf16.msra.mxu1 %v6581_v29  ;;  %v6579_v21 = vld [vmem:[%s10065_s2 + $0x28] sm:$0xff]  ;;  %v8289_v50 = vpop.xlane.xlu2 %1775  ;;  %v1699_v44 = vand.u32 2147483648, %v8281_v18  ;;  %vm1693_vm9 = vweird.f32 %v8281_v18 }
 0x639   :  { %v6790_v46 = vpack.i.bf16 %v1536_v6, %v1521_v39  ;;  %v1670_v47 = vor.u32 1.1754944e-38, %v1669_v33  ;;  %7001 = vrcp.f32 %v8289_v50  ;;  %vm1844_vm2 = vweird.f32 %v8289_v50 }
 0x63a   :  { %v642_v33 = vand.u32 2147483647, %v8144_v54 }
 0x63b   :  { %v1671_v11 = vsel %vm1668_vm4, %v1670_v47, %v1666_v7 }
 0x63c   :  { %v8257_v60 = vpop.f32.mrf.mxu2  ;;  %6791 = vrot.lane.b32.xlu1 %v6790_v46, %s10041_s0  ;;  %1986 = vmatpush.bf16.msra.mxu1 %v6580_v4  ;;  %v1697_v46 = vand.u32 2147483647, %v8281_v18 }
 0x63d   :  { %v8295_v28 = vpop.eup %6999 }
 0x63e   :  { %v1689_v16 = vmul.f32 %v8295_v28, %v8281_v18  ;;  %vm1694_vm6 = vweird.f32 %v8295_v28  ;;  %vm8350_vm11 = vcmp.eq.f32.partialorder %v1697_v46, 8.507059e+37  ;;  %v1700_v18 = vor.u32 1.1754944e-38, %v1699_v44 }
 0x63f   :  { %v8302_v9 = vpop.eup %7001  ;;  %vm8346_vm10 = vmor %vm1693_vm9, %vm1694_vm6  ;;  %vm638_vm9 = vweird.f32 %v8144_v54 }
 0x640   :  { %1987 = vmatpush.bf16.msra.mxu1 %v6579_v21  ;;  %v1690_v27 = vsub.f32 1.0, %v1689_v16  ;;  %v1840_v26 = vmul.f32 %v8302_v9, %v8289_v50  ;;  %vm1845_vm0 = vweird.f32 %v8302_v9 }
 0x641   :  { %vm1846_vm4 = vmor %vm1844_vm2, %vm1845_vm0  ;;  %vm1207_vm2 = vcmask 785408  }
 0x642   :  { %v1691_v0 = vmul.f32 %v8295_v28, %v1690_v27  ;;  %v1841_v1 = vsub.f32 1.0, %v1840_v26 }
 0x644   :  { %v1649_v12 = vpop.f32.mrf.mxu2  ;;  %1988 = vmatpush.bf16.msra.mxu1 %v6578_v53  ;;  %v1692_v31 = vadd.f32 %v8295_v28, %v1691_v0  ;;  %v1842_v8 = vmul.f32 %v8302_v9, %v1841_v1 }
 0x645   :  { %v1672_v13 = vmul.f32 %v1671_v11, %v1649_v12  ;;  %v1818_v12 = vpop.f32.mrf.mxu0 }
 0x646   :  { %v1843_v21 = vadd.f32 %v8302_v9, %v1842_v8 }
 0x647   :  { %v6785_v37 = vpack.i.bf16 %v1672_v13, %v997_v14 }
 0x648   :  { %1989 = vmatpush.bf16.msra.mxu1 %v6577_v17  ;;  %v1850_v17 = vand.u32 2147483648, %v8289_v50 }
 0x649   :  { %6786 = vrot.lane.b32.xlu2 %v6785_v37, %s10043_s6  ;;  %v1696_v37 = vsel %vm8346_vm10, %v8295_v28, %v1692_v31 }
 0x64a   :  { %v1701_v16 = vsel %vm8350_vm11, %v1700_v18, %v1696_v37  ;;  %v1851_v0 = vor.u32 1.1754944e-38, %v1850_v17  ;;  %vm623_vm11 = vweird.f32 %v8272_v3 }
 0x64c   :  { %1990 = vmatpush.bf16.msra.mxu1 %v6576_v38  ;;  %v1848_v38 = vand.u32 2147483647, %v8289_v50 }
 0x64e   :  { %vm1849_vm6 = vcmp.eq.f32.partialorder %v1848_v38, 8.507059e+37 }
 0x650   :  { %1991 = vmatpush.bf16.msra.mxu1 %v6575_v32  ;;  %v1847_v32 = vsel %vm1846_vm4, %v8302_v9, %v1843_v21 }
 0x654   :  { %1992 = vmatpush.bf16.msra.mxu1 %v6574_v49  ;;  %v1852_v49 = vsel %vm1849_vm6, %v1851_v0, %v1847_v32  ;;  %v659_v32 = vand.u32 2147483648, %v8168_v2  ;;  %v657_v0 = vand.u32 2147483647, %v8168_v2 }
 0x65b   :  { %v1610_v19 = vpop.xlane.xlu0 %1609 }
 0x65c   :  { %7003 = vrcp.f32 %v1610_v19  ;;  %v1684_v62 = vand.u32 2147483648, %v1610_v19  ;;  %vm1678_vm7 = vweird.f32 %v1610_v19  ;;  %v1682_v61 = vand.u32 2147483647, %v1610_v19 }
 0x65d   :  { %7005 = vrcp.f32 %v8144_v54 }
 0x65e   :  { %v1685_v11 = vor.u32 1.1754944e-38, %v1684_v62  ;;  %vm1683_vm12 = vcmp.eq.f32.partialorder %v1682_v61, 8.507059e+37  ;;  %v1853_v62 = vmul.f32 %v1852_v49, %v1818_v12  ;;  %v629_v61 = vand.u32 2147483648, %v8272_v3 }
 0x65f   :  { %v660_v49 = vor.u32 1.1754944e-38, %v659_v32 }
 0x662   :  { %v7004_v5 = vpop.eup %7003 }
 0x663   :  { %v1674_v43 = vmul.f32 %v7004_v5, %v1610_v19  ;;  %v8308_v55 = vpop.xlane.xlu0 %1778  ;;  %v8318_v40 = vpop.eup %7005  ;;  %vm1679_vm5 = vweird.f32 %v7004_v5 }
 0x664   :  { %7007 = vrcp.f32 %v8308_v55  ;;  %vm8329_vm8 = vmor %vm1678_vm7, %vm1679_vm5  ;;  %v634_v47 = vmul.f32 %v8318_v40, %v8144_v54  ;;  %v1865_v29 = vand.u32 2147483648, %v8308_v55  ;;  %vm1859_vm1 = vweird.f32 %v8308_v55 }
 0x665   :  { %7009 = vrcp.f32 %v8272_v3  ;;  %v1675_v56 = vsub.f32 1.0, %v1674_v43  ;;  %v1863_v19 = vand.u32 2147483647, %v8308_v55  ;;  %vm639_vm7 = vweird.f32 %v8318_v40 }
 0x666   :  { %v635_v26 = vsub.f32 1.0, %v634_v47  ;;  %vm640_vm10 = vmor %vm638_vm9, %vm639_vm7  ;;  %v6762_v47 = vpop.permute.xlu1 %6761  ;;  %7011 = vrcp.f32 %v8168_v2  ;;  %vm1328_vm7 = vweird.f32 %v8283_v45  ;;  %vm658_vm9 = vcmp.eq.f32.partialorder %v657_v0, 8.507059e+37 }
 0x667   :  { %v1676_v48 = vmul.f32 %v7004_v5, %v1675_v56  ;;  %vm1864_vm5 = vcmp.eq.f32.partialorder %v1863_v19, 8.507059e+37  ;;  %7013 = vrcp.f32 %v8283_v45 }
 0x668   :  { %v636_v50 = vmul.f32 %v8318_v40, %v635_v26 }
 0x669   :  { %v1677_v42 = vadd.f32 %v7004_v5, %v1676_v48 }
 0x66a   :  { %v7008_v39 = vpop.eup %7007  ;;  %v1652_v6 = vpop.f32.mrf.mxu2  ;;  %v637_v46 = vadd.f32 %v8318_v40, %v636_v50 }
 0x66b   :  { %v8325_v41 = vpop.eup %7009  ;;  %v1855_v52 = vmul.f32 %v7008_v39, %v8308_v55  ;;  %v1681_v51 = vsel %vm8329_vm8, %v7004_v5, %v1677_v42  ;;  %vm1860_vm15 = vweird.f32 %v7008_v39  ;;  %v1866_v55 = vor.u32 1.1754944e-38, %v1865_v29 }
 0x66c   :  { %v619_v23 = vmul.f32 %v8325_v41, %v8272_v3  ;;  %v1686_v4 = vsel %vm1683_vm12, %v1685_v11, %v1681_v51  ;;  %vm1861_vm3 = vmor %vm1859_vm1, %vm1860_vm15  ;;  %vm624_vm8 = vweird.f32 %v8325_v41  ;;  %v641_v44 = vsel %vm640_vm10, %v8318_v40, %v637_v46 }
 0x66d   :  { %v1856_v7 = vsub.f32 1.0, %v1855_v52  ;;  %v1687_v5 = vmul.f32 %v1686_v4, %v1652_v6  ;;  %v644_v52 = vand.u32 2147483648, %v8144_v54  ;;  %vm625_vm12 = vmor %vm623_vm11, %vm624_vm8  ;;  %v630_v51 = vor.u32 1.1754944e-38, %v629_v61 }
 0x66e   :  { %v620_v56 = vsub.f32 1.0, %v619_v23  ;;  %vm643_vm15 = vcmp.eq.f32.partialorder %v642_v33, 8.507059e+37  ;;  %v6764_v11 = vunpack.i.h.bf16 %v6762_v47  ;;  %v6763_v54 = vunpack.i.l.bf16 %v6762_v47 }
 0x66f   :  { %v1857_v13 = vmul.f32 %v7008_v39, %v1856_v7  ;;  %v645_v7 = vor.u32 1.1754944e-38, %v644_v52  ;;  %vm1203_vm1 = vcmask 523264  }
 0x670   :  { %v621_v42 = vmul.f32 %v8325_v41, %v620_v56 }
 0x671   :  { %v1858_v53 = vadd.f32 %v7008_v39, %v1857_v13  ;;  %v646_v23 = vsel %vm643_vm15, %v645_v7, %v641_v44 }
 0x672   :  { %1286 = vadd.xlane.f32.xlu2 %v1285_v59  ;;  %v1655_v28 = vpop.f32.mrf.mxu2  ;;  %v622_v9 = vadd.f32 %v8325_v41, %v621_v42  ;;  %v627_v59 = vand.u32 2147483647, %v8272_v3  ;;  %v647_v3 = vmul.f32 %v646_v23, %v7793_v36 }
 0x673   :  { %v1702_v27 = vmul.f32 %v1701_v16, %v1655_v28  ;;  %v1862_v43 = vsel %vm1861_vm3, %v7008_v39, %v1858_v53  ;;  %v1821_v39 = vpop.f32.mrf.mxu0 }
 0x674   :  { %v1867_v1 = vsel %vm1864_vm5, %v1866_v55, %v1862_v43  ;;  %v626_v8 = vsel %vm625_vm12, %v8325_v41, %v622_v9  ;;  %vm628_vm0 = vcmp.eq.f32.partialorder %v627_v59, 8.507059e+37  ;;  %v1201_v37 = vsel %vm510_vm13, %v647_v3, %v6764_v11 }
 0x675   :  { %v6795_v48 = vpack.i.bf16 %v1702_v27, %v1687_v5  ;;  %v1868_v6 = vmul.f32 %v1867_v1, %v1821_v39  ;;  %v631_v12 = vsel %vm628_vm0, %v630_v51, %v626_v8  ;;  %vm653_vm5 = vweird.f32 %v8168_v2 }
 0x676   :  { %v6772_v57 = vpop.permute.xlu0 %6771  ;;  %v632_v40 = vmul.f32 %v631_v12, %v7791_v20  ;;  %v7012_v20 = vpop.eup %7011  ;;  %v1332_v1 = vand.u32 2147483647, %v8283_v45 }
 0x677   :  { %6796 = vrot.lane.b32.xlu1 %v6795_v48, %s10043_s6  ;;  %v6800_v31 = vpack.i.bf16 %v1868_v6, %v1853_v62  ;;  %v6774_v4 = vunpack.i.h.bf16 %v6772_v57  ;;  %v6773_v18 = vunpack.i.l.bf16 %v6772_v57  ;;  %v7014_v28 = vpop.eup %7013  ;;  %v649_v16 = vmul.f32 %v7012_v20, %v8168_v2 }
 0x678   :  { %v1200_v29 = vsel %vm510_vm13, %v632_v40, %v6763_v54  ;;  %v1324_v38 = vmul.f32 %v7014_v28, %v8283_v45  ;;  %vm654_vm3 = vweird.f32 %v7012_v20  ;;  %vm1329_vm4 = vweird.f32 %v7014_v28 }
 0x679   :  { %v650_v5 = vsub.f32 1.0, %v649_v16  ;;  %v1334_v48 = vand.u32 2147483648, %v8283_v45  ;;  %vm655_vm6 = vmor %vm653_vm5, %vm654_vm3  ;;  %vm1333_vm10 = vcmp.eq.f32.partialorder %v1332_v1, 8.507059e+37 }
 0x67a   :  { %v1325_v27 = vsub.f32 1.0, %v1324_v38  ;;  %vm1330_vm8 = vmor %vm1328_vm7, %vm1329_vm4 }
 0x67b   :  { %v651_v43 = vmul.f32 %v7012_v20, %v650_v5  ;;  %v1335_v39 = vor.u32 1.1754944e-38, %v1334_v48 }
 0x67c   :  { %v1326_v26 = vmul.f32 %v7014_v28, %v1325_v27 }
 0x67d   :  { %v652_v56 = vadd.f32 %v7012_v20, %v651_v43 }
 0x67e   :  { %v1327_v55 = vadd.f32 %v7014_v28, %v1326_v26  ;;  %v6777_v6 = vpop.permute.xlu0 %6776 }
 0x67f   :  { %6801 = vrot.lane.b32.xlu1 %v6800_v31, %s7276_s3  ;;  %v656_v42 = vsel %vm655_vm6, %v7012_v20, %v652_v56  ;;  %v6779_v9 = vunpack.i.h.bf16 %v6777_v6  ;;  %v6778_v52 = vunpack.i.l.bf16 %v6777_v6 }
 0x680   :  { %v1331_v50 = vsel %vm1330_vm8, %v7014_v28, %v1327_v55  ;;  %v661_v46 = vsel %vm658_vm9, %v660_v49, %v656_v42 }
 0x681   :  { %v1336_v62 = vsel %vm1333_vm10, %v1335_v39, %v1331_v50  ;;  %v662_v59 = vmul.f32 %v661_v46, %v7795_v15 }
 0x682   :  { %v1337_v2 = vmul.f32 %v1336_v62, %v8222_v22 }
 0x683   :  { %v1202_v7 = vsel %vm510_vm13, %v662_v59, %v6778_v52 }
 0x684   :  { %v1905_v51 = vsel %vm510_vm13, %v1337_v2, %v6779_v9 }
 0x685   :  { %v6767_v41 = vpop.permute.xlu2 %6766 }
 0x686   :  { %v6769_v14 = vunpack.i.h.bf16 %v6767_v41  ;;  %v6768_v13 = vunpack.i.l.bf16 %v6767_v41 }
 0x688   :  { %v1205_v21 = vsel %vm1203_vm1, %v1201_v37, %v6769_v14  ;;  %v1204_v53 = vsel %vm1203_vm1, %v1200_v29, %v6768_v13 }
 0x689   :  { %v1208_v19 = vsel %vm1207_vm2, %v1204_v53, %v6773_v18  ;;  %v1209_v36 = vsel %vm1207_vm2, %v1205_v21, %v6774_v4 }
 0x68a   :  { %v1914_v17 = vpack.c.bf16 %v1209_v36, %v1208_v19 }
 0x68c   :  { %1993 = vmatmul.bf16.vlgmr.msra.gmra.mxu1 %v1914_v17 }
 0x6a3   :  { %v6787_v61 = vpop.permute.xlu2 %6786 }
 0x6a4   :  { %v6789_v31 = vunpack.i.h.bf16 %v6787_v61  ;;  %v6788_v33 = vunpack.i.l.bf16 %v6787_v61 }
 0x6a6   :  { %v6782_v45 = vpop.permute.xlu1 %6781  ;;  %v1206_v47 = vsel %vm1203_vm1, %v1202_v7, %v6788_v33  ;;  %v1908_v23 = vsel %vm1203_vm1, %v1905_v51, %v6789_v31 }
 0x6a7   :  { %v6784_v44 = vunpack.i.h.bf16 %v6782_v45  ;;  %v6783_v8 = vunpack.i.l.bf16 %v6782_v45 }
 0x6a9   :  { %v1210_v12 = vsel %vm1207_vm2, %v1206_v47, %v6783_v8  ;;  %v1911_v11 = vsel %vm1207_vm2, %v1908_v23, %v6784_v44  ;;  %v1284_v22 = vpop.xlane.xlu0 %1283 }
 0x6aa   :  { %v1915_v54 = vpack.c.bf16 %v1911_v11, %v1210_v12  ;;  %7015 = vrcp.f32 %v1284_v22  ;;  %v1349_v4 = vand.u32 2147483648, %v1284_v22  ;;  %vm1343_vm12 = vweird.f32 %v1284_v22 }
 0x6ab   :  { %v1347_v18 = vand.u32 2147483647, %v1284_v22 }
 0x6ac   :  { %1998 = vmatmul.bf16.gmra.mxu1 %v1915_v54  ;;  %v1350_v36 = vor.u32 1.1754944e-38, %v1349_v4 }
 0x6ad   :  { %vm1348_vm0 = vcmp.eq.f32.partialorder %v1347_v18, 8.507059e+37 }
 0x6ae   :  { %v6792_v3 = vpop.permute.xlu1 %6791 }
 0x6af   :  { %v6794_v32 = vunpack.i.h.bf16 %v6792_v3  ;;  %v6793_v48 = vunpack.i.l.bf16 %v6792_v3 }
 0x6b0   :  { %v7016_v15 = vpop.eup %7015 }
 0x6b1   :  { %v1339_v57 = vmul.f32 %v7016_v15, %v1284_v22  ;;  %vm1344_vm11 = vweird.f32 %v7016_v15 }
 0x6b2   :  { %vm1345_vm15 = vmor %vm1343_vm12, %vm1344_vm11 }
 0x6b3   :  { %v1340_v40 = vsub.f32 1.0, %v1339_v57 }
 0x6b5   :  { %v1341_v14 = vmul.f32 %v7016_v15, %v1340_v40 }
 0x6b7   :  { %v1342_v37 = vadd.f32 %v7016_v15, %v1341_v14 }
 0x6b9   :  { %v1346_v19 = vsel %vm1345_vm15, %v7016_v15, %v1342_v37 }
 0x6ba   :  { %v1351_v16 = vsel %vm1348_vm0, %v1350_v36, %v1346_v19  ;;  %v6596_v19 = vld [vmem:[%s10019_s9 + $0x74] sm:$0xf] }
 0x6bb   :  { %v1352_v43 = vmul.f32 %v1351_v16, %v8248_v58  ;;  %v6595_v16 = vld [vmem:[%s10019_s9 + $0x64] sm:$0xf0] }
 0x6bd   :  { %v1906_v49 = vsel %vm510_vm13, %v1352_v43, %v6793_v48  ;;  %v5905_v48 = vld [vmem:[%s10019_s9 + $0x58] sm:$0xf0] }
 0x6e5   :  { %v1287_v41 = vpop.xlane.xlu2 %1286 }
 0x6e6   :  { %7017 = vrcp.f32 %v1287_v41  ;;  %v1364_v20 = vand.u32 2147483648, %v1287_v41  ;;  %v1362_v28 = vand.u32 2147483647, %v1287_v41  ;;  %vm1358_vm4 = vweird.f32 %v1287_v41 }
 0x6e8   :  { %v1365_v5 = vor.u32 1.1754944e-38, %v1364_v20  ;;  %vm1363_vm6 = vcmp.eq.f32.partialorder %v1362_v28, 8.507059e+37  ;;  %v5921_v20 = vld [vmem:[%s10019_s9 + $0x78] sm:$0xf0]  ;;  %v5911_v28 = vld [vmem:[%s10019_s9 + $0x60] sm:$0xf] }
 0x6e9   :  { %v6797_v13 = vpop.permute.xlu1 %6796 }
 0x6ea   :  { %v6798_v56 = vunpack.i.l.bf16 %v6797_v13  ;;  %v6799_v50 = vunpack.i.h.bf16 %v6797_v13 }
 0x6ec   :  { %v7018_v29 = vpop.eup %7017  ;;  %v1909_v6 = vsel %vm1203_vm1, %v1906_v49, %v6798_v56  ;;  %v6593_v56 = vld [vmem:[%s10019_s9 + $0x54] sm:$0xf0] }
 0x6ed   :  { %v1354_v21 = vmul.f32 %v7018_v29, %v1287_v41  ;;  %vm1359_vm3 = vweird.f32 %v7018_v29 }
 0x6ee   :  { %vm1360_vm5 = vmor %vm1358_vm4, %vm1359_vm3 }
 0x6ef   :  { %v1355_v53 = vsub.f32 1.0, %v1354_v21  ;;  %v5919_v21 = vld [vmem:[%s10019_s9 + $0x70] sm:$0xf] }
 0x6f1   :  { %v1356_v17 = vmul.f32 %v7018_v29, %v1355_v53  ;;  %v6802_v27 = vpop.permute.xlu1 %6801  ;;  %v6597_v53 = vld [vmem:[%s10019_s9 + $0x74] sm:$0xf0] }
 0x6f2   :  { %v6803_v0 = vunpack.i.l.bf16 %v6802_v27  ;;  %v6804_v42 = vunpack.i.h.bf16 %v6802_v27  ;;  %v5920_v36 = vor.u32 %v6597_v53, %v5919_v21  ;;  %v5913_v27 = vld [vmem:[%s10019_s9 + $0x68] sm:$0xf0] }
 0x6f3   :  { %v1357_v38 = vadd.f32 %v7018_v29, %v1356_v17  ;;  %v5924_v17 = vor.u32 %v6596_v19, %v5921_v20  ;;  %v5865_v21 = vld [vmem:[%s10019_s9 + $0x8] sm:$0xf0] }
 0x6f4   :  { %v1912_v58 = vsel %vm1207_vm2, %v1909_v6, %v6803_v0  ;;  %2260 = vmatpush.bf16.msra.mxu2 %v5920_v36 }
 0x6f5   :  { %v1361_v26 = vsel %vm1360_vm5, %v7018_v29, %v1357_v38  ;;  %2284 = vmatpush.bf16.msra.mxu3 %v5924_v17  ;;  %v6594_v38 = vld [vmem:[%s10019_s9 + $0x64] sm:$0xf] }
 0x6f6   :  { %v1366_v55 = vsel %vm1363_vm6, %v1365_v5, %v1361_v26  ;;  %v5912_v5 = vor.u32 %v6595_v16, %v5911_v28  ;;  %v5916_v43 = vor.u32 %v6594_v38, %v5913_v27  ;;  %v5903_v26 = vld [vmem:[%s10019_s9 + $0x50] sm:$0xf] }
 0x6f7   :  { %v1367_v1 = vmul.f32 %v1366_v55, %v8257_v60  ;;  %v6894_v60 = vld [vmem:[%s10072_s15] ss:$0 sm:$0xff]  ;;  %v6592_v55 = vld [vmem:[%s10019_s9 + $0x54] sm:$0xf] }
 0x6f8   :  { %2261 = vmatpush.bf16.msra.mxu2 %v5912_v5  ;;  %v5908_v0 = vor.u32 %v6592_v55, %v5905_v48 }
 0x6f9   :  { %v1907_v39 = vsel %vm510_vm13, %v1367_v1, %v6794_v32  ;;  %2285 = vmatpush.bf16.msra.mxu3 %v5916_v43  ;;  %v5904_v32 = vor.u32 %v6593_v56, %v5903_v26  ;;  %v5895_v1 = vld [vmem:[%s10019_s9 + $0x40] sm:$0xf] }
 0x6fa   :  { %v1910_v62 = vsel %vm1203_vm1, %v1907_v39, %v6799_v50  ;;  %v6591_v50 = vld [vmem:[%s10019_s9 + $0x44] sm:$0xf0]  ;;  %v5897_v39 = vld [vmem:[%s10019_s9 + $0x48] sm:$0xf0] }
 0x6fb   :  { %v1913_v46 = vsel %vm1207_vm2, %v1910_v62, %v6804_v42  ;;  %v6590_v42 = vld [vmem:[%s10019_s9 + $0x44] sm:$0xf]  ;;  %v5896_v49 = vor.u32 %v6591_v50, %v5895_v1  ;;  %v5887_v62 = vld [vmem:[%s10019_s9 + $0x30] sm:$0xf] }
 0x6fc   :  { %v1916_v9 = vpack.c.bf16 %v1913_v46, %v1912_v58  ;;  %2262 = vmatpush.bf16.msra.mxu2 %v5904_v32  ;;  %v5900_v6 = vor.u32 %v6590_v42, %v5897_v39  ;;  %v6589_v58 = vld [vmem:[%s10019_s9 + $0x34] sm:$0xf0]  ;;  %v6588_v46 = vld [vmem:[%s10019_s9 + $0x34] sm:$0xf] }
 0x6fd   :  { %2286 = vmatpush.bf16.msra.mxu3 %v5908_v0 }
 0x6fe   :  { %2003 = vmatmul.bf16.gmra.mxu1 %v1916_v9 }
 0x700   :  { %2263 = vmatpush.bf16.msra.mxu2 %v5896_v49  ;;  %v8576_v49 = vld [vmem:[%s10018_s8] ss:$0 sm:$0xff] }
 0x701   :  { %2287 = vmatpush.bf16.msra.mxu3 %v5900_v6 }
 0x709   :  { %v1994_v52 = vpop.f32.mrf.mxu1 }
 0x70a   :  { %v1995_v61 = vadd.f32 %v6894_v60, %v1994_v52  ;;  %v5889_v52 = vld [vmem:[%s10019_s9 + $0x38] sm:$0xf0] }
 0x70c   :  { %v2009_v31 = vadd.f32 %v1995_v61, %v7615_v25  ;;  %v5879_v61 = vld [vmem:[%s10019_s9 + $0x20] sm:$0xf] }
 0x70e   :  { %2017 = vadd.xlane.f32.xlu1 %v2009_v31 }
 0x711   :  { %v1996_v33 = vpop.f32.mrf.mxu1 }
 0x712   :  { %v1997_v2 = vadd.f32 %v6894_v60, %v1996_v33 }
 0x714   :  { %v2010_v59 = vadd.f32 %v1997_v2, %v7618_v24  ;;  %v5892_v2 = vor.u32 %v6588_v46, %v5889_v52 }
 0x716   :  { %2019 = vadd.xlane.f32.xlu2 %v2010_v59  ;;  %2288 = vmatpush.bf16.msra.mxu3 %v5892_v2 }
 0x729   :  { %v1999_v45 = vpop.f32.mrf.mxu1 }
 0x72a   :  { %v2000_v44 = vadd.f32 %v6894_v60, %v1999_v45  ;;  %v5881_v45 = vld [vmem:[%s10019_s9 + $0x28] sm:$0xf0] }
 0x72c   :  { %v2011_v8 = vadd.f32 %v2000_v44, %v7630_v35 }
 0x72e   :  { %2021 = vadd.xlane.f32.xlu0 %v2011_v8 }
 0x731   :  { %v2001_v7 = vpop.f32.mrf.mxu1 }
 0x732   :  { %v2002_v51 = vadd.f32 %v6894_v60, %v2001_v7 }
 0x734   :  { %v2012_v47 = vadd.f32 %v2002_v51, %v7627_v34  ;;  %v5871_v51 = vld [vmem:[%s10019_s9 + $0x10] sm:$0xf] }
 0x736   :  { %2023 = vadd.xlane.f32.xlu2 %v2012_v47 }
 0x77b   :  { %v2004_v11 = vpop.f32.mrf.mxu1 }
 0x77c   :  { %v2005_v22 = vadd.f32 %v6894_v60, %v2004_v11 }
 0x77e   :  { %v8438_v57 = vadd.f32 %v2005_v22, %v7780_v30 }
 0x781   :  { %v2018_v23 = vpop.xlane.xlu1 %2017 }
 0x782   :  { %v2029_v12 = vmul.f32 %v2018_v23, %v7418_v10  ;;  %v6584_v23 = vld [vmem:[%s10019_s9 + $0x14] sm:$0xf] }
 0x783   :  { %v2006_v3 = vpop.f32.mrf.mxu1 }
 0x784   :  { %v8428_v25 = vsub.f32 %v2009_v31, %v2029_v12  ;;  %v2007_v40 = vadd.f32 %v6894_v60, %v2006_v3  ;;  %v5888_v60 = vor.u32 %v6589_v58, %v5887_v62  ;;  %v6587_v31 = vld [vmem:[%s10019_s9 + $0x24] sm:$0xf0]  ;;  %v5873_v12 = vld [vmem:[%s10019_s9 + $0x18] sm:$0xf0] }
 0x785   :  { %v5876_v22 = vor.u32 %v6584_v23, %v5873_v12 }
 0x786   :  { %v2041_v24 = vmul.f32 %v8428_v25, %v8428_v25  ;;  %v8442_v41 = vadd.f32 %v2007_v40, %v7783_v63  ;;  %2264 = vmatpush.bf16.msra.mxu2 %v5888_v60 }
 0x788   :  { %2047 = vadd.xlane.f32.xlu0 %v2041_v24 }
 0x789   :  { %v2020_v54 = vpop.xlane.xlu2 %2019 }
 0x78a   :  { %v2030_v35 = vmul.f32 %v2020_v54, %v7418_v10 }
 0x78c   :  { %v8433_v15 = vsub.f32 %v2010_v59, %v2030_v35  ;;  %v6586_v59 = vld [vmem:[%s10019_s9 + $0x24] sm:$0xf] }
 0x78d   :  { %v5884_v7 = vor.u32 %v6586_v59, %v5881_v45 }
 0x78e   :  { %v2042_v34 = vmul.f32 %v8433_v15, %v8433_v15 }
 0x78f   :  { %2289 = vmatpush.bf16.msra.mxu3 %v5884_v7 }
 0x790   :  { %2049 = vadd.xlane.f32.xlu2 %v2042_v34  ;;  %2025 = vadd.xlane.f32.xlu0 %v8438_v57 }
 0x793   :  { %2290 = vmatpush.bf16.msra.mxu3 %v5876_v22 }
 0x798   :  { %2027 = vadd.xlane.f32.xlu2 %v8442_v41 }
 0x7a1   :  { %v2022_v14 = vpop.xlane.xlu0 %2021 }
 0x7a2   :  { %v2031_v13 = vmul.f32 %v2022_v14, %v7418_v10 }
 0x7a4   :  { %v8446_v37 = vsub.f32 %v2011_v8, %v2031_v13  ;;  %v5880_v8 = vor.u32 %v6587_v31, %v5879_v61 }
 0x7a6   :  { %v2043_v29 = vmul.f32 %v8446_v37, %v8446_v37  ;;  %2265 = vmatpush.bf16.msra.mxu2 %v5880_v8 }
 0x7a8   :  { %2051 = vadd.xlane.f32.xlu0 %v2043_v29  ;;  %v5863_v29 = vld [vmem:[%s10019_s9] sm:$0xf] }
 0x7a9   :  { %v2024_v30 = vpop.xlane.xlu2 %2023 }
 0x7aa   :  { %v2032_v4 = vmul.f32 %v2024_v30, %v7418_v10  ;;  %v6583_v30 = vld [vmem:[%s10019_s9 + $0x4] sm:$0xf0] }
 0x7ac   :  { %v8451_v18 = vsub.f32 %v2012_v47, %v2032_v4  ;;  %v6585_v47 = vld [vmem:[%s10019_s9 + $0x14] sm:$0xf0]  ;;  %v6582_v4 = vld [vmem:[%s10019_s9 + $0x4] sm:$0xf] }
 0x7ad   :  { %v5872_v11 = vor.u32 %v6585_v47, %v5871_v51  ;;  %v5868_v19 = vor.u32 %v6582_v4, %v5865_v21 }
 0x7ae   :  { %v2044_v63 = vmul.f32 %v8451_v18, %v8451_v18 }
 0x7af   :  { %2266 = vmatpush.bf16.msra.mxu2 %v5872_v11  ;;  %2291 = vmatpush.bf16.msra.mxu3 %v5868_v19 }
 0x7b0   :  { %2053 = vadd.xlane.f32.xlu1 %v2044_v63  ;;  %v5864_v63 = vor.u32 %v6583_v30, %v5863_v29 }
 0x7b3   :  { %2267 = vmatpush.bf16.msra.mxu2 %v5864_v63 }
 0x7fb   :  { %v2048_v9 = vpop.xlane.xlu0 %2047 }
 0x7fc   :  { %v2059_v33 = vmul.f32 %v2048_v9, %v7418_v10 }
 0x7fe   :  { %v2065_v44 = vadd.f32 1e-12, %v2059_v33 }
 0x800   :  { %7019 = vrsqrt.f32 %v2065_v44  ;;  %vm2077_vm8 = vweird.f32 %v2065_v44 }
 0x803   :  { %v2050_v24 = vpop.xlane.xlu2 %2049  ;;  %v2026_v54 = vpop.xlane.xlu0 %2025 }
 0x804   :  { %v2060_v35 = vmul.f32 %v2050_v24, %v7418_v10  ;;  %v2033_v34 = vmul.f32 %v2026_v54, %v7418_v10 }
 0x806   :  { %v7020_v3 = vpop.eup %7019  ;;  %v2066_v40 = vadd.f32 1e-12, %v2060_v35  ;;  %v8543_v14 = vsub.f32 %v8438_v57, %v2033_v34 }
 0x807   :  { %v2072_v13 = vmul.f32 %v7020_v3, %v2065_v44  ;;  %vm2078_vm7 = vweird.f32 %v7020_v3 }
 0x808   :  { %7021 = vrsqrt.f32 %v2066_v40  ;;  %v2045_v57 = vmul.f32 %v8543_v14, %v8543_v14  ;;  %vm2079_vm9 = vmor %vm2077_vm8, %vm2078_vm7  ;;  %vm2087_vm11 = vweird.f32 %v2066_v40 }
 0x809   :  { %v2073_v53 = vmul.f32 %v7020_v3, %v2072_v13 }
 0x80a   :  { %2055 = vadd.xlane.f32.xlu2 %v2045_v57 }
 0x80b   :  { %v2074_v36 = vmul.f32 0.5, %v2073_v53  ;;  %v2028_v20 = vpop.xlane.xlu2 %2027 }
 0x80c   :  { %v2034_v17 = vmul.f32 %v2028_v20, %v7418_v10 }
 0x80d   :  { %v2075_v28 = vsub.f32 1.5, %v2074_v36 }
 0x80e   :  { %v7022_v16 = vpop.eup %7021  ;;  %v8561_v38 = vsub.f32 %v8442_v41, %v2034_v17  ;;  %v8569_v41 = vld [vmem:[%s10073_s16] ss:$0 sm:$0xff] }
 0x80f   :  { %v2076_v5 = vmul.f32 %v7020_v3, %v2075_v28  ;;  %v2082_v27 = vmul.f32 %v7022_v16, %v2066_v40  ;;  %vm2088_vm10 = vweird.f32 %v7022_v16 }
 0x810   :  { %v2046_v43 = vmul.f32 %v8561_v38, %v8561_v38  ;;  %vm2089_vm12 = vmor %vm2087_vm11, %vm2088_vm10 }
 0x811   :  { %v2083_v26 = vmul.f32 %v7022_v16, %v2082_v27  ;;  %v2080_v56 = vsel %vm2079_vm9, %v7020_v3, %v2076_v5  ;;  %v6613_v5 = vld [vmem:[#allocation2 + $0x78] sm:$0xff] }
 0x812   :  { %2057 = vadd.xlane.f32.xlu0 %v2046_v43  ;;  %v2131_v48 = vmul.f32 %v2080_v56, %v8428_v25  ;;  %2578 = vmatpush.bf16.msrb.mxu1 %v6613_v5  ;;  %v6604_v56 = vld [vmem:[#allocation2 + $0x30] sm:$0xff] }
 0x813   :  { %v2084_v55 = vmul.f32 0.5, %v2083_v26 }
 0x814   :  { %v2140_v42 = vmul.f32 %v8569_v41, %v2131_v48 }
 0x815   :  { %v2085_v32 = vsub.f32 1.5, %v2084_v55  ;;  %v6612_v55 = vld [vmem:[#allocation2 + $0x70] sm:$0xff] }
 0x816   :  { %v8581_v58 = vadd.f32 %v8576_v49, %v2140_v42  ;;  %2579 = vmatpush.bf16.msrb.mxu1 %v6612_v55 }
 0x817   :  { %v2086_v0 = vmul.f32 %v7022_v16, %v2085_v32 }
 0x819   :  { %v2090_v1 = vsel %vm2089_vm12, %v7022_v16, %v2086_v0  ;;  %v6605_v16 = vld [vmem:[#allocation2 + $0x38] sm:$0xff] }
 0x81a   :  { %v2132_v50 = vmul.f32 %v2090_v1, %v8433_v15  ;;  %2554 = vmatpush.bf16.msra.mxu0 %v6605_v16  ;;  %v6603_v1 = vld [vmem:[#allocation2 + $0x28] sm:$0xff] }
 0x81b   :  { %v2052_v39 = vpop.xlane.xlu0 %2051 }
 0x81c   :  { %v2061_v25 = vmul.f32 %v2052_v39, %v7418_v10  ;;  %v2141_v6 = vmul.f32 %v8569_v41, %v2132_v50  ;;  %v6611_v50 = vld [vmem:[#allocation2 + $0x68] sm:$0xff] }
 0x81d   :  { %2580 = vmatpush.bf16.msrb.mxu1 %v6611_v50 }
 0x81e   :  { %v2067_v62 = vadd.f32 1e-12, %v2061_v25  ;;  %v8584_v46 = vadd.f32 %v8576_v49, %v2141_v6  ;;  %2555 = vmatpush.bf16.msra.mxu0 %v6604_v56  ;;  %v6602_v6 = vld [vmem:[#allocation2 + $0x20] sm:$0xff] }
 0x820   :  { %7023 = vrsqrt.f32 %v2067_v62  ;;  %v2155_v15 = vpack.c.bf16 %v8584_v46, %v8581_v58  ;;  %vm2097_vm0 = vweird.f32 %v2067_v62 }
 0x822   :  { %2268 = vmatmul.bf16.vlgmr.msra.gmra.mxu2 %v2155_v15  ;;  %2292 = vmatmul.bf16.vlgmr.msra.gmra.mxu3 %v2155_v15 }
 0x823   :  { %v2054_v9 = vpop.xlane.xlu1 %2053  ;;  %2556 = vmatpush.bf16.msra.mxu0 %v6603_v1 }
 0x824   :  { %v2062_v60 = vmul.f32 %v2054_v9, %v7418_v10 }
 0x826   :  { %v7024_v52 = vpop.eup %7023  ;;  %v2068_v61 = vadd.f32 1e-12, %v2062_v60  ;;  %v6609_v60 = vld [vmem:[#allocation2 + $0x58] sm:$0xff] }
 0x827   :  { %v2092_v31 = vmul.f32 %v7024_v52, %v2067_v62  ;;  %vm2098_vm15 = vweird.f32 %v7024_v52  ;;  %v6610_v62 = vld [vmem:[#allocation2 + $0x60] sm:$0xff]  ;;  %2557 = vmatpush.bf16.msra.mxu0 %v6602_v6 }
 0x828   :  { %7025 = vrsqrt.f32 %v2068_v61  ;;  %vm2099_vm3 = vmor %vm2097_vm0, %vm2098_vm15  ;;  %vm2107_vm5 = vweird.f32 %v2068_v61  ;;  %2581 = vmatpush.bf16.msrb.mxu1 %v6610_v62 }
 0x829   :  { %v2093_v33 = vmul.f32 %v7024_v52, %v2092_v31 }
 0x82b   :  { %v2094_v2 = vmul.f32 0.5, %v2093_v33 }
 0x82c   :  { %2582 = vmatpush.bf16.msrb.mxu1 %v6609_v60 }
 0x82d   :  { %v2095_v59 = vsub.f32 1.5, %v2094_v2  ;;  %v6600_v2 = vld [vmem:[#allocation2 + $0x10] sm:$0xff] }
 0x82e   :  { %v7026_v45 = vpop.eup %7025 }
 0x82f   :  { %v2096_v44 = vmul.f32 %v7024_v52, %v2095_v59  ;;  %v2102_v8 = vmul.f32 %v7026_v45, %v2068_v61  ;;  %vm2108_vm4 = vweird.f32 %v7026_v45 }
 0x830   :  { %vm2109_vm6 = vmor %vm2107_vm5, %vm2108_vm4 }
 0x831   :  { %v2103_v7 = vmul.f32 %v7026_v45, %v2102_v8  ;;  %v2100_v47 = vsel %vm2099_vm3, %v7024_v52, %v2096_v44 }
 0x832   :  { %v2133_v12 = vmul.f32 %v2100_v47, %v8446_v37 }
 0x833   :  { %v2104_v51 = vmul.f32 0.5, %v2103_v7  ;;  %v6599_v7 = vld [vmem:[#allocation2 + $0x8] sm:$0xff] }
 0x834   :  { %v2142_v22 = vmul.f32 %v8569_v41, %v2133_v12 }
 0x835   :  { %v2105_v23 = vsub.f32 1.5, %v2104_v51  ;;  %v6607_v51 = vld [vmem:[#allocation2 + $0x48] sm:$0xff] }
 0x836   :  { %v8594_v34 = vadd.f32 %v8576_v49, %v2142_v22 }
 0x837   :  { %v2106_v11 = vmul.f32 %v7026_v45, %v2105_v23 }
 0x839   :  { %v2110_v24 = vsel %vm2109_vm6, %v7026_v45, %v2106_v11 }
 0x83a   :  { %v2134_v54 = vmul.f32 %v2110_v24, %v8451_v18 }
 0x83c   :  { %v2143_v35 = vmul.f32 %v8569_v41, %v2134_v54 }
 0x83e   :  { %v8597_v3 = vadd.f32 %v8576_v49, %v2143_v35 }
 0x840   :  { %v2156_v40 = vpack.c.bf16 %v8597_v3, %v8594_v34 }
 0x842   :  { %2273 = vmatmul.bf16.gmra.mxu2 %v2156_v40  ;;  %2297 = vmatmul.bf16.gmra.mxu3 %v2156_v40 }
 0x87d   :  { %v2056_v37 = vpop.xlane.xlu2 %2055 }
 0x87e   :  { %v2063_v13 = vmul.f32 %v2056_v37, %v7418_v10 }
 0x880   :  { %v2069_v29 = vadd.f32 1e-12, %v2063_v13  ;;  %v6598_v13 = vld [vmem:[#allocation2] sm:$0xff] }
 0x882   :  { %7027 = vrsqrt.f32 %v2069_v29  ;;  %vm2117_vm8 = vweird.f32 %v2069_v29 }
 0x885   :  { %v2058_v18 = vpop.xlane.xlu0 %2057 }
 0x886   :  { %v2064_v30 = vmul.f32 %v2058_v18, %v7418_v10 }
 0x888   :  { %v7028_v4 = vpop.eup %7027  ;;  %v2070_v57 = vadd.f32 1e-12, %v2064_v30 }
 0x889   :  { %v2112_v63 = vmul.f32 %v7028_v4, %v2069_v29  ;;  %vm2118_vm7 = vweird.f32 %v7028_v4  ;;  %v6606_v29 = vld [vmem:[#allocation2 + $0x40] sm:$0xff] }
 0x88a   :  { %7029 = vrsqrt.f32 %v2070_v57  ;;  %vm2119_vm9 = vmor %vm2117_vm8, %vm2118_vm7  ;;  %vm2127_vm11 = vweird.f32 %v2070_v57 }
 0x88b   :  { %v2113_v21 = vmul.f32 %v7028_v4, %v2112_v63 }
 0x88d   :  { %v2114_v53 = vmul.f32 0.5, %v2113_v21 }
 0x88f   :  { %v2115_v19 = vsub.f32 1.5, %v2114_v53 }
 0x890   :  { %v7030_v36 = vpop.eup %7029 }
 0x891   :  { %v2116_v20 = vmul.f32 %v7028_v4, %v2115_v19  ;;  %v2122_v17 = vmul.f32 %v7030_v36, %v2070_v57  ;;  %vm2128_vm10 = vweird.f32 %v7030_v36 }
 0x892   :  { %vm2129_vm12 = vmor %vm2127_vm11, %vm2128_vm10 }
 0x893   :  { %v2123_v28 = vmul.f32 %v7030_v36, %v2122_v17  ;;  %v2120_v43 = vsel %vm2119_vm9, %v7028_v4, %v2116_v20 }
 0x894   :  { %v2135_v32 = vmul.f32 %v2120_v43, %v8543_v14  ;;  %v2174_v14 = vld [vmem:[%s10020_s10] sm:$0x3] }
 0x895   :  { %v2124_v27 = vmul.f32 0.5, %v2123_v28  ;;  %v8620_v61 = vperm.slane %v2174_v14, 1 }
 0x896   :  { %v2144_v39 = vmul.f32 %v8569_v41, %v2135_v32 }
 0x897   :  { %v2125_v26 = vsub.f32 1.5, %v2124_v27 }
 0x898   :  { %v8611_v15 = vadd.f32 %v8576_v49, %v2144_v39 }
 0x899   :  { %v2126_v48 = vmul.f32 %v7030_v36, %v2125_v26 }
 0x89b   :  { %v2130_v0 = vsel %vm2129_vm12, %v7030_v36, %v2126_v48 }
 0x89c   :  { %v2136_v42 = vmul.f32 %v2130_v0, %v8561_v38  ;;  %v6601_v38 = vld [vmem:[#allocation2 + $0x18] sm:$0xff] }
 0x89d   :  { %2558 = vmatpush.bf16.msra.mxu0 %v6601_v38 }
 0x89e   :  { %v2145_v25 = vmul.f32 %v8569_v41, %v2136_v42  ;;  %v8618_v41 = vperm.slane %v2174_v14, 0 }
 0x8a0   :  { %v8614_v9 = vadd.f32 %v8576_v49, %v2145_v25  ;;  %v6608_v49 = vld [vmem:[#allocation2 + $0x50] sm:$0xff] }
 0x8a1   :  { %2559 = vmatpush.bf16.msra.mxu0 %v6600_v2  ;;  %2583 = vmatpush.bf16.msrb.mxu1 %v6608_v49 }
 0x8a2   :  { %v2157_v52 = vpack.c.bf16 %v8614_v9, %v8611_v15 }
 0x8a4   :  { %2278 = vmatmul.bf16.gmra.mxu2 %v2157_v52  ;;  %2302 = vmatmul.bf16.gmra.mxu3 %v2157_v52 }
 0x8a5   :  { %v2269_v31 = vpop.f32.mrf.mxu2  ;;  %v2293_v33 = vpop.f32.mrf.mxu3  ;;  %2560 = vmatpush.bf16.msra.mxu0 %v6599_v7  ;;  %2584 = vmatpush.bf16.msrb.mxu1 %v6607_v51 }
 0x8a6   :  { %v2270_v59 = vadd.f32 %v2269_v31, %v8618_v41  ;;  %v2294_v45 = vadd.f32 %v2293_v33, %v8620_v61 }
 0x8a8   :  { %v2308_v44 = vmul.f32 %v2270_v59, %v2270_v59  ;;  %v2309_v8 = vmul.f32 %v2294_v45, %v2294_v45 }
 0x8a9   :  { %2561 = vmatpush.bf16.msra.mxu0 %v6598_v13  ;;  %2585 = vmatpush.bf16.msrb.mxu1 %v6606_v29 }
 0x8aa   :  { %v2320_v47 = vmul.f32 %v2308_v44, %v2270_v59  ;;  %v2321_v23 = vmul.f32 %v2309_v8, %v2294_v45 }
 0x8ac   :  { %v2332_v12 = vmul.f32 0.044715, %v2320_v47  ;;  %v2333_v11 = vmul.f32 0.044715, %v2321_v23 }
 0x8ad   :  { %v2271_v24 = vpop.f32.mrf.mxu2  ;;  %v2295_v54 = vpop.f32.mrf.mxu3 }
 0x8ae   :  { %v2344_v22 = vadd.f32 %v2332_v12, %v2270_v59  ;;  %v2345_v35 = vadd.f32 %v2333_v11, %v2294_v45  ;;  %v2272_v40 = vadd.f32 %v2271_v24, %v8618_v41  ;;  %v2296_v37 = vadd.f32 %v2295_v54, %v8620_v61 }
 0x8b0   :  { %v2356_v18 = vmul.f32 0.7978846, %v2344_v22  ;;  %v2310_v30 = vmul.f32 %v2272_v40, %v2272_v40  ;;  %v2311_v4 = vmul.f32 %v2296_v37, %v2296_v37  ;;  %v2357_v57 = vmul.f32 0.7978846, %v2345_v35 }
 0x8b2   :  { %v2322_v63 = vmul.f32 %v2310_v30, %v2272_v40  ;;  %v2323_v21 = vmul.f32 %v2311_v4, %v2296_v37  ;;  %7031 = vtanh.f32 %v2356_v18 }
 0x8b3   :  { %7033 = vtanh.f32 %v2357_v57 }
 0x8b4   :  { %v2334_v53 = vmul.f32 0.044715, %v2322_v63  ;;  %v2335_v19 = vmul.f32 0.044715, %v2323_v21 }
 0x8b6   :  { %v2346_v36 = vadd.f32 %v2334_v53, %v2272_v40  ;;  %v2347_v20 = vadd.f32 %v2335_v19, %v2296_v37 }
 0x8b8   :  { %v2358_v17 = vmul.f32 0.7978846, %v2346_v36  ;;  %v2359_v28 = vmul.f32 0.7978846, %v2347_v20  ;;  %v7032_v16 = vpop.eup %7031 }
 0x8b9   :  { %v7034_v5 = vpop.eup %7033  ;;  %v2380_v27 = vadd.f32 1.0, %v7032_v16 }
 0x8ba   :  { %7035 = vtanh.f32 %v2358_v17  ;;  %v2381_v43 = vadd.f32 1.0, %v7034_v5 }
 0x8bb   :  { %7037 = vtanh.f32 %v2359_v28  ;;  %v2392_v55 = vmul.f32 0.5, %v2380_v27 }
 0x8bc   :  { %v2393_v48 = vmul.f32 0.5, %v2381_v43 }
 0x8bd   :  { %v2404_v42 = vmul.f32 %v2392_v55, %v2270_v59 }
 0x8be   :  { %v2405_v62 = vmul.f32 %v2393_v48, %v2294_v45 }
 0x8c0   :  { %v7036_v26 = vpop.eup %7035 }
 0x8c1   :  { %v7038_v56 = vpop.eup %7037  ;;  %v2382_v32 = vadd.f32 1.0, %v7036_v26 }
 0x8c2   :  { %v2383_v0 = vadd.f32 1.0, %v7038_v56 }
 0x8c3   :  { %v2394_v1 = vmul.f32 0.5, %v2382_v32 }
 0x8c4   :  { %v2395_v50 = vmul.f32 0.5, %v2383_v0 }
 0x8c5   :  { %v2274_v39 = vpop.f32.mrf.mxu2  ;;  %v2298_v25 = vpop.f32.mrf.mxu3  ;;  %v2406_v6 = vmul.f32 %v2394_v1, %v2272_v40 }
 0x8c6   :  { %v2275_v14 = vadd.f32 %v2274_v39, %v8618_v41  ;;  %v2299_v38 = vadd.f32 %v2298_v25, %v8620_v61  ;;  %v2407_v60 = vmul.f32 %v2395_v50, %v2296_v37 }
 0x8c7   :  { %v2416_v52 = vpack.c.bf16 %v2406_v6, %v2404_v42 }
 0x8c8   :  { %v2312_v31 = vmul.f32 %v2275_v14, %v2275_v14  ;;  %v2313_v33 = vmul.f32 %v2299_v38, %v2299_v38  ;;  %v2417_v2 = vpack.c.bf16 %v2407_v60, %v2405_v62 }
 0x8c9   :  { %2562 = vmatmul.bf16.vlgmr.msra.gmra.mxu0 %v2416_v52 }
 0x8ca   :  { %v2324_v49 = vmul.f32 %v2312_v31, %v2275_v14  ;;  %v2325_v44 = vmul.f32 %v2313_v33, %v2299_v38  ;;  %2586 = vmatmul.bf16.vlgmr.msrb.gmra.mxu1 %v2417_v2 }
 0x8cc   :  { %v2336_v8 = vmul.f32 0.044715, %v2324_v49  ;;  %v2337_v7 = vmul.f32 0.044715, %v2325_v44 }
 0x8cd   :  { %v2276_v59 = vpop.f32.mrf.mxu2  ;;  %v2300_v51 = vpop.f32.mrf.mxu3 }
 0x8ce   :  { %v2348_v47 = vadd.f32 %v2336_v8, %v2275_v14  ;;  %v2349_v23 = vadd.f32 %v2337_v7, %v2299_v38  ;;  %v2277_v45 = vadd.f32 %v2276_v59, %v8618_v41  ;;  %v2301_v12 = vadd.f32 %v2300_v51, %v8620_v61 }
 0x8d0   :  { %v2314_v11 = vmul.f32 %v2277_v45, %v2277_v45  ;;  %v2315_v24 = vmul.f32 %v2301_v12, %v2301_v12  ;;  %v2360_v54 = vmul.f32 0.7978846, %v2348_v47  ;;  %v2361_v22 = vmul.f32 0.7978846, %v2349_v23 }
 0x8d2   :  { %v2326_v35 = vmul.f32 %v2314_v11, %v2277_v45  ;;  %v2327_v40 = vmul.f32 %v2315_v24, %v2301_v12  ;;  %7039 = vtanh.f32 %v2360_v54 }
 0x8d3   :  { %7041 = vtanh.f32 %v2361_v22 }
 0x8d4   :  { %v2338_v37 = vmul.f32 0.044715, %v2326_v35  ;;  %v2339_v13 = vmul.f32 0.044715, %v2327_v40 }
 0x8d6   :  { %v2350_v29 = vadd.f32 %v2338_v37, %v2277_v45  ;;  %v2351_v18 = vadd.f32 %v2339_v13, %v2301_v12  ;;  %v6897_v13 = vld [vmem:[%s10022_s12] ss:$0 sm:$0xff] }
 0x8d8   :  { %v2362_v30 = vmul.f32 0.7978846, %v2350_v29  ;;  %v2363_v4 = vmul.f32 0.7978846, %v2351_v18  ;;  %v7040_v57 = vpop.eup %7039 }
 0x8d9   :  { %v7042_v63 = vpop.eup %7041  ;;  %v2384_v21 = vadd.f32 1.0, %v7040_v57 }
 0x8da   :  { %7043 = vtanh.f32 %v2362_v30  ;;  %v2385_v53 = vadd.f32 1.0, %v7042_v63 }
 0x8db   :  { %7045 = vtanh.f32 %v2363_v4  ;;  %v2396_v17 = vmul.f32 0.5, %v2384_v21 }
 0x8dc   :  { %v2397_v16 = vmul.f32 0.5, %v2385_v53 }
 0x8dd   :  { %v2408_v43 = vmul.f32 %v2396_v17, %v2275_v14 }
 0x8de   :  { %v2409_v56 = vmul.f32 %v2397_v16, %v2299_v38 }
 0x8e0   :  { %v7044_v19 = vpop.eup %7043 }
 0x8e1   :  { %v7046_v36 = vpop.eup %7045  ;;  %v2386_v20 = vadd.f32 1.0, %v7044_v19 }
 0x8e2   :  { %v2387_v28 = vadd.f32 1.0, %v7046_v36 }
 0x8e3   :  { %v2398_v5 = vmul.f32 0.5, %v2386_v20 }
 0x8e4   :  { %v2399_v27 = vmul.f32 0.5, %v2387_v28 }
 0x8e5   :  { %v2410_v26 = vmul.f32 %v2398_v5, %v2277_v45 }
 0x8e6   :  { %v2411_v55 = vmul.f32 %v2399_v27, %v2301_v12 }
 0x8e7   :  { %v2418_v32 = vpack.c.bf16 %v2410_v26, %v2408_v43 }
 0x8e8   :  { %v2419_v48 = vpack.c.bf16 %v2411_v55, %v2409_v56 }
 0x8e9   :  { %2567 = vmatmul.bf16.gmra.mxu0 %v2418_v32 }
 0x8ea   :  { %2591 = vmatmul.bf16.gmra.mxu1 %v2419_v48 }
 0x927   :  { %v2279_v0 = vpop.f32.mrf.mxu2  ;;  %v2303_v1 = vpop.f32.mrf.mxu3 }
 0x928   :  { %v2280_v50 = vadd.f32 %v2279_v0, %v8618_v41  ;;  %v2304_v42 = vadd.f32 %v2303_v1, %v8620_v61 }
 0x92a   :  { %v2316_v39 = vmul.f32 %v2280_v50, %v2280_v50  ;;  %v2317_v25 = vmul.f32 %v2304_v42, %v2304_v42 }
 0x92c   :  { %v2328_v6 = vmul.f32 %v2316_v39, %v2280_v50  ;;  %v2329_v62 = vmul.f32 %v2317_v25, %v2304_v42 }
 0x92e   :  { %v2340_v60 = vmul.f32 0.044715, %v2328_v6  ;;  %v2341_v52 = vmul.f32 0.044715, %v2329_v62 }
 0x92f   :  { %v2281_v14 = vpop.f32.mrf.mxu2  ;;  %v2305_v31 = vpop.f32.mrf.mxu3 }
 0x930   :  { %v2352_v38 = vadd.f32 %v2340_v60, %v2280_v50  ;;  %v2353_v33 = vadd.f32 %v2341_v52, %v2304_v42  ;;  %v2282_v2 = vadd.f32 %v2281_v14, %v8618_v41  ;;  %v2306_v49 = vadd.f32 %v2305_v31, %v8620_v61 }
 0x932   :  { %v2364_v44 = vmul.f32 0.7978846, %v2352_v38  ;;  %v2318_v8 = vmul.f32 %v2282_v2, %v2282_v2  ;;  %v2319_v7 = vmul.f32 %v2306_v49, %v2306_v49  ;;  %v2365_v59 = vmul.f32 0.7978846, %v2353_v33 }
 0x934   :  { %v2330_v51 = vmul.f32 %v2318_v8, %v2282_v2  ;;  %v2331_v47 = vmul.f32 %v2319_v7, %v2306_v49  ;;  %7047 = vtanh.f32 %v2364_v44 }
 0x935   :  { %7049 = vtanh.f32 %v2365_v59 }
 0x936   :  { %v2342_v23 = vmul.f32 0.044715, %v2330_v51  ;;  %v2343_v45 = vmul.f32 0.044715, %v2331_v47 }
 0x938   :  { %v2354_v12 = vadd.f32 %v2342_v23, %v2282_v2  ;;  %v2355_v11 = vadd.f32 %v2343_v45, %v2306_v49 }
 0x93a   :  { %v2366_v24 = vmul.f32 0.7978846, %v2354_v12  ;;  %v2367_v54 = vmul.f32 0.7978846, %v2355_v11  ;;  %v7048_v22 = vpop.eup %7047 }
 0x93b   :  { %v7050_v35 = vpop.eup %7049  ;;  %v2388_v41 = vadd.f32 1.0, %v7048_v22 }
 0x93c   :  { %7051 = vtanh.f32 %v2366_v24  ;;  %v2389_v61 = vadd.f32 1.0, %v7050_v35 }
 0x93d   :  { %7053 = vtanh.f32 %v2367_v54  ;;  %v2400_v18 = vmul.f32 0.5, %v2388_v41  ;;  %v6108_v41 = vld [vmem:[%s10054_s27 + $0x168] sm:$0xf] }
 0x93e   :  { %v2401_v4 = vmul.f32 0.5, %v2389_v61  ;;  %v6636_v61 = vld [vmem:[%s10054_s27 + $0x170] sm:$0xf0] }
 0x93f   :  { %v2412_v36 = vmul.f32 %v2400_v18, %v2280_v50  ;;  %v6637_v18 = vld [vmem:[%s10054_s27 + $0x178] sm:$0xf0] }
 0x940   :  { %v2413_v17 = vmul.f32 %v2401_v4, %v2304_v42 }
 0x942   :  { %v7052_v40 = vpop.eup %7051 }
 0x943   :  { %v7054_v37 = vpop.eup %7053  ;;  %v2390_v29 = vadd.f32 1.0, %v7052_v40  ;;  %v6635_v40 = vld [vmem:[%s10054_s27 + $0x16c] sm:$0xf] }
 0x944   :  { %v2391_v30 = vadd.f32 1.0, %v7054_v37  ;;  %v6109_v37 = vor.u32 %v6636_v61, %v6108_v41  ;;  %v6036_v41 = vld [vmem:[%s10054_s27 + $0xd8] sm:$0xf]  ;;  %v6618_v61 = vld [vmem:[%s10054_s27 + $0xe0] sm:$0xf0] }
 0x945   :  { %v2402_v57 = vmul.f32 0.5, %v2390_v29  ;;  %v6116_v29 = vld [vmem:[%s10054_s27 + $0x170] sm:$0xf] }
 0x946   :  { %v2563_v63 = vpop.f32.mrf.mxu0  ;;  %v2403_v21 = vmul.f32 0.5, %v2391_v30  ;;  %v6117_v4 = vor.u32 %v6637_v18, %v6116_v29  ;;  %2921 = vmatpush.bf16.msrb.mxu2 %v6109_v37  ;;  %v6038_v37 = vld [vmem:[%s10054_s27 + $0xe4] sm:$0xf0]  ;;  %v6619_v29 = vld [vmem:[%s10054_s27 + $0xe8] sm:$0xf0]  ;;  %v6037_v18 = vor.u32 %v6618_v61, %v6036_v41 }
 0x947   :  { %v2564_v53 = vadd.f32 %v6897_v13, %v2563_v63  ;;  %v2587_v19 = vpop.f32.mrf.mxu1  ;;  %v2414_v20 = vmul.f32 %v2402_v57, %v2282_v2  ;;  %v6096_v57 = vld [vmem:[%s10054_s27 + $0x150] sm:$0xf]  ;;  %v6633_v63 = vld [vmem:[%s10054_s27 + $0x158] sm:$0xf0] }
 0x948   :  { %v2415_v28 = vmul.f32 %v2403_v21, %v2306_v49  ;;  %2969 = vmatpush.bf16.msrb.mxu0 %v6117_v4  ;;  %v6632_v21 = vld [vmem:[%s10054_s27 + $0x154] sm:$0xf] }
 0x949   :  { %v2588_v16 = vadd.f32 %v2587_v19, %v2564_v53  ;;  %v2420_v5 = vpack.c.bf16 %v2414_v20, %v2412_v36  ;;  %v6097_v53 = vor.u32 %v6633_v63, %v6096_v57  ;;  %v6098_v19 = vld [vmem:[%s10054_s27 + $0x15c] sm:$0xf0]  ;;  %v6104_v36 = vld [vmem:[%s10054_s27 + $0x158] sm:$0xf]  ;;  %v6634_v20 = vld [vmem:[%s10054_s27 + $0x160] sm:$0xf0] }
 0x94a   :  { %v2421_v27 = vpack.c.bf16 %v2415_v28, %v2413_v17  ;;  %v6101_v17 = vor.u32 %v6632_v21, %v6098_v19  ;;  %v6105_v28 = vor.u32 %v6634_v20, %v6104_v36 }
 0x94b   :  { %2572 = vmatmul.bf16.gmra.mxu0 %v2420_v5  ;;  %v2602_v43 = vadd.f32 %v2588_v16, %v8581_v58  ;;  %2922 = vmatpush.bf16.msrb.mxu2 %v6097_v53  ;;  %v6084_v16 = vld [vmem:[%s10054_s27 + $0x138] sm:$0xf]  ;;  %v6630_v5 = vld [vmem:[%s10054_s27 + $0x140] sm:$0xf0] }
 0x94c   :  { %2596 = vmatmul.bf16.gmra.mxu1 %v2421_v27  ;;  %2970 = vmatpush.bf16.msrb.mxu0 %v6105_v28  ;;  %v6629_v27 = vld [vmem:[%s10054_s27 + $0x13c] sm:$0xf]  ;;  %v6024_v28 = vld [vmem:[%s10054_s27 + $0xc0] sm:$0xf] }
 0x94d   :  { %2610 = vadd.xlane.f32.xlu1 %v2602_v43 }
 0x94e   :  { %v2565_v26 = vpop.f32.mrf.mxu0 }
 0x94f   :  { %v2566_v56 = vadd.f32 %v6897_v13, %v2565_v26  ;;  %v2589_v55 = vpop.f32.mrf.mxu1  ;;  %v6086_v26 = vld [vmem:[%s10054_s27 + $0x144] sm:$0xf0] }
 0x951   :  { %v2590_v32 = vadd.f32 %v2589_v55, %v2566_v56  ;;  %v6092_v56 = vld [vmem:[%s10054_s27 + $0x140] sm:$0xf]  ;;  %v6631_v55 = vld [vmem:[%s10054_s27 + $0x148] sm:$0xf0] }
 0x953   :  { %v2603_v48 = vadd.f32 %v2590_v32, %v8584_v46  ;;  %v6089_v32 = vor.u32 %v6629_v27, %v6086_v26  ;;  %v6032_v26 = vld [vmem:[%s10054_s27 + $0xc8] sm:$0xf] }
 0x955   :  { %2612 = vadd.xlane.f32.xlu2 %v2603_v48 }
 0x966   :  { %v2568_v0 = vpop.f32.mrf.mxu0 }
 0x967   :  { %v2569_v1 = vadd.f32 %v6897_v13, %v2568_v0  ;;  %v2592_v50 = vpop.f32.mrf.mxu1  ;;  %v6072_v0 = vld [vmem:[%s10054_s27 + $0x120] sm:$0xf] }
 0x969   :  { %v2593_v42 = vadd.f32 %v2592_v50, %v2569_v1  ;;  %v6627_v1 = vld [vmem:[%s10054_s27 + $0x128] sm:$0xf0]  ;;  %v6626_v50 = vld [vmem:[%s10054_s27 + $0x124] sm:$0xf] }
 0x96b   :  { %v2604_v39 = vadd.f32 %v2593_v42, %v8594_v34  ;;  %v6073_v42 = vor.u32 %v6627_v1, %v6072_v0 }
 0x96d   :  { %2614 = vadd.xlane.f32.xlu0 %v2604_v39 }
 0x96e   :  { %v2570_v25 = vpop.f32.mrf.mxu0 }
 0x96f   :  { %v2571_v6 = vadd.f32 %v6897_v13, %v2570_v25  ;;  %v2594_v62 = vpop.f32.mrf.mxu1  ;;  %v6080_v25 = vld [vmem:[%s10054_s27 + $0x128] sm:$0xf] }
 0x971   :  { %v2595_v58 = vadd.f32 %v2594_v62, %v2571_v6  ;;  %v6628_v6 = vld [vmem:[%s10054_s27 + $0x130] sm:$0xf0] }
 0x973   :  { %v2605_v60 = vadd.f32 %v2595_v58, %v8597_v3  ;;  %v6081_v58 = vor.u32 %v6628_v6, %v6080_v25 }
 0x975   :  { %2616 = vadd.xlane.f32.xlu1 %v2605_v60 }
 0x9c0   :  { %v2611_v52 = vpop.xlane.xlu1 %2610 }
 0x9c1   :  { %v2622_v14 = vmul.f32 %v2611_v52, %v7418_v10  ;;  %v6624_v52 = vld [vmem:[%s10054_s27 + $0x110] sm:$0xf0] }
 0x9c3   :  { %v8642_v31 = vsub.f32 %v2602_v43, %v2622_v14  ;;  %v6085_v43 = vor.u32 %v6630_v5, %v6084_v16  ;;  %v6623_v14 = vld [vmem:[%s10054_s27 + $0x10c] sm:$0xf]  ;;  %v6614_v5 = vld [vmem:[%s10054_s27 + $0xc4] sm:$0xf] }
 0x9c4   :  { %v6615_v16 = vld [vmem:[%s10054_s27 + $0xc8] sm:$0xf0] }
 0x9c5   :  { %v2634_v46 = vmul.f32 %v8642_v31, %v8642_v31  ;;  %2923 = vmatpush.bf16.msrb.mxu2 %v6085_v43  ;;  %v6025_v27 = vor.u32 %v6615_v16, %v6024_v28  ;;  %v6026_v43 = vld [vmem:[%s10054_s27 + $0xcc] sm:$0xf0] }
 0x9c7   :  { %2640 = vadd.xlane.f32.xlu2 %v2634_v46 }
 0x9c8   :  { %v2613_v38 = vpop.xlane.xlu2 %2612  ;;  %v2573_v33 = vpop.f32.mrf.mxu0 }
 0x9c9   :  { %v2623_v34 = vmul.f32 %v2613_v38, %v7418_v10  ;;  %v2574_v2 = vadd.f32 %v6897_v13, %v2573_v33  ;;  %v2597_v49 = vpop.f32.mrf.mxu1  ;;  %2924 = vmatpush.bf16.msrb.mxu2 %v6073_v42  ;;  %v6062_v33 = vld [vmem:[%s10054_s27 + $0x114] sm:$0xf0] }
 0x9cb   :  { %v8647_v44 = vsub.f32 %v2603_v48, %v2623_v34  ;;  %v2598_v8 = vadd.f32 %v2597_v49, %v2574_v2  ;;  %v6093_v48 = vor.u32 %v6631_v55, %v6092_v56  ;;  %v6068_v34 = vld [vmem:[%s10054_s27 + $0x110] sm:$0xf]  ;;  %v6625_v2 = vld [vmem:[%s10054_s27 + $0x118] sm:$0xf0]  ;;  %v6029_v55 = vor.u32 %v6614_v5, %v6026_v43 }
 0x9cd   :  { %v2635_v3 = vmul.f32 %v8647_v44, %v8647_v44  ;;  %v8652_v7 = vadd.f32 %v2598_v8, %v8611_v15  ;;  %2971 = vmatpush.bf16.msrb.mxu0 %v6093_v48  ;;  %v6065_v8 = vor.u32 %v6623_v14, %v6062_v33 }
 0x9cf   :  { %2642 = vadd.xlane.f32.xlu0 %v2635_v3  ;;  %2618 = vadd.xlane.f32.xlu1 %v8652_v7  ;;  %v6069_v3 = vor.u32 %v6625_v2, %v6068_v34 }
 0x9d0   :  { %v2575_v59 = vpop.f32.mrf.mxu0 }
 0x9d1   :  { %v2576_v51 = vadd.f32 %v6897_v13, %v2575_v59  ;;  %v2599_v47 = vpop.f32.mrf.mxu1  ;;  %v6110_v13 = vld [vmem:[%s10054_s27 + $0x174] sm:$0xf0]  ;;  %2972 = vmatpush.bf16.msrb.mxu0 %v6081_v58  ;;  %v6048_v59 = vld [vmem:[%s10054_s27 + $0xf0] sm:$0xf] }
 0x9d2   :  { %v6113_v30 = vor.u32 %v6635_v40, %v6110_v13  ;;  %v6617_v40 = vld [vmem:[%s10054_s27 + $0xdc] sm:$0xf]  ;;  %v6044_v13 = vld [vmem:[%s10054_s27 + $0xe0] sm:$0xf] }
 0x9d3   :  { %v2600_v23 = vadd.f32 %v2599_v47, %v2576_v51  ;;  %v6621_v51 = vld [vmem:[%s10054_s27 + $0xf8] sm:$0xf0]  ;;  %v6620_v47 = vld [vmem:[%s10054_s27 + $0xf4] sm:$0xf]  ;;  %v6041_v57 = vor.u32 %v6617_v40, %v6038_v37  ;;  %v6045_v63 = vor.u32 %v6619_v29, %v6044_v13 }
 0x9d4   :  { %2945 = vmatpush.bf16.msrb.mxu3 %v6113_v30 }
 0x9d5   :  { %v8656_v45 = vadd.f32 %v2600_v23, %v8614_v9  ;;  %v6050_v23 = vld [vmem:[%s10054_s27 + $0xfc] sm:$0xf0]  ;;  %2973 = vmatpush.bf16.msrb.mxu0 %v6069_v3 }
 0x9d7   :  { %2620 = vadd.xlane.f32.xlu2 %v8656_v45 }
 0x9d8   :  { %2946 = vmatpush.bf16.msrb.mxu3 %v6101_v17 }
 0x9dc   :  { %2947 = vmatpush.bf16.msrb.mxu3 %v6089_v32  ;;  %v6616_v32 = vld [vmem:[%s10054_s27 + $0xd0] sm:$0xf0] }
 0x9dd   :  { %v6033_v48 = vor.u32 %v6616_v32, %v6032_v26 }
 0x9e0   :  { %v2615_v12 = vpop.xlane.xlu0 %2614 }
 0x9e1   :  { %v2624_v11 = vmul.f32 %v2615_v12, %v7418_v10  ;;  %v6056_v12 = vld [vmem:[%s10054_s27 + $0xf8] sm:$0xf] }
 0x9e3   :  { %v8660_v24 = vsub.f32 %v2604_v39, %v2624_v11  ;;  %v6074_v39 = vld [vmem:[%s10054_s27 + $0x12c] sm:$0xf0]  ;;  %v6622_v11 = vld [vmem:[%s10054_s27 + $0x100] sm:$0xf0] }
 0x9e4   :  { %v6077_v62 = vor.u32 %v6626_v50, %v6074_v39 }
 0x9e5   :  { %v2636_v15 = vmul.f32 %v8660_v24, %v8660_v24 }
 0x9e6   :  { %2948 = vmatpush.bf16.msrb.mxu3 %v6077_v62 }
 0x9e7   :  { %2644 = vadd.xlane.f32.xlu0 %v2636_v15 }
 0x9e8   :  { %v2617_v54 = vpop.xlane.xlu1 %2616 }
 0x9e9   :  { %v2625_v22 = vmul.f32 %v2617_v54, %v7418_v10  ;;  %v6049_v54 = vor.u32 %v6621_v51, %v6048_v59 }
 0x9ea   :  { %2949 = vmatpush.bf16.msrb.mxu3 %v6065_v8  ;;  %v8838_v8 = vld [vmem:[%s10024_s14] ss:$0 sm:$0xff] }
 0x9eb   :  { %v8665_v35 = vsub.f32 %v2605_v60, %v2625_v22  ;;  %v6060_v60 = vld [vmem:[%s10054_s27 + $0x108] sm:$0xf]  ;;  %v6053_v22 = vor.u32 %v6620_v47, %v6050_v23 }
 0x9ec   :  { %v6061_v38 = vor.u32 %v6624_v52, %v6060_v60 }
 0x9ed   :  { %v2637_v9 = vmul.f32 %v8665_v35, %v8665_v35 }
 0x9ee   :  { %2925 = vmatpush.bf16.msrb.mxu2 %v6061_v38  ;;  %2950 = vmatpush.bf16.msrb.mxu3 %v6053_v22 }
 0x9ef   :  { %2646 = vadd.xlane.f32.xlu1 %v2637_v9  ;;  %v6057_v9 = vor.u32 %v6622_v11, %v6056_v12 }
 0x9f1   :  { %2974 = vmatpush.bf16.msrb.mxu0 %v6057_v9 }
 0x9f2   :  { %2926 = vmatpush.bf16.msrb.mxu2 %v6049_v54  ;;  %2951 = vmatpush.bf16.msrb.mxu3 %v6041_v57 }
 0x9f5   :  { %2975 = vmatpush.bf16.msrb.mxu0 %v6045_v63 }
 0x9f6   :  { %2927 = vmatpush.bf16.msrb.mxu2 %v6037_v18  ;;  %2952 = vmatpush.bf16.msrb.mxu3 %v6029_v55 }
 0x9f9   :  { %2976 = vmatpush.bf16.msrb.mxu0 %v6033_v48 }
 0x9fa   :  { %2928 = vmatpush.bf16.msrb.mxu2 %v6025_v27 }
 0xa3a   :  { %v2641_v46 = vpop.xlane.xlu2 %2640 }
 0xa3b   :  { %v2652_v49 = vmul.f32 %v2641_v46, %v7418_v10 }
 0xa3d   :  { %v2658_v15 = vadd.f32 1e-12, %v2652_v49 }
 0xa3f   :  { %7055 = vrsqrt.f32 %v2658_v15  ;;  %vm2670_vm0 = vweird.f32 %v2658_v15 }
 0xa42   :  { %v2619_v30 = vpop.xlane.xlu1 %2618  ;;  %v2643_v4 = vpop.xlane.xlu0 %2642 }
 0xa43   :  { %v2626_v21 = vmul.f32 %v2619_v30, %v7418_v10  ;;  %v2653_v53 = vmul.f32 %v2643_v4, %v7418_v10 }
 0xa45   :  { %v7056_v19 = vpop.eup %7055  ;;  %v8799_v36 = vsub.f32 %v8652_v7, %v2626_v21  ;;  %v2659_v20 = vadd.f32 1e-12, %v2653_v53 }
 0xa46   :  { %v2665_v17 = vmul.f32 %v7056_v19, %v2658_v15  ;;  %vm2671_vm15 = vweird.f32 %v7056_v19 }
 0xa47   :  { %7057 = vrsqrt.f32 %v2659_v20  ;;  %v2638_v7 = vmul.f32 %v8799_v36, %v8799_v36  ;;  %vm2672_vm3 = vmor %vm2670_vm0, %vm2671_vm15  ;;  %vm2680_vm5 = vweird.f32 %v2659_v20 }
 0xa48   :  { %v2666_v56 = vmul.f32 %v7056_v19, %v2665_v17 }
 0xa49   :  { %2648 = vadd.xlane.f32.xlu2 %v2638_v7 }
 0xa4a   :  { %v2667_v0 = vmul.f32 0.5, %v2666_v56  ;;  %v2621_v1 = vpop.xlane.xlu2 %2620 }
 0xa4b   :  { %v2627_v50 = vmul.f32 %v2621_v1, %v7418_v10 }
 0xa4c   :  { %v2668_v42 = vsub.f32 1.5, %v2667_v0 }
 0xa4d   :  { %v7058_v39 = vpop.eup %7057  ;;  %v8823_v25 = vsub.f32 %v8656_v45, %v2627_v50  ;;  %v8831_v45 = vld [vmem:[%s10023_s13] ss:$0 sm:$0xff] }
 0xa4e   :  { %v2669_v6 = vmul.f32 %v7056_v19, %v2668_v42  ;;  %v2675_v62 = vmul.f32 %v7058_v39, %v2659_v20  ;;  %vm2681_vm4 = vweird.f32 %v7058_v39 }
 0xa4f   :  { %v2639_v58 = vmul.f32 %v8823_v25, %v8823_v25  ;;  %vm2682_vm6 = vmor %vm2680_vm5, %vm2681_vm4 }
 0xa50   :  { %v2676_v60 = vmul.f32 %v7058_v39, %v2675_v62  ;;  %v2673_v52 = vsel %vm2672_vm3, %v7056_v19, %v2669_v6 }
 0xa51   :  { %2650 = vadd.xlane.f32.xlu0 %v2639_v58  ;;  %v2724_v38 = vmul.f32 %v2673_v52, %v8642_v31 }
 0xa52   :  { %v2677_v14 = vmul.f32 0.5, %v2676_v60 }
 0xa53   :  { %v2733_v49 = vmul.f32 %v8831_v45, %v2724_v38 }
 0xa54   :  { %v2678_v46 = vsub.f32 1.5, %v2677_v14 }
 0xa55   :  { %v8843_v47 = vadd.f32 %v8838_v8, %v2733_v49 }
 0xa56   :  { %v2679_v33 = vmul.f32 %v7058_v39, %v2678_v46 }
 0xa58   :  { %v2683_v34 = vsel %vm2682_vm6, %v7058_v39, %v2679_v33 }
 0xa59   :  { %v2725_v2 = vmul.f32 %v2683_v34, %v8647_v44 }
 0xa5a   :  { %v2645_v3 = vpop.xlane.xlu0 %2644 }
 0xa5b   :  { %v2654_v31 = vmul.f32 %v2645_v3, %v7418_v10  ;;  %v2734_v59 = vmul.f32 %v8831_v45, %v2725_v2 }
 0xa5d   :  { %v2660_v51 = vadd.f32 1e-12, %v2654_v31  ;;  %v8846_v23 = vadd.f32 %v8838_v8, %v2734_v59 }
 0xa5f   :  { %7059 = vrsqrt.f32 %v2660_v51  ;;  %v2748_v44 = vpack.c.bf16 %v8846_v23, %v8843_v47  ;;  %vm2690_vm8 = vweird.f32 %v2660_v51 }
 0xa61   :  { %2929 = vmatmul.bf16.vlgmr.msrb.gmra.mxu2 %v2748_v44  ;;  %2953 = vmatmul.bf16.vlgmr.msrb.gmra.mxu3 %v2748_v44 }
 0xa62   :  { %2977 = vmatmul.bf16.vlgmr.msrb.gmra.mxu0 %v2748_v44  ;;  %v2647_v12 = vpop.xlane.xlu1 %2646 }
 0xa63   :  { %v2655_v11 = vmul.f32 %v2647_v12, %v7418_v10 }
 0xa65   :  { %v7060_v15 = vpop.eup %7059  ;;  %v2661_v54 = vadd.f32 1e-12, %v2655_v11 }
 0xa66   :  { %v2685_v22 = vmul.f32 %v7060_v15, %v2660_v51  ;;  %vm2691_vm7 = vweird.f32 %v7060_v15 }
 0xa67   :  { %7061 = vrsqrt.f32 %v2661_v54  ;;  %vm2692_vm9 = vmor %vm2690_vm8, %vm2691_vm7  ;;  %vm2700_vm11 = vweird.f32 %v2661_v54 }
 0xa68   :  { %v2686_v9 = vmul.f32 %v7060_v15, %v2685_v22 }
 0xa6a   :  { %v2687_v41 = vmul.f32 0.5, %v2686_v9 }
 0xa6c   :  { %v2688_v61 = vsub.f32 1.5, %v2687_v41 }
 0xa6d   :  { %v7062_v40 = vpop.eup %7061 }
 0xa6e   :  { %v2689_v37 = vmul.f32 %v7060_v15, %v2688_v61  ;;  %v2695_v13 = vmul.f32 %v7062_v40, %v2661_v54  ;;  %vm2701_vm10 = vweird.f32 %v7062_v40 }
 0xa6f   :  { %vm2702_vm12 = vmor %vm2700_vm11, %vm2701_vm10 }
 0xa70   :  { %v2696_v29 = vmul.f32 %v7062_v40, %v2695_v13  ;;  %v2693_v18 = vsel %vm2692_vm9, %v7060_v15, %v2689_v37 }
 0xa71   :  { %v2726_v57 = vmul.f32 %v2693_v18, %v8660_v24 }
 0xa72   :  { %v2697_v30 = vmul.f32 0.5, %v2696_v29 }
 0xa73   :  { %v2735_v19 = vmul.f32 %v8831_v45, %v2726_v57 }
 0xa74   :  { %v2698_v4 = vsub.f32 1.5, %v2697_v30 }
 0xa75   :  { %v8856_v17 = vadd.f32 %v8838_v8, %v2735_v19 }
 0xa76   :  { %v2699_v63 = vmul.f32 %v7062_v40, %v2698_v4 }
 0xa78   :  { %v2703_v21 = vsel %vm2702_vm12, %v7062_v40, %v2699_v63 }
 0xa79   :  { %v2727_v53 = vmul.f32 %v2703_v21, %v8665_v35 }
 0xa7b   :  { %v2736_v20 = vmul.f32 %v8831_v45, %v2727_v53 }
 0xa7d   :  { %v8859_v28 = vadd.f32 %v8838_v8, %v2736_v20 }
 0xa7f   :  { %v2749_v16 = vpack.c.bf16 %v8859_v28, %v8856_v17 }
 0xa81   :  { %2934 = vmatmul.bf16.gmra.mxu2 %v2749_v16  ;;  %2958 = vmatmul.bf16.gmra.mxu3 %v2749_v16 }
 0xa82   :  { %2982 = vmatmul.bf16.gmra.mxu0 %v2749_v16 }
 0xabc   :  { %v2649_v24 = vpop.xlane.xlu2 %2648 }
 0xabd   :  { %v2656_v5 = vmul.f32 %v2649_v24, %v7418_v10 }
 0xabf   :  { %v2662_v35 = vadd.f32 1e-12, %v2656_v5 }
 0xac1   :  { %7063 = vrsqrt.f32 %v2662_v35  ;;  %vm2710_vm0 = vweird.f32 %v2662_v35 }
 0xac4   :  { %v2651_v7 = vpop.xlane.xlu0 %2650 }
 0xac5   :  { %v2657_v27 = vmul.f32 %v2651_v7, %v7418_v10 }
 0xac7   :  { %v7064_v43 = vpop.eup %7063  ;;  %v2663_v26 = vadd.f32 1e-12, %v2657_v27 }
 0xac8   :  { %v2705_v56 = vmul.f32 %v7064_v43, %v2662_v35  ;;  %vm2711_vm15 = vweird.f32 %v7064_v43 }
 0xac9   :  { %7065 = vrsqrt.f32 %v2663_v26  ;;  %vm2712_vm3 = vmor %vm2710_vm0, %vm2711_vm15  ;;  %vm2720_vm5 = vweird.f32 %v2663_v26 }
 0xaca   :  { %v2706_v55 = vmul.f32 %v7064_v43, %v2705_v56 }
 0xacc   :  { %v2707_v32 = vmul.f32 0.5, %v2706_v55 }
 0xace   :  { %v2708_v48 = vsub.f32 1.5, %v2707_v32 }
 0xacf   :  { %v7066_v0 = vpop.eup %7065 }
 0xad0   :  { %v2709_v1 = vmul.f32 %v7064_v43, %v2708_v48  ;;  %v2715_v50 = vmul.f32 %v7066_v0, %v2663_v26  ;;  %vm2721_vm4 = vweird.f32 %v7066_v0 }
 0xad1   :  { %vm2722_vm6 = vmor %vm2720_vm5, %vm2721_vm4 }
 0xad2   :  { %v2716_v42 = vmul.f32 %v7066_v0, %v2715_v50  ;;  %v2713_v39 = vsel %vm2712_vm3, %v7064_v43, %v2709_v1 }
 0xad3   :  { %v2728_v58 = vmul.f32 %v2713_v39, %v8799_v36  ;;  %v6021_v36 = vld [vmem:[%s10055_s11 + $0x3] sm:$0x7]  ;;  %s10074_s11 = smov 64  }
 0xad4   :  { %v2717_v6 = vmul.f32 0.5, %v2716_v42  ;;  %v8880_v49 = vperm.slane %v6021_v36, 1  ;;  %v8892_v54 = vperm.slane %v6021_v36, 2 }
 0xad5   :  { %v2737_v46 = vmul.f32 %v8831_v45, %v2728_v58 }
 0xad6   :  { %v2718_v62 = vsub.f32 1.5, %v2717_v6 }
 0xad7   :  { %v8870_v33 = vadd.f32 %v8838_v8, %v2737_v46 }
 0xad8   :  { %v2719_v60 = vmul.f32 %v7066_v0, %v2718_v62 }
 0xada   :  { %v2723_v52 = vsel %vm2722_vm6, %v7066_v0, %v2719_v60 }
 0xadb   :  { %v2729_v14 = vmul.f32 %v2723_v52, %v8823_v25 }
 0xadd   :  { %v2738_v38 = vmul.f32 %v8831_v45, %v2729_v14 }
 0xadf   :  { %v8873_v34 = vadd.f32 %v8838_v8, %v2738_v38  ;;  %v8884_v8 = vperm.slane %v6021_v36, 0  ;;  %v2978_v51 = vpop.f32.mrf.mxu0 }
 0xae0   :  { %v8900_v40 = vadd.f32 %v2978_v51, %v8892_v54 }
 0xae1   :  { %v2750_v2 = vpack.c.bf16 %v8873_v34, %v8870_v33 }
 0xae3   :  { %2939 = vmatmul.bf16.gmra.mxu2 %v2750_v2  ;;  %2963 = vmatmul.bf16.gmra.mxu3 %v2750_v2 }
 0xae4   :  { %2987 = vmatmul.bf16.gmra.mxu0 %v2750_v2  ;;  %v2930_v25 = vpop.f32.mrf.mxu2  ;;  %v2954_v45 = vpop.f32.mrf.mxu3 }
 0xae5   :  { %v2955_v3 = vadd.f32 %v2954_v45, %v8880_v49  ;;  %v2931_v4 = vadd.f32 %v2930_v25, %v8884_v8 }
 0xae7   :  { %3153 = vrot.lane.b32.xlu0 %v2955_v3, %s7276_s3  ;;  %v2980_v15 = vpop.f32.mrf.mxu0  ;;  %v2993_v57 = vmul.f32 0.17677669, %v2931_v4 }
 0xae8   :  { %v2981_v9 = vadd.f32 %v2980_v15, %v8892_v54 }
 0xaec   :  { %v2932_v31 = vpop.f32.mrf.mxu2  ;;  %v2956_v59 = vpop.f32.mrf.mxu3 }
 0xaed   :  { %v2933_v44 = vadd.f32 %v2932_v31, %v8884_v8  ;;  %v2957_v12 = vadd.f32 %v2956_v59, %v8880_v49 }
 0xaef   :  { %v2994_v11 = vmul.f32 0.17677669, %v2933_v44  ;;  %3155 = vrot.lane.b32.xlu2 %v2957_v12, %s7276_s3  ;;  %v8996_v44 = vld [vmem:[%s10056_s24] ss:$0 sm:$0xff] }
 0xaf1   :  { %3149 = vrot.lane.b32.xlu0 %v2994_v11, %s7276_s3 }
 0xaf7   :  { %3324 = vrot.lane.b32.xlu2 %v2957_v12, %s10074_s11 }
 0xaf9   :  { %3322 = vrot.lane.b32.xlu0 %v2955_v3, %s10074_s11 }
 0xaff   :  { %v2983_v22 = vpop.f32.mrf.mxu0  ;;  %3488 = vrot.lane.b32.xlu2 %v2955_v3, %s10075_s26 }
 0xb00   :  { %v2984_v41 = vadd.f32 %v2983_v22, %v8892_v54 }
 0xb02   :  { %3089 = vmatpush.msra.mxu2 %v2984_v41  ;;  %v8897_v61 = vpack.i.bf16 %v2981_v9, %v2984_v41 }
 0xb04   :  { %3090 = vmatpush.msra.mxu2 %v2981_v9  ;;  %v2935_v37 = vpop.f32.mrf.mxu2  ;;  %v2959_v13 = vpop.f32.mrf.mxu3 }
 0xb05   :  { %v2936_v29 = vadd.f32 %v2935_v37, %v8884_v8  ;;  %v2960_v18 = vadd.f32 %v2959_v13, %v8880_v49 }
 0xb06   :  { %3091 = vmatpush.msra.mxu2 %v8900_v40 }
 0xb07   :  { %v2995_v30 = vmul.f32 0.17677669, %v2936_v29  ;;  %3326 = vrot.lane.b32.xlu2 %v2960_v18, %s10074_s11  ;;  %3157 = vrot.lane.b32.xlu1 %v2960_v18, %s7276_s3  ;;  %v8950_v50 = vpop.f32.mrf.mxu0 }
 0xb08   :  { %6118 = vmatpush.xpose.msk.msra.mxu1 %vm510_vm13, %v2960_v18 }
 0xb09   :  { %3151 = vrot.lane.b32.xlu0 %v2995_v30, %s7276_s3 }
 0xb0c   :  { %6119 = vmatpush.xpose.msk.msra.mxu1 %vm510_vm13, %v2957_v12  ;;  %v2961_v63 = vpop.f32.mrf.mxu3  ;;  %v2937_v53 = vpop.f32.mrf.mxu2 }
 0xb0d   :  { %v2962_v21 = vadd.f32 %v2961_v63, %v8880_v49  ;;  %v2938_v19 = vadd.f32 %v2937_v53, %v8884_v8 }
 0xb0f   :  { %3318 = vrot.lane.b32.xlu2 %v2994_v11, %s10074_s11  ;;  %3147 = vrot.lane.b32.xlu1 %v2993_v57, %s7276_s3  ;;  %v8927_v20 = vmul.f32 0.17677669, %v2938_v19 }
 0xb10   :  { %6120 = vmatpush.xpose.msk.msra.mxu1 %vm510_vm13, %v2955_v3 }
 0xb11   :  { %3482 = vrot.lane.b32.xlu0 %v2993_v57, %s10075_s26 }
 0xb13   :  { %6121 = vmatmul.msk.f32.vlgmr.msra.gmra.mxu1 %vm510_vm13, %v2993_v57 }
 0xb17   :  { %3490 = vrot.lane.b32.xlu1 %v2957_v12, %s10075_s26  ;;  %3320 = vrot.lane.b32.xlu2 %v2995_v30, %s10074_s11 }
 0xb1b   :  { %6122 = vmatmul.msk.f32.gmra.mxu1 %vm510_vm13, %v2994_v11 }
 0xb1f   :  { %3492 = vrot.lane.b32.xlu1 %v2960_v18, %s10075_s26  ;;  %3853 = vrot.lane.b32.xlu2 %v2962_v21, %s7276_s3 }
 0xb23   :  { %6123 = vmatmul.msk.f32.gmra.mxu1 %vm510_vm13, %v2995_v30 }
 0xb27   :  { %3316 = vrot.lane.b32.xlu1 %v2993_v57, %s10074_s11 }
 0xb2f   :  { %3484 = vrot.lane.b32.xlu1 %v2994_v11, %s10075_s26 }
 0xb37   :  { %3486 = vrot.lane.b32.xlu1 %v2995_v30, %s10075_s26 }
 0xb3f   :  { %3847 = vrot.lane.b32.xlu1 %v8927_v20, %s7276_s3 }
 0xb49   :  { %v3156_v16 = vpop.permute.xlu2 %3155 }
 0xb51   :  { %v3325_v24 = vpop.permute.xlu2 %3324 }
 0xb59   :  { %v3489_v5 = vpop.permute.xlu2 %3488  ;;  %v3154_v35 = vpop.permute.xlu0 %3153 }
 0xb61   :  { %v3327_v7 = vpop.permute.xlu2 %3326  ;;  %v8957_v6 = vpop.f32.mrf.mxu0 }
 0xb62   :  { %6136 = vmatpush.xpose.msk.msrb.mxu1 %vm510_vm13, %v3327_v7 }
 0xb63   :  { %v3150_v27 = vpop.permute.xlu0 %3149 }
 0xb66   :  { %v2964_v43 = vpop.f32.mrf.mxu3  ;;  %6137 = vmatpush.xpose.msk.msrb.mxu1 %vm510_vm13, %v3325_v24  ;;  %v2940_v48 = vpop.f32.mrf.mxu2 }
 0xb67   :  { %v2965_v26 = vadd.f32 %v2964_v43, %v8880_v49  ;;  %v2941_v1 = vadd.f32 %v2940_v48, %v8884_v8 }
 0xb69   :  { %4190 = vrot.lane.b32.xlu1 %v2965_v26, %s10075_s26  ;;  %4024 = vrot.lane.b32.xlu2 %v2965_v26, %s10074_s11  ;;  %v3694_v42 = vmul.f32 0.17677669, %v2941_v1  ;;  %v2990_v14 = vpop.f32.mrf.mxu0  ;;  %v3319_v45 = vpop.permute.xlu2 %3318 }
 0xb6a   :  { %v8973_v38 = vadd.f32 %v2990_v14, %v8892_v54 }
 0xb6b   :  { %v3323_v56 = vpop.permute.xlu0 %3322 }
 0xb6c   :  { %6138 = vmatpush.xpose.msk.msrb.mxu1 %vm510_vm13, %v3323_v56  ;;  %v6820_v2 = vpack.i.bf16 %v8973_v38, %v8900_v40 }
 0xb6e   :  { %v2966_v55 = vpop.f32.mrf.mxu3  ;;  %v2942_v62 = vpop.f32.mrf.mxu2 }
 0xb6f   :  { %v2967_v32 = vadd.f32 %v2966_v55, %v8880_v49  ;;  %v2943_v60 = vadd.f32 %v2942_v62, %v8884_v8 }
 0xb71   :  { %3857 = vrot.lane.b32.xlu0 %v2967_v32, %s7276_s3  ;;  %4192 = vrot.lane.b32.xlu1 %v2967_v32, %s10075_s26  ;;  %v3695_v52 = vmul.f32 0.17677669, %v2943_v60  ;;  %v3321_v31 = vpop.permute.xlu2 %3320 }
 0xb72   :  { %4188 = vrot.lane.b32.xlu2 %v2962_v21, %s10075_s26  ;;  %6154 = vmatpush.xpose.msk.msra.mxu1 %vm510_vm13, %v2967_v32 }
 0xb76   :  { %6155 = vmatpush.xpose.msk.msra.mxu1 %vm510_vm13, %v2965_v26 }
 0xb79   :  { %v3158_v0 = vpop.permute.xlu1 %3157  ;;  %4016 = vrot.lane.b32.xlu1 %v8927_v20, %s10074_s11  ;;  %3855 = vrot.lane.b32.xlu0 %v2965_v26, %s7276_s3  ;;  %v3854_v15 = vpop.permute.xlu2 %3853 }
 0xb7a   :  { %4026 = vrot.lane.b32.xlu2 %v2967_v32, %s10074_s11  ;;  %6156 = vmatpush.xpose.msk.msra.mxu1 %vm510_vm13, %v2962_v21 }
 0xb7b   :  { %6127 = vmatpush.xpose.msk.msra.mxu3 %vm510_vm13, %v3158_v0  ;;  %v3152_v36 = vpop.permute.xlu0 %3151 }
 0xb7f   :  { %6128 = vmatpush.xpose.msk.msra.mxu3 %vm510_vm13, %v3156_v16 }
 0xb81   :  { %v3148_v39 = vpop.permute.xlu1 %3147  ;;  %4184 = vrot.lane.b32.xlu1 %v3694_v42, %s10075_s26  ;;  %3849 = vrot.lane.b32.xlu0 %v3694_v42, %s7276_s3 }
 0xb82   :  { %4018 = vrot.lane.b32.xlu2 %v3694_v42, %s10074_s11 }
 0xb83   :  { %6129 = vmatpush.xpose.msk.msra.mxu3 %vm510_vm13, %v3154_v35  ;;  %v3483_v25 = vpop.permute.xlu0 %3482 }
 0xb86   :  { %6130 = vmatmul.msk.f32.vlgmr.msra.gmra.mxu3 %vm510_vm13, %v3148_v39 }
 0xb89   :  { %v3491_v58 = vpop.permute.xlu1 %3490  ;;  %6806 = vrot.lane.b32.xlu1 %v8897_v61, %s7276_s3  ;;  %4022 = vrot.lane.b32.xlu0 %v2962_v21, %s10074_s11 }
 0xb8a   :  { %6826 = vrot.lane.b32.xlu2 %v8897_v61, %s10075_s26 }
 0xb8e   :  { %6131 = vmatmul.msk.f32.gmra.mxu3 %vm510_vm13, %v3150_v27 }
 0xb90   :  { %v3031_v8 = vpop.f32.mrf.mxu1 }
 0xb91   :  { %v3493_v46 = vpop.permute.xlu1 %3492  ;;  %6816 = vrot.lane.b32.xlu1 %v8897_v61, %s10074_s11  ;;  %3851 = vrot.lane.b32.xlu0 %v3695_v52, %s7276_s3  ;;  %v9005_v9 = vadd.f32 %v8996_v44, %v3031_v8 }
 0xb92   :  { %4186 = vrot.lane.b32.xlu2 %v3695_v52, %s10075_s26  ;;  %6145 = vmatpush.xpose.msk.msrb.mxu3 %vm510_vm13, %v3493_v46 }
 0xb93   :  { %v3040_v37 = vsel %vm555_vm14, %v9005_v9, -inf }
 0xb96   :  { %6132 = vmatmul.msk.f32.gmra.mxu3 %vm510_vm13, %v3152_v36 }
 0xb97   :  { %6146 = vmatpush.xpose.msk.msrb.mxu3 %vm510_vm13, %v3491_v58 }
 0xb98   :  { %v3034_v51 = vpop.f32.mrf.mxu1 }
 0xb99   :  { %v3317_v49 = vpop.permute.xlu1 %3316  ;;  %6821 = vrot.lane.b32.xlu1 %v6820_v2, %s10074_s11  ;;  %4182 = vrot.lane.b32.xlu0 %v8927_v20, %s10075_s26  ;;  %v8999_v12 = vadd.f32 %v8996_v44, %v3034_v51 }
 0xb9a   :  { %6139 = vmatmul.msk.f32.vlgmr.msrb.gmra.mxu1 %vm510_vm13, %v3317_v49 }
 0xb9b   :  { %6147 = vmatpush.xpose.msk.msrb.mxu3 %vm510_vm13, %v3489_v5  ;;  %v3043_v11 = vsel %vm555_vm14, %v8999_v12, -inf }
 0xb9e   :  { %6148 = vmatmul.msk.f32.vlgmr.msrb.gmra.mxu3 %vm510_vm13, %v3483_v25 }
 0xba0   :  { %v3037_v22 = vpop.f32.mrf.mxu1 }
 0xba1   :  { %4020 = vrot.lane.b32.xlu0 %v3695_v52, %s10074_s11  ;;  %v3485_v3 = vpop.permute.xlu1 %3484  ;;  %v9008_v41 = vadd.f32 %v8996_v44, %v3037_v22 }
 0xba2   :  { %6140 = vmatmul.msk.f32.gmra.mxu1 %vm510_vm13, %v3319_v45 }
 0xba3   :  { %v3046_v61 = vsel %vm555_vm14, %v9008_v41, -inf }
 0xba6   :  { %6149 = vmatmul.msk.f32.gmra.mxu3 %vm510_vm13, %v3485_v3 }
 0xba9   :  { %6811 = vrot.lane.b32.xlu0 %v6820_v2, %s7276_s3  ;;  %v3487_v59 = vpop.permute.xlu1 %3486 }
 0xbaa   :  { %6141 = vmatmul.msk.f32.gmra.mxu1 %vm510_vm13, %v3321_v31 }
 0xbae   :  { %6150 = vmatmul.msk.f32.gmra.mxu3 %vm510_vm13, %v3487_v59 }
 0xbb1   :  { %v3848_v18 = vpop.permute.xlu1 %3847 }
 0xbb2   :  { %6157 = vmatmul.msk.f32.vlgmr.msra.gmra.mxu1 %vm510_vm13, %v8927_v20 }
 0xbba   :  { %6158 = vmatmul.msk.f32.gmra.mxu1 %vm510_vm13, %v3694_v42 }
 0xbbb   :  { %3044 = vmax.xlane.f32.xlu2 %v3043_v11 }
 0xbc2   :  { %6159 = vmatmul.msk.f32.gmra.mxu1 %vm510_vm13, %v3695_v52 }
 0xbc3   :  { %3047 = vmax.xlane.f32.xlu2 %v3046_v61  ;;  %v4025_v13 = vpop.permute.xlu2 %4024  ;;  %3041 = vmax.xlane.f32.xlu1 %v3040_v37 }
 0xbcc   :  { %v4189_v29 = vpop.permute.xlu2 %4188 }
 0xbd4   :  { %v4027_v30 = vpop.permute.xlu2 %4026 }
 0xbd5   :  { %6172 = vmatpush.xpose.msk.msrb.mxu1 %vm510_vm13, %v4027_v30 }
 0xbd9   :  { %6173 = vmatpush.xpose.msk.msrb.mxu1 %vm510_vm13, %v4025_v13  ;;  %v9070_v13 = vld [vmem:[%s10056_s24 + $0x1] ss:$0 sm:$0xff] }
 0xbdb   :  { %v4191_v4 = vpop.permute.xlu1 %4190 }
 0xbdc   :  { %v4019_v26 = vpop.permute.xlu2 %4018 }
 0xbe3   :  { %v4193_v57 = vpop.permute.xlu1 %4192  ;;  %v3858_v63 = vpop.permute.xlu0 %3857 }
 0xbe4   :  { %6163 = vmatpush.xpose.msk.msra.mxu3 %vm510_vm13, %v3858_v63  ;;  %v6827_v39 = vpop.permute.xlu2 %6826 }
 0xbe5   :  { %v6828_v2 = vunpack.i.l.bf16 %v6827_v39  ;;  %v6829_v25 = vunpack.i.h.bf16 %v6827_v39 }
 0xbeb   :  { %v4017_v21 = vpop.permute.xlu1 %4016  ;;  %v3856_v53 = vpop.permute.xlu0 %3855 }
 0xbec   :  { %6164 = vmatpush.xpose.msk.msra.mxu3 %vm510_vm13, %v3856_v53  ;;  %v4187_v14 = vpop.permute.xlu2 %4186 }
 0xbf0   :  { %6165 = vmatpush.xpose.msk.msra.mxu3 %vm510_vm13, %v3854_v15 }
 0xbf3   :  { %v4185_v19 = vpop.permute.xlu1 %4184  ;;  %6166 = vmatmul.msk.f32.vlgmr.msra.gmra.mxu3 %vm510_vm13, %v3848_v18  ;;  %v3850_v20 = vpop.permute.xlu0 %3849 }
 0xbf4   :  { %6181 = vmatpush.xpose.msk.msrb.mxu3 %vm510_vm13, %v4193_v57 }
 0xbf8   :  { %6182 = vmatpush.xpose.msk.msrb.mxu3 %vm510_vm13, %v4191_v4 }
 0xbfb   :  { %v6807_v16 = vpop.permute.xlu1 %6806  ;;  %6167 = vmatmul.msk.f32.gmra.mxu3 %vm510_vm13, %v3850_v20  ;;  %v4023_v24 = vpop.permute.xlu0 %4022 }
 0xbfc   :  { %6183 = vmatpush.xpose.msk.msrb.mxu3 %vm510_vm13, %v4189_v29  ;;  %v6808_v5 = vunpack.i.l.bf16 %v6807_v16  ;;  %6174 = vmatpush.xpose.msk.msrb.mxu1 %vm510_vm13, %v4023_v24  ;;  %v6809_v35 = vunpack.i.h.bf16 %v6807_v16 }
 0xbfe   :  { %3258 = vmatpush.msra.mxu0 %v6808_v5 }
 0xbff   :  { %6175 = vmatmul.msk.f32.vlgmr.msrb.gmra.mxu1 %vm510_vm13, %v4017_v21 }
 0xc00   :  { %3259 = vmatpush.msra.mxu0 %v6809_v35 }
 0xc03   :  { %v6817_v7 = vpop.permute.xlu1 %6816  ;;  %v3852_v27 = vpop.permute.xlu0 %3851 }
 0xc04   :  { %v6818_v43 = vunpack.i.l.bf16 %v6817_v7  ;;  %6168 = vmatmul.msk.f32.gmra.mxu3 %vm510_vm13, %v3852_v27  ;;  %v6819_v56 = vunpack.i.h.bf16 %v6817_v7 }
 0xc06   :  { %3424 = vmatpush.msrb.mxu2 %v6818_v43 }
 0xc07   :  { %6176 = vmatmul.msk.f32.gmra.mxu1 %vm510_vm13, %v4019_v26 }
 0xc08   :  { %3425 = vmatpush.msrb.mxu2 %v6819_v56 }
 0xc09   :  { %v3188_v55 = vpop.f32.mrf.mxu3 }
 0xc0a   :  { %v9030_v32 = vadd.f32 %v8996_v44, %v3188_v55 }
 0xc0b   :  { %v9032_v48 = vpop.permute.xlu1 %6821  ;;  %v4183_v0 = vpop.permute.xlu0 %4182 }
 0xc0c   :  { %v6823_v1 = vunpack.i.l.bf16 %v9032_v48  ;;  %v3197_v42 = vsel %vm555_vm14, %v9030_v32, -inf  ;;  %6184 = vmatmul.msk.f32.vlgmr.msrb.gmra.mxu3 %vm510_vm13, %v4183_v0 }
 0xc0d   :  { %3198 = vmax.xlane.f32.xlu0 %v3197_v42 }
 0xc0e   :  { %3426 = vmatpush.msrb.mxu2 %v6823_v1 }
 0xc11   :  { %v3191_v49 = vpop.f32.mrf.mxu3 }
 0xc12   :  { %v9055_v31 = vadd.f32 %v8996_v44, %v3191_v49 }
 0xc13   :  { %v4021_v62 = vpop.permute.xlu0 %4020 }
 0xc14   :  { %6177 = vmatmul.msk.f32.gmra.mxu1 %vm510_vm13, %v4021_v62  ;;  %6185 = vmatmul.msk.f32.gmra.mxu3 %vm510_vm13, %v4185_v19  ;;  %v3200_v15 = vsel %vm555_vm14, %v9055_v31, -inf }
 0xc17   :  { %v3357_v58 = vpop.f32.mrf.mxu1 }
 0xc18   :  { %v9041_v60 = vadd.f32 %v8996_v44, %v3357_v58 }
 0xc19   :  { %v3194_v59 = vpop.f32.mrf.mxu3 }
 0xc1a   :  { %v3366_v52 = vsel %vm555_vm14, %v9041_v60, -inf  ;;  %v9065_v61 = vadd.f32 %v8996_v44, %v3194_v59 }
 0xc1b   :  { %3367 = vmax.xlane.f32.xlu2 %v3366_v52  ;;  %v9045_v46 = vpop.permute.xlu0 %6811 }
 0xc1c   :  { %v6813_v36 = vunpack.i.l.bf16 %v9045_v46  ;;  %6186 = vmatmul.msk.f32.gmra.mxu3 %vm510_vm13, %v4187_v14  ;;  %v3203_v4 = vsel %vm555_vm14, %v9065_v61, -inf }
 0xc1e   :  { %3260 = vmatpush.msra.mxu0 %v6813_v36 }
 0xc1f   :  { %v3360_v45 = vpop.f32.mrf.mxu1 }
 0xc20   :  { %3590 = vmatpush.msrb.mxu0 %v6828_v2  ;;  %v9050_v3 = vadd.f32 %v8996_v44, %v3360_v45 }
 0xc21   :  { %v3523_v18 = vpop.f32.mrf.mxu3 }
 0xc22   :  { %3591 = vmatpush.msrb.mxu0 %v6829_v25  ;;  %v3369_v8 = vsel %vm555_vm14, %v9050_v3, -inf  ;;  %v9080_v57 = vadd.f32 %v8996_v44, %v3523_v18 }
 0xc23   :  { %3370 = vmax.xlane.f32.xlu0 %v3369_v8 }
 0xc24   :  { %v3532_v5 = vsel %vm555_vm14, %v9080_v57, -inf }
 0xc27   :  { %v3363_v51 = vpop.f32.mrf.mxu1 }
 0xc28   :  { %v9058_v11 = vadd.f32 %v8996_v44, %v3363_v51 }
 0xc29   :  { %v3526_v35 = vpop.f32.mrf.mxu3 }
 0xc2a   :  { %v3372_v22 = vsel %vm555_vm14, %v9058_v11, -inf  ;;  %v9092_v27 = vadd.f32 %v8996_v44, %v3526_v35 }
 0xc2b   :  { %3201 = vmax.xlane.f32.xlu0 %v3200_v15  ;;  %3373 = vmax.xlane.f32.xlu2 %v3372_v22 }
 0xc2c   :  { %v3535_v56 = vsel %vm555_vm14, %v9092_v27, -inf }
 0xc2e   :  { %v3045_v21 = vpop.xlane.xlu2 %3044 }
 0xc2f   :  { %v3731_v37 = vpop.f32.mrf.mxu1  ;;  %v3050_v7 = vsub.f32 %v8999_v12, %v3045_v21  ;;  %v9104_v12 = vadd.f32 %v8957_v6, %v8892_v54 }
 0xc30   :  { %v9073_v29 = vadd.f32 %v9070_v13, %v3731_v37 }
 0xc32   :  { %v3740_v30 = vsel %vm555_vm14, %v9073_v29, -inf }
 0xc33   :  { %3741 = vmax.xlane.f32.xlu1 %v3740_v30  ;;  %3204 = vmax.xlane.f32.xlu2 %v3203_v4 }
 0xc36   :  { %v3042_v63 = vpop.xlane.xlu1 %3041  ;;  %v3048_v43 = vpop.xlane.xlu2 %3047 }
 0xc37   :  { %v3049_v53 = vsub.f32 %v9005_v9, %v3042_v63  ;;  %v3734_v19 = vpop.f32.mrf.mxu1  ;;  %v3054_v9 = vmul.f32 1.442695, %v3050_v7  ;;  %v3051_v0 = vsub.f32 %v9008_v41, %v3048_v43  ;;  %v3529_v41 = vpop.f32.mrf.mxu3 }
 0xc38   :  { %v9084_v20 = vadd.f32 %v9070_v13, %v3734_v19 }
 0xc39   :  { %v3052_v16 = vmul.f32 1.442695, %v3049_v53  ;;  %v3056_v42 = vmul.f32 1.442695, %v3051_v0 }
 0xc3a   :  { %v3743_v24 = vsel %vm555_vm14, %v9084_v20, -inf }
 0xc3b   :  { %3744 = vmax.xlane.f32.xlu1 %v3743_v24  ;;  %3533 = vmax.xlane.f32.xlu2 %v3532_v5  ;;  %7067 = vpow2.f32 %v3052_v16 }
 0xc3c   :  { %7069 = vpow2.f32 %v3054_v9 }
 0xc3d   :  { %7071 = vpow2.f32 %v3056_v42 }
 0xc3f   :  { %3559 = vrot.lane.b32.xlu0 %v8900_v40, %s10075_s26  ;;  %v3737_v55 = vpop.f32.mrf.mxu1  ;;  %v9110_v40 = vadd.f32 %v8950_v50, %v8892_v54  ;;  %v9124_v54 = vadd.f32 %v8996_v44, %v3529_v41 }
 0xc40   :  { %v9113_v1 = vadd.f32 %v9070_v13, %v3737_v55 }
 0xc41   :  { %v9096_v26 = vpop.eup %7067  ;;  %v3538_v62 = vsel %vm555_vm14, %v9124_v54, -inf  ;;  %v6830_v58 = vpack.i.bf16 %v9110_v40, %v9104_v12 }
 0xc42   :  { %6124 = vmatmul.msk.f32.vlgmr.msra.gmra.mxu2 %vm555_vm14, %v9096_v26  ;;  %v9117_v39 = vpop.eup %7069  ;;  %v3746_v6 = vsel %vm555_vm14, %v9113_v1, -inf }
 0xc43   :  { %3536 = vmax.xlane.f32.xlu1 %v3535_v56  ;;  %3789 = vmatpush.msra.mxu2 %v8973_v38  ;;  %v9126_v50 = vpop.eup %7071 }
 0xc45   :  { %3790 = vmatpush.msra.mxu2 %v9104_v12 }
 0xc47   :  { %3791 = vmatpush.msra.mxu2 %v9110_v40 }
 0xc4a   :  { %6125 = vmatmul.msk.f32.gmra.mxu2 %vm555_vm14, %v9117_v39 }
 0xc4b   :  { %3747 = vmax.xlane.f32.xlu1 %v3746_v6 }
 0xc52   :  { %6126 = vmatmul.msk.f32.gmra.mxu2 %vm555_vm14, %v9126_v50 }
 0xc53   :  { %3539 = vmax.xlane.f32.xlu1 %v3538_v62  ;;  %6831 = vrot.lane.b32.xlu2 %v6830_v58, %s7276_s3 }
 0xc76   :  { %v3888_v52 = vpop.f32.mrf.mxu3 }
 0xc77   :  { %v9136_v14 = vadd.f32 %v9070_v13, %v3888_v52 }
 0xc79   :  { %v3897_v44 = vsel %vm555_vm14, %v9136_v14, -inf }
 0xc7a   :  { %3898 = vmax.xlane.f32.xlu0 %v3897_v44 }
 0xc7c   :  { %v4057_v36 = vpop.f32.mrf.mxu1 }
 0xc7d   :  { %v9141_v2 = vadd.f32 %v9070_v13, %v4057_v36 }
 0xc7e   :  { %v3891_v49 = vpop.f32.mrf.mxu3 }
 0xc7f   :  { %v4066_v25 = vsel %vm555_vm14, %v9141_v2, -inf }
 0xc80   :  { %v3199_v45 = vpop.xlane.xlu0 %3198  ;;  %4067 = vmax.xlane.f32.xlu1 %v4066_v25 }
 0xc81   :  { %v3206_v8 = vsub.f32 %v9030_v32, %v3199_v45  ;;  %v9159_v32 = vadd.f32 %v9070_v13, %v3891_v49  ;;  %v6840_v49 = vpack.i.bf16 %v9104_v12, %v8973_v38  ;;  %v6814_v38 = vunpack.i.h.bf16 %v9045_v46 }
 0xc83   :  { %v3209_v59 = vmul.f32 1.442695, %v3206_v8  ;;  %v3900_v19 = vsel %vm555_vm14, %v9159_v32, -inf }
 0xc84   :  { %v4060_v51 = vpop.f32.mrf.mxu1 }
 0xc85   :  { %7073 = vpow2.f32 %v3209_v59  ;;  %v9147_v15 = vadd.f32 %v9070_v13, %v4060_v51 }
 0xc87   :  { %v3894_v22 = vpop.f32.mrf.mxu3  ;;  %v4069_v37 = vsel %vm555_vm14, %v9147_v15, -inf }
 0xc88   :  { %v9152_v18 = vadd.f32 %v9070_v13, %v3894_v22  ;;  %4070 = vmax.xlane.f32.xlu2 %v4069_v37 }
 0xc8a   :  { %v3903_v30 = vsel %vm555_vm14, %v9152_v18, -inf }
 0xc8b   :  { %v9156_v4 = vpop.eup %7073  ;;  %3904 = vmax.xlane.f32.xlu1 %v3903_v30 }
 0xc8c   :  { %6133 = vmatmul.msk.f32.vlgmr.msra.gmra.mxu0 %vm555_vm14, %v9156_v4 }
 0xc8e   :  { %v3368_v63 = vpop.xlane.xlu2 %3367  ;;  %6836 = vrot.lane.b32.xlu0 %v6830_v58, %s10074_s11 }
 0xc8f   :  { %v3375_v21 = vsub.f32 %v9041_v60, %v3368_v63  ;;  %v4223_v53 = vpop.f32.mrf.mxu3  ;;  %v6824_v60 = vunpack.i.h.bf16 %v9032_v48 }
 0xc90   :  { %v9168_v16 = vadd.f32 %v9070_v13, %v4223_v53  ;;  %3901 = vmax.xlane.f32.xlu2 %v3900_v19 }
 0xc91   :  { %v3378_v24 = vmul.f32 1.442695, %v3375_v21 }
 0xc92   :  { %v4232_v5 = vsel %vm555_vm14, %v9168_v16, -inf }
 0xc93   :  { %7075 = vpow2.f32 %v3378_v24  ;;  %4233 = vmax.xlane.f32.xlu1 %v4232_v5 }
 0xc96   :  { %v3371_v35 = vpop.xlane.xlu0 %3370 }
 0xc97   :  { %v3376_v7 = vsub.f32 %v9050_v3, %v3371_v35 }
 0xc99   :  { %v9173_v9 = vpop.eup %7075  ;;  %v3380_v43 = vmul.f32 1.442695, %v3376_v7 }
 0xc9a   :  { %6142 = vmatmul.msk.f32.vlgmr.msrb.gmra.mxu2 %vm555_vm14, %v9173_v9 }
 0xc9b   :  { %7077 = vpow2.f32 %v3380_v43  ;;  %4124 = vmatpush.msrb.mxu2 %v6824_v60 }
 0xc9e   :  { %v3374_v56 = vpop.xlane.xlu2 %3373  ;;  %v3202_v55 = vpop.xlane.xlu0 %3201 }
 0xc9f   :  { %v3377_v0 = vsub.f32 %v9058_v11, %v3374_v56  ;;  %v3207_v42 = vsub.f32 %v9055_v31, %v3202_v55 }
 0xca1   :  { %v9180_v6 = vpop.eup %7077  ;;  %v3382_v41 = vmul.f32 1.442695, %v3377_v0  ;;  %v3211_v3 = vmul.f32 1.442695, %v3207_v42  ;;  %v3058_v42 = vsel %vm555_vm14, %v9096_v26, 0.0 }
 0xca2   :  { %6143 = vmatmul.msk.f32.gmra.mxu2 %vm555_vm14, %v9180_v6 }
 0xca3   :  { %7079 = vpow2.f32 %v3382_v41 }
 0xca4   :  { %7081 = vpow2.f32 %v3211_v3 }
 0xca6   :  { %v3742_v48 = vpop.xlane.xlu1 %3741  ;;  %v3205_v62 = vpop.xlane.xlu2 %3204 }
 0xca7   :  { %v3749_v58 = vsub.f32 %v9073_v29, %v3742_v48  ;;  %v3208_v52 = vsub.f32 %v9065_v61, %v3205_v62  ;;  %v4226_v61 = vpop.f32.mrf.mxu3  ;;  %v3387_v48 = vsel %vm555_vm14, %v9180_v6, 0.0  ;;  %v3064_v62 = vsel %vm555_vm14, %v9126_v50, 0.0 }
 0xca8   :  { %4259 = vrot.lane.b32.xlu2 %v9110_v40, %s10075_s26  ;;  %v9206_v12 = vadd.f32 %v9070_v13, %v4226_v61  ;;  %v3215_v6 = vsel %vm555_vm14, %v9156_v4, 0.0  ;;  %v3061_v50 = vsel %vm555_vm14, %v9117_v39, 0.0 }
 0xca9   :  { %v9188_v11 = vpop.eup %7079  ;;  %v3752_v31 = vmul.f32 1.442695, %v3749_v58  ;;  %v3213_v44 = vmul.f32 1.442695, %v3208_v52 }
 0xcaa   :  { %v9190_v36 = vpop.eup %7081  ;;  %6144 = vmatmul.msk.f32.gmra.mxu2 %vm555_vm14, %v9188_v11  ;;  %v4235_v46 = vsel %vm555_vm14, %v9206_v12, -inf }
 0xcab   :  { %7083 = vpow2.f32 %v3752_v31  ;;  %6134 = vmatmul.msk.f32.gmra.mxu0 %vm555_vm14, %v9190_v36  ;;  %v3218_v52 = vsel %vm555_vm14, %v9190_v36, 0.0  ;;  %v3384_v31 = vsel %vm555_vm14, %v9173_v9, 0.0 }
 0xcac   :  { %7085 = vpow2.f32 %v3213_v44  ;;  %6841 = vrot.lane.b32.xlu1 %v6840_v49, %s10075_s26  ;;  %v3390_v49 = vsel %vm555_vm14, %v9188_v11, 0.0 }
 0xcae   :  { %v3745_v29 = vpop.xlane.xlu1 %3744  ;;  %v3534_v40 = vpop.xlane.xlu2 %3533 }
 0xcaf   :  { %v3750_v25 = vsub.f32 %v9084_v20, %v3745_v29  ;;  %v3541_v45 = vsub.f32 %v9080_v57, %v3534_v40  ;;  %v4229_v21 = vpop.f32.mrf.mxu3 }
 0xcb0   :  { %v9218_v35 = vadd.f32 %v9070_v13, %v4229_v21 }
 0xcb1   :  { %v7084_v8 = vpop.eup %7083  ;;  %v3754_v59 = vmul.f32 1.442695, %v3750_v25  ;;  %v3544_v51 = vmul.f32 1.442695, %v3541_v45  ;;  %v3560_v22 = vpop.permute.xlu0 %3559 }
 0xcb2   :  { %v9201_v37 = vpop.eup %7085  ;;  %3592 = vmatpush.msrb.mxu0 %v3560_v22  ;;  %6160 = vmatmul.msk.f32.vlgmr.msra.gmra.mxu2 %vm555_vm14, %v7084_v8  ;;  %v4238_v60 = vsel %vm555_vm14, %v9218_v35, -inf }
 0xcb3   :  { %7087 = vpow2.f32 %v3754_v59  ;;  %6135 = vmatmul.msk.f32.gmra.mxu0 %vm555_vm14, %v9201_v37  ;;  %v3221_v40 = vsel %vm555_vm14, %v9201_v37, 0.0 }
 0xcb4   :  { %7089 = vpow2.f32 %v3544_v51  ;;  %3958 = vmatpush.msra.mxu0 %v6814_v38 }
 0xcb6   :  { %v3537_v57 = vpop.xlane.xlu1 %3536  ;;  %v6832_v20 = vpop.permute.xlu2 %6831 }
 0xcb7   :  { %v3542_v30 = vsub.f32 %v9092_v27, %v3537_v57  ;;  %v6833_v63 = vunpack.i.l.bf16 %v6832_v20  ;;  %v6834_v5 = vunpack.i.h.bf16 %v6832_v20 }
 0xcb8   :  { %4236 = vmax.xlane.f32.xlu0 %v4235_v46 }
 0xcb9   :  { %v9213_v53 = vpop.eup %7087  ;;  %v3546_v19 = vmul.f32 1.442695, %v3542_v30  ;;  %3959 = vmatpush.msra.mxu0 %v6833_v63 }
 0xcba   :  { %v7090_v24 = vpop.eup %7089  ;;  %6161 = vmatmul.msk.f32.gmra.mxu2 %vm555_vm14, %v9213_v53 }
 0xcbb   :  { %7091 = vpow2.f32 %v3546_v19  ;;  %6151 = vmatmul.msk.f32.vlgmr.msrb.gmra.mxu0 %vm555_vm14, %v7090_v24 }
 0xcbc   :  { %3960 = vmatpush.msra.mxu0 %v6834_v5 }
 0xcbe   :  { %v3748_v27 = vpop.xlane.xlu1 %3747 }
 0xcbf   :  { %v3751_v7 = vsub.f32 %v9113_v1, %v3748_v27  ;;  %v4063_v1 = vpop.f32.mrf.mxu1 }
 0xcc0   :  { %4239 = vmax.xlane.f32.xlu0 %v4238_v60  ;;  %v9237_v58 = vadd.f32 %v9070_v13, %v4063_v1  ;;  %v3758_v13 = vsel %vm555_vm14, %v7084_v8, 0.0 }
 0xcc1   :  { %v7092_v43 = vpop.eup %7091  ;;  %v3756_v56 = vmul.f32 1.442695, %v3751_v7 }
 0xcc2   :  { %v4072_v26 = vsel %vm555_vm14, %v9237_v58, -inf  ;;  %v3553_v44 = vsel %vm555_vm14, %v7092_v43, 0.0 }
 0xcc3   :  { %7093 = vpow2.f32 %v3756_v56  ;;  %6152 = vmatmul.msk.f32.gmra.mxu0 %vm555_vm14, %v7092_v43 }
 0xcc5   :  { %v9276_v1 = vpop.f32.mrf.mxu2 }
 0xcc6   :  { %v3540_v55 = vpop.xlane.xlu1 %3539 }
 0xcc7   :  { %v3543_v0 = vsub.f32 %v9124_v54, %v3540_v55 }
 0xcc8   :  { %3059 = vadd.xlane.f32.xlu0 %v3058_v42 }
 0xcc9   :  { %v9228_v41 = vpop.eup %7093  ;;  %v3548_v3 = vmul.f32 1.442695, %v3543_v0 }
 0xcca   :  { %6162 = vmatmul.msk.f32.gmra.mxu2 %vm555_vm14, %v9228_v41 }
 0xccb   :  { %7095 = vpow2.f32 %v3548_v3 }
 0xcd0   :  { %3388 = vadd.xlane.f32.xlu0 %v3387_v48 }
 0xcd1   :  { %v7096_v54 = vpop.eup %7095  ;;  %3065 = vadd.xlane.f32.xlu2 %v3064_v62 }
 0xcd2   :  { %6153 = vmatmul.msk.f32.gmra.mxu0 %vm555_vm14, %v7096_v54  ;;  %v3556_v63 = vsel %vm555_vm14, %v7096_v54, 0.0 }
 0xcd6   :  { %4073 = vmax.xlane.f32.xlu1 %v4072_v26 }
 0xcd8   :  { %3219 = vadd.xlane.f32.xlu0 %v3218_v52  ;;  %v9279_v52 = vpop.f32.mrf.mxu2 }
 0xcd9   :  { %3216 = vadd.xlane.f32.xlu2 %v3215_v6 }
 0xcde   :  { %3062 = vadd.xlane.f32.xlu1 %v3061_v50 }
 0xce0   :  { %3759 = vadd.xlane.f32.xlu0 %v3758_v13 }
 0xce6   :  { %3385 = vadd.xlane.f32.xlu1 %v3384_v31 }
 0xce8   :  { %3554 = vadd.xlane.f32.xlu0 %v3553_v44 }
 0xced   :  { %v3899_v36 = vpop.xlane.xlu0 %3898 }
 0xcee   :  { %v3906_v4 = vsub.f32 %v9136_v14, %v3899_v36  ;;  %3391 = vadd.xlane.f32.xlu1 %v3390_v49  ;;  %v3550_v14 = vsel %vm555_vm14, %v7090_v24, 0.0  ;;  %v3099_v49 = vpop.f32.mrf.mxu2 }
 0xcf0   :  { %v3909_v61 = vmul.f32 1.442695, %v3906_v4 }
 0xcf2   :  { %7097 = vpow2.f32 %v3909_v61 }
 0xcf3   :  { %v4068_v39 = vpop.xlane.xlu1 %4067 }
 0xcf4   :  { %v4075_v29 = vsub.f32 %v9141_v2, %v4068_v39 }
 0xcf6   :  { %v4078_v9 = vmul.f32 1.442695, %v4075_v29  ;;  %3222 = vadd.xlane.f32.xlu1 %v3221_v40 }
 0xcf8   :  { %v7098_v25 = vpop.eup %7097  ;;  %7099 = vpow2.f32 %v4078_v9 }
 0xcf9   :  { %6169 = vmatmul.msk.f32.vlgmr.msra.gmra.mxu0 %vm555_vm14, %v7098_v25  ;;  %v3915_v5 = vsel %vm555_vm14, %v7098_v25, 0.0 }
 0xcfb   :  { %v4071_v45 = vpop.xlane.xlu2 %4070 }
 0xcfc   :  { %v4076_v11 = vsub.f32 %v9147_v15, %v4071_v45 }
 0xcfe   :  { %v7100_v8 = vpop.eup %7099  ;;  %v4080_v59 = vmul.f32 1.442695, %v4076_v11  ;;  %v3905_v51 = vpop.xlane.xlu1 %3904  ;;  %3551 = vadd.xlane.f32.xlu1 %v3550_v14 }
 0xcff   :  { %v3908_v2 = vsub.f32 %v9152_v18, %v3905_v51  ;;  %v4084_v22 = vsel %vm555_vm14, %v7100_v8, 0.0 }
 0xd00   :  { %7101 = vpow2.f32 %v4080_v59  ;;  %4085 = vadd.xlane.f32.xlu0 %v4084_v22  ;;  %v6837_v37 = vpop.permute.xlu0 %6836 }
 0xd01   :  { %v3913_v38 = vmul.f32 1.442695, %v3908_v2  ;;  %v6838_v57 = vunpack.i.l.bf16 %v6837_v37  ;;  %v6839_v20 = vunpack.i.h.bf16 %v6837_v37 }
 0xd03   :  { %v3902_v30 = vpop.xlane.xlu2 %3901  ;;  %4125 = vmatpush.msrb.mxu2 %v6838_v57  ;;  %7103 = vpow2.f32 %v3913_v38 }
 0xd04   :  { %v3907_v15 = vsub.f32 %v9159_v32, %v3902_v30 }
 0xd05   :  { %4126 = vmatpush.msrb.mxu2 %v6839_v20 }
 0xd06   :  { %v7102_v46 = vpop.eup %7101  ;;  %v3911_v21 = vmul.f32 1.442695, %v3907_v15  ;;  %v4234_v19 = vpop.xlane.xlu1 %4233  ;;  %3557 = vadd.xlane.f32.xlu1 %v3556_v63  ;;  %6178 = vmatmul.msk.f32.vlgmr.msrb.gmra.mxu2 %vm555_vm14, %v7100_v8 }
 0xd07   :  { %v4241_v18 = vsub.f32 %v9168_v16, %v4234_v19  ;;  %v4087_v24 = vsel %vm555_vm14, %v7102_v46, 0.0 }
 0xd08   :  { %7105 = vpow2.f32 %v3911_v21  ;;  %4088 = vadd.xlane.f32.xlu2 %v4087_v24  ;;  %3916 = vadd.xlane.f32.xlu0 %v3915_v5 }
 0xd09   :  { %v4244_v27 = vmul.f32 1.442695, %v4241_v18  ;;  %v7104_v32 = vpop.eup %7103  ;;  %v9296_v14 = vpop.f32.mrf.mxu0 }
 0xd0a   :  { %v3921_v7 = vsel %vm555_vm14, %v7104_v32, 0.0 }
 0xd0b   :  { %7107 = vpow2.f32 %v4244_v27  ;;  %v4260_v3 = vpop.permute.xlu2 %4259 }
 0xd0e   :  { %v7106_v60 = vpop.eup %7105  ;;  %3922 = vadd.xlane.f32.xlu1 %v3921_v7  ;;  %6179 = vmatmul.msk.f32.gmra.mxu2 %vm555_vm14, %v7102_v46 }
 0xd0f   :  { %6170 = vmatmul.msk.f32.gmra.mxu0 %vm555_vm14, %v7106_v60  ;;  %v3918_v16 = vsel %vm555_vm14, %v7106_v60, 0.0 }
 0xd10   :  { %3919 = vadd.xlane.f32.xlu0 %v3918_v16 }
 0xd11   :  { %v7108_v43 = vpop.eup %7107 }
 0xd12   :  { %v4250_v56 = vsel %vm555_vm14, %v7108_v43, 0.0 }
 0xd13   :  { %4251 = vadd.xlane.f32.xlu2 %v4250_v56 }
 0xd17   :  { %6171 = vmatmul.msk.f32.gmra.mxu0 %vm555_vm14, %v7104_v32 }
 0xd1d   :  { %v9290_v61 = vpop.f32.mrf.mxu2 }
 0xd1e   :  { %v6842_v55 = vpop.permute.xlu1 %6841 }
 0xd1f   :  { %v6843_v0 = vunpack.i.l.bf16 %v6842_v55  ;;  %v6844_v42 = vunpack.i.h.bf16 %v6842_v55 }
 0xd21   :  { %4290 = vmatpush.msrb.mxu0 %v6843_v0 }
 0xd23   :  { %4291 = vmatpush.msrb.mxu0 %v6844_v42 }
 0xd25   :  { %4292 = vmatpush.msrb.mxu0 %v4260_v3  ;;  %v9301_v2 = vpop.f32.mrf.mxu2 }
 0xd26   :  { %6187 = vmatmul.msk.f32.vlgmr.msrb.gmra.mxu0 %vm555_vm14, %v7108_v43 }
 0xd28   :  { %v3265_v24 = vpop.f32.mrf.mxu0 }
 0xd2b   :  { %v4237_v48 = vpop.xlane.xlu0 %4236 }
 0xd2c   :  { %v4242_v62 = vsub.f32 %v9206_v12, %v4237_v48 }
 0xd2e   :  { %v4246_v54 = vmul.f32 1.442695, %v4242_v62  ;;  %v9319_v62 = vpop.f32.mrf.mxu2 }
 0xd30   :  { %7109 = vpow2.f32 %v4246_v54 }
 0xd33   :  { %v4240_v26 = vpop.xlane.xlu0 %4239 }
 0xd34   :  { %v4243_v6 = vsub.f32 %v9218_v35, %v4240_v26 }
 0xd36   :  { %v7110_v50 = vpop.eup %7109  ;;  %v4248_v13 = vmul.f32 1.442695, %v4243_v6 }
 0xd37   :  { %6188 = vmatmul.msk.f32.gmra.mxu0 %vm555_vm14, %v7110_v50  ;;  %v4253_v31 = vsel %vm555_vm14, %v7110_v50, 0.0 }
 0xd38   :  { %7111 = vpow2.f32 %v4248_v13  ;;  %4254 = vadd.xlane.f32.xlu1 %v4253_v31 }
 0xd3b   :  { %v9284_v44 = vpop.xlane.xlu0 %3059 }
 0xd3e   :  { %v7112_v36 = vpop.eup %7111 }
 0xd3f   :  { %6189 = vmatmul.msk.f32.gmra.mxu0 %vm555_vm14, %v7112_v36  ;;  %v4256_v12 = vsel %vm555_vm14, %v7112_v36, 0.0 }
 0xd40   :  { %4257 = vadd.xlane.f32.xlu2 %v4256_v12 }
 0xd43   :  { %v9288_v4 = vpop.xlane.xlu0 %3388 }
 0xd44   :  { %v3066_v35 = vpop.xlane.xlu2 %3065 }
 0xd45   :  { %7113 = vrcp.f32 %v3066_v35  ;;  %v3143_v59 = vand.u32 2147483648, %v3066_v35  ;;  %vm3137_vm8 = vweird.f32 %v3066_v35 }
 0xd46   :  { %7115 = vrcp.f32 %v9288_v4 }
 0xd47   :  { %v3144_v30 = vor.u32 1.1754944e-38, %v3143_v59 }
 0xd49   :  { %v4074_v39 = vpop.xlane.xlu1 %4073 }
 0xd4a   :  { %v4077_v29 = vsub.f32 %v9237_v58, %v4074_v39  ;;  %v3141_v58 = vand.u32 2147483647, %v3066_v35 }
 0xd4b   :  { %v7114_v40 = vpop.eup %7113  ;;  %v3220_v9 = vpop.xlane.xlu0 %3219 }
 0xd4c   :  { %v3133_v25 = vmul.f32 %v7114_v40, %v3066_v35  ;;  %v4082_v45 = vmul.f32 1.442695, %v4077_v29  ;;  %v9294_v11 = vpop.xlane.xlu2 %3216  ;;  %7117 = vrcp.f32 %v3220_v9  ;;  %v9299_v51 = vpop.eup %7115  ;;  %vm3138_vm7 = vweird.f32 %v7114_v40 }
 0xd4d   :  { %v3453_v20 = vmul.f32 %v9299_v51, %v9288_v4  ;;  %vm3139_vm9 = vmor %vm3137_vm8, %vm3138_vm7  ;;  %vm3142_vm10 = vcmp.eq.f32.partialorder %v3141_v58, 8.507059e+37  ;;  %vm3291_vm11 = vweird.f32 %v3220_v9  ;;  %v3295_v56 = vand.u32 2147483647, %v3220_v9 }
 0xd4e   :  { %v3134_v8 = vsub.f32 1.0, %v3133_v25  ;;  %7119 = vpow2.f32 %v4082_v45  ;;  %v3297_v55 = vand.u32 2147483648, %v3220_v9  ;;  %v3280_v0 = vand.u32 2147483647, %v9294_v11 }
 0xd4f   :  { %7121 = vrcp.f32 %v9294_v11  ;;  %v3454_v32 = vsub.f32 1.0, %v3453_v20  ;;  %v3282_v42 = vand.u32 2147483648, %v9294_v11  ;;  %vm3276_vm3 = vweird.f32 %v9294_v11 }
 0xd50   :  { %v3135_v22 = vmul.f32 %v7114_v40, %v3134_v8  ;;  %vm3296_vm4 = vcmp.eq.f32.partialorder %v3295_v56, 8.507059e+37  ;;  %vm3281_vm6 = vcmp.eq.f32.partialorder %v3280_v0, 8.507059e+37 }
 0xd51   :  { %v9303_v37 = vpop.xlane.xlu1 %3062  ;;  %v3455_v13 = vmul.f32 %v9299_v51, %v3454_v32  ;;  %v3283_v12 = vor.u32 1.1754944e-38, %v3282_v42 }
 0xd52   :  { %v3136_v38 = vadd.f32 %v7114_v40, %v3135_v22  ;;  %v7118_v57 = vpop.eup %7117  ;;  %v9336_v22 = vpop.f32.mrf.mxu0 }
 0xd53   :  { %v9307_v15 = vpop.xlane.xlu0 %3759  ;;  %v3287_v21 = vmul.f32 %v7118_v57, %v3220_v9  ;;  %vm3292_vm12 = vweird.f32 %v7118_v57 }
 0xd54   :  { %v7120_v63 = vpop.eup %7119  ;;  %v3140_v46 = vsel %vm3139_vm9, %v7114_v40, %v3136_v38  ;;  %7123 = vrcp.f32 %v9307_v15  ;;  %vm9323_vm0 = vmor %vm3291_vm11, %vm3292_vm12  ;;  %v3811_v29 = vand.u32 2147483647, %v9307_v15  ;;  %v3813_v40 = vand.u32 2147483648, %v9307_v15 }
 0xd55   :  { %v7122_v19 = vpop.eup %7121  ;;  %v3145_v18 = vsel %vm3142_vm10, %v3144_v30, %v3140_v46  ;;  %6180 = vmatmul.msk.f32.gmra.mxu2 %vm555_vm14, %v7120_v63  ;;  %v3288_v5 = vsub.f32 1.0, %v3287_v21  ;;  %v4090_v7 = vsel %vm555_vm14, %v7120_v63, 0.0  ;;  %vm3807_vm8 = vweird.f32 %v9307_v15 }
 0xd56   :  { %v3272_v27 = vmul.f32 %v7122_v19, %v9294_v11  ;;  %v9313_v60 = vmul.f32 %v3145_v18, %v3099_v49  ;;  %4091 = vadd.xlane.f32.xlu0 %v4090_v7  ;;  %vm3277_vm15 = vweird.f32 %v7122_v19  ;;  %v3298_v49 = vor.u32 1.1754944e-38, %v3297_v55 }
 0xd57   :  { %v3289_v16 = vmul.f32 %v7118_v57, %v3288_v5  ;;  %vm3278_vm5 = vmor %vm3276_vm3, %vm3277_vm15  ;;  %v3456_v30 = vadd.f32 %v9299_v51, %v3455_v13  ;;  %vm3458_vm9 = vweird.f32 %v9299_v51  ;;  %v3814_v63 = vor.u32 1.1754944e-38, %v3813_v40 }
 0xd58   :  { %v3273_v43 = vsub.f32 1.0, %v3272_v27  ;;  %v3463_v46 = vand.u32 2147483648, %v9288_v4  ;;  %vm3812_vm11 = vcmp.eq.f32.partialorder %v3811_v29, 8.507059e+37  ;;  %vm3457_vm12 = vweird.f32 %v9288_v4 }
 0xd59   :  { %v9317_v3 = vpop.xlane.xlu1 %3385  ;;  %v3290_v54 = vadd.f32 %v7118_v57, %v3289_v16  ;;  %vm9349_vm15 = vmor %vm3457_vm12, %vm3458_vm9 }
 0xd5a   :  { %v7124_v48 = vpop.eup %7123  ;;  %v3274_v26 = vmul.f32 %v7122_v19, %v3273_v43  ;;  %7125 = vrcp.f32 %v9317_v3  ;;  %v3448_v32 = vand.u32 2147483648, %v9317_v3  ;;  %v3446_v16 = vand.u32 2147483647, %v9317_v3 }
 0xd5b   :  { %v3803_v50 = vmul.f32 %v7124_v48, %v9307_v15  ;;  %v3294_v31 = vsel %vm9323_vm0, %v7118_v57, %v3290_v54  ;;  %vm3808_vm7 = vweird.f32 %v7124_v48  ;;  %v9334_v25 = vpop.xlane.xlu0 %3554  ;;  %v3461_v15 = vand.u32 2147483647, %v9288_v4 }
 0xd5c   :  { %v3275_v36 = vadd.f32 %v7122_v19, %v3274_v26  ;;  %v3299_v8 = vsel %vm3296_vm4, %v3298_v49, %v3294_v31  ;;  %vm3809_vm10 = vmor %vm3807_vm8, %vm3808_vm7  ;;  %7127 = vrcp.f32 %v9334_v25  ;;  %v3460_v4 = vsel %vm9349_vm15, %v9299_v51, %v3456_v30  ;;  %v9365_v26 = vpop.f32.mrf.mxu0 }
 0xd5d   :  { %v3804_v35 = vsub.f32 1.0, %v3803_v50  ;;  %v3300_v58 = vmul.f32 %v3299_v8, %v3265_v24  ;;  %v3464_v43 = vor.u32 1.1754944e-38, %v3463_v46  ;;  %vm3442_vm3 = vweird.f32 %v9317_v3 }
 0xd5e   :  { %v3279_v39 = vsel %vm3278_vm5, %v7122_v19, %v3275_v36  ;;  %v3793_v19 = vpop.f32.mrf.mxu2  ;;  %vm3462_vm4 = vcmp.eq.f32.partialorder %v3461_v15, 8.507059e+37  ;;  %v3449_v0 = vor.u32 1.1754944e-38, %v3448_v32  ;;  %v3629_v8 = vand.u32 2147483648, %v9334_v25 }
 0xd5f   :  { %v3805_v9 = vmul.f32 %v7124_v48, %v3804_v35  ;;  %v3284_v45 = vsel %vm3281_vm6, %v3283_v12, %v3279_v39  ;;  %v3465_v54 = vsel %vm3462_vm4, %v3464_v43, %v3460_v4  ;;  %vm3447_vm6 = vcmp.eq.f32.partialorder %v3446_v16, 8.507059e+37 }
 0xd60   :  { %v7126_v59 = vpop.eup %7125  ;;  %v3285_v11 = vmul.f32 %v3284_v45, %v9296_v14  ;;  %vm3623_vm8 = vweird.f32 %v9334_v25 }
 0xd61   :  { %v3806_v38 = vadd.f32 %v7124_v48, %v3805_v9  ;;  %v3438_v57 = vmul.f32 %v7126_v59, %v9317_v3  ;;  %v9341_v20 = vpop.xlane.xlu1 %3391  ;;  %vm3443_vm0 = vweird.f32 %v7126_v59  ;;  %v3466_v3 = vmul.f32 %v3465_v54, %v9301_v2 }
 0xd62   :  { %v6850_v24 = vpack.i.bf16 %v3300_v58, %v3285_v11  ;;  %v7128_v55 = vpop.eup %7127  ;;  %vm3444_vm5 = vmor %vm3442_vm3, %vm3443_vm0  ;;  %7129 = vrcp.f32 %v9341_v20  ;;  %vm3472_vm0 = vweird.f32 %v9341_v20 }
 0xd63   :  { %v3810_v21 = vsel %vm3809_vm10, %v7124_v48, %v3806_v38  ;;  %v3439_v14 = vsub.f32 1.0, %v3438_v57  ;;  %v3619_v6 = vmul.f32 %v7128_v55, %v9334_v25  ;;  %vm3624_vm7 = vweird.f32 %v7128_v55 }
 0xd64   :  { %v3815_v18 = vsel %vm3812_vm11, %v3814_v63, %v3810_v21  ;;  %6851 = vrot.lane.b32.xlu1 %v6850_v24, %s10075_s26  ;;  %v3597_v29 = vpop.f32.mrf.mxu0  ;;  %vm9390_vm9 = vmor %vm3623_vm8, %vm3624_vm7  ;;  %v3478_v24 = vand.u32 2147483648, %v9341_v20 }
 0xd65   :  { %v3440_v27 = vmul.f32 %v7126_v59, %v3439_v14  ;;  %v9354_v7 = vmul.f32 %v3815_v18, %v3793_v19  ;;  %v3620_v36 = vsub.f32 1.0, %v3619_v6  ;;  %v3630_v18 = vor.u32 1.1754944e-38, %v3629_v8 }
 0xd66   :  { %v3479_v54 = vor.u32 1.1754944e-38, %v3478_v24 }
 0xd67   :  { %v3441_v56 = vadd.f32 %v7126_v59, %v3440_v27  ;;  %v3621_v35 = vmul.f32 %v7128_v55, %v3620_v36  ;;  %v3476_v36 = vand.u32 2147483647, %v9341_v20 }
 0xd68   :  { %v9370_v31 = vpop.eup %7129 }
 0xd69   :  { %v9363_v42 = vpop.xlane.xlu1 %3222  ;;  %v3445_v48 = vsel %vm3444_vm5, %v7126_v59, %v3441_v56  ;;  %v3468_v12 = vmul.f32 %v9370_v31, %v9341_v20  ;;  %v3622_v9 = vadd.f32 %v7128_v55, %v3621_v35  ;;  %v9383_v59 = vpop.f32.mrf.mxu2  ;;  %vm3473_vm12 = vweird.f32 %v9370_v31 }
 0xd6a   :  { %v3450_v51 = vsel %vm3447_vm6, %v3449_v0, %v3445_v48  ;;  %7131 = vrcp.f32 %v9363_v42  ;;  %vm9426_vm5 = vmor %vm3472_vm0, %vm3473_vm12  ;;  %vm3306_vm8 = vweird.f32 %v9363_v42  ;;  %v3310_v30 = vand.u32 2147483647, %v9363_v42 }
 0xd6b   :  { %v3451_v50 = vmul.f32 %v3450_v51, %v9290_v61  ;;  %v3627_v61 = vand.u32 2147483647, %v9334_v25  ;;  %v3469_v2 = vsub.f32 1.0, %v3468_v12  ;;  %v3626_v46 = vsel %vm9390_vm9, %v7128_v55, %v3622_v9 }
 0xd6c   :  { %v9407_v15 = vpop.f32.mrf.mxu0  ;;  %vm3477_vm9 = vcmp.eq.f32.partialorder %v3476_v36, 8.507059e+37 }
 0xd6d   :  { %v6845_v13 = vpack.i.bf16 %v3466_v3, %v3451_v50  ;;  %vm9394_vm10 = vcmp.eq.f32.partialorder %v3627_v61, 8.507059e+37  ;;  %v3470_v63 = vmul.f32 %v9370_v31, %v3469_v2 }
 0xd6e   :  { %v3631_v43 = vsel %vm9394_vm10, %v3630_v18, %v3626_v46 }
 0xd6f   :  { %6846 = vrot.lane.b32.xlu2 %v6845_v13, %s10074_s11  ;;  %v3471_v56 = vadd.f32 %v9370_v31, %v3470_v63  ;;  %v3632_v13 = vmul.f32 %v3631_v43, %v3597_v29 }
 0xd70   :  { %v9380_v40 = vpop.eup %7131 }
 0xd71   :  { %v3552_v49 = vpop.xlane.xlu1 %3551  ;;  %v3302_v25 = vmul.f32 %v9380_v40, %v9363_v42  ;;  %v9419_v51 = vpop.f32.mrf.mxu2  ;;  %v3475_v29 = vsel %vm9426_vm5, %v9370_v31, %v3471_v56 }
 0xd72   :  { %7133 = vrcp.f32 %v3552_v49  ;;  %v3612_v5 = vand.u32 2147483647, %v3552_v49  ;;  %v3614_v27 = vand.u32 2147483648, %v3552_v49  ;;  %vm3608_vm15 = vweird.f32 %v3552_v49 }
 0xd73   :  { %v9376_v39 = vpop.xlane.xlu0 %4085  ;;  %v3303_v55 = vsub.f32 1.0, %v3302_v25 }
 0xd74   :  { %7135 = vrcp.f32 %v9376_v39  ;;  %v3615_v6 = vor.u32 1.1754944e-38, %v3614_v27  ;;  %vm3613_vm4 = vcmp.eq.f32.partialorder %v3612_v5, 8.507059e+37  ;;  %vm4142_vm7 = vweird.f32 %v9376_v39 }
 0xd75   :  { %v3304_v2 = vmul.f32 %v9380_v40, %v3303_v55  ;;  %v4146_v57 = vand.u32 2147483647, %v9376_v39  ;;  %v3312_v27 = vand.u32 2147483648, %v9363_v42 }
 0xd76   :  { %v9441_v8 = vpop.f32.mrf.mxu0 }
 0xd77   :  { %v3305_v25 = vadd.f32 %v9380_v40, %v3304_v2  ;;  %v3313_v2 = vor.u32 1.1754944e-38, %v3312_v27 }
 0xd78   :  { %v7134_v45 = vpop.eup %7133 }
 0xd79   :  { %v3604_v11 = vmul.f32 %v7134_v45, %v3552_v49  ;;  %v9386_v58 = vpop.xlane.xlu1 %3557  ;;  %vm3609_vm11 = vweird.f32 %v7134_v45 }
 0xd7a   :  { %v9388_v38 = vpop.eup %7135  ;;  %vm3610_vm3 = vmor %vm3608_vm15, %vm3609_vm11  ;;  %vm3307_vm11 = vweird.f32 %v9380_v40  ;;  %vm4147_vm15 = vcmp.eq.f32.partialorder %v4146_v57, 8.507059e+37 }
 0xd7b   :  { %v3605_v21 = vsub.f32 1.0, %v3604_v11  ;;  %v4138_v14 = vmul.f32 %v9388_v38, %v9376_v39  ;;  %v9405_v19 = vpop.xlane.xlu0 %3916  ;;  %v9412_v4 = vpop.xlane.xlu2 %4088  ;;  %vm4143_vm6 = vweird.f32 %v9388_v38  ;;  %vm9476_vm0 = vmor %vm3306_vm8, %vm3307_vm11 }
 0xd7c   :  { %7137 = vrcp.f32 %v9405_v19  ;;  %vm9451_vm10 = vmor %vm4142_vm7, %vm4143_vm6  ;;  %v3982_v5 = vand.u32 2147483648, %v9405_v19  ;;  %v3309_v36 = vsel %vm9476_vm0, %v9380_v40, %v3305_v25  ;;  %vm3311_vm6 = vcmp.eq.f32.partialorder %v3310_v30, 8.507059e+37 }
 0xd7d   :  { %v3606_v32 = vmul.f32 %v7134_v45, %v3605_v21  ;;  %v4139_v16 = vsub.f32 1.0, %v4138_v14  ;;  %v3480_v21 = vsel %vm3477_vm9, %v3479_v54, %v3475_v29  ;;  %v3761_v40 = vsel %vm555_vm14, %v9213_v53, 0.0 }
 0xd7e   :  { %v3983_v49 = vor.u32 1.1754944e-38, %v3982_v5 }
 0xd7f   :  { %v3607_v0 = vadd.f32 %v7134_v45, %v3606_v32  ;;  %v4140_v48 = vmul.f32 %v9388_v38, %v4139_v16  ;;  %v3980_v32 = vand.u32 2147483647, %v9405_v19 }
 0xd81   :  { %v3611_v50 = vsel %vm3610_vm3, %v7134_v45, %v3607_v0  ;;  %v9421_v3 = vpop.xlane.xlu1 %3922  ;;  %v4141_v35 = vadd.f32 %v9388_v38, %v4140_v48  ;;  %v4148_v45 = vand.u32 2147483648, %v9376_v39  ;;  %vm3976_vm3 = vweird.f32 %v9405_v19 }
 0xd82   :  { %7139 = vrcp.f32 %v9421_v3  ;;  %v3616_v12 = vsel %vm3613_vm4, %v3615_v6, %v3611_v50  ;;  %v7138_v61 = vpop.eup %7137  ;;  %v3481_v48 = vmul.f32 %v3480_v21, %v9319_v62  ;;  %vm3981_vm5 = vcmp.eq.f32.partialorder %v3980_v32, 8.507059e+37 }
 0xd83   :  { %v9434_v9 = vpop.xlane.xlu0 %3919  ;;  %v3617_v20 = vmul.f32 %v3616_v12, %v9365_v26  ;;  %v3972_v11 = vmul.f32 %v7138_v61, %v9405_v19  ;;  %v4145_v39 = vsel %vm9451_vm10, %v9388_v38, %v4141_v35  ;;  %v4149_v14 = vor.u32 1.1754944e-38, %v4148_v45 }
 0xd84   :  { %7141 = vrcp.f32 %v9434_v9  ;;  %vm3977_vm12 = vweird.f32 %v7138_v61  ;;  %vm3991_vm8 = vweird.f32 %v9434_v9  ;;  %v3995_v31 = vand.u32 2147483647, %v9434_v9 }
 0xd85   :  { %7143 = vrcp.f32 %v9386_v58  ;;  %v6855_v26 = vpack.i.bf16 %v3632_v13, %v3617_v20  ;;  %v3973_v63 = vsub.f32 1.0, %v3972_v11  ;;  %v4150_v43 = vsel %vm4147_vm15, %v4149_v14, %v4145_v39  ;;  %vm9485_vm4 = vmor %vm3976_vm3, %vm3977_vm12 }
 0xd86   :  { %v9457_v46 = vpop.xlane.xlu2 %4251  ;;  %v3997_v30 = vand.u32 2147483648, %v9434_v9  ;;  %v4012_v21 = vand.u32 2147483648, %v9421_v3  ;;  %vm4006_vm11 = vweird.f32 %v9421_v3  ;;  %vm3996_vm15 = vcmp.eq.f32.partialorder %v3995_v31, 8.507059e+37 }
 0xd87   :  { %7145 = vrcp.f32 %v9457_v46  ;;  %6856 = vrot.lane.b32.xlu0 %v6855_v26, %s7276_s3  ;;  %v3974_v24 = vmul.f32 %v7138_v61, %v3973_v63  ;;  %v3642_v50 = vand.u32 2147483647, %v9386_v58 }
 0xd88   :  { %v9465_v18 = vpop.eup %7139  ;;  %v4013_v55 = vor.u32 1.1754944e-38, %v4012_v21  ;;  %7147 = vrcp.f32 %v9412_v4 }
 0xd89   :  { %v4002_v38 = vmul.f32 %v9465_v18, %v9421_v3  ;;  %v4128_v16 = vpop.f32.mrf.mxu2  ;;  %v3975_v0 = vadd.f32 %v7138_v61, %v3974_v24  ;;  %vm4007_vm9 = vweird.f32 %v9465_v18  ;;  %v4010_v24 = vand.u32 2147483647, %v9421_v3 }
 0xd8a   :  { %v7142_v56 = vpop.eup %7141  ;;  %v4151_v54 = vmul.f32 %v4150_v43, %v4128_v16  ;;  %vm4008_vm12 = vmor %vm4006_vm11, %vm4007_vm9  ;;  %v3764_v3 = vsel %vm555_vm14, %v9228_v41, 0.0  ;;  %vm4157_vm11 = vweird.f32 %v9412_v4 }
 0xd8b   :  { %v9482_v6 = vpop.eup %7143  ;;  %v4003_v13 = vsub.f32 1.0, %v4002_v38  ;;  %v3987_v42 = vmul.f32 %v7142_v56, %v9434_v9  ;;  %v3979_v19 = vsel %vm9485_vm4, %v7138_v61, %v3975_v0  ;;  %vm3992_vm7 = vweird.f32 %v7142_v56 }
 0xd8c   :  { %v6860_v62 = vpack.i.bf16 %v4151_v54, %v3481_v48  ;;  %v3965_v12 = vpop.f32.mrf.mxu0  ;;  %v3634_v45 = vmul.f32 %v9482_v6, %v9386_v58  ;;  %v3984_v11 = vsel %vm3981_vm5, %v3983_v49, %v3979_v19  ;;  %v3314_v61 = vsel %vm3311_vm6, %v3313_v2, %v3309_v36  ;;  %vm3993_vm10 = vmor %vm3991_vm8, %vm3992_vm7 }
 0xd8d   :  { %v9495_v35 = vpop.eup %7145  ;;  %v3988_v20 = vsub.f32 1.0, %v3987_v42  ;;  %v4004_v29 = vmul.f32 %v9465_v18, %v4003_v13  ;;  %v3985_v53 = vmul.f32 %v3984_v11, %v9441_v8  ;;  %v3315_v5 = vmul.f32 %v3314_v61, %v9336_v22  ;;  %v6645_v11 = vld [vmem:[%s10065_s2 + $0x78] sm:$0xff] }
 0xd8e   :  { %v4304_v26 = vmul.f32 %v9495_v35, %v9457_v46  ;;  %3762 = vadd.xlane.f32.xlu1 %v3761_v40  ;;  %v3635_v25 = vsub.f32 1.0, %v3634_v45  ;;  %v3998_v9 = vor.u32 1.1754944e-38, %v3997_v30  ;;  %vm4011_vm0 = vcmp.eq.f32.partialorder %v4010_v24, 8.507059e+37  ;;  %4466 = vmatpush.bf16.msra.mxu1 %v6645_v11 }
 0xd8f   :  { %v3989_v57 = vmul.f32 %v7142_v56, %v3988_v20  ;;  %6861 = vrot.lane.b32.xlu0 %v6860_v62, %s10074_s11  ;;  %v4005_v39 = vadd.f32 %v9465_v18, %v4004_v29  ;;  %v6865_v38 = vpack.i.bf16 %v3985_v53, %v3315_v5  ;;  %vm3639_vm3 = vweird.f32 %v9482_v6 }
 0xd90   :  { %v4305_v27 = vsub.f32 1.0, %v4304_v26  ;;  %v3636_v8 = vmul.f32 %v9482_v6, %v3635_v25  ;;  %v3644_v54 = vand.u32 2147483648, %v9386_v58  ;;  %vm3638_vm4 = vweird.f32 %v9386_v58  ;;  %v6643_v26 = vld [vmem:[%s10065_s2 + $0x68] sm:$0xff] }
 0xd91   :  { %v3990_v63 = vadd.f32 %v7142_v56, %v3989_v57  ;;  %v4009_v32 = vsel %vm4008_vm12, %v9465_v18, %v4005_v39  ;;  %vm4309_vm5 = vweird.f32 %v9495_v35  ;;  %vm3640_vm14 = vmor %vm3638_vm4, %vm3639_vm3  ;;  %v4314_v42 = vand.u32 2147483648, %v9457_v46 }
 0xd92   :  { %v4306_v22 = vmul.f32 %v9495_v35, %v4305_v27  ;;  %v3637_v18 = vadd.f32 %v9482_v6, %v3636_v8  ;;  %vm4308_vm6 = vweird.f32 %v9457_v46  ;;  %v4312_v19 = vand.u32 2147483647, %v9457_v46 }
 0xd93   :  { %v3994_v14 = vsel %vm3993_vm10, %v7142_v56, %v3990_v63  ;;  %v4014_v56 = vsel %vm4011_vm0, %v4013_v55, %v4009_v32  ;;  %v3645_v49 = vor.u32 1.1754944e-38, %v3644_v54  ;;  %vm4310_vm7 = vmor %vm4308_vm6, %vm4309_vm5  ;;  %vm3643_vm8 = vcmp.eq.f32.partialorder %v3642_v50, 8.507059e+37  ;;  %v6642_v63 = vld [vmem:[%s10065_s2 + $0x60] sm:$0xff]  ;;  %v6639_v50 = vld [vmem:[%s10065_s2 + $0x48] sm:$0xff] }
 0xd94   :  { %v3999_v16 = vsel %vm3996_vm15, %v3998_v9, %v3994_v14  ;;  %v3968_v43 = vpop.f32.mrf.mxu0  ;;  %v4307_v13 = vadd.f32 %v9495_v35, %v4306_v22  ;;  %v3641_v36 = vsel %vm3640_vm14, %v9482_v6, %v3637_v18  ;;  %vm4313_vm9 = vcmp.eq.f32.partialorder %v4312_v19, 8.507059e+37  ;;  %v6641_v14 = vld [vmem:[%s10065_s2 + $0x58] sm:$0xff] }
 0xd95   :  { %v4000_v0 = vmul.f32 %v3999_v16, %v3965_v12  ;;  %v4015_v48 = vmul.f32 %v4014_v56, %v3968_v43  ;;  %v3646_v62 = vsel %vm3643_vm8, %v3645_v49, %v3641_v36  ;;  %v4315_v12 = vor.u32 1.1754944e-38, %v4314_v42  ;;  %v6640_v16 = vld [vmem:[%s10065_s2 + $0x50] sm:$0xff]  ;;  %v4131_v43 = vpop.f32.mrf.mxu2 }
 0xd96   :  { %v4311_v58 = vsel %vm4310_vm7, %v9495_v35, %v4307_v13  ;;  %v3647_v29 = vmul.f32 %v3646_v62, %v9407_v15  ;;  %v7148_v35 = vpop.eup %7147  ;;  %v6644_v15 = vld [vmem:[%s10065_s2 + $0x70] sm:$0xff]  ;;  %v4161_v9 = vand.u32 2147483647, %v9412_v4  ;;  %v4163_v32 = vand.u32 2147483648, %v9412_v4 }
 0xd97   :  { %6866 = vrot.lane.b32.xlu0 %v6865_v38, %s10075_s26  ;;  %v6870_v41 = vpack.i.bf16 %v4015_v48, %v4000_v0  ;;  %v4316_v20 = vsel %vm4313_vm9, %v4315_v12, %v4311_v58  ;;  %v4153_v57 = vmul.f32 %v7148_v35, %v9412_v4  ;;  %4467 = vmatpush.bf16.msra.mxu1 %v6644_v15  ;;  %vm4158_vm10 = vweird.f32 %v7148_v35 }
 0xd98   :  { %3765 = vadd.xlane.f32.xlu2 %v3764_v3  ;;  %vm9573_vm12 = vmor %vm4157_vm11, %vm4158_vm10  ;;  %vm4162_vm15 = vcmp.eq.f32.partialorder %v4161_v9, 8.507059e+37  ;;  %v4164_v22 = vor.u32 1.1754944e-38, %v4163_v32  ;;  %v3128_v55 = vand.u32 2147483648, %v9303_v37 }
 0xd99   :  { %v4154_v61 = vsub.f32 1.0, %v4153_v57 }
 0xd9b   :  { %4468 = vmatpush.bf16.msra.mxu1 %v6643_v26  ;;  %v4155_v53 = vmul.f32 %v7148_v35, %v4154_v61  ;;  %v6638_v61 = vld [vmem:[%s10065_s2 + $0x40] sm:$0xff] }
 0xd9d   :  { %v4156_v24 = vadd.f32 %v7148_v35, %v4155_v53 }
 0xd9f   :  { %6871 = vrot.lane.b32.xlu0 %v6870_v41, %s10075_s26  ;;  %4469 = vmatpush.bf16.msra.mxu1 %v6642_v63  ;;  %v4160_v56 = vsel %vm9573_vm12, %v7148_v35, %v4156_v24 }
 0xda0   :  { %v4165_v13 = vsel %vm4162_vm15, %v4164_v22, %v4160_v56  ;;  %v3111_v56 = vand.u32 2147483647, %v9284_v44 }
 0xda3   :  { %v4294_v2 = vpop.f32.mrf.mxu0  ;;  %4470 = vmatpush.bf16.msra.mxu1 %v6641_v14 }
 0xda4   :  { %v4317_v45 = vmul.f32 %v4316_v20, %v4294_v2 }
 0xda6   :  { %v6875_v6 = vpack.i.bf16 %v4317_v45, %v3647_v29  ;;  %v4166_v29 = vmul.f32 %v4165_v13, %v4131_v43  ;;  %v3113_v43 = vand.u32 2147483648, %v9284_v44 }
 0xda7   :  { %4471 = vmatpush.bf16.msra.mxu1 %v6640_v16 }
 0xda8   :  { %6876 = vrot.lane.b32.xlu0 %v6875_v6, %s7276_s3 }
 0xdab   :  { %v9542_v40 = vpop.xlane.xlu1 %4254  ;;  %4472 = vmatpush.bf16.msra.mxu1 %v6639_v50 }
 0xdac   :  { %v4329_v45 = vand.u32 2147483648, %v9542_v40  ;;  %vm4323_vm9 = vweird.f32 %v9542_v40  ;;  %v4327_v15 = vand.u32 2147483647, %v9542_v40 }
 0xdae   :  { %vm4328_vm12 = vcmp.eq.f32.partialorder %v4327_v15, 8.507059e+37 }
 0xdaf   :  { %4473 = vmatpush.bf16.msra.mxu1 %v6638_v61 }
 0xdb3   :  { %v9537_v46 = vpop.xlane.xlu2 %4257 }
 0xdb4   :  { %7149 = vrcp.f32 %v9537_v46  ;;  %v4297_v41 = vpop.f32.mrf.mxu0  ;;  %vm4338_vm14 = vweird.f32 %v9537_v46  ;;  %v4344_v19 = vand.u32 2147483648, %v9537_v46  ;;  %v4342_v12 = vand.u32 2147483647, %v9537_v46 }
 0xdb5   :  { %7151 = vrcp.f32 %v9542_v40 }
 0xdb6   :  { %v4345_v26 = vor.u32 1.1754944e-38, %v4344_v19  ;;  %vm4343_vm11 = vcmp.eq.f32.partialorder %v4342_v12, 8.507059e+37 }
 0xdba   :  { %v9553_v31 = vpop.eup %7149 }
 0xdbb   :  { %v9558_v39 = vpop.eup %7151  ;;  %v4334_v25 = vmul.f32 %v9553_v31, %v9537_v46  ;;  %vm4339_vm3 = vweird.f32 %v9553_v31 }
 0xdbc   :  { %v4319_v21 = vmul.f32 %v9558_v39, %v9542_v40  ;;  %vm4324_vm5 = vweird.f32 %v9558_v39  ;;  %vm9596_vm8 = vmor %vm4338_vm14, %vm4339_vm3  ;;  %v4300_v14 = vpop.f32.mrf.mxu0  ;;  %vm3107_vm3 = vweird.f32 %v9284_v44 }
 0xdbd   :  { %v4335_v5 = vsub.f32 1.0, %v4334_v25  ;;  %vm4325_vm10 = vmor %vm4323_vm9, %vm4324_vm5  ;;  %v4330_v25 = vor.u32 1.1754944e-38, %v4329_v45  ;;  %vm3122_vm5 = vweird.f32 %v9303_v37 }
 0xdbe   :  { %v4320_v38 = vsub.f32 1.0, %v4319_v21 }
 0xdbf   :  { %v4336_v3 = vmul.f32 %v9553_v31, %v4335_v5 }
 0xdc0   :  { %v4321_v48 = vmul.f32 %v9558_v39, %v4320_v38 }
 0xdc1   :  { %v4337_v42 = vadd.f32 %v9553_v31, %v4336_v3  ;;  %v3126_v3 = vand.u32 2147483647, %v9303_v37 }
 0xdc2   :  { %v4322_v62 = vadd.f32 %v9558_v39, %v4321_v48  ;;  %v3129_v48 = vor.u32 1.1754944e-38, %v3128_v55 }
 0xdc3   :  { %v4341_v46 = vsel %vm9596_vm8, %v9553_v31, %v4337_v42 }
 0xdc4   :  { %v4346_v31 = vsel %vm4343_vm11, %v4345_v26, %v4341_v46 }
 0xdc5   :  { %v4347_v24 = vmul.f32 %v4346_v31, %v4300_v14 }
 0xdc9   :  { %v4092_v30 = vpop.xlane.xlu0 %4091  ;;  %v6847_v42 = vpop.permute.xlu2 %6846 }
 0xdca   :  { %7153 = vrcp.f32 %v4092_v30  ;;  %v4178_v0 = vand.u32 2147483648, %v4092_v30  ;;  %v4176_v54 = vand.u32 2147483647, %v4092_v30  ;;  %vm4172_vm4 = vweird.f32 %v4092_v30 }
 0xdcb   :  { %7155 = vrcp.f32 %v9284_v44 }
 0xdcc   :  { %7157 = vrcp.f32 %v9303_v37  ;;  %v4179_v49 = vor.u32 1.1754944e-38, %v4178_v0  ;;  %vm4177_vm7 = vcmp.eq.f32.partialorder %v4176_v54, 8.507059e+37  ;;  %v3114_v0 = vor.u32 1.1754944e-38, %v3113_v43 }
 0xdd0   :  { %v7154_v27 = vpop.eup %7153 }
 0xdd1   :  { %v4168_v8 = vmul.f32 %v7154_v27, %v4092_v30  ;;  %vm4173_vm0 = vweird.f32 %v7154_v27  ;;  %v7156_v58 = vpop.eup %7155  ;;  %v4326_v30 = vsel %vm4325_vm10, %v9558_v39, %v4322_v62 }
 0xdd2   :  { %vm4174_vm6 = vmor %vm4172_vm4, %vm4173_vm0  ;;  %v7158_v20 = vpop.eup %7157  ;;  %v3103_v40 = vmul.f32 %v7156_v58, %v9284_v44  ;;  %v4331_v21 = vsel %vm4328_vm12, %v4330_v25, %v4326_v30  ;;  %vm3108_vm15 = vweird.f32 %v7156_v58 }
 0xdd3   :  { %v4169_v4 = vsub.f32 1.0, %v4168_v8  ;;  %v3118_v53 = vmul.f32 %v7158_v20, %v9303_v37  ;;  %v4332_v9 = vmul.f32 %v4331_v21, %v4297_v41  ;;  %vm3123_vm0 = vweird.f32 %v7158_v20  ;;  %vm3109_vm4 = vmor %vm3107_vm3, %vm3108_vm15 }
 0xdd4   :  { %v3104_v5 = vsub.f32 1.0, %v3103_v40  ;;  %vm3124_vm14 = vmor %vm3122_vm5, %vm3123_vm0 }
 0xdd5   :  { %v4170_v18 = vmul.f32 %v7154_v27, %v4169_v4  ;;  %v6885_v32 = vpack.i.bf16 %v4347_v24, %v4332_v9 }
 0xdd6   :  { %v3105_v39 = vmul.f32 %v7156_v58, %v3104_v5 }
 0xdd7   :  { %v4171_v36 = vadd.f32 %v7154_v27, %v4170_v18  ;;  %v6852_v18 = vpop.permute.xlu1 %6851 }
 0xdd8   :  { %v4134_v11 = vpop.f32.mrf.mxu2  ;;  %v3106_v8 = vadd.f32 %v7156_v58, %v3105_v39  ;;  %v6854_v13 = vunpack.i.h.bf16 %v6852_v18  ;;  %v6853_v41 = vunpack.i.l.bf16 %v6852_v18 }
 0xdd9   :  { %v4175_v2 = vsel %vm4174_vm6, %v7154_v27, %v4171_v36  ;;  %v3119_v27 = vsub.f32 1.0, %v3118_v53  ;;  %vm3112_vm6 = vcmp.eq.f32.partialorder %v3111_v56, 8.507059e+37 }
 0xdda   :  { %v4180_v35 = vsel %vm4177_vm7, %v4179_v49, %v4175_v2  ;;  %v3110_v4 = vsel %vm3109_vm4, %v7156_v58, %v3106_v8  ;;  %vm3127_vm7 = vcmp.eq.f32.partialorder %v3126_v3, 8.507059e+37  ;;  %v6849_v49 = vunpack.i.h.bf16 %v6847_v42 }
 0xddb   :  { %v4181_v57 = vmul.f32 %v4180_v35, %v4134_v11  ;;  %v3120_v38 = vmul.f32 %v7158_v20, %v3119_v27  ;;  %v3115_v54 = vsel %vm3112_vm6, %v3114_v0, %v3110_v4  ;;  %v6848_v58 = vunpack.i.l.bf16 %v6847_v42 }
 0xddc   :  { %v3116_v36 = vmul.f32 %v3115_v54, %v9276_v1 }
 0xddd   :  { %v6880_v63 = vpack.i.bf16 %v4181_v57, %v4166_v29  ;;  %v3121_v16 = vadd.f32 %v7158_v20, %v3120_v38 }
 0xdde   :  { %v3684_v37 = vsel %vm510_vm13, %v3116_v36, %v6853_v41 }
 0xddf   :  { %6881 = vrot.lane.b32.xlu0 %v6880_v63, %s10074_s11  ;;  %v3125_v22 = vsel %vm3124_vm14, %v7158_v20, %v3121_v16  ;;  %v3687_v20 = vsel %vm1203_vm1, %v3684_v37, %v6848_v58 }
 0xde0   :  { %v3130_v50 = vsel %vm3127_vm7, %v3129_v48, %v3125_v22 }
 0xde1   :  { %v3131_v44 = vmul.f32 %v3130_v50, %v9279_v52 }
 0xde3   :  { %v3685_v19 = vsel %vm510_vm13, %v3131_v44, %v6854_v13 }
 0xde4   :  { %v3688_v29 = vsel %vm1203_vm1, %v3685_v19, %v6849_v49 }
 0xde7   :  { %6886 = vrot.lane.b32.xlu0 %v6885_v32, %s7276_s3 }
 0xdf9   :  { %v6857_v62 = vpop.permute.xlu0 %6856 }
 0xdfa   :  { %v6859_v12 = vunpack.i.h.bf16 %v6857_v62  ;;  %v6858_v2 = vunpack.i.l.bf16 %v6857_v62 }
 0xdfc   :  { %v3691_v45 = vsel %vm1207_vm2, %v3688_v29, %v6859_v12  ;;  %v3690_v6 = vsel %vm1207_vm2, %v3687_v20, %v6858_v2 }
 0xdfd   :  { %v4393_v1 = vpack.c.bf16 %v3691_v45, %v3690_v6 }
 0xdff   :  { %4474 = vmatmul.bf16.vlgmr.msra.gmra.mxu1 %v4393_v1  ;;  %v6900_v1 = vld [vmem:[%s10072_s15 + $0x1] ss:$0 sm:$0xff] }
 0xe01   :  { %v6862_v52 = vpop.permute.xlu0 %6861  ;;  %v3763_v5 = vpop.xlane.xlu1 %3762 }
 0xe02   :  { %v6864_v26 = vunpack.i.h.bf16 %v6862_v52  ;;  %v6863_v30 = vunpack.i.l.bf16 %v6862_v52  ;;  %7159 = vrcp.f32 %v3763_v5  ;;  %vm3822_vm10 = vweird.f32 %v3763_v5 }
 0xe03   :  { %v3828_v56 = vand.u32 2147483648, %v3763_v5  ;;  %v3826_v4 = vand.u32 2147483647, %v3763_v5 }
 0xe05   :  { %v3829_v18 = vor.u32 1.1754944e-38, %v3828_v56  ;;  %vm3827_vm0 = vcmp.eq.f32.partialorder %v3826_v4, 8.507059e+37 }
 0xe09   :  { %v6867_v11 = vpop.permute.xlu0 %6866 }
 0xe0a   :  { %v6869_v15 = vunpack.i.h.bf16 %v6867_v11  ;;  %v6868_v46 = vunpack.i.l.bf16 %v6867_v11 }
 0xe0c   :  { %v4384_v57 = vsel %vm510_vm13, %v9354_v7, %v6869_v15  ;;  %v3686_v61 = vsel %vm510_vm13, %v9313_v60, %v6868_v46  ;;  %v3766_v7 = vpop.xlane.xlu2 %3765  ;;  %v7160_v60 = vpop.eup %7159 }
 0xe0d   :  { %v3689_v25 = vsel %vm1203_vm1, %v3686_v61, %v6863_v30  ;;  %v4387_v31 = vsel %vm1203_vm1, %v4384_v57, %v6864_v26  ;;  %7161 = vrcp.f32 %v3766_v7  ;;  %v3818_v9 = vmul.f32 %v7160_v60, %v3763_v5 }
 0xe0e   :  { %vm3823_vm8 = vweird.f32 %v7160_v60  ;;  %v3843_v3 = vand.u32 2147483648, %v3766_v7  ;;  %vm3837_vm12 = vweird.f32 %v3766_v7  ;;  %v3841_v22 = vand.u32 2147483647, %v3766_v7 }
 0xe0f   :  { %v3819_v39 = vsub.f32 1.0, %v3818_v9  ;;  %vm3824_vm11 = vmor %vm3822_vm10, %vm3823_vm8 }
 0xe10   :  { %v3844_v54 = vor.u32 1.1754944e-38, %v3843_v3  ;;  %vm3842_vm3 = vcmp.eq.f32.partialorder %v3841_v22, 8.507059e+37 }
 0xe11   :  { %v6872_v35 = vpop.permute.xlu0 %6871  ;;  %v3820_v8 = vmul.f32 %v7160_v60, %v3819_v39 }
 0xe12   :  { %v6873_v44 = vunpack.i.l.bf16 %v6872_v35  ;;  %v6874_v49 = vunpack.i.h.bf16 %v6872_v35 }
 0xe13   :  { %v7162_v27 = vpop.eup %7161  ;;  %v3821_v43 = vadd.f32 %v7160_v60, %v3820_v8 }
 0xe14   :  { %v3833_v32 = vmul.f32 %v7162_v27, %v3766_v7  ;;  %vm3838_vm9 = vweird.f32 %v7162_v27 }
 0xe15   :  { %vm3839_vm15 = vmor %vm3837_vm12, %vm3838_vm9  ;;  %v3825_v0 = vsel %vm3824_vm11, %v7160_v60, %v3821_v43 }
 0xe16   :  { %v3834_v38 = vsub.f32 1.0, %v3833_v32  ;;  %v3830_v13 = vsel %vm3827_vm0, %v3829_v18, %v3825_v0  ;;  %v6316_v18 = vld [vmem:[%s10019_s9 + $0xf0] sm:$0xf] }
 0xe17   :  { %v3831_v42 = vmul.f32 %v3830_v13, %v9383_v59 }
 0xe18   :  { %v3835_v16 = vmul.f32 %v7162_v27, %v3834_v38 }
 0xe19   :  { %v4385_v12 = vsel %vm510_vm13, %v3831_v42, %v6873_v44  ;;  %v6308_v44 = vld [vmem:[%s10019_s9 + $0xe0] sm:$0xf] }
 0xe1a   :  { %v6877_v63 = vpop.permute.xlu0 %6876  ;;  %v3836_v55 = vadd.f32 %v7162_v27, %v3835_v16 }
 0xe1b   :  { %v6879_v40 = vunpack.i.h.bf16 %v6877_v63  ;;  %v6878_v53 = vunpack.i.l.bf16 %v6877_v63 }
 0xe1c   :  { %v3840_v48 = vsel %vm3839_vm15, %v7162_v27, %v3836_v55 }
 0xe1d   :  { %v3692_v21 = vsel %vm1207_vm2, %v3689_v25, %v6878_v53  ;;  %v4390_v14 = vsel %vm1207_vm2, %v4387_v31, %v6879_v40  ;;  %v3845_v41 = vsel %vm3842_vm3, %v3844_v54, %v3840_v48  ;;  %v6661_v54 = vld [vmem:[%s10019_s9 + $0xf4] sm:$0xf0] }
 0xe1e   :  { %v4394_v24 = vpack.c.bf16 %v4390_v14, %v3692_v21  ;;  %v3846_v36 = vmul.f32 %v3845_v41, %v9419_v51  ;;  %v6317_v13 = vor.u32 %v6661_v54, %v6316_v18  ;;  %v6318_v41 = vld [vmem:[%s10019_s9 + $0xf8] sm:$0xf0]  ;;  %v6262_v18 = vld [vmem:[%s10019_s9 + $0x88] sm:$0xf0] }
 0xe20   :  { %4479 = vmatmul.bf16.gmra.mxu1 %v4394_v24  ;;  %v4386_v62 = vsel %vm510_vm13, %v3846_v36, %v6874_v49  ;;  %4745 = vmatpush.bf16.msra.mxu2 %v6317_v13 }
 0xe51   :  { %v6882_v50 = vpop.permute.xlu0 %6881 }
 0xe52   :  { %v6884_v19 = vunpack.i.h.bf16 %v6882_v50  ;;  %v6883_v37 = vunpack.i.l.bf16 %v6882_v50  ;;  %v6660_v50 = vld [vmem:[%s10019_s9 + $0xf4] sm:$0xf] }
 0xe53   :  { %v6321_v36 = vor.u32 %v6660_v50, %v6318_v41 }
 0xe54   :  { %v4388_v29 = vsel %vm1203_vm1, %v4385_v12, %v6883_v37  ;;  %v4389_v45 = vsel %vm1203_vm1, %v4386_v62, %v6884_v19  ;;  %v6659_v19 = vld [vmem:[%s10019_s9 + $0xe4] sm:$0xf0]  ;;  %v6658_v37 = vld [vmem:[%s10019_s9 + $0xe4] sm:$0xf]  ;;  %v6300_v12 = vld [vmem:[%s10019_s9 + $0xd0] sm:$0xf] }
 0xe55   :  { %4769 = vmatpush.bf16.msra.mxu3 %v6321_v36  ;;  %v6309_v49 = vor.u32 %v6659_v19, %v6308_v44 }
 0xe57   :  { %4746 = vmatpush.bf16.msra.mxu2 %v6309_v49  ;;  %v9785_v49 = vld [vmem:[%s10073_s16 + $0x1] ss:$0 sm:$0xff] }
 0xe59   :  { %v6887_v58 = vpop.permute.xlu0 %6886 }
 0xe5a   :  { %v6889_v2 = vunpack.i.h.bf16 %v6887_v58  ;;  %v6888_v20 = vunpack.i.l.bf16 %v6887_v58  ;;  %v6310_v58 = vld [vmem:[%s10019_s9 + $0xe8] sm:$0xf0] }
 0xe5b   :  { %v6313_v62 = vor.u32 %v6658_v37, %v6310_v58 }
 0xe5c   :  { %v4391_v6 = vsel %vm1207_vm2, %v4388_v29, %v6888_v20  ;;  %v4392_v59 = vsel %vm1207_vm2, %v4389_v45, %v6889_v2  ;;  %v6657_v2 = vld [vmem:[%s10019_s9 + $0xd4] sm:$0xf0]  ;;  %v6656_v20 = vld [vmem:[%s10019_s9 + $0xd4] sm:$0xf]  ;;  %v6302_v45 = vld [vmem:[%s10019_s9 + $0xd8] sm:$0xf0] }
 0xe5d   :  { %v4395_v51 = vpack.c.bf16 %v4392_v59, %v4391_v6  ;;  %4770 = vmatpush.bf16.msra.mxu3 %v6313_v62  ;;  %v6301_v29 = vor.u32 %v6657_v2, %v6300_v12  ;;  %v6305_v6 = vor.u32 %v6656_v20, %v6302_v45  ;;  %v6292_v59 = vld [vmem:[%s10019_s9 + $0xc0] sm:$0xf] }
 0xe5e   :  { %v9791_v2 = vld [vmem:[%s10018_s8 + $0x1] ss:$0 sm:$0xff] }
 0xe5f   :  { %4484 = vmatmul.bf16.gmra.mxu1 %v4395_v51  ;;  %4747 = vmatpush.bf16.msra.mxu2 %v6301_v29  ;;  %v6655_v51 = vld [vmem:[%s10019_s9 + $0xc4] sm:$0xf0] }
 0xe61   :  { %4771 = vmatpush.bf16.msra.mxu3 %v6305_v6 }
 0xe7c   :  { %v4475_v52 = vpop.f32.mrf.mxu1 }
 0xe7d   :  { %v4476_v11 = vadd.f32 %v6900_v1, %v4475_v52 }
 0xe7f   :  { %v4490_v35 = vadd.f32 %v4476_v11, %v8843_v47  ;;  %v6293_v11 = vor.u32 %v6655_v51, %v6292_v59 }
 0xe81   :  { %4500 = vadd.xlane.f32.xlu2 %v4490_v35  ;;  %4748 = vmatpush.bf16.msra.mxu2 %v6293_v11 }
 0xe84   :  { %v4477_v15 = vpop.f32.mrf.mxu1 }
 0xe85   :  { %v4478_v46 = vadd.f32 %v6900_v1, %v4477_v15 }
 0xe87   :  { %v4491_v57 = vadd.f32 %v4478_v46, %v8846_v23 }
 0xe89   :  { %4502 = vadd.xlane.f32.xlu1 %v4491_v57 }
 0xe9d   :  { %v4480_v61 = vpop.f32.mrf.mxu1 }
 0xe9e   :  { %v4481_v26 = vadd.f32 %v6900_v1, %v4480_v61  ;;  %v6284_v61 = vld [vmem:[%s10019_s9 + $0xb0] sm:$0xf] }
 0xea0   :  { %v4492_v30 = vadd.f32 %v4481_v26, %v8856_v17  ;;  %v6653_v26 = vld [vmem:[%s10019_s9 + $0xb4] sm:$0xf0] }
 0xea2   :  { %4504 = vadd.xlane.f32.xlu0 %v4492_v30 }
 0xea5   :  { %v4482_v63 = vpop.f32.mrf.mxu1 }
 0xea6   :  { %v4483_v40 = vadd.f32 %v6900_v1, %v4482_v63  ;;  %v6652_v63 = vld [vmem:[%s10019_s9 + $0xb4] sm:$0xf] }
 0xea8   :  { %v4493_v53 = vadd.f32 %v4483_v40, %v8859_v28  ;;  %v6286_v40 = vld [vmem:[%s10019_s9 + $0xb8] sm:$0xf0] }
 0xeaa   :  { %4506 = vadd.xlane.f32.xlu2 %v4493_v53 }
 0xedc   :  { %v4485_v25 = vpop.f32.mrf.mxu1 }
 0xedd   :  { %v4486_v31 = vadd.f32 %v6900_v1, %v4485_v25  ;;  %v6289_v25 = vor.u32 %v6652_v63, %v6286_v40 }
 0xedf   :  { %v4494_v47 = vadd.f32 %v4486_v31, %v8870_v33  ;;  %v6651_v31 = vld [vmem:[%s10019_s9 + $0xa4] sm:$0xf0] }
 0xee1   :  { %4508 = vadd.xlane.f32.xlu1 %v4494_v47 }
 0xee4   :  { %v4487_v21 = vpop.f32.mrf.mxu1 }
 0xee5   :  { %v4488_v14 = vadd.f32 %v6900_v1, %v4487_v21  ;;  %v6654_v1 = vld [vmem:[%s10019_s9 + $0xc4] sm:$0xf]  ;;  %v6278_v21 = vld [vmem:[%s10019_s9 + $0xa8] sm:$0xf0] }
 0xee7   :  { %v4495_v23 = vadd.f32 %v4488_v14, %v8873_v34 }
 0xee9   :  { %4510 = vadd.xlane.f32.xlu2 %v4495_v23 }
 0xef4   :  { %v4501_v24 = vpop.xlane.xlu2 %4500 }
 0xef5   :  { %v4512_v5 = vmul.f32 %v4501_v24, %v7418_v10  ;;  %v6268_v24 = vld [vmem:[%s10019_s9 + $0x90] sm:$0xf] }
 0xef7   :  { %v9655_v17 = vsub.f32 %v4490_v35, %v4512_v5  ;;  %v6294_v35 = vld [vmem:[%s10019_s9 + $0xc8] sm:$0xf0]  ;;  %v6649_v5 = vld [vmem:[%s10019_s9 + $0x94] sm:$0xf0] }
 0xef8   :  { %v6297_v46 = vor.u32 %v6654_v1, %v6294_v35 }
 0xef9   :  { %v4524_v7 = vmul.f32 %v9655_v17, %v9655_v17 }
 0xefa   :  { %4772 = vmatpush.bf16.msra.mxu3 %v6297_v46 }
 0xefb   :  { %4530 = vadd.xlane.f32.xlu1 %v4524_v7 }
 0xefc   :  { %v4503_v28 = vpop.xlane.xlu1 %4502 }
 0xefd   :  { %v4513_v60 = vmul.f32 %v4503_v28, %v7418_v10  ;;  %v6648_v28 = vld [vmem:[%s10019_s9 + $0x94] sm:$0xf] }
 0xefe   :  { %4773 = vmatpush.bf16.msra.mxu3 %v6289_v25 }
 0xeff   :  { %v9660_v27 = vsub.f32 %v4491_v57, %v4513_v60  ;;  %v6270_v60 = vld [vmem:[%s10019_s9 + $0x98] sm:$0xf0] }
 0xf01   :  { %v4525_v33 = vmul.f32 %v9660_v27, %v9660_v27 }
 0xf03   :  { %4532 = vadd.xlane.f32.xlu2 %v4525_v33 }
 0xf15   :  { %v4505_v34 = vpop.xlane.xlu0 %4504 }
 0xf16   :  { %v4514_v9 = vmul.f32 %v4505_v34, %v7418_v10  ;;  %v6269_v34 = vor.u32 %v6649_v5, %v6268_v24 }
 0xf18   :  { %v9665_v32 = vsub.f32 %v4492_v30, %v4514_v9  ;;  %v6285_v30 = vor.u32 %v6653_v26, %v6284_v61 }
 0xf1a   :  { %v4526_v39 = vmul.f32 %v9665_v32, %v9665_v32  ;;  %4749 = vmatpush.bf16.msra.mxu2 %v6285_v30 }
 0xf1c   :  { %4534 = vadd.xlane.f32.xlu1 %v4526_v39 }
 0xf1d   :  { %v4507_v38 = vpop.xlane.xlu2 %4506 }
 0xf1e   :  { %v4515_v8 = vmul.f32 %v4507_v38, %v7418_v10  ;;  %v6273_v38 = vor.u32 %v6648_v28, %v6270_v60 }
 0xf20   :  { %v9670_v16 = vsub.f32 %v4493_v53, %v4515_v8  ;;  %v6276_v53 = vld [vmem:[%s10019_s9 + $0xa0] sm:$0xf] }
 0xf21   :  { %v6277_v14 = vor.u32 %v6651_v31, %v6276_v53 }
 0xf22   :  { %v4527_v43 = vmul.f32 %v9670_v16, %v9670_v16 }
 0xf23   :  { %4750 = vmatpush.bf16.msra.mxu2 %v6277_v14 }
 0xf24   :  { %4536 = vadd.xlane.f32.xlu2 %v4527_v43 }
 0xf27   :  { %4751 = vmatpush.bf16.msra.mxu2 %v6269_v34 }
 0xf54   :  { %v4509_v55 = vpop.xlane.xlu1 %4508 }
 0xf55   :  { %v4516_v56 = vmul.f32 %v4509_v55, %v7418_v10  ;;  %v6260_v55 = vld [vmem:[%s10019_s9 + $0x80] sm:$0xf] }
 0xf57   :  { %v9675_v3 = vsub.f32 %v4494_v47, %v4516_v56  ;;  %v6650_v47 = vld [vmem:[%s10019_s9 + $0xa4] sm:$0xf]  ;;  %v6647_v56 = vld [vmem:[%s10019_s9 + $0x84] sm:$0xf0] }
 0xf59   :  { %v4528_v4 = vmul.f32 %v9675_v3, %v9675_v3 }
 0xf5b   :  { %4538 = vadd.xlane.f32.xlu1 %v4528_v4  ;;  %v6646_v4 = vld [vmem:[%s10019_s9 + $0x84] sm:$0xf] }
 0xf5c   :  { %v4511_v22 = vpop.xlane.xlu2 %4510  ;;  %v6265_v54 = vor.u32 %v6646_v4, %v6262_v18 }
 0xf5d   :  { %v4517_v0 = vmul.f32 %v4511_v22, %v7418_v10 }
 0xf5f   :  { %v9680_v48 = vsub.f32 %v4495_v23, %v4517_v0  ;;  %v6281_v23 = vor.u32 %v6650_v47, %v6278_v21  ;;  %v6261_v0 = vor.u32 %v6647_v56, %v6260_v55 }
 0xf61   :  { %v4529_v42 = vmul.f32 %v9680_v48, %v9680_v48  ;;  %4774 = vmatpush.bf16.msra.mxu3 %v6281_v23  ;;  %4752 = vmatpush.bf16.msra.mxu2 %v6261_v0 }
 0xf63   :  { %4540 = vadd.xlane.f32.xlu2 %v4529_v42 }
 0xf65   :  { %4775 = vmatpush.bf16.msra.mxu3 %v6273_v38 }
 0xf69   :  { %4776 = vmatpush.bf16.msra.mxu3 %v6265_v54 }
 0xf6e   :  { %v4531_v52 = vpop.xlane.xlu1 %4530 }
 0xf6f   :  { %v4542_v15 = vmul.f32 %v4531_v52, %v7418_v10 }
 0xf71   :  { %v4548_v57 = vadd.f32 1e-12, %v4542_v15 }
 0xf73   :  { %7163 = vrsqrt.f32 %v4548_v57  ;;  %vm4560_vm1 = vweird.f32 %v4548_v57 }
 0xf76   :  { %v4533_v7 = vpop.xlane.xlu2 %4532 }
 0xf77   :  { %v4543_v33 = vmul.f32 %v4533_v7, %v7418_v10 }
 0xf79   :  { %v7164_v9 = vpop.eup %7163  ;;  %v4549_v39 = vadd.f32 1e-12, %v4543_v33 }
 0xf7a   :  { %v4555_v8 = vmul.f32 %v7164_v9, %v4548_v57  ;;  %vm4561_vm13 = vweird.f32 %v7164_v9 }
 0xf7b   :  { %7165 = vrsqrt.f32 %v4549_v39  ;;  %vm4562_vm2 = vmor %vm4560_vm1, %vm4561_vm13  ;;  %vm4570_vm5 = vweird.f32 %v4549_v39 }
 0xf7c   :  { %v4556_v43 = vmul.f32 %v7164_v9, %v4555_v8 }
 0xf7e   :  { %v4557_v22 = vmul.f32 0.5, %v4556_v43 }
 0xf80   :  { %v4558_v50 = vsub.f32 1.5, %v4557_v22 }
 0xf81   :  { %v7166_v13 = vpop.eup %7165 }
 0xf82   :  { %v4559_v41 = vmul.f32 %v7164_v9, %v4558_v50  ;;  %v4565_v42 = vmul.f32 %v7166_v13, %v4549_v39  ;;  %vm4571_vm4 = vweird.f32 %v7166_v13 }
 0xf83   :  { %vm4572_vm14 = vmor %vm4570_vm5, %vm4571_vm4 }
 0xf84   :  { %v4566_v36 = vmul.f32 %v7166_v13, %v4565_v42  ;;  %v4563_v44 = vsel %vm4562_vm2, %v7164_v9, %v4559_v41 }
 0xf85   :  { %v4614_v58 = vmul.f32 %v4563_v44, %v9655_v17 }
 0xf86   :  { %v4567_v19 = vmul.f32 0.5, %v4566_v36 }
 0xf87   :  { %v4623_v20 = vmul.f32 %v9785_v49, %v4614_v58 }
 0xf88   :  { %v4568_v37 = vsub.f32 1.5, %v4567_v19 }
 0xf89   :  { %v9798_v17 = vadd.f32 %v9791_v2, %v4623_v20 }
 0xf8a   :  { %v4569_v62 = vmul.f32 %v7166_v13, %v4568_v37 }
 0xf8c   :  { %v4573_v12 = vsel %vm4572_vm14, %v7166_v13, %v4569_v62 }
 0xf8d   :  { %v4615_v29 = vmul.f32 %v4573_v12, %v9660_v27 }
 0xf8f   :  { %v4624_v45 = vmul.f32 %v9785_v49, %v4615_v29  ;;  %v4535_v6 = vpop.xlane.xlu1 %4534  ;;  %v6677_v29 = vld [vmem:[#allocation2 + $0xf8] sm:$0xff] }
 0xf90   :  { %v4544_v59 = vmul.f32 %v4535_v6, %v7418_v10  ;;  %5065 = vmatpush.bf16.msrb.mxu1 %v6677_v29  ;;  %v6675_v6 = vld [vmem:[#allocation2 + $0xe8] sm:$0xff] }
 0xf91   :  { %v9801_v51 = vadd.f32 %v9791_v2, %v4624_v45  ;;  %v6676_v45 = vld [vmem:[#allocation2 + $0xf0] sm:$0xff] }
 0xf92   :  { %v4550_v1 = vadd.f32 1e-12, %v4544_v59 }
 0xf93   :  { %v4638_v52 = vpack.c.bf16 %v9801_v51, %v9798_v17 }
 0xf94   :  { %7167 = vrsqrt.f32 %v4550_v1  ;;  %vm4580_vm7 = vweird.f32 %v4550_v1  ;;  %5066 = vmatpush.bf16.msrb.mxu1 %v6676_v45 }
 0xf95   :  { %4753 = vmatmul.bf16.vlgmr.msra.gmra.mxu2 %v4638_v52  ;;  %4777 = vmatmul.bf16.vlgmr.msra.gmra.mxu3 %v4638_v52  ;;  %v6666_v52 = vld [vmem:[#allocation2 + $0xa0] sm:$0xff] }
 0xf97   :  { %v4537_v11 = vpop.xlane.xlu2 %4536 }
 0xf98   :  { %v4545_v27 = vmul.f32 %v4537_v11, %v7418_v10  ;;  %5067 = vmatpush.bf16.msrb.mxu1 %v6675_v6  ;;  %v6674_v11 = vld [vmem:[#allocation2 + $0xe0] sm:$0xff] }
 0xf9a   :  { %v7168_v35 = vpop.eup %7167  ;;  %v4551_v15 = vadd.f32 1e-12, %v4545_v27 }
 0xf9b   :  { %v4575_v46 = vmul.f32 %v7168_v35, %v4550_v1  ;;  %vm4581_vm6 = vweird.f32 %v7168_v35 }
 0xf9c   :  { %7169 = vrsqrt.f32 %v4551_v15  ;;  %vm4582_vm8 = vmor %vm4580_vm7, %vm4581_vm6  ;;  %vm4590_vm10 = vweird.f32 %v4551_v15  ;;  %5068 = vmatpush.bf16.msrb.mxu1 %v6674_v11 }
 0xf9d   :  { %v4576_v57 = vmul.f32 %v7168_v35, %v4575_v46 }
 0xf9f   :  { %v4577_v61 = vmul.f32 0.5, %v4576_v57  ;;  %v6665_v57 = vld [vmem:[#allocation2 + $0x98] sm:$0xff] }
 0xfa1   :  { %v4578_v26 = vsub.f32 1.5, %v4577_v61  ;;  %v6673_v61 = vld [vmem:[#allocation2 + $0xd8] sm:$0xff] }
 0xfa2   :  { %v7170_v30 = vpop.eup %7169  ;;  %5069 = vmatpush.bf16.msrb.mxu1 %v6673_v61 }
 0xfa3   :  { %v4579_v63 = vmul.f32 %v7168_v35, %v4578_v26  ;;  %v4585_v40 = vmul.f32 %v7170_v30, %v4551_v15  ;;  %vm4591_vm9 = vweird.f32 %v7170_v30 }
 0xfa4   :  { %vm4592_vm11 = vmor %vm4590_vm10, %vm4591_vm9 }
 0xfa5   :  { %v4586_v53 = vmul.f32 %v7170_v30, %v4585_v40  ;;  %v4583_v25 = vsel %vm4582_vm8, %v7168_v35, %v4579_v63  ;;  %v6664_v63 = vld [vmem:[#allocation2 + $0x90] sm:$0xff] }
 0xfa6   :  { %v4616_v21 = vmul.f32 %v4583_v25, %v9665_v32  ;;  %v6672_v40 = vld [vmem:[#allocation2 + $0xd0] sm:$0xff] }
 0xfa7   :  { %v4587_v31 = vmul.f32 0.5, %v4586_v53  ;;  %5070 = vmatpush.bf16.msrb.mxu1 %v6672_v40 }
 0xfa8   :  { %v4625_v5 = vmul.f32 %v9785_v49, %v4616_v21  ;;  %v6663_v21 = vld [vmem:[#allocation2 + $0x88] sm:$0xff] }
 0xfa9   :  { %v4588_v47 = vsub.f32 1.5, %v4587_v31 }
 0xfaa   :  { %v9811_v28 = vadd.f32 %v9791_v2, %v4625_v5 }
 0xfab   :  { %v4589_v14 = vmul.f32 %v7170_v30, %v4588_v47 }
 0xfad   :  { %v4593_v23 = vsel %vm4592_vm11, %v7170_v30, %v4589_v14  ;;  %v6671_v14 = vld [vmem:[#allocation2 + $0xc8] sm:$0xff] }
 0xfae   :  { %v4617_v24 = vmul.f32 %v4593_v23, %v9670_v16  ;;  %5071 = vmatpush.bf16.msrb.mxu1 %v6671_v14 }
 0xfb0   :  { %v4626_v7 = vmul.f32 %v9785_v49, %v4617_v24 }
 0xfb2   :  { %v9814_v60 = vadd.f32 %v9791_v2, %v4626_v7 }
 0xfb4   :  { %v4639_v33 = vpack.c.bf16 %v9814_v60, %v9811_v28 }
 0xfb6   :  { %4758 = vmatmul.bf16.gmra.mxu2 %v4639_v33  ;;  %4782 = vmatmul.bf16.gmra.mxu3 %v4639_v33 }
 0xfce   :  { %v4539_v32 = vpop.xlane.xlu1 %4538 }
 0xfcf   :  { %v4546_v34 = vmul.f32 %v4539_v32, %v7418_v10 }
 0xfd1   :  { %v4552_v9 = vadd.f32 1e-12, %v4546_v34 }
 0xfd3   :  { %7171 = vrsqrt.f32 %v4552_v9  ;;  %vm4600_vm15 = vweird.f32 %v4552_v9 }
 0xfd6   :  { %v4541_v16 = vpop.xlane.xlu2 %4540 }
 0xfd7   :  { %v4547_v39 = vmul.f32 %v4541_v16, %v7418_v10 }
 0xfd9   :  { %v7172_v38 = vpop.eup %7171  ;;  %v4553_v8 = vadd.f32 1e-12, %v4547_v39 }
 0xfda   :  { %v4595_v43 = vmul.f32 %v7172_v38, %v4552_v9  ;;  %vm4601_vm12 = vweird.f32 %v7172_v38 }
 0xfdb   :  { %7173 = vrsqrt.f32 %v4553_v8  ;;  %vm4602_vm0 = vmor %vm4600_vm15, %vm4601_vm12  ;;  %vm4610_vm13 = vweird.f32 %v4553_v8 }
 0xfdc   :  { %v4596_v55 = vmul.f32 %v7172_v38, %v4595_v43  ;;  %v6662_v43 = vld [vmem:[#allocation2 + $0x80] sm:$0xff] }
 0xfde   :  { %v4597_v56 = vmul.f32 0.5, %v4596_v55  ;;  %v6670_v55 = vld [vmem:[#allocation2 + $0xc0] sm:$0xff] }
 0xfdf   :  { %5072 = vmatpush.bf16.msrb.mxu1 %v6670_v55 }
 0xfe0   :  { %v4598_v4 = vsub.f32 1.5, %v4597_v56 }
 0xfe1   :  { %v7174_v22 = vpop.eup %7173 }
 0xfe2   :  { %v4599_v0 = vmul.f32 %v7172_v38, %v4598_v4  ;;  %v4605_v18 = vmul.f32 %v7174_v22, %v4553_v8  ;;  %vm4611_vm3 = vweird.f32 %v7174_v22 }
 0xfe3   :  { %vm4612_vm1 = vmor %vm4610_vm13, %vm4611_vm3 }
 0xfe4   :  { %v4606_v54 = vmul.f32 %v7174_v22, %v4605_v18  ;;  %v4603_v50 = vsel %vm4602_vm0, %v7172_v38, %v4599_v0 }
 0xfe5   :  { %v4618_v42 = vmul.f32 %v4603_v50, %v9675_v3  ;;  %v6669_v3 = vld [vmem:[#allocation2 + $0xb8] sm:$0xff] }
 0xfe6   :  { %v4607_v13 = vmul.f32 0.5, %v4606_v54  ;;  %5041 = vmatpush.bf16.msra.mxu0 %v6669_v3 }
 0xfe7   :  { %v4627_v37 = vmul.f32 %v9785_v49, %v4618_v42 }
 0xfe8   :  { %v4608_v41 = vsub.f32 1.5, %v4607_v13 }
 0xfe9   :  { %v9825_v62 = vadd.f32 %v9791_v2, %v4627_v37 }
 0xfea   :  { %v4609_v36 = vmul.f32 %v7174_v22, %v4608_v41 }
 0xfec   :  { %v4613_v44 = vsel %vm4612_vm1, %v7174_v22, %v4609_v36 }
 0xfed   :  { %v4619_v19 = vmul.f32 %v4613_v44, %v9680_v48  ;;  %v6668_v48 = vld [vmem:[#allocation2 + $0xb0] sm:$0xff] }
 0xfee   :  { %5042 = vmatpush.bf16.msra.mxu0 %v6668_v48 }
 0xfef   :  { %v4628_v58 = vmul.f32 %v9785_v49, %v4619_v19  ;;  %v6667_v49 = vld [vmem:[#allocation2 + $0xa8] sm:$0xff] }
 0xff1   :  { %v9828_v12 = vadd.f32 %v9791_v2, %v4628_v58  ;;  %v6257_v2 = vld [vmem:[%s10020_s10 + $0x2] sm:$0x3] }
 0xff2   :  { %5043 = vmatpush.bf16.msra.mxu0 %v6667_v49  ;;  %v9835_v59 = vperm.slane %v6257_v2, 0  ;;  %v9837_v1 = vperm.slane %v6257_v2, 1 }
 0xff3   :  { %v4640_v20 = vpack.c.bf16 %v9828_v12, %v9825_v62 }
 0xff5   :  { %4763 = vmatmul.bf16.gmra.mxu2 %v4640_v20  ;;  %4787 = vmatmul.bf16.gmra.mxu3 %v4640_v20 }
 0xff6   :  { %5044 = vmatpush.bf16.msra.mxu0 %v6666_v52 }
 0xffa   :  { %5045 = vmatpush.bf16.msra.mxu0 %v6665_v57 }
 0xffe   :  { %5046 = vmatpush.bf16.msra.mxu0 %v6664_v63 }
0x1002   :  { %5047 = vmatpush.bf16.msra.mxu0 %v6663_v21 }
0x1006   :  { %5048 = vmatpush.bf16.msra.mxu0 %v6662_v43 }
0x1018   :  { %v4754_v27 = vpop.f32.mrf.mxu2  ;;  %v4778_v35 = vpop.f32.mrf.mxu3 }
0x1019   :  { %v4755_v15 = vadd.f32 %v4754_v27, %v9835_v59  ;;  %v4779_v46 = vadd.f32 %v4778_v35, %v9837_v1 }
0x101b   :  { %v4793_v26 = vmul.f32 %v4755_v15, %v4755_v15  ;;  %v4794_v30 = vmul.f32 %v4779_v46, %v4779_v46 }
0x101d   :  { %v4805_v53 = vmul.f32 %v4793_v26, %v4755_v15  ;;  %v4806_v25 = vmul.f32 %v4794_v30, %v4779_v46 }
0x101f   :  { %v4817_v31 = vmul.f32 0.044715, %v4805_v53  ;;  %v4818_v47 = vmul.f32 0.044715, %v4806_v25 }
0x1020   :  { %v4756_v23 = vpop.f32.mrf.mxu2  ;;  %v4780_v24 = vpop.f32.mrf.mxu3 }
0x1021   :  { %v4829_v5 = vadd.f32 %v4817_v31, %v4755_v15  ;;  %v4830_v7 = vadd.f32 %v4818_v47, %v4779_v46  ;;  %v4757_v33 = vadd.f32 %v4756_v23, %v9835_v59  ;;  %v4781_v32 = vadd.f32 %v4780_v24, %v9837_v1 }
0x1023   :  { %v4841_v34 = vmul.f32 0.7978846, %v4829_v5  ;;  %v4795_v9 = vmul.f32 %v4757_v33, %v4757_v33  ;;  %v4796_v16 = vmul.f32 %v4781_v32, %v4781_v32  ;;  %v4842_v39 = vmul.f32 0.7978846, %v4830_v7 }
0x1025   :  { %v4807_v38 = vmul.f32 %v4795_v9, %v4757_v33  ;;  %v4808_v8 = vmul.f32 %v4796_v16, %v4781_v32  ;;  %7175 = vtanh.f32 %v4841_v34 }
0x1026   :  { %7177 = vtanh.f32 %v4842_v39 }
0x1027   :  { %v4819_v56 = vmul.f32 0.044715, %v4807_v38  ;;  %v4820_v4 = vmul.f32 0.044715, %v4808_v8 }
0x1029   :  { %v4831_v22 = vadd.f32 %v4819_v56, %v4757_v33  ;;  %v4832_v0 = vadd.f32 %v4820_v4, %v4781_v32 }
0x102b   :  { %v4843_v18 = vmul.f32 0.7978846, %v4831_v22  ;;  %v4844_v54 = vmul.f32 0.7978846, %v4832_v0  ;;  %v7176_v50 = vpop.eup %7175 }
0x102c   :  { %v7178_v13 = vpop.eup %7177  ;;  %v4865_v41 = vadd.f32 1.0, %v7176_v50 }
0x102d   :  { %7179 = vtanh.f32 %v4843_v18  ;;  %v4866_v42 = vadd.f32 1.0, %v7178_v13 }
0x102e   :  { %7181 = vtanh.f32 %v4844_v54  ;;  %v4877_v19 = vmul.f32 0.5, %v4865_v41 }
0x102f   :  { %v4878_v58 = vmul.f32 0.5, %v4866_v42 }
0x1030   :  { %v4889_v48 = vmul.f32 %v4877_v19, %v4755_v15 }
0x1031   :  { %v4890_v49 = vmul.f32 %v4878_v58, %v4779_v46 }
0x1033   :  { %v7180_v36 = vpop.eup %7179 }
0x1034   :  { %v7182_v44 = vpop.eup %7181  ;;  %v4867_v37 = vadd.f32 1.0, %v7180_v36 }
0x1035   :  { %v4868_v20 = vadd.f32 1.0, %v7182_v44 }
0x1036   :  { %v4879_v3 = vmul.f32 0.5, %v4867_v37 }
0x1037   :  { %v4880_v29 = vmul.f32 0.5, %v4868_v20 }
0x1038   :  { %v4891_v45 = vmul.f32 %v4879_v3, %v4757_v33 }
0x1039   :  { %v4892_v6 = vmul.f32 %v4880_v29, %v4781_v32  ;;  %v4759_v2 = vpop.f32.mrf.mxu2  ;;  %v4783_v52 = vpop.f32.mrf.mxu3 }
0x103a   :  { %v4901_v11 = vpack.c.bf16 %v4891_v45, %v4889_v48  ;;  %v4760_v27 = vadd.f32 %v4759_v2, %v9835_v59  ;;  %v4784_v35 = vadd.f32 %v4783_v52, %v9837_v1 }
0x103b   :  { %v4902_v57 = vpack.c.bf16 %v4892_v6, %v4890_v49 }
0x103c   :  { %v4797_v61 = vmul.f32 %v4760_v27, %v4760_v27  ;;  %v4798_v26 = vmul.f32 %v4784_v35, %v4784_v35  ;;  %5049 = vmatmul.bf16.vlgmr.msra.gmra.mxu0 %v4901_v11 }
0x103d   :  { %5073 = vmatmul.bf16.vlgmr.msrb.gmra.mxu1 %v4902_v57 }
0x103e   :  { %v4809_v30 = vmul.f32 %v4797_v61, %v4760_v27  ;;  %v4810_v63 = vmul.f32 %v4798_v26, %v4784_v35 }
0x1040   :  { %v4821_v40 = vmul.f32 0.044715, %v4809_v30  ;;  %v4822_v53 = vmul.f32 0.044715, %v4810_v63 }
0x1041   :  { %v4761_v15 = vpop.f32.mrf.mxu2  ;;  %v4785_v25 = vpop.f32.mrf.mxu3 }
0x1042   :  { %v4833_v46 = vadd.f32 %v4821_v40, %v4760_v27  ;;  %v4834_v31 = vadd.f32 %v4822_v53, %v4784_v35  ;;  %v4762_v47 = vadd.f32 %v4761_v15, %v9835_v59  ;;  %v4786_v21 = vadd.f32 %v4785_v25, %v9837_v1 }
0x1044   :  { %v4845_v14 = vmul.f32 0.7978846, %v4833_v46  ;;  %v4799_v23 = vmul.f32 %v4762_v47, %v4762_v47  ;;  %v4800_v24 = vmul.f32 %v4786_v21, %v4786_v21  ;;  %v4846_v5 = vmul.f32 0.7978846, %v4834_v31 }
0x1046   :  { %v4811_v7 = vmul.f32 %v4799_v23, %v4762_v47  ;;  %v4812_v33 = vmul.f32 %v4800_v24, %v4786_v21  ;;  %7183 = vtanh.f32 %v4845_v14 }
0x1047   :  { %7185 = vtanh.f32 %v4846_v5 }
0x1048   :  { %v4823_v32 = vmul.f32 0.044715, %v4811_v7  ;;  %v4824_v34 = vmul.f32 0.044715, %v4812_v33 }
0x104a   :  { %v4835_v9 = vadd.f32 %v4823_v32, %v4762_v47  ;;  %v4836_v16 = vadd.f32 %v4824_v34, %v4786_v21 }
0x104c   :  { %v4847_v39 = vmul.f32 0.7978846, %v4835_v9  ;;  %v4848_v38 = vmul.f32 0.7978846, %v4836_v16  ;;  %v7184_v8 = vpop.eup %7183 }
0x104d   :  { %v7186_v43 = vpop.eup %7185  ;;  %v4869_v55 = vadd.f32 1.0, %v7184_v8 }
0x104e   :  { %7187 = vtanh.f32 %v4847_v39  ;;  %v4870_v56 = vadd.f32 1.0, %v7186_v43 }
0x104f   :  { %7189 = vtanh.f32 %v4848_v38  ;;  %v4881_v18 = vmul.f32 0.5, %v4869_v55 }
0x1050   :  { %v4882_v50 = vmul.f32 0.5, %v4870_v56 }
0x1051   :  { %v4893_v42 = vmul.f32 %v4881_v18, %v4760_v27  ;;  %v6903_v18 = vld [vmem:[%s10022_s12 + $0x1] ss:$0 sm:$0xff] }
0x1052   :  { %v4894_v44 = vmul.f32 %v4882_v50, %v4784_v35 }
0x1054   :  { %v7188_v4 = vpop.eup %7187 }
0x1055   :  { %v7190_v22 = vpop.eup %7189  ;;  %v4871_v0 = vadd.f32 1.0, %v7188_v4 }
0x1056   :  { %v4872_v54 = vadd.f32 1.0, %v7190_v22 }
0x1057   :  { %v4883_v13 = vmul.f32 0.5, %v4871_v0 }
0x1058   :  { %v4884_v41 = vmul.f32 0.5, %v4872_v54 }
0x1059   :  { %v4895_v36 = vmul.f32 %v4883_v13, %v4762_v47 }
0x105a   :  { %v4896_v19 = vmul.f32 %v4884_v41, %v4786_v21 }
0x105b   :  { %v4903_v37 = vpack.c.bf16 %v4895_v36, %v4893_v42 }
0x105c   :  { %v4904_v58 = vpack.c.bf16 %v4896_v19, %v4894_v44 }
0x105d   :  { %5054 = vmatmul.bf16.gmra.mxu0 %v4903_v37 }
0x105e   :  { %5078 = vmatmul.bf16.gmra.mxu1 %v4904_v58 }
0x1078   :  { %v4764_v20 = vpop.f32.mrf.mxu2  ;;  %v4788_v3 = vpop.f32.mrf.mxu3 }
0x1079   :  { %v4765_v29 = vadd.f32 %v4764_v20, %v9835_v59  ;;  %v4789_v48 = vadd.f32 %v4788_v3, %v9837_v1 }
0x107b   :  { %v4801_v45 = vmul.f32 %v4765_v29, %v4765_v29  ;;  %v4802_v49 = vmul.f32 %v4789_v48, %v4789_v48 }
0x107d   :  { %v4813_v6 = vmul.f32 %v4801_v45, %v4765_v29  ;;  %v4814_v2 = vmul.f32 %v4802_v49, %v4789_v48 }
0x107f   :  { %v4825_v52 = vmul.f32 0.044715, %v4813_v6  ;;  %v4826_v11 = vmul.f32 0.044715, %v4814_v2 }
0x1080   :  { %v4766_v27 = vpop.f32.mrf.mxu2  ;;  %v4790_v57 = vpop.f32.mrf.mxu3 }
0x1081   :  { %v4837_v35 = vadd.f32 %v4825_v52, %v4765_v29  ;;  %v4838_v61 = vadd.f32 %v4826_v11, %v4789_v48  ;;  %v4767_v26 = vadd.f32 %v4766_v27, %v9835_v59  ;;  %v4791_v30 = vadd.f32 %v4790_v57, %v9837_v1 }
0x1083   :  { %v4849_v63 = vmul.f32 0.7978846, %v4837_v35  ;;  %v4803_v40 = vmul.f32 %v4767_v26, %v4767_v26  ;;  %v4804_v53 = vmul.f32 %v4791_v30, %v4791_v30  ;;  %v4850_v15 = vmul.f32 0.7978846, %v4838_v61 }
0x1085   :  { %v4815_v25 = vmul.f32 %v4803_v40, %v4767_v26  ;;  %v4816_v46 = vmul.f32 %v4804_v53, %v4791_v30  ;;  %7191 = vtanh.f32 %v4849_v63 }
0x1086   :  { %7193 = vtanh.f32 %v4850_v15 }
0x1087   :  { %v4827_v31 = vmul.f32 0.044715, %v4815_v25  ;;  %v4828_v47 = vmul.f32 0.044715, %v4816_v46 }
0x1089   :  { %v4839_v21 = vadd.f32 %v4827_v31, %v4767_v26  ;;  %v4840_v14 = vadd.f32 %v4828_v47, %v4791_v30 }
0x108b   :  { %v4851_v23 = vmul.f32 0.7978846, %v4839_v21  ;;  %v4852_v24 = vmul.f32 0.7978846, %v4840_v14  ;;  %v7192_v5 = vpop.eup %7191 }
0x108c   :  { %v7194_v7 = vpop.eup %7193  ;;  %v4873_v59 = vadd.f32 1.0, %v7192_v5 }
0x108d   :  { %7195 = vtanh.f32 %v4851_v23  ;;  %v4874_v1 = vadd.f32 1.0, %v7194_v7 }
0x108e   :  { %7197 = vtanh.f32 %v4852_v24  ;;  %v4885_v9 = vmul.f32 0.5, %v4873_v59 }
0x108f   :  { %v4886_v39 = vmul.f32 0.5, %v4874_v1 }
0x1090   :  { %v4897_v43 = vmul.f32 %v4885_v9, %v4765_v29 }
0x1091   :  { %v4898_v56 = vmul.f32 %v4886_v39, %v4789_v48 }
0x1093   :  { %v7196_v33 = vpop.eup %7195 }
0x1094   :  { %v7198_v32 = vpop.eup %7197  ;;  %v4875_v34 = vadd.f32 1.0, %v7196_v33 }
0x1095   :  { %v4876_v16 = vadd.f32 1.0, %v7198_v32 }
0x1096   :  { %v4887_v38 = vmul.f32 0.5, %v4875_v34 }
0x1097   :  { %v4888_v8 = vmul.f32 0.5, %v4876_v16 }
0x1098   :  { %v4899_v55 = vmul.f32 %v4887_v38, %v4767_v26 }
0x1099   :  { %v4900_v4 = vmul.f32 %v4888_v8, %v4791_v30 }
0x109a   :  { %v4905_v22 = vpack.c.bf16 %v4899_v55, %v4897_v43 }
0x109b   :  { %v4906_v0 = vpack.c.bf16 %v4900_v4, %v4898_v56 }
0x109c   :  { %5059 = vmatmul.bf16.gmra.mxu0 %v4905_v22 }
0x109d   :  { %5083 = vmatmul.bf16.gmra.mxu1 %v4906_v0 }
0x10b9   :  { %v5050_v54 = vpop.f32.mrf.mxu0 }
0x10ba   :  { %v5051_v50 = vadd.f32 %v6903_v18, %v5050_v54  ;;  %v5074_v13 = vpop.f32.mrf.mxu1 }
0x10bc   :  { %v5075_v41 = vadd.f32 %v5074_v13, %v5051_v50 }
0x10be   :  { %v5089_v53 = vadd.f32 %v5075_v41, %v9798_v17 }
0x10c1   :  { %v5052_v42 = vpop.f32.mrf.mxu0 }
0x10c2   :  { %v5053_v36 = vadd.f32 %v6903_v18, %v5052_v42  ;;  %v5076_v44 = vpop.f32.mrf.mxu1 }
0x10c4   :  { %v5077_v19 = vadd.f32 %v5076_v44, %v5053_v36 }
0x10c6   :  { %v5090_v26 = vadd.f32 %v5077_v19, %v9801_v51 }
0x10da   :  { %v5055_v37 = vpop.f32.mrf.mxu0 }
0x10db   :  { %v5056_v58 = vadd.f32 %v6903_v18, %v5055_v37  ;;  %v5079_v20 = vpop.f32.mrf.mxu1 }
0x10dd   :  { %v5080_v3 = vadd.f32 %v5079_v20, %v5056_v58 }
0x10df   :  { %v5091_v29 = vadd.f32 %v5080_v3, %v9811_v28 }
0x10e1   :  { %5103 = vadd.xlane.f32.xlu0 %v5091_v29 }
0x10e2   :  { %v5057_v48 = vpop.f32.mrf.mxu0 }
0x10e3   :  { %v5081_v45 = vpop.f32.mrf.mxu1  ;;  %v5058_v30 = vadd.f32 %v6903_v18, %v5057_v48 }
0x10e5   :  { %v5082_v28 = vadd.f32 %v5081_v45, %v5058_v30 }
0x10e7   :  { %v5092_v40 = vadd.f32 %v5082_v28, %v9814_v60 }
0x1119   :  { %v5060_v49 = vpop.f32.mrf.mxu0 }
0x111a   :  { %v5061_v6 = vadd.f32 %v6903_v18, %v5060_v49  ;;  %v5084_v2 = vpop.f32.mrf.mxu1 }
0x111c   :  { %v5085_v52 = vadd.f32 %v5084_v2, %v5061_v6  ;;  %v6685_v2 = vld [vmem:[%s10027_s17 + $0x38] sm:$0xff] }
0x111d   :  { %5331 = vmatpush.bf16.msrb.mxu3 %v6685_v2 }
0x111e   :  { %v5093_v11 = vadd.f32 %v5085_v52, %v9825_v62 }
0x1120   :  { %5107 = vadd.xlane.f32.xlu2 %v5093_v11 }
0x1121   :  { %v5062_v27 = vpop.f32.mrf.mxu0 }
0x1122   :  { %v5063_v57 = vadd.f32 %v6903_v18, %v5062_v27  ;;  %v5086_v35 = vpop.f32.mrf.mxu1 }
0x1124   :  { %v5087_v61 = vadd.f32 %v5086_v35, %v5063_v57  ;;  %v6684_v57 = vld [vmem:[%s10027_s17 + $0x30] sm:$0xff] }
0x1125   :  { %5332 = vmatpush.bf16.msrb.mxu3 %v6684_v57  ;;  %v6906_v57 = vld [vmem:[%s10028_s18] ss:$0 sm:$0xff] }
0x1126   :  { %v5094_v63 = vadd.f32 %v5087_v61, %v9828_v12 }
0x1128   :  { %5109 = vadd.xlane.f32.xlu1 %v5094_v63  ;;  %5101 = vadd.xlane.f32.xlu2 %v5090_v26 }
0x1130   :  { %5105 = vadd.xlane.f32.xlu1 %v5092_v40 }
0x1138   :  { %5099 = vadd.xlane.f32.xlu1 %v5089_v53 }
0x1154   :  { %v5104_v60 = vpop.xlane.xlu0 %5103 }
0x1155   :  { %v5113_v14 = vmul.f32 %v5104_v60, %v7418_v10 }
0x1157   :  { %v9876_v7 = vsub.f32 %v5091_v29, %v5113_v14 }
0x1159   :  { %v5125_v33 = vmul.f32 %v9876_v7, %v9876_v7 }
0x1193   :  { %v5108_v62 = vpop.xlane.xlu2 %5107 }
0x1194   :  { %v5115_v15 = vmul.f32 %v5108_v62, %v7418_v10 }
0x1196   :  { %v9861_v25 = vsub.f32 %v5093_v11, %v5115_v15 }
0x1198   :  { %v5127_v51 = vmul.f32 %v9861_v25, %v9861_v25 }
0x119a   :  { %5137 = vadd.xlane.f32.xlu2 %v5127_v51  ;;  %v6683_v51 = vld [vmem:[%s10027_s17 + $0x28] sm:$0xff] }
0x119b   :  { %v5110_v46 = vpop.xlane.xlu1 %5109  ;;  %v5102_v12 = vpop.xlane.xlu2 %5101  ;;  %5333 = vmatpush.bf16.msrb.mxu3 %v6683_v51 }
0x119c   :  { %v5116_v31 = vmul.f32 %v5110_v46, %v7418_v10  ;;  %v5112_v47 = vmul.f32 %v5102_v12, %v7418_v10 }
0x119e   :  { %v9867_v21 = vsub.f32 %v5094_v63, %v5116_v31  ;;  %v9869_v17 = vsub.f32 %v5090_v26, %v5112_v47  ;;  %v9933_v31 = vld [vmem:[%s10023_s13 + $0x1] ss:$0 sm:$0xff] }
0x11a0   :  { %v5128_v23 = vmul.f32 %v9867_v21, %v9867_v21  ;;  %v5124_v24 = vmul.f32 %v9869_v17, %v9869_v17 }
0x11a2   :  { %5139 = vadd.xlane.f32.xlu0 %v5128_v23  ;;  %5131 = vadd.xlane.f32.xlu2 %v5124_v24 }
0x11a3   :  { %v5106_v5 = vpop.xlane.xlu1 %5105 }
0x11a4   :  { %v5114_v59 = vmul.f32 %v5106_v5, %v7418_v10 }
0x11a6   :  { %v9879_v1 = vsub.f32 %v5092_v40, %v5114_v59  ;;  %v6682_v59 = vld [vmem:[%s10027_s17 + $0x20] sm:$0xff] }
0x11a7   :  { %5334 = vmatpush.bf16.msrb.mxu3 %v6682_v59 }
0x11a8   :  { %v5126_v32 = vmul.f32 %v9879_v1, %v9879_v1 }
0x11aa   :  { %5133 = vadd.xlane.f32.xlu0 %v5125_v33  ;;  %5135 = vadd.xlane.f32.xlu1 %v5126_v32 }
0x11ab   :  { %v5100_v34 = vpop.xlane.xlu1 %5099 }
0x11ac   :  { %v5111_v9 = vmul.f32 %v5100_v34, %v7418_v10 }
0x11ae   :  { %v9886_v16 = vsub.f32 %v5089_v53, %v5111_v9 }
0x11b0   :  { %v5123_v39 = vmul.f32 %v9886_v16, %v9886_v16 }
0x11b2   :  { %5129 = vadd.xlane.f32.xlu1 %v5123_v39 }
0x120d   :  { %v5138_v38 = vpop.xlane.xlu2 %5137 }
0x120e   :  { %v5145_v8 = vmul.f32 %v5138_v38, %v7418_v10 }
0x1210   :  { %v5151_v43 = vadd.f32 1e-12, %v5145_v8 }
0x1212   :  { %7199 = vrsqrt.f32 %v5151_v43  ;;  %vm5199_vm4 = vweird.f32 %v5151_v43 }
0x1215   :  { %v5140_v55 = vpop.xlane.xlu0 %5139  ;;  %v5132_v56 = vpop.xlane.xlu2 %5131 }
0x1216   :  { %v5146_v4 = vmul.f32 %v5140_v55, %v7418_v10  ;;  %v5142_v22 = vmul.f32 %v5132_v56, %v7418_v10 }
0x1218   :  { %v7200_v0 = vpop.eup %7199  ;;  %v5152_v18 = vadd.f32 1e-12, %v5146_v4  ;;  %v9893_v54 = vadd.f32 1e-12, %v5142_v22  ;;  %v6681_v4 = vld [vmem:[%s10027_s17 + $0x18] sm:$0xff] }
0x1219   :  { %v5194_v50 = vmul.f32 %v7200_v0, %v5151_v43  ;;  %vm5200_vm2 = vweird.f32 %v7200_v0  ;;  %5335 = vmatpush.bf16.msrb.mxu3 %v6681_v4  ;;  %v6520_v43 = vld [vmem:[#allocation4 + $0xc0] sm:$0xf] }
0x121a   :  { %7201 = vrsqrt.f32 %v5152_v18  ;;  %vm9915_vm5 = vmor %vm5199_vm4, %vm5200_vm2  ;;  %vm5209_vm6 = vweird.f32 %v5152_v18  ;;  %vm5169_vm10 = vweird.f32 %v9893_v54 }
0x121b   :  { %v5195_v13 = vmul.f32 %v7200_v0, %v5194_v50  ;;  %7203 = vrsqrt.f32 %v9893_v54 }
0x121d   :  { %v5196_v41 = vmul.f32 0.5, %v5195_v13  ;;  %v5134_v42 = vpop.xlane.xlu0 %5133  ;;  %v5136_v36 = vpop.xlane.xlu1 %5135 }
0x121e   :  { %v5143_v44 = vmul.f32 %v5134_v42, %v7418_v10  ;;  %v5144_v19 = vmul.f32 %v5136_v36, %v7418_v10 }
0x121f   :  { %v5197_v37 = vsub.f32 1.5, %v5196_v41 }
0x1220   :  { %v7202_v58 = vpop.eup %7201  ;;  %v9898_v20 = vadd.f32 1e-12, %v5143_v44  ;;  %v9900_v3 = vadd.f32 1e-12, %v5144_v19  ;;  %v6680_v19 = vld [vmem:[%s10027_s17 + $0x10] sm:$0xff] }
0x1221   :  { %v9902_v29 = vpop.eup %7203  ;;  %v5204_v48 = vmul.f32 %v7202_v58, %v5152_v18  ;;  %v5198_v49 = vmul.f32 %v7200_v0, %v5197_v37  ;;  %vm5210_vm14 = vweird.f32 %v7202_v58  ;;  %5336 = vmatpush.bf16.msrb.mxu3 %v6680_v19  ;;  %v6706_v19 = vld [vmem:[#allocation4 + $0xa4] sm:$0xf] }
0x1222   :  { %v5164_v45 = vmul.f32 %v9902_v29, %v9893_v54  ;;  %7205 = vrsqrt.f32 %v9898_v20  ;;  %vm5211_vm7 = vmor %vm5209_vm6, %vm5210_vm14  ;;  %vm5170_vm8 = vweird.f32 %v9902_v29  ;;  %vm5179_vm15 = vweird.f32 %v9898_v20 }
0x1223   :  { %v5205_v6 = vmul.f32 %v7202_v58, %v5204_v48  ;;  %7207 = vrsqrt.f32 %v9900_v3  ;;  %v5202_v30 = vsel %vm9915_vm5, %v7200_v0, %v5198_v49  ;;  %vm9950_vm12 = vmor %vm5169_vm10, %vm5170_vm8  ;;  %vm5189_vm3 = vweird.f32 %v9900_v3 }
0x1224   :  { %v5165_v52 = vmul.f32 %v9902_v29, %v5164_v45  ;;  %v5217_v47 = vmul.f32 %v5202_v30, %v9861_v25  ;;  %v6905_v25 = vld [vmem:[%s10024_s14 + $0x1] ss:$0 sm:$0xff]  ;;  %vm5238_vm5 = vcmask 392192   ;;  %vm5355_vm14 = vcmask 1041408  }
0x1225   :  { %v5206_v11 = vmul.f32 0.5, %v5205_v6  ;;  %v5130_v27 = vpop.xlane.xlu1 %5129  ;;  %vm5651_vm10 = vcmask 1043456  }
0x1226   :  { %v5166_v61 = vmul.f32 0.5, %v5165_v52  ;;  %v5141_v26 = vmul.f32 %v5130_v27, %v7418_v10  ;;  %v5237_v52 = vld [vmem:[%s10100_s28] sm:$0x3] }
0x1227   :  { %v5207_v63 = vsub.f32 1.5, %v5206_v11  ;;  %v6678_v11 = vld [vmem:[%s10027_s17] sm:$0xff] }
0x1228   :  { %v7206_v28 = vpop.eup %7205  ;;  %v9922_v40 = vadd.f32 1e-12, %v5141_v26  ;;  %v5167_v46 = vsub.f32 1.5, %v5166_v61 }
0x1229   :  { %v7208_v53 = vpop.eup %7207  ;;  %v5208_v62 = vmul.f32 %v7202_v58, %v5207_v63  ;;  %v5174_v15 = vmul.f32 %v7206_v28, %v9898_v20  ;;  %vm5180_vm9 = vweird.f32 %v7206_v28 }
0x122a   :  { %v5184_v12 = vmul.f32 %v7208_v53, %v9900_v3  ;;  %7209 = vrsqrt.f32 %v9922_v40  ;;  %v5168_v33 = vmul.f32 %v9902_v29, %v5167_v46  ;;  %vm5190_vm11 = vweird.f32 %v7208_v53  ;;  %vm5181_vm0 = vmor %vm5179_vm15, %vm5180_vm9 }
0x122b   :  { %v5212_v60 = vsel %vm5211_vm7, %v7202_v58, %v5208_v62  ;;  %v5175_v14 = vmul.f32 %v7206_v28, %v5174_v15  ;;  %vm5191_vm13 = vmor %vm5189_vm3, %vm5190_vm11  ;;  %vm5159_vm2 = vweird.f32 %v9922_v40  ;;  %vm5649_vm9 = vcmask 1045508  }
0x122c   :  { %v5218_v23 = vmul.f32 %v5212_v60, %v9867_v21  ;;  %v5185_v24 = vmul.f32 %v7208_v53, %v5184_v12  ;;  %v5226_v21 = vmul.f32 %v9933_v31, %v5217_v47  ;;  %v5172_v22 = vsel %vm9950_vm12, %v9902_v29, %v5168_v33  ;;  %v6716_v47 = vld [vmem:[#allocation4 + $0xec] sm:$0xf0]  ;;  %v6714_v60 = vld [vmem:[#allocation4 + $0xe4] sm:$0xf] }
0x122d   :  { %v5176_v5 = vmul.f32 0.5, %v5175_v14  ;;  %v5214_v44 = vmul.f32 %v5172_v22, %v9869_v17  ;;  %v6679_v17 = vld [vmem:[%s10027_s17 + $0x8] sm:$0xff]  ;;  %v6522_v22 = vld [vmem:[#allocation4 + $0xd0] sm:$0xf0] }
0x122e   :  { %v5186_v32 = vmul.f32 0.5, %v5185_v24  ;;  %v5227_v34 = vmul.f32 %v9933_v31, %v5218_v23  ;;  %v5235_v18 = vadd.f32 %v6905_v25, %v5226_v21  ;;  %5337 = vmatpush.bf16.msrb.mxu3 %v6679_v17  ;;  %v6538_v23 = vld [vmem:[#allocation4 + $0xf0] sm:$0xf0]  ;;  %v6544_v24 = vld [vmem:[#allocation4 + $0xe8] sm:$0xf] }
0x122f   :  { %v5177_v9 = vsub.f32 1.5, %v5176_v5  ;;  %v5223_v29 = vmul.f32 %v9933_v31, %v5214_v44  ;;  %v6717_v5 = vld [vmem:[#allocation4 + $0xf4] sm:$0xf0]  ;;  %v6541_v59 = vor.u32 %v6714_v60, %v6538_v23  ;;  %v6708_v44 = vld [vmem:[#allocation4 + $0xac] sm:$0xf0] }
0x1230   :  { %v7210_v39 = vpop.eup %7209  ;;  %v5187_v38 = vsub.f32 1.5, %v5186_v32  ;;  %v5236_v8 = vadd.f32 %v6905_v25, %v5227_v34  ;;  %v6545_v33 = vor.u32 %v6717_v5, %v6544_v24  ;;  %v6715_v32 = vld [vmem:[#allocation4 + $0xec] sm:$0xf]  ;;  %v6546_v34 = vld [vmem:[#allocation4 + $0xf8] sm:$0xf0] }
0x1231   :  { %v5178_v55 = vmul.f32 %v7206_v28, %v5177_v9  ;;  %v5154_v56 = vmul.f32 %v7210_v39, %v9922_v40  ;;  %vm5160_vm1 = vweird.f32 %v7210_v39  ;;  %v5232_v49 = vadd.f32 %v6905_v25, %v5223_v29  ;;  %v6707_v17 = vld [vmem:[#allocation4 + $0xac] sm:$0xf]  ;;  %v6694_v23 = vld [vmem:[#allocation4 + $0x44] sm:$0xf]  ;;  %v6458_v24 = vld [vmem:[#allocation4 + $0x50] sm:$0xf0] }
0x1232   :  { %v5188_v0 = vmul.f32 %v7208_v53, %v5187_v38  ;;  %5252 = vmatpush.msrb.mxu2 %v5236_v8  ;;  %vm5161_vm4 = vmor %vm5159_vm2, %vm5160_vm1  ;;  %5338 = vmatpush.bf16.msrb.mxu3 %v6678_v11  ;;  %v6496_v11 = vld [vmem:[#allocation4 + $0x88] sm:$0xf] }
0x1233   :  { %v5182_v54 = vsel %vm5181_vm0, %v7206_v28, %v5178_v55  ;;  %v5155_v50 = vmul.f32 %v7210_v39, %v5154_v56  ;;  %v6712_v55 = vld [vmem:[#allocation4 + $0xcc] sm:$0xf0]  ;;  %v6710_v56 = vld [vmem:[#allocation4 + $0xc4] sm:$0xf] }
0x1234   :  { %v5192_v13 = vsel %vm5191_vm13, %v7208_v53, %v5188_v0  ;;  %5253 = vmatpush.msrb.mxu2 %v5235_v18  ;;  %v5215_v41 = vmul.f32 %v5182_v54, %v9876_v7  ;;  %v6521_v4 = vor.u32 %v6712_v55, %v6520_v43  ;;  %v6528_v0 = vld [vmem:[#allocation4 + $0xc8] sm:$0xf]  ;;  %v6713_v18 = vld [vmem:[#allocation4 + $0xd4] sm:$0xf0]  ;;  %v6525_v54 = vor.u32 %v6710_v56, %v6522_v22  ;;  %v6690_v43 = vld [vmem:[#allocation4 + $0x24] sm:$0xf] }
0x1235   :  { %v5156_v42 = vmul.f32 0.5, %v5155_v50  ;;  %v5216_v36 = vmul.f32 %v5192_v13, %v9879_v1  ;;  %v6529_v50 = vor.u32 %v6713_v18, %v6528_v0  ;;  %v6711_v13 = vld [vmem:[#allocation4 + $0xcc] sm:$0xf]  ;;  %v6442_v55 = vld [vmem:[#allocation4 + $0x30] sm:$0xf0] }
0x1236   :  { %v5224_v20 = vmul.f32 %v9933_v31, %v5215_v41  ;;  %5615 = vmatpush.bf16.msra.mxu3 %v6545_v33  ;;  %v6530_v41 = vld [vmem:[#allocation4 + $0xd8] sm:$0xf0]  ;;  %v6464_v33 = vld [vmem:[#allocation4 + $0x48] sm:$0xf]  ;;  %v6693_v0 = vld [vmem:[#allocation4 + $0x34] sm:$0xf0] }
0x1237   :  { %v5157_v37 = vsub.f32 1.5, %v5156_v42  ;;  %v5225_v58 = vmul.f32 %v9933_v31, %v5216_v36  ;;  %v6533_v42 = vor.u32 %v6711_v13, %v6530_v41  ;;  %v6504_v36 = vld [vmem:[#allocation4 + $0xa0] sm:$0xf]  ;;  %v6448_v56 = vld [vmem:[#allocation4 + $0x28] sm:$0xf]  ;;  %v6445_v13 = vor.u32 %v6690_v43, %v6442_v55 }
0x1238   :  { %v5233_v48 = vadd.f32 %v6905_v25, %v5224_v20  ;;  %v6512_v20 = vld [vmem:[#allocation4 + $0xa8] sm:$0xf]  ;;  %v6691_v18 = vld [vmem:[#allocation4 + $0x2c] sm:$0xf]  ;;  %v6449_v41 = vor.u32 %v6693_v0, %v6448_v56 }
0x1239   :  { %v5158_v3 = vmul.f32 %v7210_v39, %v5157_v37  ;;  %v5234_v7 = vadd.f32 %v6905_v25, %v5225_v58  ;;  %v6505_v37 = vor.u32 %v6708_v44, %v6504_v36  ;;  %v6506_v58 = vld [vmem:[#allocation4 + $0xb0] sm:$0xf0]  ;;  %v6688_v36 = vld [vmem:[#allocation4 + $0xc] sm:$0xf0]  ;;  %v6686_v44 = vld [vmem:[#allocation4 + $0x4] sm:$0xf] }
0x123a   :  { %5616 = vmatpush.bf16.msra.mxu3 %v6529_v50 }
0x123b   :  { %v5162_v1 = vsel %vm5161_vm4, %v7210_v39, %v5158_v3  ;;  %5254 = vmatpush.msrb.mxu2 %v5234_v7  ;;  %v6709_v3 = vld [vmem:[#allocation4 + $0xb4] sm:$0xf0]  ;;  %v6509_v7 = vor.u32 %v6706_v19, %v6506_v58  ;;  %v6432_v58 = vld [vmem:[#allocation4 + $0x8] sm:$0xf] }
0x123c   :  { %v5213_v45 = vmul.f32 %v5162_v1, %v9886_v16  ;;  %v6513_v29 = vor.u32 %v6709_v3, %v6512_v20  ;;  %v6514_v1 = vld [vmem:[#allocation4 + $0xb8] sm:$0xf0]  ;;  %v6689_v20 = vld [vmem:[#allocation4 + $0x14] sm:$0xf0] }
0x123d   :  { %5255 = vmatpush.msrb.mxu2 %v5233_v48  ;;  %v6517_v48 = vor.u32 %v6707_v17, %v6514_v1  ;;  %v6433_v1 = vor.u32 %v6689_v20, %v6432_v58 }
0x123e   :  { %v5222_v6 = vmul.f32 %v9933_v31, %v5213_v45  ;;  %v6536_v31 = vld [vmem:[#allocation4 + $0xe0] sm:$0xf]  ;;  %5617 = vmatpush.bf16.msra.mxu3 %v6513_v29  ;;  %v6434_v29 = vld [vmem:[#allocation4 + $0x18] sm:$0xf0] }
0x123f   :  { %5256 = vmatpush.msrb.mxu2 %v5232_v49  ;;  %v6537_v14 = vor.u32 %v6716_v47, %v6536_v31  ;;  %v6488_v45 = vld [vmem:[#allocation4 + $0x80] sm:$0xf]  ;;  %v6704_v49 = vld [vmem:[#allocation4 + $0x8c] sm:$0xf0]  ;;  %v6482_v31 = vld [vmem:[#allocation4 + $0x78] sm:$0xf0] }
0x1240   :  { %v5231_v2 = vadd.f32 %v6905_v25, %v5222_v6  ;;  %v6549_v25 = vor.u32 %v6715_v32, %v6546_v34  ;;  %v6702_v6 = vld [vmem:[#allocation4 + $0x84] sm:$0xf]  ;;  %v6456_v47 = vld [vmem:[#allocation4 + $0x40] sm:$0xf]  ;;  %v6697_v32 = vld [vmem:[#allocation4 + $0x54] sm:$0xf0] }
0x1241   :  { %5589 = vmatpush.bf16.msrb.mxu0 %v6537_v14  ;;  %v6696_v14 = vld [vmem:[#allocation4 + $0x4c] sm:$0xf0]  ;;  %v6695_v34 = vld [vmem:[#allocation4 + $0x4c] sm:$0xf] }
0x1242   :  { %5257 = vmatpush.msrb.mxu2 %v5231_v2  ;;  %5628 = vmatpush.bf16.msra.mxu1 %v6549_v25  ;;  %v6489_v2 = vor.u32 %v6704_v49, %v6488_v45  ;;  %v6457_v5 = vor.u32 %v6696_v14, %v6456_v47  ;;  %v6465_v25 = vor.u32 %v6697_v32, %v6464_v33 }
0x1243   :  { %6389 = vmatmul.msk.f32.vlgmr.msrb.gmra.mxu2 %vm5238_vm5, %v5237_v52  ;;  %v6490_v52 = vld [vmem:[#allocation4 + $0x90] sm:$0xf0] }
0x1244   :  { %5602 = vmatpush.bf16.msra.mxu2 %v6541_v59  ;;  %v6461_v59 = vor.u32 %v6694_v23, %v6458_v24 }
0x1245   :  { %5590 = vmatpush.bf16.msrb.mxu0 %v6521_v4 }
0x1246   :  { %5629 = vmatpush.bf16.msra.mxu1 %v6533_v42  ;;  %v6424_v42 = vld [vmem:[#allocation4] sm:$0xf] }
0x1247   :  { %v6425_v17 = vor.u32 %v6688_v36, %v6424_v42 }
0x1248   :  { %5603 = vmatpush.bf16.msra.mxu2 %v6525_v54  ;;  %v6450_v54 = vld [vmem:[#allocation4 + $0x38] sm:$0xf0] }
0x1249   :  { %5591 = vmatpush.bf16.msrb.mxu0 %v6505_v37  ;;  %v6453_v19 = vor.u32 %v6691_v18, %v6450_v54  ;;  %v6426_v37 = vld [vmem:[#allocation4 + $0x10] sm:$0xf0] }
0x124a   :  { %5630 = vmatpush.bf16.msra.mxu1 %v6517_v48 }
0x124c   :  { %5604 = vmatpush.bf16.msra.mxu2 %v6509_v7  ;;  %v6687_v7 = vld [vmem:[#allocation4 + $0xc] sm:$0xf] }
0x124d   :  { %5592 = vmatpush.bf16.msrb.mxu0 %v6489_v2  ;;  %v6437_v48 = vor.u32 %v6687_v7, %v6434_v29 }
0x12c6   :  { %v5259_v16 = vpop.f32.mrf.mxu2 }
0x12c7   :  { %v5262_v27 = vpack.c.bf16 %v5259_v16, %v5259_v16  ;;  %v6705_v16 = vld [vmem:[#allocation4 + $0x94] sm:$0xf0] }
0x12c9   :  { %5339 = vmatmul.bf16.vlgmr.msrb.gmra.mxu3 %v5262_v27  ;;  %v6493_v27 = vor.u32 %v6702_v6, %v6490_v52 }
0x12cb   :  { %5605 = vmatpush.bf16.msra.mxu2 %v6493_v27 }
0x134c   :  { %v5340_v35 = vpop.f32.mrf.mxu3 }
0x134d   :  { %v5341_v61 = vadd.f32 %v6906_v57, %v5340_v35  ;;  %v6497_v57 = vor.u32 %v6705_v16, %v6496_v11  ;;  %v6703_v35 = vld [vmem:[#allocation4 + $0x8c] sm:$0xf]  ;;  %v6907_v16 = vld [vmem:[%s10029_s19] ss:$0 sm:$0xff] }
0x134f   :  { %v5344_v26 = vmul.f32 %v5341_v61, %v5341_v61  ;;  %5618 = vmatpush.bf16.msra.mxu3 %v6497_v57 }
0x1351   :  { %v5345_v30 = vmul.f32 %v5344_v26, %v5341_v61 }
0x1353   :  { %v5346_v63 = vmul.f32 0.044715, %v5345_v30  ;;  %v6472_v30 = vld [vmem:[#allocation4 + $0x60] sm:$0xf] }
0x1354   :  { %v5342_v28 = vpop.f32.mrf.mxu3 }
0x1355   :  { %v5347_v40 = vadd.f32 %v5346_v63, %v5341_v61  ;;  %v6700_v63 = vld [vmem:[#allocation4 + $0x6c] sm:$0xf0]  ;;  %v6698_v28 = vld [vmem:[#allocation4 + $0x64] sm:$0xf] }
0x1357   :  { %v5348_v53 = vmul.f32 0.7978846, %v5347_v40  ;;  %v6473_v40 = vor.u32 %v6700_v63, %v6472_v30  ;;  %v5419_v63 = vld [vmem:[%s10032_s22] sm:$0xf] }
0x1359   :  { %7211 = vtanh.f32 %v5348_v53  ;;  %v6474_v53 = vld [vmem:[#allocation4 + $0x70] sm:$0xf0]  ;;  %5593 = vmatpush.bf16.msrb.mxu0 %v6473_v40 }
0x135d   :  { %5594 = vmatpush.bf16.msrb.mxu0 %v6457_v5 }
0x135f   :  { %v7212_v62 = vpop.eup %7211 }
0x1360   :  { %v5350_v15 = vadd.f32 1.0, %v7212_v62  ;;  %v6480_v62 = vld [vmem:[#allocation4 + $0x68] sm:$0xf] }
0x1362   :  { %v5351_v51 = vmul.f32 0.5, %v5350_v15  ;;  %v6701_v15 = vld [vmem:[#allocation4 + $0x74] sm:$0xf0] }
0x1364   :  { %v5352_v46 = vmul.f32 %v5351_v51, %v5341_v61  ;;  %v6498_v61 = vld [vmem:[#allocation4 + $0x98] sm:$0xf0]  ;;  %v6477_v51 = vor.u32 %v6698_v28, %v6474_v53  ;;  %v5424_v53 = vperm.slane %v5419_v63, 3 }
0x1365   :  { %v6501_v26 = vor.u32 %v6703_v35, %v6498_v61  ;;  %v6908_v35 = vld [vmem:[%s10030_s20] ss:$0 sm:$0xff] }
0x1366   :  { %v5356_v12 = vsel %vm5355_vm14, %v5352_v46, 0.0  ;;  %5606 = vmatpush.bf16.msra.mxu2 %v6477_v51 }
0x1367   :  { %5357 = vadd.xlane.f32.xlu0 %v5356_v12  ;;  %5631 = vmatpush.bf16.msra.mxu1 %v6501_v26  ;;  %v6699_v12 = vld [vmem:[#allocation4 + $0x6c] sm:$0xf] }
0x1368   :  { %v6485_v60 = vor.u32 %v6699_v12, %v6482_v31 }
0x136a   :  { %5607 = vmatpush.bf16.msra.mxu2 %v6461_v59 }
0x136b   :  { %5632 = vmatpush.bf16.msra.mxu1 %v6485_v60 }
0x136e   :  { %5608 = vmatpush.bf16.msra.mxu2 %v6445_v13 }
0x13da   :  { %v5358_v21 = vpop.xlane.xlu0 %5357 }
0x13db   :  { %v5359_v9 = vmul.f32 %v5358_v21, %v7418_v10  ;;  %v6466_v21 = vld [vmem:[#allocation4 + $0x58] sm:$0xf0] }
0x13dd   :  { %v9990_v39 = vsub.f32 %v5352_v46, %v5359_v9  ;;  %v6481_v46 = vor.u32 %v6701_v15, %v6480_v62  ;;  %v6440_v9 = vld [vmem:[#allocation4 + $0x20] sm:$0xf]  ;;  %v5422_v62 = vperm.slane %v5419_v63, 1  ;;  %v5421_v15 = vperm.slane %v5419_v63, 0 }
0x13df   :  { %v5361_v38 = vmul.f32 %v9990_v39, %v9990_v39  ;;  %5619 = vmatpush.bf16.msra.mxu3 %v6481_v46 }
0x13e1   :  { %v5362_v8 = vsel %vm5355_vm14, %v5361_v38, 0.0  ;;  %v6692_v38 = vld [vmem:[#allocation4 + $0x2c] sm:$0xf0] }
0x13e2   :  { %5363 = vadd.xlane.f32.xlu2 %v5362_v8  ;;  %v6469_v8 = vor.u32 %v6695_v34, %v6466_v21  ;;  %v6441_v22 = vor.u32 %v6692_v38, %v6440_v9 }
0x13e3   :  { %5620 = vmatpush.bf16.msra.mxu3 %v6465_v25 }
0x13e4   :  { %5633 = vmatpush.bf16.msra.mxu1 %v6469_v8  ;;  %5595 = vmatpush.bf16.msrb.mxu0 %v6441_v22 }
0x13e7   :  { %5621 = vmatpush.bf16.msra.mxu3 %v6449_v41 }
0x13e8   :  { %5634 = vmatpush.bf16.msra.mxu1 %v6453_v19  ;;  %5596 = vmatpush.bf16.msrb.mxu0 %v6425_v17 }
0x13eb   :  { %5622 = vmatpush.bf16.msra.mxu3 %v6433_v1 }
0x13ec   :  { %5635 = vmatpush.bf16.msra.mxu1 %v6437_v48 }
0x1455   :  { %v5364_v4 = vpop.xlane.xlu2 %5363 }
0x1456   :  { %v5365_v50 = vmul.f32 %v5364_v4, %v7418_v10  ;;  %v6429_v10 = vor.u32 %v6686_v44, %v6426_v37 }
0x1458   :  { %v5366_v3 = vadd.f32 1e-12, %v5365_v50  ;;  %5609 = vmatpush.bf16.msra.mxu2 %v6429_v10 }
0x145a   :  { %7213 = vrsqrt.f32 %v5366_v3  ;;  %vm5373_vm7 = vweird.f32 %v5366_v3 }
0x1460   :  { %v7214_v45 = vpop.eup %7213 }
0x1461   :  { %v5368_v49 = vmul.f32 %v7214_v45, %v5366_v3  ;;  %vm5374_vm6 = vweird.f32 %v7214_v45 }
0x1462   :  { %vm5375_vm8 = vmor %vm5373_vm7, %vm5374_vm6 }
0x1463   :  { %v5369_v6 = vmul.f32 %v7214_v45, %v5368_v49 }
0x1465   :  { %v5370_v2 = vmul.f32 0.5, %v5369_v6 }
0x1467   :  { %v5371_v52 = vsub.f32 1.5, %v5370_v2 }
0x1469   :  { %v5372_v11 = vmul.f32 %v7214_v45, %v5371_v52 }
0x146b   :  { %v5376_v27 = vsel %vm5375_vm8, %v7214_v45, %v5372_v11 }
0x146c   :  { %v5377_v57 = vmul.f32 %v5376_v27, %v9990_v39  ;;  %v5423_v39 = vperm.slane %v5419_v63, 2 }
0x146e   :  { %v5381_v61 = vmul.f32 %v6907_v16, %v5377_v57 }
0x1470   :  { %v5385_v26 = vadd.f32 %v6908_v35, %v5381_v61 }
0x1472   :  { %v5386_v30 = vpack.c.bf16 %v5385_v26, %v5385_v26 }
0x1474   :  { %5597 = vmatmul.bf16.vlgmr.msrb.gmra.mxu0 %v5386_v30  ;;  %5610 = vmatmul.bf16.vlgmr.msra.gmra.mxu2 %v5386_v30 }
0x1475   :  { %5623 = vmatmul.bf16.vlgmr.msra.gmra.mxu3 %v5386_v30  ;;  %5636 = vmatmul.bf16.vlgmr.msra.gmra.mxu1 %v5386_v30 }
0x14f1   :  { %v5598_v28 = vpop.f32.mrf.mxu0 }
0x14f2   :  { %v5637_v40 = vpop.f32.mrf.mxu1  ;;  %v5599_v14 = vadd.f32 %v5598_v28, %v5421_v15 }
0x14f3   :  { %v5638_v51 = vadd.f32 %v5637_v40, %v5424_v53 }
0x14f5   :  { %v5647_v5 = vrot.slane %v5638_v51, 2 }
0x14f7   :  { %v5611_v46 = vpop.f32.mrf.mxu2 }
0x14f8   :  { %v5612_v12 = vadd.f32 %v5611_v46, %v5422_v62  ;;  %v5624_v31 = vpop.f32.mrf.mxu3 }
0x14f9   :  { %v5625_v47 = vadd.f32 %v5624_v31, %v5423_v39  ;;  %v5600_v60 = vpop.f32.mrf.mxu0 }
0x14fa   :  { %v5645_v23 = vrot.slane %v5612_v12, 6  ;;  %v5639_v24 = vpop.f32.mrf.mxu1 }
0x14fb   :  { %v5646_v59 = vrot.slane %v5625_v47, 4 }
0x14fc   :  { %v5648_v33 = vsel %vm5355_vm14, %v5599_v14, %v5645_v23 }
0x14fd   :  { %v5650_v32 = vsel %vm5649_vm9, %v5646_v59, %v5647_v5 }
0x14fe   :  { %v5652_v34 = vsel %vm5651_vm10, %v5648_v33, %v5650_v32 }
0x14ff   :  { %5654 = vst [vmem:[%s10033_s23] sm:$0xff] %v5652_v34  ;;  %v5613_v25 = vpop.f32.mrf.mxu2 }
0x1500   :  { %v5626_v21 = vpop.f32.mrf.mxu3 }
0x1501   :  { %5659 = vsyncpa [#allocation3], 1 }
0x1502   :  { %5660 = vsyncpa [#allocation5], 1 }

</bundles_post_ra>
